<compile_context>
chip_gen: v5e
topology: v5e:2x2
jax: 0.10.0
libtpu: 0.0.40
codegen_flags: <defaults>
</compile_context>

<pallas_src>
import functools
import numpy as np
import jax
import jax.numpy as jnp
from jax.experimental import pallas as pl
from jax.experimental.pallas import tpu as pltpu


# ----------------------------------------------------------------------------- #
# Fused forward kernel: one invocation handles the whole (stacked) batch
# ----------------------------------------------------------------------------- #
def _cnn3d_fused_kernel(alpha_ref, x_ref, a1_ref, k1_ref, b1_ref,
                        a2_ref, k2_ref, b2_ref,
                        wf1_ref, m1_ref, sel_ref, bf1_ref, wf2_ref, bf2_ref,
                        out_ref, *, P1, P2, LP):
    f32, bf16 = jnp.float32, jnp.bfloat16
    al1, al2, al3 = alpha_ref[0], alpha_ref[1], alpha_ref[2]   # PReLU alphas (SMEM)

    # ---- conv1 tap rows: 4 tiny block-diag bf16 selections, lane-concatenated ----
    xb = x_ref[...].astype(bf16)                                         # (B*W, H*D)
    rows1 = jnp.concatenate(
        [jnp.dot(a1_ref[s], xb, preferred_element_type=f32) for s in range(4)],
        axis=1).astype(bf16)                                             # (B*W2, 4*H*D)

    # ---- conv1 GEMM (taps concatenated into K) + bias + PReLU + pool1,
    #      chunked over output lanes (2 pool blocks / 512 lanes per chunk) ----
    n_chunks = k1_ref.shape[1] // (2 * P1)
    p1 = None
    for c in range(n_chunks):
        lo = c * 2 * P1
        yc = jnp.dot(rows1, k1_ref[:, lo:lo + 2 * P1],
                     preferred_element_type=f32) + b1_ref[:, lo:lo + 2 * P1]
        yc = jnp.where(yc >= 0.0, yc, al1 * yc)
        mc = jnp.maximum(yc[:, 0:P1], yc[:, P1:2 * P1])
        p1 = mc if p1 is None else jnp.maximum(p1, mc)                   # (B*W2, P1)

    # ---- conv2: same structure, one K = 4*P1 GEMM ----
    p1b = p1.astype(bf16)
    rows2 = jnp.concatenate(
        [jnp.dot(a2_ref[s], p1b, preferred_element_type=f32) for s in range(4)],
        axis=1).astype(bf16)                                             # (B*W4, 4*P1)
    y2 = jnp.dot(rows2, k2_ref[...], preferred_element_type=f32) + b2_ref[...]
    y2 = jnp.where(y2 >= 0.0, y2, al2 * y2)                              # (B*W4, 8*P2)

    # ---- maxpool2: max over the 8 (pw, ph, pd) pool-window lane blocks ----
    p2 = y2[:, 0:P2]
    for m in range(1, 8):
        p2 = jnp.maximum(p2, y2[:, m * P2:(m + 1) * P2])                 # (B*W4, P2)

    # ---- fc1 as one GEMM (PyTorch channel-major flatten folded into wf1 at prep time).
    # q[b*W4+r, r'*LP+o] pairs pooled row (b, r) with the fc1 weights of flatten-chunk r';
    # the 0/1 mask keeps r'==r and the tiny `sel` matmul sums the W4 rows of each sample. --
    q = jnp.dot(p2, wf1_ref[...], preferred_element_type=f32) * m1_ref[...]   # (B*W4, W4*LP)
    W4 = q.shape[1] // LP
    t = q[:, 0:LP]
    for r in range(1, W4):
        t = t + q[:, r * LP:(r + 1) * LP]                                # (B*W4, LP)
    h = jnp.dot(sel_ref[...], t, preferred_element_type=f32) + bf1_ref[...]   # (B, LP)
    h = jnp.where(h >= 0.0, h, al3 * h)
    # TODO(synk): nn.Dropout is identity here (eval mode); PyTorch training-mode RNG
    # masks are not reproduced.

    # ---- fc2 (weights/bias lane-padded to LP=128 -> lane-dense final store) ----
    out_ref[...] = jnp.dot(h, wf2_ref[...], preferred_element_type=f32) + bf2_ref[...]


# ----------------------------------------------------------------------------- #
# Wrapper
# ----------------------------------------------------------------------------- #
def cnn3d_forward(x, kp):
    """x: (B, W, H, D) float32. Returns (B, 128) logits; only the first num_classes
    lanes are meaningful (fc2 output is lane-padded)."""
    B, W, H, D = x.shape
    xr = x.reshape(B * W, H * D).astype(jnp.float32)
    P1 = kp["k2"].shape[0] // 4
    P2 = kp["k2"].shape[1] // 8
    LP = kp["wf2"].shape[1]

    kernel = functools.partial(_cnn3d_fused_kernel, P1=P1, P2=P2, LP=LP)
    vmem = pl.BlockSpec(memory_space=pltpu.MemorySpace.VMEM)
    smem = pl.BlockSpec(memory_space=pltpu.MemorySpace.SMEM)

    return pl.pallas_call(
        kernel,
        out_shape=jax.ShapeDtypeStruct((B, LP), jnp.float32),
        in_specs=[smem] + [vmem] * 13,
        out_specs=vmem,
        compiler_params=pltpu.CompilerParams(vmem_limit_bytes=32 * 1024 * 1024),
    )(kp["alphas"], xr, kp["a1"], kp["k1"], kp["b1"],
      kp["a2"], kp["k2"], kp["b2"],
      kp["wf1w"], kp["mask"], kp["sel"], kp["bf1"], kp["wf2"], kp["bf2"])


# ----------------------------------------------------------------------------- #
# One-time parameter preparation (pure host-side layout work, zero runtime cost)
# ----------------------------------------------------------------------------- #
def _shift_select(batch, n_out, n_in):
    """A[s] @ v puts v[b*n_in + 2*r + shift_s] into row b*n_out + r (zero when OOB);
    block-diagonal over the stacked batch.  Shifts s index 0..3 == -1..+2."""
    A = np.zeros((4, batch * n_out, batch * n_in), np.float32)
    for si, s in enumerate((-1, 0, 1, 2)):
        for b in range(batch):
            for r in range(n_out):
                c = 2 * r + s
                if 0 <= c < n_in:
                    A[si, b * n_out + r, b * n_in + c] = 1.0
    return A


def _conv_pool_taps(w, h_in, d_in):
    """Dense per-W-tap GEMM matrices for a 3x3x3/pad-1 Conv3d whose output lanes are
    ordered (pw, ph, pd, h//2, d//2, c_out), so 2x2x2 max-pooling becomes a max over
    8 aligned lane blocks.  w: PyTorch Conv3d weight (C_out, C_in, kw, kh, kd);
    h/d zero-padding is baked into the matrices, W zero-padding into the A matrices."""
    w = np.asarray(w, np.float32)
    c_out, c_in = w.shape[0], w.shape[1]
    h2, d2 = h_in // 2, d_in // 2
    K = np.zeros((4, h_in * d_in * c_in, 8 * h2 * d2 * c_out), np.float32)
    wt = np.transpose(w, (1, 0, 2, 3, 4))                     # (C_in, C_out, kw, kh, kd)
    for si, s in enumerate((-1, 0, 1, 2)):
        for pw in range(2):
            kw = s - pw + 1
            if not 0 <= kw <= 2:
                continue
            for ph in range(2):
                for pd in range(2):
                    blk = (pw * 2 + ph) * 2 + pd
                    for ho2 in range(h2):
                        for do2 in range(d2):
                            h_o, d_o = 2 * ho2 + ph, 2 * do2 + pd
                            lo = (blk * h2 * d2 + ho2 * d2 + do2) * c_out
                            for kh in range(3):
                                h_i = h_o + kh - 1
                                if not 0 <= h_i < h_in:
                                    continue
                                for kd in range(3):
                                    d_i = d_o + kd - 1
                                    if not 0 <= d_i < d_in:
                                        continue
                                    li = (h_i * d_in + d_i) * c_in
                                    K[si, li:li + c_in, lo:lo + c_out] = wt[:, :, kw, kh, kd]
    return K


def prepare_kernel_params(tp, B, W, H, D, lane_pad=128):
    """Convert PyTorch-layout parameters into the fused kernel's GEMM operands."""
    C1 = tp["conv1_w"].shape[0]
    C2 = tp["conv2_w"].shape[0]
    H3 = tp["fc1_w"].shape[0]
    ncls = tp["fc2_w"].shape[0]
    W2, W4 = W // 2, W // 4
    H2, D2, H4, D4 = H // 2, D // 2, H // 4, D // 4
    P1, P2 = H2 * D2 * C1, H4 * D4 * C2

    # conv taps: (4, K_in, L) -> K-concat (4*K_in, L)
    k1 = _conv_pool_taps(tp["conv1_w"], H, D).reshape(4 * H * D, 8 * P1)
    k2 = _conv_pool_taps(tp["conv2_w"], H2, D2).reshape(4 * P1, 8 * P2)
    b1 = np.tile(np.asarray(tp["conv1_b"], np.float32), 8 * H2 * D2)[None, :]
    b2 = np.tile(np.asarray(tp["conv2_b"], np.float32), 8 * H4 * D4)[None, :]

    # fc1: fold PyTorch's channel-major flatten (B, C2, W4, H4, D4).view(B, -1) into a
    # lane-padded "wide" weight: column block r (width lane_pad) holds the weights for
    # flatten-chunk w4 == r.  mask keeps only the matching (row w4, column block) pairs;
    # sel sums the W4 rows belonging to each sample.
    wf1 = np.asarray(tp["fc1_w"], np.float32).reshape(H3, C2, W4, H4, D4)
    wf1 = np.transpose(wf1, (2, 3, 4, 1, 0)).reshape(W4, P2, H3)
    wf1w = np.zeros((P2, W4 * lane_pad), np.float32)
    mask = np.zeros((B * W4, W4 * lane_pad), np.float32)
    for r in range(W4):
        wf1w[:, r * lane_pad:r * lane_pad + H3] = wf1[r]
        mask[r::W4, r * lane_pad:(r + 1) * lane_pad] = 1.0
    sel = np.zeros((B, B * W4), np.float32)
    for b in range(B):
        sel[b, b * W4:(b + 1) * W4] = 1.0

    bf1 = np.zeros((1, lane_pad), np.float32)
    bf1[0, :H3] = np.asarray(tp["fc1_b"], np.float32)
    wf2 = np.zeros((lane_pad, lane_pad), np.float32)
    wf2[:H3, :ncls] = np.asarray(tp["fc2_w"], np.float32).T
    bf2 = np.zeros((1, lane_pad), np.float32)
    bf2[0, :ncls] = np.asarray(tp["fc2_b"], np.float32)

    return {
        "alphas": jnp.array([float(tp["alpha1"]), float(tp["alpha2"]),
                             float(tp["alpha3"])], jnp.float32),
        "a1": jnp.asarray(_shift_select(B, W2, W), jnp.bfloat16),
        "k1": jnp.asarray(k1, jnp.bfloat16),
        "b1": jnp.asarray(b1),
        "a2": jnp.asarray(_shift_select(B, W4, W2), jnp.bfloat16),
        "k2": jnp.asarray(k2, jnp.bfloat16),
        "b2": jnp.asarray(b2),
        "wf1w": jnp.asarray(wf1w),
        "mask": jnp.asarray(mask),
        "sel": jnp.asarray(sel),
        "bf1": jnp.asarray(bf1),
        "wf2": jnp.asarray(wf2),
        "bf2": jnp.asarray(bf2),
    }


# ----------------------------------------------------------------------------- #
# Independent pure-JAX reference (lax.conv on the PyTorch-layout weights)
# ----------------------------------------------------------------------------- #
def reference_forward(x, tp):
    def prelu(v, a):
        return jnp.where(v >= 0, v, a * v)

    def pool(v):                                   # (B, C, W, H, D) 2x2x2 max-pool
        b, c, w, h, d = v.shape
        return v.reshape(b, c, w // 2, 2, h // 2, 2, d // 2, 2).max(axis=(3, 5, 7))

    dn = ("NCDHW", "OIDHW", "NCDHW")
    pad = ((1, 1), (1, 1), (1, 1))
    xb = x[:, None].astype(jnp.float32)
    y1 = jax.lax.conv_general_dilated(xb, tp["conv1_w"], (1, 1, 1), pad,
                                      dimension_numbers=dn)
    p1 = pool(prelu(y1 + tp["conv1_b"][None, :, None, None, None], tp["alpha1"]))
    y2 = jax.lax.conv_general_dilated(p1, tp["conv2_w"], (1, 1, 1), pad,
                                      dimension_numbers=dn)
    p2 = pool(prelu(y2 + tp["conv2_b"][None, :, None, None, None], tp["alpha2"]))
    flat = p2.reshape(p2.shape[0], -1)
    h = prelu(flat @ tp["fc1_w"].T + tp["fc1_b"], tp["alpha3"])
    return h @ tp["fc2_w"].T + tp["fc2_b"]


# ----------------------------------------------------------------------------- #
# Driver
# ----------------------------------------------------------------------------- #
if __name__ == "__main__":
    # Small shapes consistent with the module (w, h, d divisible by 4):
    # w=h=16, d=8, hiddim1=8, hiddim2=16, hiddim3=32, num_input_channels=1, classes=1.
    B, W, H, D = 2, 16, 16, 8
    C1, C2, C3, NCLS = 8, 16, 32, 1
    FLAT = C2 * (W // 4) * (H // 4) * (D // 4)

    key = jax.random.PRNGKey(0)
    ks = jax.random.split(key, 9)
    x = jax.random.normal(ks[0], (B, W, H, D), dtype=jnp.float32)

    tp = {  # PyTorch-layout parameters
        "conv1_w": 0.05 * jax.random.normal(ks[1], (C1, 1, 3, 3, 3), jnp.float32),
        "conv1_b": 0.05 * jax.random.normal(ks[2], (C1,), jnp.float32),
        "alpha1": 0.25,                                   # nn.PReLU default init
        "conv2_w": 0.05 * jax.random.normal(ks[3], (C2, C1, 3, 3, 3), jnp.float32),
        "conv2_b": 0.05 * jax.random.normal(ks[4], (C2,), jnp.float32),
        "alpha2": 0.25,
        "fc1_w": 0.05 * jax.random.normal(ks[5], (C3, FLAT), jnp.float32),
        "fc1_b": 0.05 * jax.random.normal(ks[6], (C3,), jnp.float32),
        "alpha3": 0.25,
        "fc2_w": 0.05 * jax.random.normal(ks[7], (NCLS, C3), jnp.float32),
        "fc2_b": 0.05 * jax.random.normal(ks[8], (NCLS,), jnp.float32),
    }

    kp = prepare_kernel_params(tp, B=B, W=W, H=H, D=D)

    fwd = jax.jit(cnn3d_forward)
    out_full = jax.block_until_ready(fwd(x, kp))
    out = np.asarray(out_full[:, :NCLS])
    assert out.shape == (B, NCLS), out.shape

    ref = np.asarray(reference_forward(x, tp))
    assert np.allclose(out, ref, rtol=2e-2, atol=2e-2), (out, ref)

    print("KERNEL_OK")
</pallas_src>

<mosaic_0001>
module attributes {stable_mosaic.version = 11 : i64} {
  func.func @_cnn3d_fused_kernel(%arg0: memref<3xf32, #tpu.memory_space<smem>>, %arg1: memref<32x128xf32, #tpu.memory_space<vmem>>, %arg2: memref<4x16x32xbf16, #tpu.memory_space<vmem>>, %arg3: memref<512x2048xbf16, #tpu.memory_space<vmem>>, %arg4: memref<1x2048xf32, #tpu.memory_space<vmem>>, %arg5: memref<4x8x16xbf16, #tpu.memory_space<vmem>>, %arg6: memref<1024x1024xbf16, #tpu.memory_space<vmem>>, %arg7: memref<1x1024xf32, #tpu.memory_space<vmem>>, %arg8: memref<128x512xf32, #tpu.memory_space<vmem>>, %arg9: memref<8x512xf32, #tpu.memory_space<vmem>>, %arg10: memref<2x8xf32, #tpu.memory_space<vmem>>, %arg11: memref<1x128xf32, #tpu.memory_space<vmem>>, %arg12: memref<128x128xf32, #tpu.memory_space<vmem>>, %arg13: memref<1x128xf32, #tpu.memory_space<vmem>>, %arg14: memref<2x128xf32, #tpu.memory_space<vmem>>) attributes {dimension_semantics = [], scalar_prefetch = 0 : i64, scratch_operands = 0 : i64, tpu.core_type = #tpu.core_type<tc>} {
    %c0 = arith.constant 0 : index
    %0 = memref.load %arg0[%c0] : memref<3xf32, #tpu.memory_space<smem>>
    %c1 = arith.constant 1 : index
    %1 = memref.load %arg0[%c1] : memref<3xf32, #tpu.memory_space<smem>>
    %c2 = arith.constant 2 : index
    %2 = memref.load %arg0[%c2] : memref<3xf32, #tpu.memory_space<smem>>
    %c0_0 = arith.constant 0 : index
    %c0_1 = arith.constant 0 : index
    %3 = vector.load %arg1[%c0_0, %c0_1] : memref<32x128xf32, #tpu.memory_space<vmem>>, vector<32x128xf32>
    %4 = arith.truncf %3 : vector<32x128xf32> to vector<32x128xbf16>
    %c0_2 = arith.constant 0 : index
    %c0_3 = arith.constant 0 : index
    %c0_4 = arith.constant 0 : index
    %5 = vector.load %arg2[%c0_2, %c0_3, %c0_4] : memref<4x16x32xbf16, #tpu.memory_space<vmem>>, vector<1x16x32xbf16>
    %6 = vector.shape_cast %5 : vector<1x16x32xbf16> to vector<16x32xbf16>
    %cst = arith.constant dense<0.000000e+00> : vector<16x128xf32>
    %7 = tpu.matmul %6, %4, %cst {dimension_numbers = #tpu.dot_dimension_numbers<[1], [0], [0], [1], [0, 0, 1, 1], [], []>} : vector<16x32xbf16>, vector<32x128xbf16>, vector<16x128xf32> -> vector<16x128xf32>
    %c1_5 = arith.constant 1 : index
    %c0_6 = arith.constant 0 : index
    %c0_7 = arith.constant 0 : index
    %8 = vector.load %arg2[%c1_5, %c0_6, %c0_7] : memref<4x16x32xbf16, #tpu.memory_space<vmem>>, vector<1x16x32xbf16>
    %9 = vector.shape_cast %8 : vector<1x16x32xbf16> to vector<16x32xbf16>
    %cst_8 = arith.constant dense<0.000000e+00> : vector<16x128xf32>
    %10 = tpu.matmul %9, %4, %cst_8 {dimension_numbers = #tpu.dot_dimension_numbers<[1], [0], [0], [1], [0, 0, 1, 1], [], []>} : vector<16x32xbf16>, vector<32x128xbf16>, vector<16x128xf32> -> vector<16x128xf32>
    %c2_9 = arith.constant 2 : index
    %c0_10 = arith.constant 0 : index
    %c0_11 = arith.constant 0 : index
    %11 = vector.load %arg2[%c2_9, %c0_10, %c0_11] : memref<4x16x32xbf16, #tpu.memory_space<vmem>>, vector<1x16x32xbf16>
    %12 = vector.shape_cast %11 : vector<1x16x32xbf16> to vector<16x32xbf16>
    %cst_12 = arith.constant dense<0.000000e+00> : vector<16x128xf32>
    %13 = tpu.matmul %12, %4, %cst_12 {dimension_numbers = #tpu.dot_dimension_numbers<[1], [0], [0], [1], [0, 0, 1, 1], [], []>} : vector<16x32xbf16>, vector<32x128xbf16>, vector<16x128xf32> -> vector<16x128xf32>
    %c3 = arith.constant 3 : index
    %c0_13 = arith.constant 0 : index
    %c0_14 = arith.constant 0 : index
    %14 = vector.load %arg2[%c3, %c0_13, %c0_14] : memref<4x16x32xbf16, #tpu.memory_space<vmem>>, vector<1x16x32xbf16>
    %15 = vector.shape_cast %14 : vector<1x16x32xbf16> to vector<16x32xbf16>
    %cst_15 = arith.constant dense<0.000000e+00> : vector<16x128xf32>
    %16 = tpu.matmul %15, %4, %cst_15 {dimension_numbers = #tpu.dot_dimension_numbers<[1], [0], [0], [1], [0, 0, 1, 1], [], []>} : vector<16x32xbf16>, vector<32x128xbf16>, vector<16x128xf32> -> vector<16x128xf32>
    %17 = tpu.concatenate %7, %10, %13, %16 in 1 : vector<16x128xf32>, vector<16x128xf32>, vector<16x128xf32>, vector<16x128xf32> -> vector<16x512xf32>
    %18 = arith.truncf %17 : vector<16x512xf32> to vector<16x512xbf16>
    %c0_16 = arith.constant 0 : index
    %c0_17 = arith.constant 0 : index
    %19 = vector.load %arg3[%c0_16, %c0_17] : memref<512x2048xbf16, #tpu.memory_space<vmem>>, vector<512x512xbf16>
    %cst_18 = arith.constant dense<0.000000e+00> : vector<16x512xf32>
    %20 = tpu.matmul %18, %19, %cst_18 {dimension_numbers = #tpu.dot_dimension_numbers<[1], [0], [0], [1], [0, 0, 1, 1], [], []>} : vector<16x512xbf16>, vector<512x512xbf16>, vector<16x512xf32> -> vector<16x512xf32>
    %c0_19 = arith.constant 0 : index
    %c0_20 = arith.constant 0 : index
    %21 = vector.load %arg4[%c0_19, %c0_20] : memref<1x2048xf32, #tpu.memory_space<vmem>>, vector<1x512xf32>
    %22 = vector.broadcast %21 : vector<1x512xf32> to vector<16x512xf32>
    %23 = arith.addf %20, %22 : vector<16x512xf32>
    %cst_21 = arith.constant 0.000000e+00 : f32
    %24 = vector.broadcast %cst_21 : f32 to vector<16x512xf32>
    %25 = arith.cmpf oge, %23, %24 : vector<16x512xf32>
    %26 = vector.broadcast %0 : f32 to vector<16x512xf32>
    %27 = arith.mulf %26, %23 : vector<16x512xf32>
    %28 = arith.select %25, %23, %27 : vector<16x512xi1>, vector<16x512xf32>
    %29 = vector.extract_strided_slice %28 {offsets = [0, 0], sizes = [16, 256], strides = [1, 1]} : vector<16x512xf32> to vector<16x256xf32>
    %30 = vector.extract_strided_slice %28 {offsets = [0, 256], sizes = [16, 256], strides = [1, 1]} : vector<16x512xf32> to vector<16x256xf32>
    %31 = arith.maximumf %29, %30 : vector<16x256xf32>
    %c0_22 = arith.constant 0 : index
    %c512 = arith.constant 512 : index
    %32 = vector.load %arg3[%c0_22, %c512] : memref<512x2048xbf16, #tpu.memory_space<vmem>>, vector<512x512xbf16>
    %cst_23 = arith.constant dense<0.000000e+00> : vector<16x512xf32>
    %33 = tpu.matmul %18, %32, %cst_23 {dimension_numbers = #tpu.dot_dimension_numbers<[1], [0], [0], [1], [0, 0, 1, 1], [], []>} : vector<16x512xbf16>, vector<512x512xbf16>, vector<16x512xf32> -> vector<16x512xf32>
    %c0_24 = arith.constant 0 : index
    %c512_25 = arith.constant 512 : index
    %34 = vector.load %arg4[%c0_24, %c512_25] : memref<1x2048xf32, #tpu.memory_space<vmem>>, vector<1x512xf32>
    %35 = vector.broadcast %34 : vector<1x512xf32> to vector<16x512xf32>
    %36 = arith.addf %33, %35 : vector<16x512xf32>
    %cst_26 = arith.constant 0.000000e+00 : f32
    %37 = vector.broadcast %cst_26 : f32 to vector<16x512xf32>
    %38 = arith.cmpf oge, %36, %37 : vector<16x512xf32>
    %39 = vector.broadcast %0 : f32 to vector<16x512xf32>
    %40 = arith.mulf %39, %36 : vector<16x512xf32>
    %41 = arith.select %38, %36, %40 : vector<16x512xi1>, vector<16x512xf32>
    %42 = vector.extract_strided_slice %41 {offsets = [0, 0], sizes = [16, 256], strides = [1, 1]} : vector<16x512xf32> to vector<16x256xf32>
    %43 = vector.extract_strided_slice %41 {offsets = [0, 256], sizes = [16, 256], strides = [1, 1]} : vector<16x512xf32> to vector<16x256xf32>
    %44 = arith.maximumf %42, %43 : vector<16x256xf32>
    %45 = arith.maximumf %31, %44 : vector<16x256xf32>
    %c0_27 = arith.constant 0 : index
    %c1024 = arith.constant 1024 : index
    %46 = vector.load %arg3[%c0_27, %c1024] : memref<512x2048xbf16, #tpu.memory_space<vmem>>, vector<512x512xbf16>
    %cst_28 = arith.constant dense<0.000000e+00> : vector<16x512xf32>
    %47 = tpu.matmul %18, %46, %cst_28 {dimension_numbers = #tpu.dot_dimension_numbers<[1], [0], [0], [1], [0, 0, 1, 1], [], []>} : vector<16x512xbf16>, vector<512x512xbf16>, vector<16x512xf32> -> vector<16x512xf32>
    %c0_29 = arith.constant 0 : index
    %c1024_30 = arith.constant 1024 : index
    %48 = vector.load %arg4[%c0_29, %c1024_30] : memref<1x2048xf32, #tpu.memory_space<vmem>>, vector<1x512xf32>
    %49 = vector.broadcast %48 : vector<1x512xf32> to vector<16x512xf32>
    %50 = arith.addf %47, %49 : vector<16x512xf32>
    %cst_31 = arith.constant 0.000000e+00 : f32
    %51 = vector.broadcast %cst_31 : f32 to vector<16x512xf32>
    %52 = arith.cmpf oge, %50, %51 : vector<16x512xf32>
    %53 = vector.broadcast %0 : f32 to vector<16x512xf32>
    %54 = arith.mulf %53, %50 : vector<16x512xf32>
    %55 = arith.select %52, %50, %54 : vector<16x512xi1>, vector<16x512xf32>
    %56 = vector.extract_strided_slice %55 {offsets = [0, 0], sizes = [16, 256], strides = [1, 1]} : vector<16x512xf32> to vector<16x256xf32>
    %57 = vector.extract_strided_slice %55 {offsets = [0, 256], sizes = [16, 256], strides = [1, 1]} : vector<16x512xf32> to vector<16x256xf32>
    %58 = arith.maximumf %56, %57 : vector<16x256xf32>
    %59 = arith.maximumf %45, %58 : vector<16x256xf32>
    %c0_32 = arith.constant 0 : index
    %c1536 = arith.constant 1536 : index
    %60 = vector.load %arg3[%c0_32, %c1536] : memref<512x2048xbf16, #tpu.memory_space<vmem>>, vector<512x512xbf16>
    %cst_33 = arith.constant dense<0.000000e+00> : vector<16x512xf32>
    %61 = tpu.matmul %18, %60, %cst_33 {dimension_numbers = #tpu.dot_dimension_numbers<[1], [0], [0], [1], [0, 0, 1, 1], [], []>} : vector<16x512xbf16>, vector<512x512xbf16>, vector<16x512xf32> -> vector<16x512xf32>
    %c0_34 = arith.constant 0 : index
    %c1536_35 = arith.constant 1536 : index
    %62 = vector.load %arg4[%c0_34, %c1536_35] : memref<1x2048xf32, #tpu.memory_space<vmem>>, vector<1x512xf32>
    %63 = vector.broadcast %62 : vector<1x512xf32> to vector<16x512xf32>
    %64 = arith.addf %61, %63 : vector<16x512xf32>
    %cst_36 = arith.constant 0.000000e+00 : f32
    %65 = vector.broadcast %cst_36 : f32 to vector<16x512xf32>
    %66 = arith.cmpf oge, %64, %65 : vector<16x512xf32>
    %67 = vector.broadcast %0 : f32 to vector<16x512xf32>
    %68 = arith.mulf %67, %64 : vector<16x512xf32>
    %69 = arith.select %66, %64, %68 : vector<16x512xi1>, vector<16x512xf32>
    %70 = vector.extract_strided_slice %69 {offsets = [0, 0], sizes = [16, 256], strides = [1, 1]} : vector<16x512xf32> to vector<16x256xf32>
    %71 = vector.extract_strided_slice %69 {offsets = [0, 256], sizes = [16, 256], strides = [1, 1]} : vector<16x512xf32> to vector<16x256xf32>
    %72 = arith.maximumf %70, %71 : vector<16x256xf32>
    %73 = arith.maximumf %59, %72 : vector<16x256xf32>
    %74 = arith.truncf %73 : vector<16x256xf32> to vector<16x256xbf16>
    %c0_37 = arith.constant 0 : index
    %c0_38 = arith.constant 0 : index
    %c0_39 = arith.constant 0 : index
    %75 = vector.load %arg5[%c0_37, %c0_38, %c0_39] : memref<4x8x16xbf16, #tpu.memory_space<vmem>>, vector<1x8x16xbf16>
    %76 = vector.shape_cast %75 : vector<1x8x16xbf16> to vector<8x16xbf16>
    %cst_40 = arith.constant dense<0.000000e+00> : vector<8x256xf32>
    %77 = tpu.matmul %76, %74, %cst_40 {dimension_numbers = #tpu.dot_dimension_numbers<[1], [0], [0], [1], [0, 0, 1, 1], [], []>} : vector<8x16xbf16>, vector<16x256xbf16>, vector<8x256xf32> -> vector<8x256xf32>
    %c1_41 = arith.constant 1 : index
    %c0_42 = arith.constant 0 : index
    %c0_43 = arith.constant 0 : index
    %78 = vector.load %arg5[%c1_41, %c0_42, %c0_43] : memref<4x8x16xbf16, #tpu.memory_space<vmem>>, vector<1x8x16xbf16>
    %79 = vector.shape_cast %78 : vector<1x8x16xbf16> to vector<8x16xbf16>
    %cst_44 = arith.constant dense<0.000000e+00> : vector<8x256xf32>
    %80 = tpu.matmul %79, %74, %cst_44 {dimension_numbers = #tpu.dot_dimension_numbers<[1], [0], [0], [1], [0, 0, 1, 1], [], []>} : vector<8x16xbf16>, vector<16x256xbf16>, vector<8x256xf32> -> vector<8x256xf32>
    %c2_45 = arith.constant 2 : index
    %c0_46 = arith.constant 0 : index
    %c0_47 = arith.constant 0 : index
    %81 = vector.load %arg5[%c2_45, %c0_46, %c0_47] : memref<4x8x16xbf16, #tpu.memory_space<vmem>>, vector<1x8x16xbf16>
    %82 = vector.shape_cast %81 : vector<1x8x16xbf16> to vector<8x16xbf16>
    %cst_48 = arith.constant dense<0.000000e+00> : vector<8x256xf32>
    %83 = tpu.matmul %82, %74, %cst_48 {dimension_numbers = #tpu.dot_dimension_numbers<[1], [0], [0], [1], [0, 0, 1, 1], [], []>} : vector<8x16xbf16>, vector<16x256xbf16>, vector<8x256xf32> -> vector<8x256xf32>
    %c3_49 = arith.constant 3 : index
    %c0_50 = arith.constant 0 : index
    %c0_51 = arith.constant 0 : index
    %84 = vector.load %arg5[%c3_49, %c0_50, %c0_51] : memref<4x8x16xbf16, #tpu.memory_space<vmem>>, vector<1x8x16xbf16>
    %85 = vector.shape_cast %84 : vector<1x8x16xbf16> to vector<8x16xbf16>
    %cst_52 = arith.constant dense<0.000000e+00> : vector<8x256xf32>
    %86 = tpu.matmul %85, %74, %cst_52 {dimension_numbers = #tpu.dot_dimension_numbers<[1], [0], [0], [1], [0, 0, 1, 1], [], []>} : vector<8x16xbf16>, vector<16x256xbf16>, vector<8x256xf32> -> vector<8x256xf32>
    %87 = tpu.concatenate %77, %80, %83, %86 in 1 : vector<8x256xf32>, vector<8x256xf32>, vector<8x256xf32>, vector<8x256xf32> -> vector<8x1024xf32>
    %88 = arith.truncf %87 : vector<8x1024xf32> to vector<8x1024xbf16>
    %c0_53 = arith.constant 0 : index
    %c0_54 = arith.constant 0 : index
    %89 = vector.load %arg6[%c0_53, %c0_54] : memref<1024x1024xbf16, #tpu.memory_space<vmem>>, vector<1024x1024xbf16>
    %cst_55 = arith.constant dense<0.000000e+00> : vector<8x1024xf32>
    %90 = tpu.matmul %88, %89, %cst_55 {dimension_numbers = #tpu.dot_dimension_numbers<[1], [0], [0], [1], [0, 0, 1, 1], [], []>} : vector<8x1024xbf16>, vector<1024x1024xbf16>, vector<8x1024xf32> -> vector<8x1024xf32>
    %c0_56 = arith.constant 0 : index
    %c0_57 = arith.constant 0 : index
    %91 = vector.load %arg7[%c0_56, %c0_57] : memref<1x1024xf32, #tpu.memory_space<vmem>>, vector<1x1024xf32>
    %92 = vector.broadcast %91 : vector<1x1024xf32> to vector<8x1024xf32>
    %93 = arith.addf %90, %92 : vector<8x1024xf32>
    %cst_58 = arith.constant 0.000000e+00 : f32
    %94 = vector.broadcast %cst_58 : f32 to vector<8x1024xf32>
    %95 = arith.cmpf oge, %93, %94 : vector<8x1024xf32>
    %96 = vector.broadcast %1 : f32 to vector<8x1024xf32>
    %97 = arith.mulf %96, %93 : vector<8x1024xf32>
    %98 = arith.select %95, %93, %97 : vector<8x1024xi1>, vector<8x1024xf32>
    %99 = vector.extract_strided_slice %98 {offsets = [0, 0], sizes = [8, 128], strides = [1, 1]} : vector<8x1024xf32> to vector<8x128xf32>
    %100 = vector.extract_strided_slice %98 {offsets = [0, 128], sizes = [8, 128], strides = [1, 1]} : vector<8x1024xf32> to vector<8x128xf32>
    %101 = arith.maximumf %99, %100 : vector<8x128xf32>
    %102 = vector.extract_strided_slice %98 {offsets = [0, 256], sizes = [8, 128], strides = [1, 1]} : vector<8x1024xf32> to vector<8x128xf32>
    %103 = arith.maximumf %101, %102 : vector<8x128xf32>
    %104 = vector.extract_strided_slice %98 {offsets = [0, 384], sizes = [8, 128], strides = [1, 1]} : vector<8x1024xf32> to vector<8x128xf32>
    %105 = arith.maximumf %103, %104 : vector<8x128xf32>
    %106 = vector.extract_strided_slice %98 {offsets = [0, 512], sizes = [8, 128], strides = [1, 1]} : vector<8x1024xf32> to vector<8x128xf32>
    %107 = arith.maximumf %105, %106 : vector<8x128xf32>
    %108 = vector.extract_strided_slice %98 {offsets = [0, 640], sizes = [8, 128], strides = [1, 1]} : vector<8x1024xf32> to vector<8x128xf32>
    %109 = arith.maximumf %107, %108 : vector<8x128xf32>
    %110 = vector.extract_strided_slice %98 {offsets = [0, 768], sizes = [8, 128], strides = [1, 1]} : vector<8x1024xf32> to vector<8x128xf32>
    %111 = arith.maximumf %109, %110 : vector<8x128xf32>
    %112 = vector.extract_strided_slice %98 {offsets = [0, 896], sizes = [8, 128], strides = [1, 1]} : vector<8x1024xf32> to vector<8x128xf32>
    %113 = arith.maximumf %111, %112 : vector<8x128xf32>
    %c0_59 = arith.constant 0 : index
    %c0_60 = arith.constant 0 : index
    %114 = vector.load %arg8[%c0_59, %c0_60] : memref<128x512xf32, #tpu.memory_space<vmem>>, vector<128x512xf32>
    %cst_61 = arith.constant dense<0.000000e+00> : vector<8x512xf32>
    %115 = tpu.matmul %113, %114, %cst_61 {dimension_numbers = #tpu.dot_dimension_numbers<[1], [0], [0], [1], [0, 0, 1, 1], [], []>} : vector<8x128xf32>, vector<128x512xf32>, vector<8x512xf32> -> vector<8x512xf32>
    %c0_62 = arith.constant 0 : index
    %c0_63 = arith.constant 0 : index
    %116 = vector.load %arg9[%c0_62, %c0_63] : memref<8x512xf32, #tpu.memory_space<vmem>>, vector<8x512xf32>
    %117 = arith.mulf %115, %116 : vector<8x512xf32>
    %118 = vector.extract_strided_slice %117 {offsets = [0, 0], sizes = [8, 128], strides = [1, 1]} : vector<8x512xf32> to vector<8x128xf32>
    %119 = vector.extract_strided_slice %117 {offsets = [0, 128], sizes = [8, 128], strides = [1, 1]} : vector<8x512xf32> to vector<8x128xf32>
    %120 = arith.addf %118, %119 : vector<8x128xf32>
    %121 = vector.extract_strided_slice %117 {offsets = [0, 256], sizes = [8, 128], strides = [1, 1]} : vector<8x512xf32> to vector<8x128xf32>
    %122 = arith.addf %120, %121 : vector<8x128xf32>
    %123 = vector.extract_strided_slice %117 {offsets = [0, 384], sizes = [8, 128], strides = [1, 1]} : vector<8x512xf32> to vector<8x128xf32>
    %124 = arith.addf %122, %123 : vector<8x128xf32>
    %c0_64 = arith.constant 0 : index
    %c0_65 = arith.constant 0 : index
    %125 = vector.load %arg10[%c0_64, %c0_65] : memref<2x8xf32, #tpu.memory_space<vmem>>, vector<2x8xf32>
    %cst_66 = arith.constant dense<0.000000e+00> : vector<2x128xf32>
    %126 = tpu.matmul %125, %124, %cst_66 {dimension_numbers = #tpu.dot_dimension_numbers<[1], [0], [0], [1], [0, 0, 1, 1], [], []>} : vector<2x8xf32>, vector<8x128xf32>, vector<2x128xf32> -> vector<2x128xf32>
    %c0_67 = arith.constant 0 : index
    %c0_68 = arith.constant 0 : index
    %127 = vector.load %arg11[%c0_67, %c0_68] : memref<1x128xf32, #tpu.memory_space<vmem>>, vector<1x128xf32>
    %128 = vector.broadcast %127 : vector<1x128xf32> to vector<2x128xf32>
    %129 = arith.addf %126, %128 : vector<2x128xf32>
    %cst_69 = arith.constant 0.000000e+00 : f32
    %130 = vector.broadcast %cst_69 : f32 to vector<2x128xf32>
    %131 = arith.cmpf oge, %129, %130 : vector<2x128xf32>
    %132 = vector.broadcast %2 : f32 to vector<2x128xf32>
    %133 = arith.mulf %132, %129 : vector<2x128xf32>
    %134 = arith.select %131, %129, %133 : vector<2x128xi1>, vector<2x128xf32>
    %c0_70 = arith.constant 0 : index
    %c0_71 = arith.constant 0 : index
    %135 = vector.load %arg12[%c0_70, %c0_71] : memref<128x128xf32, #tpu.memory_space<vmem>>, vector<128x128xf32>
    %cst_72 = arith.constant dense<0.000000e+00> : vector<2x128xf32>
    %136 = tpu.matmul %134, %135, %cst_72 {dimension_numbers = #tpu.dot_dimension_numbers<[1], [0], [0], [1], [0, 0, 1, 1], [], []>} : vector<2x128xf32>, vector<128x128xf32>, vector<2x128xf32> -> vector<2x128xf32>
    %c0_73 = arith.constant 0 : index
    %c0_74 = arith.constant 0 : index
    %137 = vector.load %arg13[%c0_73, %c0_74] : memref<1x128xf32, #tpu.memory_space<vmem>>, vector<1x128xf32>
    %138 = vector.broadcast %137 : vector<1x128xf32> to vector<2x128xf32>
    %139 = arith.addf %136, %138 : vector<2x128xf32>
    %c0_75 = arith.constant 0 : index
    %c0_76 = arith.constant 0 : index
    %140 = vector.load %arg14[%c0_75, %c0_76] : memref<2x128xf32, #tpu.memory_space<vmem>>, vector<2x128xf32>
    tpu.vector_store %arg14[%c0_75, %c0_76], %139 {strides = array<i32>} : memref<2x128xf32, #tpu.memory_space<vmem>>, vector<2x128xf32>,
    return
  }
}

</mosaic_0001>

<bundles_post_ra>
// kernel: cnn3d_forward.1
= control target key start
LH: loop header
LB: loop body
LE: loop exit
PB: predicated region body
PF: predicated region fallthrough
CT: control target
= control target key end

     0   :  { %19 = vsyncpa [#allocation5], 0  ;;  %s15193_s0 = inlined_call_operand.hbm [shape: f32[3], index: 0, kind: input, shape index: {}]   ;;  %s15194_s1 = inlined_call_operand.vmem [shape: f32[32,128], index: 1, kind: input, shape index: {}]   ;;  %s15195_s2 = inlined_call_operand.hbm [shape: bf16[4,16,32], index: 2, kind: input, shape index: {}]   ;;  %s15196_s3 = inlined_call_operand.hbm [shape: bf16[512,2048], index: 3, kind: input, shape index: {}]   ;;  %s15197_s4 = inlined_call_operand.hbm [shape: f32[1,2048], index: 4, kind: input, shape index: {}]   ;;  %s15198_s5 = inlined_call_operand.hbm [shape: bf16[4,8,16], index: 5, kind: input, shape index: {}]   ;;  %s15199_s6 = inlined_call_operand.hbm [shape: bf16[1024,1024], index: 6, kind: input, shape index: {}]   ;;  %s15200_s7 = inlined_call_operand.hbm [shape: f32[1,1024], index: 7, kind: input, shape index: {}]   ;;  %s15201_s8 = inlined_call_operand.hbm [shape: f32[128,512], index: 8, kind: input, shape index: {}]   ;;  %s15202_s9 = inlined_call_operand.hbm [shape: f32[8,512], index: 9, kind: input, shape index: {}]   ;;  %s15203_s10 = inlined_call_operand.hbm [shape: f32[2,8], index: 10, kind: input, shape index: {}]   ;;  %s15204_s11 = inlined_call_operand.hbm [shape: f32[1,128], index: 11, kind: input, shape index: {}]   ;;  %s15205_s12 = inlined_call_operand.hbm [shape: f32[128,128], index: 12, kind: input, shape index: {}]   ;;  %s15206_s13 = inlined_call_operand.hbm [shape: f32[1,128], index: 13, kind: input, shape index: {}]   ;;  %s15207_s14 = inlined_call_operand.hbm [shape: f32[2,128], index: 14, kind: output, shape index: {}]  }
   0x1   :  { %20 = vsyncpa [#allocation3], 0 }
   0x2   :  { %21 = vsyncpa [#allocation8], 0 }
   0x3   :  { %22 = vsyncpa [#allocation11], 0 }
   0x4   :  { %23 = vsyncpa [#allocation14], 0 }
   0x5   :  { %24 = vsyncpa [#allocation17], 0 }
   0x6   :  { %25 = vsyncpa [#allocation20], 0 }
   0x7   :  { %26 = vsyncpa [#allocation23], 0  ;;  %s56_s15 = sshll.u32 %s15196_s3, 4  ;;  %s57_s15 = int_to_ptr.hbm [resolvable:$true] %s56_s15 }
   0x8   :  { %27 = vsyncpa [#allocation4], 0  ;;  %s14346_s16 = smov [#allocation7]   ;;  %s14347_s18 = smov 1024  }
   0x9   :  { %s58_s17 = sshll.u32 %s14346_s16, 4  ;;  %s14348_s19 = smov 64   ;;  %s59_s17 = int_to_ptr.vmem [resolvable:$true] %s58_s17 }
   0xa   :  { %64 = dma.hbm_to_vmem [thread:$0]  %s57_s15, 65536, %s59_s17, [#allocation8], %s14347_s18, %s14347_s18, %s14348_s19  }
   0xb   :  { %s80_s22 = sshll.u32 %s15198_s5, 4  ;;  %s14349_s23 = smov [#allocation10]   ;;  %s81_s22 = int_to_ptr.hbm [resolvable:$true] %s80_s22 }
   0xc   :  { %s82_s24 = sshll.u32 %s14349_s23, 4  ;;  %s107_s3 = sshll.u32 %s15200_s7, 4  ;;  %s83_s24 = int_to_ptr.vmem [resolvable:$true] %s82_s24  ;;  %s108_s3 = int_to_ptr.hbm [resolvable:$true] %s107_s3 }
   0xd   :  { %s14350_s27 = smov 4   ;;  %s14351_s28 = smov [#allocation13]  }
   0xe   :  { %88 = dma.hbm_to_vmem [thread:$0]  %s81_s22, 256, %s83_s24, [#allocation11], %s14348_s19, %s14348_s19, %s14350_s27  }
   0xf   :  { %s109_s29 = sshll.u32 %s14351_s28, 4  ;;  %s131_s5 = sshll.u32 %s15202_s9, 4  ;;  %s110_s29 = int_to_ptr.vmem [resolvable:$true] %s109_s29  ;;  %s132_s5 = int_to_ptr.hbm [resolvable:$true] %s131_s5 }
  0x10   :  { %112 = dma.hbm_to_vmem [thread:$0]  %s108_s3, 128, %s110_s29, [#allocation14]  }
  0x11   :  { %s153_s18 = sshll.u32 %s15204_s11, 4  ;;  %s14352_s7 = smov [#allocation16]   ;;  %s154_s18 = int_to_ptr.hbm [resolvable:$true] %s153_s18 }
  0x12   :  { %s133_s20 = sshll.u32 %s14352_s7, 4  ;;  %s14353_s21 = smov [#allocation19]   ;;  %s134_s20 = int_to_ptr.vmem [resolvable:$true] %s133_s20 }
  0x13   :  { %136 = dma.hbm_to_vmem [thread:$0]  %s132_s5, 512, %s134_s20, [#allocation17]  }
  0x14   :  { %s155_s22 = sshll.u32 %s14353_s21, 4  ;;  %s33_s25 = sshll.u32 %s15193_s0, 4  ;;  %s156_s22 = int_to_ptr.vmem [resolvable:$true] %s155_s22  ;;  %s34_s25 = int_to_ptr.hbm [resolvable:$true] %s33_s25 }
  0x15   :  { %158 = dma.hbm_to_vmem [thread:$0]  %s154_s18, 16, %s156_s22, [#allocation20]  }
  0x16   :  { %s43_s3 = sshll.u32 %s15195_s2, 4  ;;  %s14354_s28 = smov [#allocation2]   ;;  %s44_s3 = int_to_ptr.hbm [resolvable:$true] %s43_s3 }
  0x17   :  { %36 = dma.hbm_to_smem %s34_s25, 16, %s14354_s28, [#allocation5]  }
  0x18   :  { %s14355_s11 = smov [#allocation6]   ;;  %s70_s5 = sshll.u32 %s15197_s4, 4  ;;  %s71_s5 = int_to_ptr.hbm [resolvable:$true] %s70_s5 }
  0x19   :  { %s45_s29 = sshll.u32 %s14355_s11, 4  ;;  %s93_s17 = sshll.u32 %s15199_s6, 4  ;;  %s46_s29 = int_to_ptr.vmem [resolvable:$true] %s45_s29  ;;  %s94_s17 = int_to_ptr.hbm [resolvable:$true] %s93_s17 }
  0x1a   :  { %51 = dma.hbm_to_vmem [thread:$0]  %s44_s3, 512, %s46_s29, [#allocation3], %s14348_s19, %s14348_s19, %s14350_s27  }
  0x1b   :  { %s14356_s2 = smov [#allocation9]   ;;  %s14357_s7 = smov [#allocation12]  }
  0x1c   :  { %s72_s18 = sshll.u32 %s14356_s2, 4  ;;  %s95_s20 = sshll.u32 %s14357_s7, 4  ;;  %s73_s18 = int_to_ptr.vmem [resolvable:$true] %s72_s18  ;;  %s96_s20 = int_to_ptr.vmem [resolvable:$true] %s95_s20 }
  0x1d   :  { %75 = dma.hbm_to_vmem [thread:$0]  %s71_s5, 256, %s73_s18, [#allocation8]  }
  0x1e   :  { %s14358_s21 = smov 512   ;;  %s14359_s4 = smov 32  }
  0x1f   :  { %101 = dma.hbm_to_vmem [thread:$0]  %s94_s17, 65536, %s96_s20, [#allocation11], %s14358_s21, %s14358_s21, %s14359_s4  }
  0x20   :  { %s117_s24 = sshll.u32 %s15201_s8, 4  ;;  %s14360_s19 = smov [#allocation15]   ;;  %s118_s24 = int_to_ptr.hbm [resolvable:$true] %s117_s24 }
  0x21   :  { %s119_s27 = sshll.u32 %s14360_s19, 4  ;;  %s142_s9 = sshll.u32 %s15203_s10, 4  ;;  %s120_s27 = int_to_ptr.vmem [resolvable:$true] %s119_s27  ;;  %s143_s9 = int_to_ptr.hbm [resolvable:$true] %s142_s9 }
  0x22   :  { %125 = dma.hbm_to_vmem [thread:$0]  %s118_s24, 8192, %s120_s27, [#allocation14], %s14358_s21, %s14358_s21, %s14359_s4  }
  0x23   :  { %s14361_s26 = smov [#allocation18]   ;;  %s163_s29 = sshll.u32 %s15205_s12, 4  ;;  %s164_s29 = int_to_ptr.hbm [resolvable:$true] %s163_s29 }
  0x24   :  { %s144_s3 = sshll.u32 %s14361_s26, 4  ;;  %s14362_s8 = smov [#allocation21]   ;;  %s145_s3 = int_to_ptr.vmem [resolvable:$true] %s144_s3 }
  0x25   :  { %147 = dma.hbm_to_vmem [thread:$0]  %s143_s9, 32, %s145_s3, [#allocation17]  }
  0x26   :  { %s165_s30 = sshll.u32 %s14362_s8, 4  ;;  %s177_s0 = sshll.u32 %s15206_s13, 4  ;;  %s166_s30 = int_to_ptr.vmem [resolvable:$true] %s165_s30  ;;  %s178_s0 = int_to_ptr.hbm [resolvable:$true] %s177_s0 }
  0x27   :  { %s14363_s16 = smov 128   ;;  %s14364_s10 = smov 8  }
  0x28   :  { %171 = dma.hbm_to_vmem [thread:$0]  %s164_s29, 2048, %s166_s30, [#allocation20], %s14363_s16, %s14363_s16, %s14364_s10  }
  0x29   :  { %s14365_s17 = smov [#allocation22]  }
  0x2a   :  { %s179_s2 = sshll.u32 %s14365_s17, 4  ;;  %s180_s2 = int_to_ptr.vmem [resolvable:$true] %s179_s2 }
  0x2b   :  { %182 = dma.hbm_to_vmem [thread:$0]  %s178_s0, 16, %s180_s2, [#allocation23]  }
  0x2c   :  { %14328 = dma.done.wait [#allocation5], 16  }
  0x2d   :  { %14329 = vsyncadd [#allocation5], 4294967280 }
  0x2e   :  { %14330 = dma.done.wait [#allocation3], 512  }
  0x2f   :  { %14331 = vsyncadd [#allocation3], 4294966784 }
  0x30   :  { %14332 = dma.done.wait [#allocation8], 65792  }
  0x31   :  { %14333 = vsyncadd [#allocation8], 4294901504 }
  0x32   :  { %14334 = dma.done.wait [#allocation11], 65792  }
  0x33   :  { %14335 = vsyncadd [#allocation11], 4294901504 }
  0x34   :  { %14336 = dma.done.wait [#allocation14], 8320  }
  0x35   :  { %14337 = vsyncadd [#allocation14], 4294958976 }
  0x36   :  { %14338 = dma.done.wait [#allocation17], 544  }
  0x37   :  { %14339 = vsyncadd [#allocation17], 4294966752 }
  0x38   :  { %14340 = dma.done.wait [#allocation20], 2064  }
  0x39   :  { %14341 = vsyncadd [#allocation20], 4294965232 }
  0x3a   :  { %14342 = dma.done.wait [#allocation23], 16  }
  0x3b   :  { %14343 = vsyncadd [#allocation23], 4294967280 }
  0x3c   :  { %235 = sfence }
  0x3d   :  { %v242_v0 = vld [vmem:[%s15194_s1 + $0x10] sm:$0xff]  ;;  %v243_v1 = vld [vmem:[%s15194_s1 + $0x18] sm:$0xff]  ;;  %v240_v2 = vld [vmem:[%s15194_s1] sm:$0xff]  ;;  %vm253_vm0 = vcmask 261120   ;;  %s15032_s23 = sld [smem:[#allocation2 + $0x1]]  ;;  %s14366_s19 = smov [#allocation24]  }
  0x3e   :  { %v245_v3 = vpack.c.bf16 %v243_v1, %v242_v0  ;;  %v241_v4 = vld [vmem:[%s15194_s1 + $0x8] sm:$0xff]  ;;  %v8960_v5 = vld [vmem:[#allocation7 + $0x380] sm:$0xf]  ;;  %v12953_v22 = vld [vmem:[#allocation6 + $0x10] sm:$0xff]  ;;  %s14569_s1 = sld [smem:[#allocation2]]  ;;  %s8805_s27 = sshll.u32 %s14366_s19, 4  ;;  %s8806_s27 = int_to_ptr.vmem [resolvable:$true] %s8805_s27 }
  0x3f   :  { %v244_v6 = vpack.c.bf16 %v241_v4, %v240_v2  ;;  %v12985_v7 = vld [vmem:[#allocation7 + $0x3bc] sm:$0xf0]  ;;  %v12952_v11 = vld [vmem:[#allocation6 + $0x8] sm:$0xff]  ;;  %v12954_v23 = vld [vmem:[#allocation6 + $0x18] sm:$0xff]  ;;  %s8825_s24 = sld [smem:[#allocation2 + $0x2]]  ;;  %s8807_s9 = sshll.u32 %s15207_s14, 4  ;;  %s8808_s9 = int_to_ptr.hbm [resolvable:$true] %s8807_s9 }
  0x40   :  { %263 = vmatpush.bf16.msra.mxu0 %v245_v3  ;;  %288 = vmatpush.bf16.msra.mxu1 %v245_v3  ;;  %v9088_v8 = vld [vmem:[#allocation7 + $0x780] sm:$0xf]  ;;  %v8961_v14 = vor.u32 %v12985_v7, %v8960_v5 }
  0x41   :  { %v13017_v9 = vld [vmem:[#allocation7 + $0x7bc] sm:$0xf0]  ;;  %313 = vmatpush.bf16.msra.mxu2 %v245_v3  ;;  %338 = vmatpush.bf16.msra.mxu3 %v245_v3 }
  0x42   :  { %v12951_v10 = vld [vmem:[#allocation6] sm:$0xff]  ;;  %v9089_v15 = vor.u32 %v13017_v9, %v9088_v8 }
  0x43   :  { %v8944_v12 = vld [vmem:[#allocation7 + $0x300] sm:$0xf] }
  0x44   :  { %v12981_v13 = vld [vmem:[#allocation7 + $0x33c] sm:$0xf0]  ;;  %264 = vmatpush.bf16.msra.mxu0 %v244_v6  ;;  %289 = vmatpush.bf16.msra.mxu1 %v244_v6 }
  0x45   :  { %v9072_v16 = vld [vmem:[#allocation7 + $0x700] sm:$0xf]  ;;  %314 = vmatpush.bf16.msra.mxu2 %v244_v6  ;;  %339 = vmatpush.bf16.msra.mxu3 %v244_v6  ;;  %v8945_v28 = vor.u32 %v12981_v13, %v8944_v12 }
  0x46   :  { %v9216_v17 = vld [vmem:[#allocation7 + $0xb80] sm:$0xf] }
  0x47   :  { %v13049_v18 = vld [vmem:[#allocation7 + $0xbbc] sm:$0xf0]  ;;  %8830 = vmatmul.msk.bf16.vlgmr.msra.gmra.mxu0 %vm253_vm0, %v12951_v10  ;;  %8835 = vmatmul.msk.bf16.vlgmr.msra.gmra.mxu1 %vm253_vm0, %v12952_v11 }
  0x48   :  { %v13013_v19 = vld [vmem:[#allocation7 + $0x73c] sm:$0xf0]  ;;  %v9217_v24 = vor.u32 %v13049_v18, %v9216_v17  ;;  %1128 = vmatpush.bf16.msrb.mxu0 %v8961_v14  ;;  %1142 = vmatpush.bf16.msrb.mxu1 %v9089_v15 }
  0x49   :  { %v9344_v20 = vld [vmem:[#allocation7 + $0xf80] sm:$0xf]  ;;  %v9073_v29 = vor.u32 %v13013_v19, %v9072_v16  ;;  %8840 = vmatmul.msk.bf16.vlgmr.msra.gmra.mxu2 %vm253_vm0, %v12953_v22  ;;  %8845 = vmatmul.msk.bf16.vlgmr.msra.gmra.mxu3 %vm253_vm0, %v12954_v23 }
  0x4a   :  { %v13081_v21 = vld [vmem:[#allocation7 + $0xfbc] sm:$0xf0]  ;;  %1156 = vmatpush.bf16.msrb.mxu2 %v9217_v24 }
  0x4b   :  { %v9345_v25 = vor.u32 %v13081_v21, %v9344_v20  ;;  %v8928_v26 = vld [vmem:[#allocation7 + $0x280] sm:$0xf] }
  0x4c   :  { %v9200_v27 = vld [vmem:[#allocation7 + $0xb00] sm:$0xf]  ;;  %1129 = vmatpush.bf16.msrb.mxu0 %v8945_v28  ;;  %1143 = vmatpush.bf16.msrb.mxu1 %v9073_v29 }
  0x4d   :  { %v13045_v30 = vld [vmem:[#allocation7 + $0xb3c] sm:$0xf0]  ;;  %1170 = vmatpush.bf16.msrb.mxu3 %v9345_v25 }
  0x4e   :  { %v9328_v31 = vld [vmem:[#allocation7 + $0xf00] sm:$0xf]  ;;  %v9201_v36 = vor.u32 %v13045_v30, %v9200_v27 }
  0x4f   :  { %v13077_v32 = vld [vmem:[#allocation7 + $0xf3c] sm:$0xf0] }
  0x50   :  { %v12977_v33 = vld [vmem:[#allocation7 + $0x2bc] sm:$0xf0]  ;;  %v9329_v37 = vor.u32 %v13077_v32, %v9328_v31  ;;  %1157 = vmatpush.bf16.msrb.mxu2 %v9201_v36  ;;  %v12983_v32 = vld [vmem:[#allocation7 + $0x384] sm:$0xf] }
  0x51   :  { %v9056_v34 = vld [vmem:[#allocation7 + $0x680] sm:$0xf]  ;;  %v8929_v40 = vor.u32 %v12977_v33, %v8928_v26  ;;  %v8962_v33 = vld [vmem:[#allocation7 + $0x3c0] sm:$0xf0] }
  0x52   :  { %v13009_v35 = vld [vmem:[#allocation7 + $0x6bc] sm:$0xf0]  ;;  %1171 = vmatpush.bf16.msrb.mxu3 %v9329_v37 }
  0x53   :  { %v8912_v38 = vld [vmem:[#allocation7 + $0x200] sm:$0xf]  ;;  %v9057_v41 = vor.u32 %v13009_v35, %v9056_v34  ;;  %1130 = vmatpush.bf16.msrb.mxu0 %v8929_v40  ;;  %v13015_v34 = vld [vmem:[#allocation7 + $0x784] sm:$0xf] }
  0x54   :  { %v9184_v39 = vld [vmem:[#allocation7 + $0xa80] sm:$0xf]  ;;  %v9090_v35 = vld [vmem:[#allocation7 + $0x7c0] sm:$0xf0] }
  0x55   :  { %v13041_v42 = vld [vmem:[#allocation7 + $0xabc] sm:$0xf0]  ;;  %1144 = vmatpush.bf16.msrb.mxu1 %v9057_v41 }
  0x56   :  { %v9312_v43 = vld [vmem:[#allocation7 + $0xe80] sm:$0xf]  ;;  %v9185_v48 = vor.u32 %v13041_v42, %v9184_v39 }
  0x57   :  { %v13073_v44 = vld [vmem:[#allocation7 + $0xebc] sm:$0xf0] }
  0x58   :  { %v12973_v45 = vld [vmem:[#allocation7 + $0x23c] sm:$0xf0]  ;;  %v9313_v49 = vor.u32 %v13073_v44, %v9312_v43  ;;  %1158 = vmatpush.bf16.msrb.mxu2 %v9185_v48  ;;  %v12979_v43 = vld [vmem:[#allocation7 + $0x304] sm:$0xf]  ;;  %v8965_v48 = vor.u32 %v12983_v32, %v8962_v33 }
  0x59   :  { %v9040_v46 = vld [vmem:[#allocation7 + $0x600] sm:$0xf]  ;;  %v8913_v52 = vor.u32 %v12973_v45, %v8912_v38  ;;  %v8946_v44 = vld [vmem:[#allocation7 + $0x340] sm:$0xf0] }
  0x5a   :  { %v13005_v47 = vld [vmem:[#allocation7 + $0x63c] sm:$0xf0]  ;;  %1172 = vmatpush.bf16.msrb.mxu3 %v9313_v49  ;;  %v9093_v49 = vor.u32 %v13015_v34, %v9090_v35  ;;  %v12963_v32 = vld [vmem:[#allocation7 + $0x104] sm:$0xf] }
  0x5b   :  { %v8896_v50 = vld [vmem:[#allocation7 + $0x180] sm:$0xf]  ;;  %v9041_v53 = vor.u32 %v13005_v47, %v9040_v46  ;;  %1131 = vmatpush.bf16.msrb.mxu0 %v8913_v52  ;;  %v13047_v46 = vld [vmem:[#allocation7 + $0xb84] sm:$0xf] }
  0x5c   :  { %v9168_v51 = vld [vmem:[#allocation7 + $0xa00] sm:$0xf]  ;;  %v9218_v47 = vld [vmem:[#allocation7 + $0xbc0] sm:$0xf0] }
  0x5d   :  { %v13037_v54 = vld [vmem:[#allocation7 + $0xa3c] sm:$0xf0]  ;;  %1145 = vmatpush.bf16.msrb.mxu1 %v9041_v53  ;;  %v13011_v52 = vld [vmem:[#allocation7 + $0x704] sm:$0xf] }
  0x5e   :  { %v9296_v55 = vld [vmem:[#allocation7 + $0xe00] sm:$0xf]  ;;  %v9169_v60 = vor.u32 %v13037_v54, %v9168_v51  ;;  %v9346_v51 = vld [vmem:[#allocation7 + $0xfc0] sm:$0xf0] }
  0x5f   :  { %v13069_v56 = vld [vmem:[#allocation7 + $0xe3c] sm:$0xf0]  ;;  %v9074_v53 = vld [vmem:[#allocation7 + $0x740] sm:$0xf0] }
  0x60   :  { %v12969_v57 = vld [vmem:[#allocation7 + $0x1bc] sm:$0xf0]  ;;  %v9297_v61 = vor.u32 %v13069_v56, %v9296_v55  ;;  %1159 = vmatpush.bf16.msrb.mxu2 %v9169_v60  ;;  %v9221_v56 = vor.u32 %v13047_v46, %v9218_v47  ;;  %v8949_v60 = vor.u32 %v12979_v43, %v8946_v44  ;;  %v8882_v33 = vld [vmem:[#allocation7 + $0x140] sm:$0xf0] }
  0x61   :  { %v9024_v58 = vld [vmem:[#allocation7 + $0x580] sm:$0xf]  ;;  %v8897_v0 = vor.u32 %v12969_v57, %v8896_v50  ;;  %v13079_v50 = vld [vmem:[#allocation7 + $0xf84] sm:$0xf]  ;;  %v8885_v35 = vor.u32 %v12963_v32, %v8882_v33  ;;  %v13082_v33 = vld [vmem:[#allocation7 + $0xfc4] sm:$0xf0] }
  0x62   :  { %v13001_v59 = vld [vmem:[#allocation7 + $0x5bc] sm:$0xf0]  ;;  %1173 = vmatpush.bf16.msrb.mxu3 %v9297_v61  ;;  %v9349_v57 = vor.u32 %v13079_v50, %v9346_v51  ;;  %v9077_v61 = vor.u32 %v13011_v52, %v9074_v53  ;;  %v12995_v34 = vld [vmem:[#allocation7 + $0x504] sm:$0xf] }
  0x63   :  { %v8880_v62 = vld [vmem:[#allocation7 + $0x100] sm:$0xf]  ;;  %v9025_v1 = vor.u32 %v13001_v59, %v9024_v58  ;;  %1132 = vmatpush.bf16.msrb.mxu0 %v8897_v0  ;;  %v12975_v58 = vld [vmem:[#allocation7 + $0x284] sm:$0xf] }
  0x64   :  { %v9152_v63 = vld [vmem:[#allocation7 + $0x980] sm:$0xf]  ;;  %v13043_v59 = vld [vmem:[#allocation7 + $0xb04] sm:$0xf] }
  0x65   :  { %v13033_v2 = vld [vmem:[#allocation7 + $0x9bc] sm:$0xf0]  ;;  %1146 = vmatpush.bf16.msrb.mxu1 %v9025_v1  ;;  %v9330_v0 = vld [vmem:[#allocation7 + $0xf40] sm:$0xf0] }
  0x66   :  { %v9280_v3 = vld [vmem:[#allocation7 + $0xd80] sm:$0xf]  ;;  %v9153_v8 = vor.u32 %v13033_v2, %v9152_v63  ;;  %v13075_v63 = vld [vmem:[#allocation7 + $0xf04] sm:$0xf] }
  0x67   :  { %v13065_v4 = vld [vmem:[#allocation7 + $0xdbc] sm:$0xf0]  ;;  %v8930_v1 = vld [vmem:[#allocation7 + $0x2c0] sm:$0xf0] }
  0x68   :  { %v12965_v5 = vld [vmem:[#allocation7 + $0x13c] sm:$0xf0]  ;;  %v9281_v9 = vor.u32 %v13065_v4, %v9280_v3  ;;  %1160 = vmatpush.bf16.msrb.mxu2 %v9153_v8  ;;  %v13007_v2 = vld [vmem:[#allocation7 + $0x684] sm:$0xf]  ;;  %v8933_v8 = vor.u32 %v12975_v58, %v8930_v1 }
  0x69   :  { %v9008_v6 = vld [vmem:[#allocation7 + $0x500] sm:$0xf]  ;;  %v8881_v12 = vor.u32 %v12965_v5, %v8880_v62  ;;  %v9202_v62 = vld [vmem:[#allocation7 + $0xb40] sm:$0xf0]  ;;  %v9333_v5 = vor.u32 %v13075_v63, %v9330_v0 }
  0x6a   :  { %v12997_v7 = vld [vmem:[#allocation7 + $0x53c] sm:$0xf0]  ;;  %1174 = vmatpush.bf16.msrb.mxu3 %v9281_v9  ;;  %v9058_v3 = vld [vmem:[#allocation7 + $0x6c0] sm:$0xf0]  ;;  %v9205_v4 = vor.u32 %v13043_v59, %v9202_v62 }
  0x6b   :  { %v8864_v10 = vld [vmem:[#allocation7 + $0x80] sm:$0xf]  ;;  %v9009_v13 = vor.u32 %v12997_v7, %v9008_v6  ;;  %1133 = vmatpush.bf16.msrb.mxu0 %v8881_v12  ;;  %v12971_v6 = vld [vmem:[#allocation7 + $0x204] sm:$0xf]  ;;  %v9061_v9 = vor.u32 %v13007_v2, %v9058_v3 }
  0x6c   :  { %v9136_v11 = vld [vmem:[#allocation7 + $0x900] sm:$0xf]  ;;  %v13039_v7 = vld [vmem:[#allocation7 + $0xa84] sm:$0xf] }
  0x6d   :  { %v13029_v14 = vld [vmem:[#allocation7 + $0x93c] sm:$0xf0]  ;;  %1147 = vmatpush.bf16.msrb.mxu1 %v9009_v13  ;;  %v9314_v12 = vld [vmem:[#allocation7 + $0xec0] sm:$0xf0] }
  0x6e   :  { %v9264_v15 = vld [vmem:[#allocation7 + $0xd00] sm:$0xf]  ;;  %v9137_v20 = vor.u32 %v13029_v14, %v9136_v11  ;;  %v13071_v11 = vld [vmem:[#allocation7 + $0xe84] sm:$0xf] }
  0x6f   :  { %v13061_v16 = vld [vmem:[#allocation7 + $0xd3c] sm:$0xf0]  ;;  %v8914_v13 = vld [vmem:[#allocation7 + $0x240] sm:$0xf0] }
  0x70   :  { %v12961_v17 = vld [vmem:[#allocation7 + $0xbc] sm:$0xf0]  ;;  %v9265_v21 = vor.u32 %v13061_v16, %v9264_v15  ;;  %1161 = vmatpush.bf16.msrb.mxu2 %v9137_v20  ;;  %v13003_v14 = vld [vmem:[#allocation7 + $0x604] sm:$0xf] }
  0x71   :  { %v8992_v18 = vld [vmem:[#allocation7 + $0x480] sm:$0xf]  ;;  %v8865_v25 = vor.u32 %v12961_v17, %v8864_v10  ;;  %v9186_v10 = vld [vmem:[#allocation7 + $0xac0] sm:$0xf0]  ;;  %v9317_v17 = vor.u32 %v13071_v11, %v9314_v12  ;;  %v8968_v12 = vld [vmem:[#allocation7 + $0x388] sm:$0xf] }
  0x72   :  { %v12993_v19 = vld [vmem:[#allocation7 + $0x4bc] sm:$0xf0]  ;;  %1175 = vmatpush.bf16.msrb.mxu3 %v9265_v21  ;;  %v9042_v15 = vld [vmem:[#allocation7 + $0x640] sm:$0xf0]  ;;  %v9189_v16 = vor.u32 %v13039_v7, %v9186_v10 }
  0x73   :  { %v8848_v22 = vld [vmem:[#allocation7] sm:$0xf]  ;;  %v8993_v26 = vor.u32 %v12993_v19, %v8992_v18  ;;  %1134 = vmatpush.bf16.msrb.mxu0 %v8865_v25  ;;  %v8917_v18 = vor.u32 %v12971_v6, %v8914_v13  ;;  %v9045_v19 = vor.u32 %v13003_v14, %v9042_v15  ;;  %v12967_v20 = vld [vmem:[#allocation7 + $0x184] sm:$0xf]  ;;  %v12986_v13 = vld [vmem:[#allocation7 + $0x3c4] sm:$0xf0] }
  0x74   :  { %v12957_v23 = vld [vmem:[#allocation7 + $0x3c] sm:$0xf0]  ;;  %v8898_v21 = vld [vmem:[#allocation7 + $0x1c0] sm:$0xf0]  ;;  %v9096_v14 = vld [vmem:[#allocation7 + $0x788] sm:$0xf] }
  0x75   :  { %v9120_v24 = vld [vmem:[#allocation7 + $0x880] sm:$0xf]  ;;  %1148 = vmatpush.bf16.msrb.mxu1 %v8993_v26  ;;  %v8849_v41 = vor.u32 %v12957_v23, %v8848_v22  ;;  %v12999_v22 = vld [vmem:[#allocation7 + $0x584] sm:$0xf]  ;;  %v13018_v15 = vld [vmem:[#allocation7 + $0x7c4] sm:$0xf0] }
  0x76   :  { %v13025_v27 = vld [vmem:[#allocation7 + $0x8bc] sm:$0xf0]  ;;  %v9026_v23 = vld [vmem:[#allocation7 + $0x5c0] sm:$0xf0] }
  0x77   :  { %v9248_v28 = vld [vmem:[#allocation7 + $0xc80] sm:$0xf]  ;;  %v9121_v36 = vor.u32 %v13025_v27, %v9120_v24  ;;  %1135 = vmatpush.bf16.msrb.mxu0 %v8849_v41  ;;  %v8901_v24 = vor.u32 %v12967_v20, %v8898_v21  ;;  %v9029_v25 = vor.u32 %v12999_v22, %v9026_v23  ;;  %v13035_v26 = vld [vmem:[#allocation7 + $0xa04] sm:$0xf]  ;;  %v8969_v20 = vor.u32 %v12986_v13, %v8968_v12  ;;  %v8952_v22 = vld [vmem:[#allocation7 + $0x308] sm:$0xf] }
  0x78   :  { %v13057_v29 = vld [vmem:[#allocation7 + $0xcbc] sm:$0xf0]  ;;  %v9170_v27 = vld [vmem:[#allocation7 + $0xa40] sm:$0xf0]  ;;  %v9097_v21 = vor.u32 %v13018_v15, %v9096_v14  ;;  %v9016_v12 = vld [vmem:[#allocation7 + $0x508] sm:$0xf] }
  0x79   :  { %v8976_v30 = vld [vmem:[#allocation7 + $0x400] sm:$0xf]  ;;  %v9249_v37 = vor.u32 %v13057_v29, %v9248_v28  ;;  %1162 = vmatpush.bf16.msrb.mxu2 %v9121_v36  ;;  %v13067_v28 = vld [vmem:[#allocation7 + $0xe04] sm:$0xf]  ;;  %v9173_v29 = vor.u32 %v13035_v26, %v9170_v27  ;;  %v9080_v26 = vld [vmem:[#allocation7 + $0x708] sm:$0xf] }
  0x7a   :  { %v12989_v31 = vld [vmem:[#allocation7 + $0x43c] sm:$0xf0]  ;;  %v9010_v36 = vld [vmem:[#allocation7 + $0x540] sm:$0xf0]  ;;  %v13014_v27 = vld [vmem:[#allocation7 + $0x744] sm:$0xf0] }
  0x7b   :  { %v9104_v38 = vld [vmem:[#allocation7 + $0x800] sm:$0xf]  ;;  %v8977_v42 = vor.u32 %v12989_v31, %v8976_v30  ;;  %1176 = vmatpush.bf16.msrb.mxu3 %v9249_v37  ;;  %1184 = vmatpush.bf16.msra.mxu0 %v8965_v48  ;;  %v9298_v30 = vld [vmem:[#allocation7 + $0xe40] sm:$0xf0]  ;;  %v9081_v32 = vor.u32 %v13014_v27, %v9080_v26  ;;  %v12998_v13 = vld [vmem:[#allocation7 + $0x544] sm:$0xf0] }
  0x7c   :  { %v13021_v39 = vld [vmem:[#allocation7 + $0x83c] sm:$0xf0]  ;;  %v9301_v31 = vor.u32 %v13067_v28, %v9298_v30  ;;  %v13031_v37 = vld [vmem:[#allocation7 + $0x984] sm:$0xf]  ;;  %v9224_v28 = vld [vmem:[#allocation7 + $0xb88] sm:$0xf] }
  0x7d   :  { %v9232_v40 = vld [vmem:[#allocation7 + $0xc00] sm:$0xf]  ;;  %v9105_v54 = vor.u32 %v13021_v39, %v9104_v38  ;;  %1149 = vmatpush.bf16.msrb.mxu1 %v8977_v42  ;;  %v9154_v38 = vld [vmem:[#allocation7 + $0x9c0] sm:$0xf0]  ;;  %v9013_v39 = vor.u32 %v12995_v34, %v9010_v36  ;;  %v9352_v30 = vld [vmem:[#allocation7 + $0xf88] sm:$0xf] }
  0x7e   :  { %v13053_v45 = vld [vmem:[#allocation7 + $0xc3c] sm:$0xf0]  ;;  %v13063_v41 = vld [vmem:[#allocation7 + $0xd84] sm:$0xf]  ;;  %v8936_v34 = vld [vmem:[#allocation7 + $0x288] sm:$0xf] }
  0x7f   :  { %v9233_v55 = vor.u32 %v13053_v45, %v9232_v40  ;;  %1163 = vmatpush.bf16.msrb.mxu2 %v9105_v54  ;;  %1185 = vmatpush.bf16.msra.mxu0 %v8949_v60  ;;  %v9157_v40 = vor.u32 %v13031_v37, %v9154_v38  ;;  %v9282_v42 = vld [vmem:[#allocation7 + $0xdc0] sm:$0xf0]  ;;  %v9064_v36 = vld [vmem:[#allocation7 + $0x688] sm:$0xf] }
  0x80   :  { %v9285_v43 = vor.u32 %v13063_v41, %v9282_v42  ;;  %v12959_v44 = vld [vmem:[#allocation7 + $0x84] sm:$0xf]  ;;  %v13010_v37 = vld [vmem:[#allocation7 + $0x6c4] sm:$0xf0]  ;;  %v9353_v41 = vor.u32 %v13082_v33, %v9352_v30 }
  0x81   :  { %1198 = vmatpush.bf16.msra.mxu1 %v9093_v49  ;;  %1177 = vmatpush.bf16.msrb.mxu3 %v9233_v55  ;;  %v8866_v45 = vld [vmem:[#allocation7 + $0xc0] sm:$0xf0]  ;;  %v9000_v26 = vld [vmem:[#allocation7 + $0x488] sm:$0xf] }
  0x82   :  { %v12991_v46 = vld [vmem:[#allocation7 + $0x484] sm:$0xf]  ;;  %v8869_v47 = vor.u32 %v12959_v44, %v8866_v45  ;;  %v13046_v44 = vld [vmem:[#allocation7 + $0xb44] sm:$0xf0] }
  0x83   :  { %1212 = vmatpush.bf16.msra.mxu2 %v9221_v56  ;;  %1186 = vmatpush.bf16.msra.mxu0 %v8933_v8  ;;  %v8994_v48 = vld [vmem:[#allocation7 + $0x4c0] sm:$0xf0]  ;;  %v12994_v27 = vld [vmem:[#allocation7 + $0x4c4] sm:$0xf0] }
  0x84   :  { %v8997_v49 = vor.u32 %v12991_v46, %v8994_v48  ;;  %v13027_v50 = vld [vmem:[#allocation7 + $0x904] sm:$0xf]  ;;  %v9336_v48 = vld [vmem:[#allocation7 + $0xf08] sm:$0xf] }
  0x85   :  { %1226 = vmatpush.bf16.msra.mxu3 %v9349_v57  ;;  %1199 = vmatpush.bf16.msra.mxu1 %v9077_v61  ;;  %v9138_v51 = vld [vmem:[#allocation7 + $0x940] sm:$0xf0]  ;;  %v9144_v30 = vld [vmem:[#allocation7 + $0x908] sm:$0xf] }
  0x86   :  { %v13059_v52 = vld [vmem:[#allocation7 + $0xd04] sm:$0xf]  ;;  %v9141_v53 = vor.u32 %v13027_v50, %v9138_v51  ;;  %v8920_v50 = vld [vmem:[#allocation7 + $0x208] sm:$0xf] }
  0x87   :  { %1213 = vmatpush.bf16.msra.mxu2 %v9205_v4  ;;  %1187 = vmatpush.bf16.msra.mxu0 %v8917_v18  ;;  %v9266_v54 = vld [vmem:[#allocation7 + $0xd40] sm:$0xf0]  ;;  %v12974_v51 = vld [vmem:[#allocation7 + $0x244] sm:$0xf0] }
  0x88   :  { %v9269_v55 = vor.u32 %v13059_v52, %v9266_v54  ;;  %v12955_v56 = vld [vmem:[#allocation7 + $0x4] sm:$0xf]  ;;  %v9048_v52 = vld [vmem:[#allocation7 + $0x608] sm:$0xf] }
  0x89   :  { %1227 = vmatpush.bf16.msra.mxu3 %v9333_v5  ;;  %1200 = vmatpush.bf16.msra.mxu1 %v9061_v9  ;;  %v8850_v57 = vld [vmem:[#allocation7 + $0x40] sm:$0xf0]  ;;  %v13062_v33 = vld [vmem:[#allocation7 + $0xd44] sm:$0xf0] }
  0x8a   :  { %v12987_v58 = vld [vmem:[#allocation7 + $0x404] sm:$0xf]  ;;  %v8853_v59 = vor.u32 %v12955_v56, %v8850_v57  ;;  %v9192_v56 = vld [vmem:[#allocation7 + $0xa88] sm:$0xf]  ;;  %v8921_v57 = vor.u32 %v12974_v51, %v8920_v50 }
  0x8b   :  { %1214 = vmatpush.bf16.msra.mxu2 %v9189_v16  ;;  %1188 = vmatpush.bf16.msra.mxu0 %v8901_v24  ;;  %v8978_v60 = vld [vmem:[#allocation7 + $0x440] sm:$0xf0]  ;;  %v9256_v50 = vld [vmem:[#allocation7 + $0xc88] sm:$0xf] }
  0x8c   :  { %v8981_v61 = vor.u32 %v12987_v58, %v8978_v60  ;;  %v13023_v62 = vld [vmem:[#allocation7 + $0x884] sm:$0xf]  ;;  %v9320_v60 = vld [vmem:[#allocation7 + $0xe88] sm:$0xf] }
  0x8d   :  { %1228 = vmatpush.bf16.msra.mxu3 %v9317_v17  ;;  %1201 = vmatpush.bf16.msra.mxu1 %v9045_v19  ;;  %v9122_v63 = vld [vmem:[#allocation7 + $0x8c0] sm:$0xf0]  ;;  %v13058_v51 = vld [vmem:[#allocation7 + $0xcc4] sm:$0xf0] }
  0x8e   :  { %v13055_v0 = vld [vmem:[#allocation7 + $0xc84] sm:$0xf]  ;;  %v9125_v2 = vor.u32 %v13023_v62, %v9122_v63  ;;  %v8904_v62 = vld [vmem:[#allocation7 + $0x188] sm:$0xf] }
  0x8f   :  { %1215 = vmatpush.bf16.msra.mxu2 %v9173_v29  ;;  %1189 = vmatpush.bf16.msra.mxu0 %v8885_v35  ;;  %v9250_v1 = vld [vmem:[#allocation7 + $0xcc0] sm:$0xf0]  ;;  %v13050_v29 = vld [vmem:[#allocation7 + $0xbc4] sm:$0xf0] }
  0x90   :  { %v9253_v3 = vor.u32 %v13055_v0, %v9250_v1  ;;  %v13019_v4 = vld [vmem:[#allocation7 + $0x804] sm:$0xf]  ;;  %v12978_v35 = vld [vmem:[#allocation7 + $0x2c4] sm:$0xf0] }
  0x91   :  { %1202 = vmatpush.bf16.msra.mxu1 %v9029_v25  ;;  %1229 = vmatpush.bf16.msra.mxu3 %v9301_v31  ;;  %v9106_v5 = vld [vmem:[#allocation7 + $0x840] sm:$0xf0]  ;;  %v12982_v25 = vld [vmem:[#allocation7 + $0x344] sm:$0xf0]  ;;  %v8937_v42 = vor.u32 %v12978_v35, %v8936_v34  ;;  %v9001_v35 = vor.u32 %v12994_v27, %v9000_v26  ;;  %v13004_v26 = vld [vmem:[#allocation7 + $0x60c] sm:$0xf] }
  0x92   :  { %v9109_v6 = vor.u32 %v13019_v4, %v9106_v5  ;;  %v13051_v7 = vld [vmem:[#allocation7 + $0xc04] sm:$0xf]  ;;  %v8953_v31 = vor.u32 %v12982_v25, %v8952_v22  ;;  %v12970_v63 = vld [vmem:[#allocation7 + $0x1c4] sm:$0xf0]  ;;  %v9050_v27 = vld [vmem:[#allocation7 + $0x648] sm:$0xf0] }
  0x93   :  { %1216 = vmatpush.bf16.msra.mxu2 %v9157_v40  ;;  %1190 = vmatpush.bf16.msra.mxu0 %v8869_v47  ;;  %v9234_v8 = vld [vmem:[#allocation7 + $0xc40] sm:$0xf0]  ;;  %v9225_v40 = vor.u32 %v13050_v29, %v9224_v28  ;;  %v9065_v47 = vor.u32 %v13010_v37, %v9064_v36  ;;  %v9032_v0 = vld [vmem:[#allocation7 + $0x588] sm:$0xf] }
  0x94   :  { %v9237_v9 = vor.u32 %v13051_v7, %v9234_v8  ;;  %v13002_v1 = vld [vmem:[#allocation7 + $0x5c4] sm:$0xf0]  ;;  %v8905_v8 = vor.u32 %v12970_v63, %v8904_v62 }
  0x95   :  { %1203 = vmatpush.bf16.msra.mxu1 %v9013_v39  ;;  %1230 = vmatpush.bf16.msra.mxu3 %v9285_v43  ;;  %v9208_v43 = vld [vmem:[#allocation7 + $0xb08] sm:$0xf] }
  0x96   :  { %v9209_v54 = vor.u32 %v13046_v44, %v9208_v43  ;;  %v9176_v4 = vld [vmem:[#allocation7 + $0xa08] sm:$0xf]  ;;  %v13016_v44 = vld [vmem:[#allocation7 + $0x78c] sm:$0xf] }
  0x97   :  { %1217 = vmatpush.bf16.msra.mxu2 %v9141_v53  ;;  %1191 = vmatpush.bf16.msra.mxu0 %v8853_v59  ;;  %v13006_v53 = vld [vmem:[#allocation7 + $0x644] sm:$0xf0] }
  0x98   :  { %v9049_v58 = vor.u32 %v13006_v53, %v9048_v52  ;;  %v13042_v59 = vld [vmem:[#allocation7 + $0xac4] sm:$0xf0] }
  0x99   :  { %1204 = vmatpush.bf16.msra.mxu1 %v8997_v49  ;;  %1231 = vmatpush.bf16.msra.mxu3 %v9269_v55  ;;  %v13078_v49 = vld [vmem:[#allocation7 + $0xf44] sm:$0xf0] }
  0x9a   :  { %v9337_v55 = vor.u32 %v13078_v49, %v9336_v48  ;;  %v13038_v5 = vld [vmem:[#allocation7 + $0xa44] sm:$0xf0] }
  0x9b   :  { %1218 = vmatpush.bf16.msra.mxu2 %v9125_v2  ;;  %v9193_v2 = vor.u32 %v13042_v59, %v9192_v56  ;;  %v13070_v7 = vld [vmem:[#allocation7 + $0xe44] sm:$0xf0]  ;;  %v9177_v14 = vor.u32 %v13038_v5, %v9176_v4  ;;  %v12980_v56 = vld [vmem:[#allocation7 + $0x30c] sm:$0xf] }
  0x9c   :  { %v8872_v22 = vld [vmem:[#allocation7 + $0x88] sm:$0xf]  ;;  %v13080_v4 = vld [vmem:[#allocation7 + $0xf8c] sm:$0xf] }
  0x9d   :  { %1205 = vmatpush.bf16.msra.mxu1 %v8981_v61  ;;  %1232 = vmatpush.bf16.msra.mxu3 %v9253_v3  ;;  %v13074_v61 = vld [vmem:[#allocation7 + $0xec4] sm:$0xf0]  ;;  %v9354_v5 = vld [vmem:[#allocation7 + $0xfc8] sm:$0xf0] }
  0x9e   :  { %v9321_v3 = vor.u32 %v13074_v61, %v9320_v60  ;;  %v12962_v25 = vld [vmem:[#allocation7 + $0xc4] sm:$0xf0]  ;;  %v9257_v60 = vor.u32 %v13058_v51, %v9256_v50  ;;  %v9082_v61 = vld [vmem:[#allocation7 + $0x748] sm:$0xf0] }
  0x9f   :  { %1219 = vmatpush.bf16.msra.mxu2 %v9109_v6  ;;  %v9304_v6 = vld [vmem:[#allocation7 + $0xe08] sm:$0xf]  ;;  %v8873_v34 = vor.u32 %v12962_v25, %v8872_v22  ;;  %v12972_v22 = vld [vmem:[#allocation7 + $0x20c] sm:$0xf] }
  0xa0   :  { %v9305_v15 = vor.u32 %v13070_v7, %v9304_v6  ;;  %v8856_v36 = vld [vmem:[#allocation7 + $0x8] sm:$0xf]  ;;  %v8922_v25 = vld [vmem:[#allocation7 + $0x248] sm:$0xf0] }
  0xa1   :  { %1233 = vmatpush.bf16.msra.mxu3 %v9237_v9  ;;  %v9033_v9 = vor.u32 %v13002_v1, %v9032_v0  ;;  %v12958_v37 = vld [vmem:[#allocation7 + $0x44] sm:$0xf0]  ;;  %v12964_v50 = vld [vmem:[#allocation7 + $0x10c] sm:$0xf] }
  0xa2   :  { %v9128_v48 = vld [vmem:[#allocation7 + $0x888] sm:$0xf]  ;;  %v8857_v52 = vor.u32 %v12958_v37, %v8856_v36  ;;  %v12968_v36 = vld [vmem:[#allocation7 + $0x18c] sm:$0xf] }
  0xa3   :  { %v13026_v49 = vld [vmem:[#allocation7 + $0x8c4] sm:$0xf0]  ;;  %v8906_v37 = vld [vmem:[#allocation7 + $0x1c8] sm:$0xf0] }
  0xa4   :  { %v9129_v59 = vor.u32 %v13026_v49, %v9128_v48  ;;  %v9112_v62 = vld [vmem:[#allocation7 + $0x808] sm:$0xf]  ;;  %v8909_v48 = vor.u32 %v12968_v36, %v8906_v37  ;;  %v8890_v51 = vld [vmem:[#allocation7 + $0x148] sm:$0xf0] }
  0xa5   :  { %v13022_v63 = vld [vmem:[#allocation7 + $0x844] sm:$0xf0]  ;;  %v13020_v36 = vld [vmem:[#allocation7 + $0x80c] sm:$0xf] }
  0xa6   :  { %v9240_v0 = vld [vmem:[#allocation7 + $0xc08] sm:$0xf]  ;;  %v9114_v37 = vld [vmem:[#allocation7 + $0x848] sm:$0xf0] }
  0xa7   :  { %v13054_v1 = vld [vmem:[#allocation7 + $0xc44] sm:$0xf0] }
  0xc4   :  { %v266_v10 = vpop.f32.mrf.mxu0  ;;  %v291_v11 = vpop.f32.mrf.mxu1 }
  0xcc   :  { %v316_v16 = vpop.f32.mrf.mxu2  ;;  %v341_v17 = vpop.f32.mrf.mxu3 }
  0xcd   :  { %v268_v18 = vpop.f32.mrf.mxu0  ;;  %v293_v19 = vpop.f32.mrf.mxu1 }
  0xce   :  { %v14504_v23 = vpack.c.bf16 %v268_v18, %v266_v10  ;;  %v14506_v24 = vpack.c.bf16 %v293_v19, %v291_v11  ;;  %v8888_v10 = vld [vmem:[#allocation7 + $0x108] sm:$0xf] }
  0xcf   :  { %v12966_v11 = vld [vmem:[#allocation7 + $0x144] sm:$0xf0] }
  0xd0   :  { %1136 = vmatmul.bf16.vlgmr.msrb.gmra.mxu0 %v14504_v23  ;;  %1150 = vmatmul.bf16.vlgmr.msrb.gmra.mxu1 %v14506_v24  ;;  %v9288_v18 = vld [vmem:[#allocation7 + $0xd88] sm:$0xf] }
  0xd1   :  { %1240 = vmatpush.bf16.msrb.mxu0 %v8969_v20  ;;  %1254 = vmatpush.bf16.msrb.mxu1 %v9097_v21  ;;  %v13066_v19 = vld [vmem:[#allocation7 + $0xdc4] sm:$0xf0]  ;;  %v8889_v20 = vor.u32 %v12966_v11, %v8888_v10  ;;  %v9017_v21 = vor.u32 %v12998_v13, %v9016_v12  ;;  %v9241_v10 = vor.u32 %v13054_v1, %v9240_v0  ;;  %v8938_v11 = vld [vmem:[#allocation7 + $0x2c8] sm:$0xf0] }
  0xd2   :  { %v9289_v29 = vor.u32 %v13066_v19, %v9288_v18  ;;  %v13008_v12 = vld [vmem:[#allocation7 + $0x68c] sm:$0xf] }
  0xd3   :  { %v9066_v13 = vld [vmem:[#allocation7 + $0x6c8] sm:$0xf0] }
  0xd4   :  { %v318_v38 = vpop.f32.mrf.mxu2  ;;  %v343_v39 = vpop.f32.mrf.mxu3  ;;  %v13076_v18 = vld [vmem:[#allocation7 + $0xf0c] sm:$0xf] }
  0xd5   :  { %v14510_v45 = vpack.c.bf16 %v318_v38, %v316_v16  ;;  %v14512_v46 = vpack.c.bf16 %v343_v39, %v341_v17  ;;  %1241 = vmatpush.bf16.msrb.mxu0 %v8953_v31  ;;  %1255 = vmatpush.bf16.msrb.mxu1 %v9081_v32  ;;  %v9160_v16 = vld [vmem:[#allocation7 + $0x988] sm:$0xf]  ;;  %v9338_v19 = vld [vmem:[#allocation7 + $0xf48] sm:$0xf0] }
  0xd6   :  { %v13034_v17 = vld [vmem:[#allocation7 + $0x9c4] sm:$0xf0]  ;;  %v12992_v0 = vld [vmem:[#allocation7 + $0x48c] sm:$0xf] }
  0xd7   :  { %1164 = vmatmul.bf16.vlgmr.msrb.gmra.mxu2 %v14510_v45  ;;  %1178 = vmatmul.bf16.vlgmr.msrb.gmra.mxu3 %v14512_v46  ;;  %v9161_v28 = vor.u32 %v13034_v17, %v9160_v16  ;;  %v13030_v31 = vld [vmem:[#allocation7 + $0x944] sm:$0xf0]  ;;  %v13044_v16 = vld [vmem:[#allocation7 + $0xb0c] sm:$0xf] }
  0xd8   :  { %1268 = vmatpush.bf16.msrb.mxu2 %v9225_v40  ;;  %1282 = vmatpush.bf16.msrb.mxu3 %v9353_v41  ;;  %v9272_v32 = vld [vmem:[#allocation7 + $0xd08] sm:$0xf]  ;;  %v12984_v40 = vld [vmem:[#allocation7 + $0x38c] sm:$0xf] }
  0xd9   :  { %1242 = vmatpush.bf16.msrb.mxu0 %v8937_v42  ;;  %1256 = vmatpush.bf16.msrb.mxu1 %v9065_v47  ;;  %v8984_v38 = vld [vmem:[#allocation7 + $0x408] sm:$0xf]  ;;  %v8970_v41 = vld [vmem:[#allocation7 + $0x3c8] sm:$0xf0]  ;;  %v9145_v42 = vor.u32 %v13030_v31, %v9144_v30  ;;  %v9273_v43 = vor.u32 %v13062_v33, %v9272_v32 }
  0xda   :  { %v12990_v39 = vld [vmem:[#allocation7 + $0x444] sm:$0xf0]  ;;  %v9098_v47 = vld [vmem:[#allocation7 + $0x7c8] sm:$0xf0] }
  0xdb   :  { %v8985_v53 = vor.u32 %v12990_v39, %v8984_v38  ;;  %v9210_v17 = vld [vmem:[#allocation7 + $0xb48] sm:$0xf0] }
  0xdc   :  { %1269 = vmatpush.bf16.msrb.mxu2 %v9209_v54  ;;  %1283 = vmatpush.bf16.msrb.mxu3 %v9337_v55  ;;  %v8973_v54 = vor.u32 %v12984_v40, %v8970_v41  ;;  %v9101_v55 = vor.u32 %v13016_v44, %v9098_v47  ;;  %v13040_v30 = vld [vmem:[#allocation7 + $0xa8c] sm:$0xf] }
  0xdd   :  { %1243 = vmatpush.bf16.msrb.mxu0 %v8921_v57  ;;  %1257 = vmatpush.bf16.msrb.mxu1 %v9049_v58  ;;  %v8954_v57 = vld [vmem:[#allocation7 + $0x348] sm:$0xf0] }
  0xde   :  { %v13012_v58 = vld [vmem:[#allocation7 + $0x70c] sm:$0xf]  ;;  %v8957_v6 = vor.u32 %v12980_v56, %v8954_v57 }
  0xdf   :  { %v9085_v7 = vor.u32 %v13012_v58, %v9082_v61  ;;  %v9194_v31 = vld [vmem:[#allocation7 + $0xac8] sm:$0xf0] }
  0xe0   :  { %1270 = vmatpush.bf16.msrb.mxu2 %v9193_v2  ;;  %1284 = vmatpush.bf16.msrb.mxu3 %v9321_v3  ;;  %v13048_v2 = vld [vmem:[#allocation7 + $0xb8c] sm:$0xf]  ;;  %v9197_v40 = vor.u32 %v13040_v30, %v9194_v31  ;;  %v9456_v30 = vld [vmem:[#allocation7 + $0x310] sm:$0xf] }
  0xe1   :  { %1192 = vmatmul.bf16.vlgmr.msra.gmra.mxu0 %v14504_v23  ;;  %1206 = vmatmul.bf16.vlgmr.msra.gmra.mxu1 %v14506_v24  ;;  %v9226_v3 = vld [vmem:[#allocation7 + $0xbc8] sm:$0xf0]  ;;  %v13109_v31 = vld [vmem:[#allocation7 + $0x34c] sm:$0xf0] }
  0xe2   :  { %1244 = vmatpush.bf16.msrb.mxu0 %v8905_v8  ;;  %1258 = vmatpush.bf16.msrb.mxu1 %v9033_v9  ;;  %v12976_v8 = vld [vmem:[#allocation7 + $0x28c] sm:$0xf]  ;;  %v9113_v9 = vor.u32 %v13022_v63, %v9112_v62 }
  0xe3   :  { %v13072_v32 = vld [vmem:[#allocation7 + $0xe8c] sm:$0xf] }
  0xe4   :  { %1271 = vmatpush.bf16.msrb.mxu2 %v9177_v14  ;;  %1285 = vmatpush.bf16.msrb.mxu3 %v9305_v15  ;;  %v9229_v14 = vor.u32 %v13048_v2, %v9226_v3  ;;  %v9357_v15 = vor.u32 %v13080_v4, %v9354_v5  ;;  %v9322_v33 = vld [vmem:[#allocation7 + $0xec8] sm:$0xf0] }
  0xe5   :  { %v13000_v38 = vld [vmem:[#allocation7 + $0x58c] sm:$0xf]  ;;  %v9325_v41 = vor.u32 %v13072_v32, %v9322_v33  ;;  %v9584_v32 = vld [vmem:[#allocation7 + $0x710] sm:$0xf] }
  0xe6   :  { %1245 = vmatpush.bf16.msrb.mxu0 %v8889_v20  ;;  %1259 = vmatpush.bf16.msrb.mxu1 %v9017_v21  ;;  %v8941_v20 = vor.u32 %v12976_v8, %v8938_v11  ;;  %v9069_v21 = vor.u32 %v13008_v12, %v9066_v13  ;;  %v9034_v39 = vld [vmem:[#allocation7 + $0x5c8] sm:$0xf0] }
  0xe7   :  { %1220 = vmatmul.bf16.vlgmr.msra.gmra.mxu2 %v14510_v45  ;;  %1234 = vmatmul.bf16.vlgmr.msra.gmra.mxu3 %v14512_v46  ;;  %v13068_v44 = vld [vmem:[#allocation7 + $0xe0c] sm:$0xf]  ;;  %v9037_v49 = vor.u32 %v13000_v38, %v9034_v39 }
  0xe8   :  { %1272 = vmatpush.bf16.msrb.mxu2 %v9161_v28  ;;  %1286 = vmatpush.bf16.msrb.mxu3 %v9289_v29  ;;  %v9213_v28 = vor.u32 %v13044_v16, %v9210_v17  ;;  %v9341_v29 = vor.u32 %v13076_v18, %v9338_v19  ;;  %v9306_v47 = vld [vmem:[#allocation7 + $0xe48] sm:$0xf0]  ;;  %v9600_v18 = vld [vmem:[#allocation7 + $0x790] sm:$0xf] }
  0xe9   :  { %v13032_v56 = vld [vmem:[#allocation7 + $0x98c] sm:$0xf]  ;;  %v13145_v19 = vld [vmem:[#allocation7 + $0x7cc] sm:$0xf0] }
  0xea   :  { %1246 = vmatpush.bf16.msrb.mxu0 %v8873_v34  ;;  %1260 = vmatpush.bf16.msrb.mxu1 %v9001_v35  ;;  %v8925_v34 = vor.u32 %v12972_v22, %v8922_v25  ;;  %v9053_v35 = vor.u32 %v13004_v26, %v9050_v27  ;;  %v9162_v57 = vld [vmem:[#allocation7 + $0x9c8] sm:$0xf0] }
  0xeb   :  { %v13064_v58 = vld [vmem:[#allocation7 + $0xd8c] sm:$0xf]  ;;  %v9165_v2 = vor.u32 %v13032_v56, %v9162_v57  ;;  %v9712_v56 = vld [vmem:[#allocation7 + $0xb10] sm:$0xf] }
  0xec   :  { %1273 = vmatpush.bf16.msrb.mxu2 %v9145_v42  ;;  %1287 = vmatpush.bf16.msrb.mxu3 %v9273_v43  ;;  %v13036_v42 = vld [vmem:[#allocation7 + $0xa0c] sm:$0xf]  ;;  %v13173_v57 = vld [vmem:[#allocation7 + $0xb4c] sm:$0xf0] }
  0xed   :  { %v9178_v43 = vld [vmem:[#allocation7 + $0xa48] sm:$0xf0] }
  0xee   :  { %1247 = vmatpush.bf16.msrb.mxu0 %v8857_v52  ;;  %1261 = vmatpush.bf16.msrb.mxu1 %v8985_v53  ;;  %v12996_v52 = vld [vmem:[#allocation7 + $0x50c] sm:$0xf] }
  0xef   :  { %v9018_v53 = vld [vmem:[#allocation7 + $0x548] sm:$0xf0] }
  0xf0   :  { %1274 = vmatpush.bf16.msrb.mxu2 %v9129_v59  ;;  %1288 = vmatpush.bf16.msrb.mxu3 %v9257_v60  ;;  %v9290_v59 = vld [vmem:[#allocation7 + $0xdc8] sm:$0xf0]  ;;  %v8893_v60 = vor.u32 %v12964_v50, %v8890_v51  ;;  %v9021_v61 = vor.u32 %v12996_v52, %v9018_v53  ;;  %v9440_v50 = vld [vmem:[#allocation7 + $0x290] sm:$0xf] }
  0xf1   :  { %1248 = vmatmul.bf16.vlgmr.msrb.gmra.mxu0 %v14504_v23  ;;  %1262 = vmatmul.bf16.vlgmr.msrb.gmra.mxu1 %v14506_v24  ;;  %v12960_v62 = vld [vmem:[#allocation7 + $0x8c] sm:$0xf]  ;;  %v9293_v3 = vor.u32 %v13064_v58, %v9290_v59  ;;  %v13105_v51 = vld [vmem:[#allocation7 + $0x2cc] sm:$0xf0] }
  0xf2   :  { %1296 = vmatpush.bf16.msra.mxu0 %v8973_v54  ;;  %1310 = vmatpush.bf16.msra.mxu1 %v9101_v55  ;;  %v9181_v54 = vor.u32 %v13036_v42, %v9178_v43  ;;  %v9309_v55 = vor.u32 %v13068_v44, %v9306_v47  ;;  %v8874_v63 = vld [vmem:[#allocation7 + $0xc8] sm:$0xf0]  ;;  %v9856_v42 = vld [vmem:[#allocation7 + $0xf90] sm:$0xf]  ;;  %v9457_v44 = vor.u32 %v13109_v31, %v9456_v30 }
  0xf3   :  { %v9002_v1 = vld [vmem:[#allocation7 + $0x4c8] sm:$0xf0]  ;;  %v8877_v8 = vor.u32 %v12960_v62, %v8874_v63  ;;  %v13209_v43 = vld [vmem:[#allocation7 + $0xfcc] sm:$0xf0] }
  0xf4   :  { %1275 = vmatpush.bf16.msrb.mxu2 %v9113_v9  ;;  %1289 = vmatpush.bf16.msrb.mxu3 %v9241_v10  ;;  %v13028_v4 = vld [vmem:[#allocation7 + $0x90c] sm:$0xf]  ;;  %v9005_v9 = vor.u32 %v12992_v0, %v9002_v1  ;;  %v9857_v53 = vor.u32 %v13209_v43, %v9856_v42  ;;  %v9840_v58 = vld [vmem:[#allocation7 + $0xf10] sm:$0xf]  ;;  %v9713_v0 = vor.u32 %v13173_v57, %v9712_v56  ;;  %v13111_v56 = vld [vmem:[#allocation7 + $0x394] sm:$0xf] }
  0xf5   :  { %v9146_v5 = vld [vmem:[#allocation7 + $0x948] sm:$0xf0]  ;;  %v13205_v59 = vld [vmem:[#allocation7 + $0xf4c] sm:$0xf0]  ;;  %v9474_v57 = vld [vmem:[#allocation7 + $0x3d0] sm:$0xf0] }
  0xf6   :  { %1297 = vmatpush.bf16.msra.mxu0 %v8957_v6  ;;  %1311 = vmatpush.bf16.msra.mxu1 %v9085_v7  ;;  %v13060_v6 = vld [vmem:[#allocation7 + $0xd0c] sm:$0xf]  ;;  %v9149_v16 = vor.u32 %v13028_v4, %v9146_v5  ;;  %v9424_v62 = vld [vmem:[#allocation7 + $0x210] sm:$0xf]  ;;  %v9841_v1 = vor.u32 %v13205_v59, %v9840_v58  ;;  %v13143_v58 = vld [vmem:[#allocation7 + $0x794] sm:$0xf] }
  0xf7   :  { %1276 = vmatmul.bf16.vlgmr.msrb.gmra.mxu2 %v14510_v45  ;;  %1290 = vmatmul.bf16.vlgmr.msrb.gmra.mxu3 %v14512_v46  ;;  %v9274_v7 = vld [vmem:[#allocation7 + $0xd48] sm:$0xf0]  ;;  %v13101_v63 = vld [vmem:[#allocation7 + $0x24c] sm:$0xf0]  ;;  %v9602_v59 = vld [vmem:[#allocation7 + $0x7d0] sm:$0xf0] }
  0xf8   :  { %1324 = vmatpush.bf16.msra.mxu2 %v9229_v14  ;;  %1338 = vmatpush.bf16.msra.mxu3 %v9357_v15  ;;  %v12956_v10 = vld [vmem:[#allocation7 + $0xc] sm:$0xf]  ;;  %v9472_v14 = vld [vmem:[#allocation7 + $0x390] sm:$0xf]  ;;  %v9277_v17 = vor.u32 %v13060_v6, %v9274_v7 }
  0xf9   :  { %v8858_v11 = vld [vmem:[#allocation7 + $0x48] sm:$0xf0]  ;;  %v13113_v15 = vld [vmem:[#allocation7 + $0x3cc] sm:$0xf0] }
  0xfa   :  { %1298 = vmatpush.bf16.msra.mxu0 %v8941_v20  ;;  %1312 = vmatpush.bf16.msra.mxu1 %v9069_v21  ;;  %v12988_v12 = vld [vmem:[#allocation7 + $0x40c] sm:$0xf]  ;;  %v8861_v26 = vor.u32 %v12956_v10, %v8858_v11  ;;  %v9696_v4 = vld [vmem:[#allocation7 + $0xa90] sm:$0xf] }
  0xfb   :  { %v8986_v13 = vld [vmem:[#allocation7 + $0x448] sm:$0xf0]  ;;  %v13169_v5 = vld [vmem:[#allocation7 + $0xacc] sm:$0xf0] }
  0xfc   :  { %1325 = vmatpush.bf16.msra.mxu2 %v9213_v28  ;;  %1339 = vmatpush.bf16.msra.mxu3 %v9341_v29  ;;  %v13024_v20 = vld [vmem:[#allocation7 + $0x88c] sm:$0xf]  ;;  %v8989_v27 = vor.u32 %v12988_v12, %v8986_v13  ;;  %v9473_v28 = vor.u32 %v13113_v15, %v9472_v14  ;;  %v9601_v29 = vor.u32 %v13145_v19, %v9600_v18  ;;  %v9824_v6 = vld [vmem:[#allocation7 + $0xe90] sm:$0xf] }
  0xfd   :  { %v9130_v21 = vld [vmem:[#allocation7 + $0x8c8] sm:$0xf0]  ;;  %v13201_v7 = vld [vmem:[#allocation7 + $0xecc] sm:$0xf0]  ;;  %v9697_v12 = vor.u32 %v13169_v5, %v9696_v4  ;;  %v13107_v4 = vld [vmem:[#allocation7 + $0x314] sm:$0xf] }
  0xfe   :  { %1299 = vmatpush.bf16.msra.mxu0 %v8925_v34  ;;  %1313 = vmatpush.bf16.msra.mxu1 %v9053_v35  ;;  %v13056_v22 = vld [vmem:[#allocation7 + $0xc8c] sm:$0xf]  ;;  %v9133_v33 = vor.u32 %v13024_v20, %v9130_v21  ;;  %v13141_v35 = vld [vmem:[#allocation7 + $0x74c] sm:$0xf0]  ;;  %v9825_v13 = vor.u32 %v13201_v7, %v9824_v6  ;;  %v9458_v5 = vld [vmem:[#allocation7 + $0x350] sm:$0xf0] }
  0xff   :  { %v9258_v25 = vld [vmem:[#allocation7 + $0xcc8] sm:$0xf0]  ;;  %v9585_v47 = vor.u32 %v13141_v35, %v9584_v32  ;;  %v9408_v10 = vld [vmem:[#allocation7 + $0x190] sm:$0xf]  ;;  %v13139_v6 = vld [vmem:[#allocation7 + $0x714] sm:$0xf] }
 0x100   :  { %1326 = vmatpush.bf16.msra.mxu2 %v9197_v40  ;;  %1340 = vmatpush.bf16.msra.mxu3 %v9325_v41  ;;  %v9261_v34 = vor.u32 %v13056_v22, %v9258_v25  ;;  %v13052_v38 = vld [vmem:[#allocation7 + $0xc0c] sm:$0xf]  ;;  %v9728_v40 = vld [vmem:[#allocation7 + $0xb90] sm:$0xf] }
 0x101   :  { %v9242_v39 = vld [vmem:[#allocation7 + $0xc48] sm:$0xf0]  ;;  %v13177_v41 = vld [vmem:[#allocation7 + $0xbcc] sm:$0xf0] }
 0x102   :  { %1300 = vmatpush.bf16.msra.mxu0 %v8909_v48  ;;  %1314 = vmatpush.bf16.msra.mxu1 %v9037_v49  ;;  %v9117_v48 = vor.u32 %v13020_v36, %v9114_v37  ;;  %v9245_v49 = vor.u32 %v13052_v38, %v9242_v39  ;;  %v9729_v52 = vor.u32 %v13177_v41, %v9728_v40  ;;  %v13097_v11 = vld [vmem:[#allocation7 + $0x1cc] sm:$0xf0] }
 0x103   :  { %v9536_v14 = vld [vmem:[#allocation7 + $0x590] sm:$0xf]  ;;  %v9409_v20 = vor.u32 %v13097_v11, %v9408_v10 }
 0x104   :  { %1327 = vmatpush.bf16.msra.mxu2 %v9181_v54  ;;  %1341 = vmatpush.bf16.msra.mxu3 %v9309_v55  ;;  %v9568_v54 = vld [vmem:[#allocation7 + $0x690] sm:$0xf] }
 0x105   :  { %v13137_v55 = vld [vmem:[#allocation7 + $0x6cc] sm:$0xf0] }
 0x106   :  { %1301 = vmatpush.bf16.msra.mxu0 %v8893_v60  ;;  %1315 = vmatpush.bf16.msra.mxu1 %v9021_v61  ;;  %v9441_v60 = vor.u32 %v13105_v51, %v9440_v50  ;;  %v9569_v61 = vor.u32 %v13137_v55, %v9568_v54  ;;  %v13129_v15 = vld [vmem:[#allocation7 + $0x5cc] sm:$0xf0] }
 0x107   :  { %v9808_v18 = vld [vmem:[#allocation7 + $0xe10] sm:$0xf]  ;;  %v9537_v21 = vor.u32 %v13129_v15, %v9536_v14  ;;  %v13175_v14 = vld [vmem:[#allocation7 + $0xb94] sm:$0xf] }
 0x108   :  { %1328 = vmatpush.bf16.msra.mxu2 %v9165_v2  ;;  %1342 = vmatpush.bf16.msra.mxu3 %v9293_v3  ;;  %v9552_v2 = vld [vmem:[#allocation7 + $0x610] sm:$0xf]  ;;  %v9730_v15 = vld [vmem:[#allocation7 + $0xbd0] sm:$0xf0] }
 0x109   :  { %v13133_v3 = vld [vmem:[#allocation7 + $0x64c] sm:$0xf0] }
 0x10a   :  { %1302 = vmatpush.bf16.msra.mxu0 %v8877_v8  ;;  %1316 = vmatpush.bf16.msra.mxu1 %v9005_v9  ;;  %v9425_v8 = vor.u32 %v13101_v63, %v9424_v62  ;;  %v9553_v9 = vor.u32 %v13133_v3, %v9552_v2  ;;  %v13197_v19 = vld [vmem:[#allocation7 + $0xe4c] sm:$0xf0]  ;;  %v9477_v2 = vor.u32 %v13111_v56, %v9474_v57  ;;  %v13163_v56 = vld [vmem:[#allocation7 + $0xa14] sm:$0xf] }
 0x10b   :  { %v9392_v22 = vld [vmem:[#allocation7 + $0x110] sm:$0xf]  ;;  %v9605_v3 = vor.u32 %v13143_v58, %v9602_v59  ;;  %v9682_v57 = vld [vmem:[#allocation7 + $0xa50] sm:$0xf0] }
 0x10c   :  { %1329 = vmatpush.bf16.msra.mxu2 %v9149_v16  ;;  %1343 = vmatpush.bf16.msra.mxu3 %v9277_v17  ;;  %v9680_v16 = vld [vmem:[#allocation7 + $0xa10] sm:$0xf]  ;;  %v13195_v58 = vld [vmem:[#allocation7 + $0xe14] sm:$0xf] }
 0x10d   :  { %v13165_v17 = vld [vmem:[#allocation7 + $0xa4c] sm:$0xf0]  ;;  %v9810_v59 = vld [vmem:[#allocation7 + $0xe50] sm:$0xf0] }
 0x10e   :  { %1303 = vmatpush.bf16.msra.mxu0 %v8861_v26  ;;  %1317 = vmatpush.bf16.msra.mxu1 %v8989_v27  ;;  %v13093_v25 = vld [vmem:[#allocation7 + $0x14c] sm:$0xf0]  ;;  %v9681_v26 = vor.u32 %v13165_v17, %v9680_v16  ;;  %v9809_v27 = vor.u32 %v13197_v19, %v9808_v18  ;;  %v13207_v16 = vld [vmem:[#allocation7 + $0xf94] sm:$0xf]  ;;  %v9461_v18 = vor.u32 %v13107_v4, %v9458_v5 }
 0x10f   :  { %v9664_v30 = vld [vmem:[#allocation7 + $0x990] sm:$0xf]  ;;  %v9858_v17 = vld [vmem:[#allocation7 + $0xfd0] sm:$0xf0] }
 0x110   :  { %1330 = vmatpush.bf16.msra.mxu2 %v9133_v33  ;;  %1344 = vmatpush.bf16.msra.mxu3 %v9261_v34  ;;  %v13161_v31 = vld [vmem:[#allocation7 + $0x9cc] sm:$0xf0]  ;;  %v9393_v34 = vor.u32 %v13093_v25, %v9392_v22  ;;  %v13103_v22 = vld [vmem:[#allocation7 + $0x294] sm:$0xf] }
 0x111   :  { %1304 = vmatmul.bf16.vlgmr.msra.gmra.mxu0 %v14504_v23  ;;  %1318 = vmatmul.bf16.vlgmr.msra.gmra.mxu1 %v14506_v24  ;;  %v9792_v32 = vld [vmem:[#allocation7 + $0xd90] sm:$0xf]  ;;  %v9665_v38 = vor.u32 %v13161_v31, %v9664_v30  ;;  %v9442_v25 = vld [vmem:[#allocation7 + $0x2d0] sm:$0xf0] }
 0x112   :  { %2159 = vmatpush.bf16.msrb.mxu0 %v9473_v28  ;;  %2173 = vmatpush.bf16.msrb.mxu1 %v9601_v29  ;;  %v9520_v28 = vld [vmem:[#allocation7 + $0x510] sm:$0xf]  ;;  %v13171_v30 = vld [vmem:[#allocation7 + $0xb14] sm:$0xf] }
 0x113   :  { %v13125_v29 = vld [vmem:[#allocation7 + $0x54c] sm:$0xf0]  ;;  %v9714_v31 = vld [vmem:[#allocation7 + $0xb50] sm:$0xf0] }
 0x114   :  { %1331 = vmatpush.bf16.msra.mxu2 %v9117_v48  ;;  %1345 = vmatpush.bf16.msra.mxu3 %v9245_v49  ;;  %v13193_v33 = vld [vmem:[#allocation7 + $0xdcc] sm:$0xf0]  ;;  %v9521_v35 = vor.u32 %v13125_v29, %v9520_v28  ;;  %v13135_v28 = vld [vmem:[#allocation7 + $0x694] sm:$0xf] }
 0x115   :  { %v9376_v36 = vld [vmem:[#allocation7 + $0x90] sm:$0xf]  ;;  %v9793_v39 = vor.u32 %v13193_v33, %v9792_v32  ;;  %v9570_v29 = vld [vmem:[#allocation7 + $0x6d0] sm:$0xf0] }
 0x116   :  { %2160 = vmatpush.bf16.msrb.mxu0 %v9457_v44  ;;  %2174 = vmatpush.bf16.msrb.mxu1 %v9585_v47  ;;  %v13089_v37 = vld [vmem:[#allocation7 + $0xcc] sm:$0xf0]  ;;  %v13203_v32 = vld [vmem:[#allocation7 + $0xf14] sm:$0xf] }
 0x117   :  { %1332 = vmatmul.bf16.vlgmr.msra.gmra.mxu2 %v14510_v45  ;;  %1346 = vmatmul.bf16.vlgmr.msra.gmra.mxu3 %v14512_v46  ;;  %v9504_v40 = vld [vmem:[#allocation7 + $0x490] sm:$0xf]  ;;  %v9377_v48 = vor.u32 %v13089_v37, %v9376_v36  ;;  %v9842_v33 = vld [vmem:[#allocation7 + $0xf50] sm:$0xf0] }
 0x118   :  { %2187 = vmatpush.bf16.msrb.mxu2 %v9729_v52  ;;  %2201 = vmatpush.bf16.msrb.mxu3 %v9857_v53  ;;  %v13121_v41 = vld [vmem:[#allocation7 + $0x4cc] sm:$0xf0]  ;;  %v13099_v36 = vld [vmem:[#allocation7 + $0x214] sm:$0xf] }
 0x119   :  { %v9648_v42 = vld [vmem:[#allocation7 + $0x910] sm:$0xf]  ;;  %v9505_v49 = vor.u32 %v13121_v41, %v9504_v40  ;;  %v9426_v37 = vld [vmem:[#allocation7 + $0x250] sm:$0xf0] }
 0x11a   :  { %2161 = vmatpush.bf16.msrb.mxu0 %v9441_v60  ;;  %2175 = vmatpush.bf16.msrb.mxu1 %v9569_v61  ;;  %v13157_v43 = vld [vmem:[#allocation7 + $0x94c] sm:$0xf0]  ;;  %v13131_v40 = vld [vmem:[#allocation7 + $0x614] sm:$0xf] }
 0x11b   :  { %v9776_v44 = vld [vmem:[#allocation7 + $0xd10] sm:$0xf]  ;;  %v9649_v53 = vor.u32 %v13157_v43, %v9648_v42  ;;  %v9554_v41 = vld [vmem:[#allocation7 + $0x650] sm:$0xf0] }
 0x11c   :  { %2188 = vmatpush.bf16.msrb.mxu2 %v9713_v0  ;;  %2202 = vmatpush.bf16.msrb.mxu3 %v9841_v1  ;;  %v13189_v47 = vld [vmem:[#allocation7 + $0xd4c] sm:$0xf0]  ;;  %v13167_v42 = vld [vmem:[#allocation7 + $0xa94] sm:$0xf] }
 0x11d   :  { %v9360_v50 = vld [vmem:[#allocation7 + $0x10] sm:$0xf]  ;;  %v9777_v54 = vor.u32 %v13189_v47, %v9776_v44  ;;  %v9698_v43 = vld [vmem:[#allocation7 + $0xad0] sm:$0xf0] }
 0x11e   :  { %2162 = vmatpush.bf16.msrb.mxu0 %v9425_v8  ;;  %2176 = vmatpush.bf16.msrb.mxu1 %v9553_v9  ;;  %v13085_v51 = vld [vmem:[#allocation7 + $0x4c] sm:$0xf0]  ;;  %v9586_v9 = vld [vmem:[#allocation7 + $0x750] sm:$0xf0] }
 0x11f   :  { %v9488_v52 = vld [vmem:[#allocation7 + $0x410] sm:$0xf]  ;;  %v9361_v0 = vor.u32 %v13085_v51, %v9360_v50  ;;  %v9589_v19 = vor.u32 %v13139_v6, %v9586_v9  ;;  %v13199_v44 = vld [vmem:[#allocation7 + $0xe94] sm:$0xf] }
 0x120   :  { %2189 = vmatpush.bf16.msrb.mxu2 %v9697_v12  ;;  %2203 = vmatpush.bf16.msrb.mxu3 %v9825_v13  ;;  %v13117_v55 = vld [vmem:[#allocation7 + $0x44c] sm:$0xf0]  ;;  %v9826_v47 = vld [vmem:[#allocation7 + $0xed0] sm:$0xf0] }
 0x121   :  { %v9632_v60 = vld [vmem:[#allocation7 + $0x890] sm:$0xf]  ;;  %v9489_v1 = vor.u32 %v13117_v55, %v9488_v52  ;;  %v13095_v50 = vld [vmem:[#allocation7 + $0x194] sm:$0xf]  ;;  %v9701_v52 = vor.u32 %v13167_v42, %v9698_v43  ;;  %v13110_v43 = vld [vmem:[#allocation7 + $0x354] sm:$0xf0] }
 0x122   :  { %2163 = vmatpush.bf16.msrb.mxu0 %v9409_v20  ;;  %2177 = vmatpush.bf16.msrb.mxu1 %v9537_v21  ;;  %v13153_v61 = vld [vmem:[#allocation7 + $0x8cc] sm:$0xf0]  ;;  %v9410_v51 = vld [vmem:[#allocation7 + $0x1d0] sm:$0xf0] }
 0x123   :  { %v9760_v62 = vld [vmem:[#allocation7 + $0xc90] sm:$0xf]  ;;  %v9633_v7 = vor.u32 %v13153_v61, %v9632_v60  ;;  %v9538_v55 = vld [vmem:[#allocation7 + $0x5d0] sm:$0xf0]  ;;  %v9413_v60 = vor.u32 %v13095_v50, %v9410_v51 }
 0x124   :  { %2190 = vmatpush.bf16.msrb.mxu2 %v9681_v26  ;;  %2204 = vmatpush.bf16.msrb.mxu3 %v9809_v27  ;;  %v13185_v63 = vld [vmem:[#allocation7 + $0xccc] sm:$0xf0]  ;;  %v9733_v26 = vor.u32 %v13175_v14, %v9730_v15  ;;  %v9861_v27 = vor.u32 %v13207_v16, %v9858_v17  ;;  %v13159_v4 = vld [vmem:[#allocation7 + $0x994] sm:$0xf] }
 0x125   :  { %v9761_v8 = vor.u32 %v13185_v63, %v9760_v62  ;;  %v9616_v10 = vld [vmem:[#allocation7 + $0x810] sm:$0xf]  ;;  %v13091_v62 = vld [vmem:[#allocation7 + $0x114] sm:$0xf] }
 0x126   :  { %2164 = vmatpush.bf16.msrb.mxu0 %v9393_v34  ;;  %2178 = vmatpush.bf16.msrb.mxu1 %v9521_v35  ;;  %v13149_v11 = vld [vmem:[#allocation7 + $0x84c] sm:$0xf0]  ;;  %v9445_v34 = vor.u32 %v13103_v22, %v9442_v25  ;;  %v9573_v35 = vor.u32 %v13135_v28, %v9570_v29  ;;  %v9394_v63 = vld [vmem:[#allocation7 + $0x150] sm:$0xf0] }
 0x127   :  { %v9744_v12 = vld [vmem:[#allocation7 + $0xc10] sm:$0xf]  ;;  %v9617_v20 = vor.u32 %v13149_v11, %v9616_v10  ;;  %v9666_v5 = vld [vmem:[#allocation7 + $0x9d0] sm:$0xf0] }
 0x128   :  { %2191 = vmatpush.bf16.msrb.mxu2 %v9665_v38  ;;  %2205 = vmatpush.bf16.msrb.mxu3 %v9793_v39  ;;  %v13181_v13 = vld [vmem:[#allocation7 + $0xc4c] sm:$0xf0]  ;;  %v9717_v38 = vor.u32 %v13171_v30, %v9714_v31  ;;  %v9845_v39 = vor.u32 %v13203_v32, %v9842_v33  ;;  %v13191_v6 = vld [vmem:[#allocation7 + $0xd94] sm:$0xf]  ;;  %v9480_v30 = vld [vmem:[#allocation7 + $0x398] sm:$0xf] }
 0x129   :  { %v9745_v21 = vor.u32 %v13181_v13, %v9744_v12  ;;  %v13087_v10 = vld [vmem:[#allocation7 + $0x94] sm:$0xf]  ;;  %v9669_v12 = vor.u32 %v13159_v4, %v9666_v5  ;;  %v13114_v31 = vld [vmem:[#allocation7 + $0x3d4] sm:$0xf0] }
 0x12a   :  { %2165 = vmatpush.bf16.msrb.mxu0 %v9377_v48  ;;  %2179 = vmatpush.bf16.msrb.mxu1 %v9505_v49  ;;  %v9429_v48 = vor.u32 %v13099_v36, %v9426_v37  ;;  %v9557_v49 = vor.u32 %v13131_v40, %v9554_v41  ;;  %v9378_v11 = vld [vmem:[#allocation7 + $0xd0] sm:$0xf0]  ;;  %v9608_v32 = vld [vmem:[#allocation7 + $0x798] sm:$0xf]  ;;  %v9481_v41 = vor.u32 %v13114_v31, %v9480_v30 }
 0x12b   :  { %v13119_v14 = vld [vmem:[#allocation7 + $0x494] sm:$0xf]  ;;  %v13146_v33 = vld [vmem:[#allocation7 + $0x7d4] sm:$0xf0] }
 0x12c   :  { %2192 = vmatpush.bf16.msrb.mxu2 %v9649_v53  ;;  %2206 = vmatpush.bf16.msrb.mxu3 %v9777_v54  ;;  %v9829_v53 = vor.u32 %v13199_v44, %v9826_v47  ;;  %v13127_v54 = vld [vmem:[#allocation7 + $0x594] sm:$0xf]  ;;  %v9464_v40 = vld [vmem:[#allocation7 + $0x318] sm:$0xf]  ;;  %v9609_v42 = vor.u32 %v13146_v33, %v9608_v32 }
 0x12d   :  { %v9541_v61 = vor.u32 %v13127_v54, %v9538_v55  ;;  %v9506_v15 = vld [vmem:[#allocation7 + $0x4d0] sm:$0xf0]  ;;  %v9592_v44 = vld [vmem:[#allocation7 + $0x718] sm:$0xf] }
 0x12e   :  { %2166 = vmatpush.bf16.msrb.mxu0 %v9361_v0  ;;  %2180 = vmatpush.bf16.msrb.mxu1 %v9489_v1  ;;  %v9685_v0 = vor.u32 %v13163_v56, %v9682_v57  ;;  %v9813_v1 = vor.u32 %v13195_v58, %v9810_v59  ;;  %v13155_v16 = vld [vmem:[#allocation7 + $0x914] sm:$0xf]  ;;  %v13142_v47 = vld [vmem:[#allocation7 + $0x754] sm:$0xf0]  ;;  %v14532_v58 = vld [vmem:[#allocation9] sm:$0xf]  ;;  %v9465_v59 = vor.u32 %v13110_v43, %v9464_v40 }
 0x12f   :  { %v9650_v17 = vld [vmem:[#allocation7 + $0x950] sm:$0xf0]  ;;  %v9736_v54 = vld [vmem:[#allocation7 + $0xb98] sm:$0xf]  ;;  %v15213_v5 = vperm.slane %v14532_v58, 0 }
 0x130   :  { %2193 = vmatpush.bf16.msrb.mxu2 %v9633_v7  ;;  %2207 = vmatpush.bf16.msrb.mxu3 %v9761_v8  ;;  %v9794_v7 = vld [vmem:[#allocation7 + $0xdd0] sm:$0xf0]  ;;  %v9397_v8 = vor.u32 %v13091_v62, %v9394_v63  ;;  %v13178_v55 = vld [vmem:[#allocation7 + $0xbd4] sm:$0xf0] }
 0x131   :  { %2167 = vmatmul.bf16.vlgmr.msrb.gmra.mxu0 %v14504_v23  ;;  %2181 = vmatmul.bf16.vlgmr.msrb.gmra.mxu1 %v14506_v24  ;;  %v9797_v13 = vor.u32 %v13191_v6, %v9794_v7  ;;  %v13083_v22 = vld [vmem:[#allocation7 + $0x14] sm:$0xf]  ;;  %v9864_v56 = vld [vmem:[#allocation7 + $0xf98] sm:$0xf] }
 0x132   :  { %2215 = vmatpush.bf16.msra.mxu0 %v9477_v2  ;;  %2229 = vmatpush.bf16.msra.mxu1 %v9605_v3  ;;  %v13123_v2 = vld [vmem:[#allocation7 + $0x514] sm:$0xf]  ;;  %v13210_v57 = vld [vmem:[#allocation7 + $0xfd4] sm:$0xf0] }
 0x133   :  { %v9522_v3 = vld [vmem:[#allocation7 + $0x550] sm:$0xf0]  ;;  %v9448_v63 = vld [vmem:[#allocation7 + $0x298] sm:$0xf] }
 0x134   :  { %2194 = vmatpush.bf16.msrb.mxu2 %v9617_v20  ;;  %2208 = vmatpush.bf16.msrb.mxu3 %v9745_v21  ;;  %v9525_v9 = vor.u32 %v13123_v2, %v9522_v3  ;;  %v9381_v20 = vor.u32 %v13087_v10, %v9378_v11  ;;  %v9509_v21 = vor.u32 %v13119_v14, %v9506_v15  ;;  %v9362_v25 = vld [vmem:[#allocation7 + $0x50] sm:$0xf0]  ;;  %v13138_v4 = vld [vmem:[#allocation7 + $0x6d4] sm:$0xf0] }
 0x135   :  { %v9490_v29 = vld [vmem:[#allocation7 + $0x450] sm:$0xf0]  ;;  %v9737_v2 = vor.u32 %v13178_v55, %v9736_v54  ;;  %v9865_v3 = vor.u32 %v13210_v57, %v9864_v56  ;;  %v9720_v6 = vld [vmem:[#allocation7 + $0xb18] sm:$0xf] }
 0x136   :  { %2216 = vmatpush.bf16.msra.mxu0 %v9461_v18  ;;  %2230 = vmatpush.bf16.msra.mxu1 %v9589_v19  ;;  %v13187_v18 = vld [vmem:[#allocation7 + $0xd14] sm:$0xf]  ;;  %v13174_v7 = vld [vmem:[#allocation7 + $0xb54] sm:$0xf0] }
 0x137   :  { %2195 = vmatmul.bf16.vlgmr.msrb.gmra.mxu2 %v14510_v45  ;;  %2209 = vmatmul.bf16.vlgmr.msrb.gmra.mxu3 %v14512_v46  ;;  %v9778_v19 = vld [vmem:[#allocation7 + $0xd50] sm:$0xf0]  ;;  %v9432_v14 = vld [vmem:[#allocation7 + $0x218] sm:$0xf] }
 0x138   :  { %2243 = vmatpush.bf16.msra.mxu2 %v9733_v26  ;;  %2257 = vmatpush.bf16.msra.mxu3 %v9861_v27  ;;  %v13115_v26 = vld [vmem:[#allocation7 + $0x414] sm:$0xf]  ;;  %v9653_v27 = vor.u32 %v13155_v16, %v9650_v17  ;;  %v9781_v28 = vor.u32 %v13187_v18, %v9778_v19  ;;  %v13102_v15 = vld [vmem:[#allocation7 + $0x254] sm:$0xf0]  ;;  %v9721_v17 = vor.u32 %v13174_v7, %v9720_v6  ;;  %v15209_v7 = vperm.slane %v14532_v58, 1 }
 0x139   :  { %v13183_v36 = vld [vmem:[#allocation7 + $0xc94] sm:$0xf]  ;;  %v9560_v19 = vld [vmem:[#allocation7 + $0x618] sm:$0xf] }
 0x13a   :  { %2217 = vmatpush.bf16.msra.mxu0 %v9445_v34  ;;  %2231 = vmatpush.bf16.msra.mxu1 %v9573_v35  ;;  %v13151_v34 = vld [vmem:[#allocation7 + $0x894] sm:$0xf]  ;;  %v9416_v30 = vld [vmem:[#allocation7 + $0x198] sm:$0xf] }
 0x13b   :  { %v9634_v35 = vld [vmem:[#allocation7 + $0x8d0] sm:$0xf0]  ;;  %v13098_v31 = vld [vmem:[#allocation7 + $0x1d4] sm:$0xf0] }
 0x13c   :  { %2244 = vmatpush.bf16.msra.mxu2 %v9717_v38  ;;  %2258 = vmatpush.bf16.msra.mxu3 %v9845_v39  ;;  %v9762_v37 = vld [vmem:[#allocation7 + $0xcd0] sm:$0xf0]  ;;  %v9365_v38 = vor.u32 %v13083_v22, %v9362_v25  ;;  %v9493_v39 = vor.u32 %v13115_v26, %v9490_v29  ;;  %v13170_v22 = vld [vmem:[#allocation7 + $0xad4] sm:$0xf0]  ;;  %v9417_v40 = vor.u32 %v13098_v31, %v9416_v30 }
 0x13d   :  { %v13147_v50 = vld [vmem:[#allocation7 + $0x814] sm:$0xf]  ;;  %v9832_v25 = vld [vmem:[#allocation7 + $0xe98] sm:$0xf] }
 0x13e   :  { %2218 = vmatpush.bf16.msra.mxu0 %v9429_v48  ;;  %2232 = vmatpush.bf16.msra.mxu1 %v9557_v49  ;;  %v9637_v48 = vor.u32 %v13151_v34, %v9634_v35  ;;  %v9765_v49 = vor.u32 %v13183_v36, %v9762_v37  ;;  %v9618_v51 = vld [vmem:[#allocation7 + $0x850] sm:$0xf0]  ;;  %v13202_v26 = vld [vmem:[#allocation7 + $0xed4] sm:$0xf0] }
 0x13f   :  { %v9833_v33 = vor.u32 %v13202_v26, %v9832_v25  ;;  %v9544_v34 = vld [vmem:[#allocation7 + $0x598] sm:$0xf]  ;;  %v13144_v26 = vld [vmem:[#allocation7 + $0x79c] sm:$0xf] }
 0x140   :  { %2245 = vmatpush.bf16.msra.mxu2 %v9701_v52  ;;  %2259 = vmatpush.bf16.msra.mxu3 %v9829_v53  ;;  %v13179_v52 = vld [vmem:[#allocation7 + $0xc14] sm:$0xf]  ;;  %v13130_v35 = vld [vmem:[#allocation7 + $0x5d4] sm:$0xf0] }
 0x141   :  { %v9746_v53 = vld [vmem:[#allocation7 + $0xc50] sm:$0xf0]  ;;  %v9688_v36 = vld [vmem:[#allocation7 + $0xa18] sm:$0xf] }
 0x142   :  { %2219 = vmatpush.bf16.msra.mxu0 %v9413_v60  ;;  %2233 = vmatpush.bf16.msra.mxu1 %v9541_v61  ;;  %v9593_v60 = vor.u32 %v13142_v47, %v9592_v44  ;;  %v9621_v61 = vor.u32 %v13147_v50, %v9618_v51  ;;  %v9749_v62 = vor.u32 %v13179_v52, %v9746_v53  ;;  %v13166_v37 = vld [vmem:[#allocation7 + $0xa54] sm:$0xf0] }
 0x143   :  { %v9400_v44 = vld [vmem:[#allocation7 + $0x118] sm:$0xf] }
 0x144   :  { %2246 = vmatpush.bf16.msra.mxu2 %v9685_v0  ;;  %2260 = vmatpush.bf16.msra.mxu3 %v9813_v1  ;;  %v13106_v0 = vld [vmem:[#allocation7 + $0x2d4] sm:$0xf0] }
 0x145   :  { %v9576_v1 = vld [vmem:[#allocation7 + $0x698] sm:$0xf]  ;;  %v9449_v10 = vor.u32 %v13106_v0, %v9448_v63 }
 0x146   :  { %2220 = vmatpush.bf16.msra.mxu0 %v9397_v8  ;;  %2234 = vmatpush.bf16.msra.mxu1 %v9525_v9  ;;  %v9848_v8 = vld [vmem:[#allocation7 + $0xf18] sm:$0xf]  ;;  %v9577_v11 = vor.u32 %v13138_v4, %v9576_v1 }
 0x147   :  { %v13206_v9 = vld [vmem:[#allocation7 + $0xf54] sm:$0xf0] }
 0x148   :  { %2247 = vmatpush.bf16.msra.mxu2 %v9669_v12  ;;  %2261 = vmatpush.bf16.msra.mxu3 %v9797_v13  ;;  %v9849_v18 = vor.u32 %v13206_v9, %v9848_v8  ;;  %v13094_v47 = vld [vmem:[#allocation7 + $0x154] sm:$0xf0] }
 0x149   :  { %v9528_v50 = vld [vmem:[#allocation7 + $0x518] sm:$0xf]  ;;  %v9401_v56 = vor.u32 %v13094_v47, %v9400_v44 }
 0x14a   :  { %2221 = vmatpush.bf16.msra.mxu0 %v9381_v20  ;;  %2235 = vmatpush.bf16.msra.mxu1 %v9509_v21  ;;  %v13134_v20 = vld [vmem:[#allocation7 + $0x654] sm:$0xf0] }
 0x14b   :  { %v9704_v21 = vld [vmem:[#allocation7 + $0xa98] sm:$0xf]  ;;  %v9561_v29 = vor.u32 %v13134_v20, %v9560_v19 }
 0x14c   :  { %2248 = vmatpush.bf16.msra.mxu2 %v9653_v27  ;;  %2262 = vmatpush.bf16.msra.mxu3 %v9781_v28  ;;  %v9433_v28 = vor.u32 %v13102_v15, %v9432_v14  ;;  %v9705_v32 = vor.u32 %v13170_v22, %v9704_v21  ;;  %v13126_v51 = vld [vmem:[#allocation7 + $0x554] sm:$0xf0]  ;;  %v13112_v21 = vld [vmem:[#allocation7 + $0x39c] sm:$0xf] }
 0x14d   :  { %v1137_v12 = vpop.f32.mrf.mxu0  ;;  %v1151_v13 = vpop.f32.mrf.mxu1  ;;  %v9672_v52 = vld [vmem:[#allocation7 + $0x998] sm:$0xf]  ;;  %v9529_v57 = vor.u32 %v13126_v51, %v9528_v50  ;;  %v9482_v22 = vld [vmem:[#allocation7 + $0x3d8] sm:$0xf0] }
 0x14e   :  { %2222 = vmatpush.bf16.msra.mxu0 %v9365_v38  ;;  %2236 = vmatpush.bf16.msra.mxu1 %v9493_v39  ;;  %v1138_v16 = vadd.f32 %v1137_v12, %v15213_v5  ;;  %v9816_v38 = vld [vmem:[#allocation7 + $0xe18] sm:$0xf]  ;;  %v10264_v5 = vld [vmem:[#allocation7 + $0xc28] sm:$0xf] }
 0x14f   :  { %v13198_v39 = vld [vmem:[#allocation7 + $0xe54] sm:$0xf0] }
 0x150   :  { %2249 = vmatpush.bf16.msra.mxu2 %v9637_v48  ;;  %2263 = vmatpush.bf16.msra.mxu3 %v9765_v49  ;;  %v1152_v27 = vadd.f32 %v1151_v13, %v1138_v16  ;;  %v9689_v48 = vor.u32 %v13166_v37, %v9688_v36  ;;  %v9817_v49 = vor.u32 %v13198_v39, %v9816_v38  ;;  %v13162_v53 = vld [vmem:[#allocation7 + $0x9d4] sm:$0xf0]  ;;  %v13108_v39 = vld [vmem:[#allocation7 + $0x31c] sm:$0xf] }
 0x151   :  { %2223 = vmatmul.bf16.vlgmr.msra.gmra.mxu0 %v14504_v23  ;;  %2237 = vmatmul.bf16.vlgmr.msra.gmra.mxu1 %v14506_v24  ;;  %v9800_v54 = vld [vmem:[#allocation7 + $0xd98] sm:$0xf]  ;;  %v9673_v0 = vor.u32 %v13162_v53, %v9672_v52  ;;  %v9485_v37 = vor.u32 %v13112_v21, %v9482_v22  ;;  %v13176_v53 = vld [vmem:[#allocation7 + $0xb9c] sm:$0xf] }
 0x152   :  { %2271 = vmatpush.bf16.msrb.mxu0 %v9481_v41  ;;  %2285 = vmatpush.bf16.msrb.mxu1 %v9609_v42  ;;  %v9545_v41 = vor.u32 %v13130_v35, %v9544_v34  ;;  %v13194_v55 = vld [vmem:[#allocation7 + $0xdd4] sm:$0xf0] }
 0x153   :  { %v9801_v1 = vor.u32 %v13194_v55, %v9800_v54  ;;  %v13158_v4 = vld [vmem:[#allocation7 + $0x954] sm:$0xf0]  ;;  %v9738_v54 = vld [vmem:[#allocation7 + $0xbd8] sm:$0xf0] }
 0x154   :  { %2250 = vmatpush.bf16.msra.mxu2 %v9621_v61  ;;  %2264 = vmatpush.bf16.msra.mxu3 %v9749_v62  ;;  %v9512_v61 = vld [vmem:[#allocation7 + $0x498] sm:$0xf]  ;;  %v13208_v55 = vld [vmem:[#allocation7 + $0xf9c] sm:$0xf] }
 0x155   :  { %v14541_v42 = vpop.f32.mrf.mxu0  ;;  %v14543_v43 = vpop.f32.mrf.mxu1  ;;  %v9784_v8 = vld [vmem:[#allocation7 + $0xd18] sm:$0xf] }
 0x156   :  { %2272 = vmatpush.bf16.msrb.mxu0 %v9465_v59  ;;  %2286 = vmatpush.bf16.msrb.mxu1 %v9593_v60  ;;  %v9384_v59 = vld [vmem:[#allocation7 + $0x98] sm:$0xf] }
 0x157   :  { %2251 = vmatmul.bf16.vlgmr.msra.gmra.mxu2 %v14510_v45  ;;  %2265 = vmatmul.bf16.vlgmr.msra.gmra.mxu3 %v14512_v46  ;;  %v13090_v60 = vld [vmem:[#allocation7 + $0xd4] sm:$0xf0] }
 0x158   :  { %2299 = vmatpush.bf16.msrb.mxu2 %v9737_v2  ;;  %2313 = vmatpush.bf16.msrb.mxu3 %v9865_v3  ;;  %v13122_v2 = vld [vmem:[#allocation7 + $0x4d4] sm:$0xf0] }
 0x159   :  { %v9656_v3 = vld [vmem:[#allocation7 + $0x918] sm:$0xf]  ;;  %v9513_v12 = vor.u32 %v13122_v2, %v9512_v61  ;;  %v9741_v2 = vor.u32 %v13176_v53, %v9738_v54  ;;  %v9818_v53 = vld [vmem:[#allocation7 + $0xe58] sm:$0xf0] }
 0x15a   :  { %2273 = vmatpush.bf16.msrb.mxu0 %v9449_v10  ;;  %2287 = vmatpush.bf16.msrb.mxu1 %v9577_v11  ;;  %v1165_v62 = vpop.f32.mrf.mxu2  ;;  %v1179_v63 = vpop.f32.mrf.mxu3  ;;  %v13190_v9 = vld [vmem:[#allocation7 + $0xd54] sm:$0xf0]  ;;  %v9385_v11 = vor.u32 %v13090_v60, %v9384_v59 }
 0x15b   :  { %v1166_v6 = vadd.f32 %v1165_v62, %v1152_v27  ;;  %v9368_v13 = vld [vmem:[#allocation7 + $0x18] sm:$0xf]  ;;  %v9785_v19 = vor.u32 %v13190_v9, %v9784_v8  ;;  %v9610_v27 = vld [vmem:[#allocation7 + $0x7d8] sm:$0xf0] }
 0x15c   :  { %2300 = vmatpush.bf16.msrb.mxu2 %v9721_v17  ;;  %2314 = vmatpush.bf16.msrb.mxu3 %v9849_v18  ;;  %v13086_v14 = vld [vmem:[#allocation7 + $0x54] sm:$0xf0]  ;;  %v9657_v18 = vor.u32 %v13158_v4, %v9656_v3  ;;  %v9613_v38 = vor.u32 %v13144_v26, %v9610_v27  ;;  %v13136_v4 = vld [vmem:[#allocation7 + $0x69c] sm:$0xf] }
 0x15d   :  { %v14546_v10 = vadd.f32 %v1179_v63, %v1166_v6  ;;  %v9496_v15 = vld [vmem:[#allocation7 + $0x418] sm:$0xf]  ;;  %v9578_v6 = vld [vmem:[#allocation7 + $0x6d8] sm:$0xf0] }
 0x15e   :  { %2274 = vmatpush.bf16.msrb.mxu0 %v9433_v28  ;;  %2288 = vmatpush.bf16.msrb.mxu1 %v9561_v29  ;;  %v1193_v16 = vpop.f32.mrf.mxu0  ;;  %v1207_v17 = vpop.f32.mrf.mxu1  ;;  %v13118_v20 = vld [vmem:[#allocation7 + $0x454] sm:$0xf0]  ;;  %v13172_v8 = vld [vmem:[#allocation7 + $0xb1c] sm:$0xf] }
 0x15f   :  { %v1194_v25 = vadd.f32 %v1193_v16, %v15209_v7  ;;  %v9640_v28 = vld [vmem:[#allocation7 + $0x898] sm:$0xf]  ;;  %v9497_v34 = vor.u32 %v13118_v20, %v9496_v15  ;;  %v9722_v9 = vld [vmem:[#allocation7 + $0xb58] sm:$0xf0]  ;;  %vm1352_vm1 = vcmp.ge.f32.partialorder %v14546_v10, 0.0 }
 0x160   :  { %2301 = vmatpush.bf16.msrb.mxu2 %v9705_v32  ;;  %2315 = vmatpush.bf16.msrb.mxu3 %v9833_v33  ;;  %v13154_v29 = vld [vmem:[#allocation7 + $0x8d4] sm:$0xf0]  ;;  %v9369_v33 = vor.u32 %v13086_v14, %v9368_v13  ;;  %v9434_v20 = vld [vmem:[#allocation7 + $0x258] sm:$0xf0]  ;;  %v9725_v21 = vor.u32 %v13172_v8, %v9722_v9  ;;  %v10248_v7 = vld [vmem:[#allocation7 + $0xba8] sm:$0xf] }
 0x161   :  { %v9768_v30 = vld [vmem:[#allocation7 + $0xc98] sm:$0xf]  ;;  %v1208_v32 = vadd.f32 %v1207_v17, %v1194_v25  ;;  %v9641_v44 = vor.u32 %v13154_v29, %v9640_v28  ;;  %v9581_v17 = vor.u32 %v13136_v4, %v9578_v6  ;;  %v13132_v25 = vld [vmem:[#allocation7 + $0x61c] sm:$0xf] }
 0x162   :  { %2275 = vmatpush.bf16.msrb.mxu0 %v9417_v40  ;;  %2289 = vmatpush.bf16.msrb.mxu1 %v9545_v41  ;;  %v13186_v31 = vld [vmem:[#allocation7 + $0xcd4] sm:$0xf0]  ;;  %v14550_v35 = vpop.f32.mrf.mxu2  ;;  %v14552_v36 = vpop.f32.mrf.mxu3  ;;  %v9466_v40 = vld [vmem:[#allocation7 + $0x358] sm:$0xf0] }
 0x163   :  { %v13140_v41 = vld [vmem:[#allocation7 + $0x71c] sm:$0xf]  ;;  %v9769_v47 = vor.u32 %v13186_v31, %v9768_v30  ;;  %v13150_v50 = vld [vmem:[#allocation7 + $0x854] sm:$0xf0]  ;;  %v9469_v60 = vor.u32 %v13108_v39, %v9466_v40 }
 0x164   :  { %2302 = vmatpush.bf16.msrb.mxu2 %v9689_v48  ;;  %2316 = vmatpush.bf16.msrb.mxu3 %v9817_v49  ;;  %v9594_v48 = vld [vmem:[#allocation7 + $0x758] sm:$0xf0]  ;;  %v9624_v49 = vld [vmem:[#allocation7 + $0x818] sm:$0xf] }
 0x165   :  { %v9752_v51 = vld [vmem:[#allocation7 + $0xc18] sm:$0xf]  ;;  %v9597_v61 = vor.u32 %v13140_v41, %v9594_v48  ;;  %v9625_v62 = vor.u32 %v13150_v50, %v9624_v49  ;;  %v9562_v26 = vld [vmem:[#allocation7 + $0x658] sm:$0xf0] }
 0x166   :  { %2276 = vmatpush.bf16.msrb.mxu0 %v9401_v56  ;;  %2290 = vmatpush.bf16.msrb.mxu1 %v9529_v57  ;;  %v13182_v52 = vld [vmem:[#allocation7 + $0xc54] sm:$0xf0]  ;;  %v9866_v56 = vld [vmem:[#allocation7 + $0xfd8] sm:$0xf0]  ;;  %v14554_v57 = vpop.f32.mrf.mxu0  ;;  %v14556_v59 = vpop.f32.mrf.mxu1 }
 0x167   :  { %15220 = vst [vmem:[#allocation34_spill] sm:$0xff] %v14554_v57  ;;  %v9753_v63 = vor.u32 %v13182_v52, %v9752_v51  ;;  %v9869_v3 = vor.u32 %v13208_v55, %v9866_v56  ;;  %v13168_v27 = vld [vmem:[#allocation7 + $0xa9c] sm:$0xf] }
 0x168   :  { %2303 = vmatpush.bf16.msrb.mxu2 %v9673_v0  ;;  %2317 = vmatpush.bf16.msrb.mxu3 %v9801_v1  ;;  %15221 = vst [vmem:[#allocation35_spill] sm:$0xff] %v14556_v59  ;;  %v13104_v0 = vld [vmem:[#allocation7 + $0x29c] sm:$0xf]  ;;  %v13405_v59 = vld [vmem:[#allocation7 + $0x86c] sm:$0xf0] }
 0x169   :  { %v9450_v1 = vld [vmem:[#allocation7 + $0x2d8] sm:$0xf0] }
 0x16a   :  { %2277 = vmatpush.bf16.msrb.mxu0 %v9385_v11  ;;  %2291 = vmatpush.bf16.msrb.mxu1 %v9513_v12  ;;  %v13204_v11 = vld [vmem:[#allocation7 + $0xf1c] sm:$0xf]  ;;  %v1221_v13 = vpop.f32.mrf.mxu2  ;;  %v1235_v14 = vpop.f32.mrf.mxu3  ;;  %v9453_v16 = vor.u32 %v13104_v0, %v9450_v1 }
 0x16b   :  { %v9850_v12 = vld [vmem:[#allocation7 + $0xf58] sm:$0xf0]  ;;  %v1222_v15 = vadd.f32 %v1221_v13, %v1208_v32 }
 0x16c   :  { %2304 = vmatpush.bf16.msrb.mxu2 %v9657_v18  ;;  %2318 = vmatpush.bf16.msrb.mxu3 %v9785_v19  ;;  %v15212_v18 = vperm.slane %v14532_v58, 2  ;;  %v13100_v19 = vld [vmem:[#allocation7 + $0x21c] sm:$0xf]  ;;  %v9853_v22 = vor.u32 %v13204_v11, %v9850_v12 }
 0x16d   :  { %v14561_v28 = vadd.f32 %v1235_v14, %v1222_v15  ;;  %v9706_v29 = vld [vmem:[#allocation7 + $0xad8] sm:$0xf0] }
 0x16e   :  { %2278 = vmatpush.bf16.msrb.mxu0 %v9369_v33  ;;  %2292 = vmatpush.bf16.msrb.mxu1 %v9497_v34  ;;  %v13200_v30 = vld [vmem:[#allocation7 + $0xe9c] sm:$0xf]  ;;  %v1249_v32 = vpop.f32.mrf.mxu0  ;;  %v9437_v34 = vor.u32 %v13100_v19, %v9434_v20  ;;  %v1263_v40 = vpop.f32.mrf.mxu1  ;;  %v9709_v41 = vor.u32 %v13168_v27, %v9706_v29 }
 0x16f   :  { %v9834_v31 = vld [vmem:[#allocation7 + $0xed8] sm:$0xf0]  ;;  %v1250_v33 = vadd.f32 %v1249_v32, %v15212_v18  ;;  %vm1353_vm3 = vcmp.ge.f32.partialorder %v14561_v28, 0.0  ;;  %v10122_v18 = vld [vmem:[#allocation7 + $0x7e8] sm:$0xf0] }
 0x170   :  { %2305 = vmatpush.bf16.msrb.mxu2 %v9641_v44  ;;  %2319 = vmatpush.bf16.msrb.mxu3 %v9769_v47  ;;  %v9418_v39 = vld [vmem:[#allocation7 + $0x1d8] sm:$0xf0]  ;;  %v9837_v44 = vor.u32 %v13200_v30, %v9834_v31 }
 0x171   :  { %2279 = vmatmul.bf16.vlgmr.msrb.gmra.mxu0 %v14504_v23  ;;  %2293 = vmatmul.bf16.vlgmr.msrb.gmra.mxu1 %v14506_v24  ;;  %v13128_v47 = vld [vmem:[#allocation7 + $0x59c] sm:$0xf]  ;;  %v1264_v50 = vadd.f32 %v1263_v40, %v1250_v33  ;;  %v13241_v40 = vld [vmem:[#allocation7 + $0x3dc] sm:$0xf0] }
 0x172   :  { %2327 = vmatpush.bf16.msra.mxu0 %v9485_v37  ;;  %2341 = vmatpush.bf16.msra.mxu1 %v9613_v38  ;;  %v9565_v37 = vor.u32 %v13132_v25, %v9562_v26  ;;  %v13096_v38 = vld [vmem:[#allocation7 + $0x19c] sm:$0xf]  ;;  %v14567_v54 = vpop.f32.mrf.mxu2  ;;  %v14571_v55 = vpop.f32.mrf.mxu3  ;;  %v14574_v25 = vstv %s14569_s1 }
 0x173   :  { %v9546_v48 = vld [vmem:[#allocation7 + $0x5d8] sm:$0xf0]  ;;  %15222 = vst [vmem:[#allocation36_spill] sm:$0xff] %v14567_v54  ;;  %v9421_v56 = vor.u32 %v13096_v38, %v9418_v39  ;;  %v9984_v39 = vld [vmem:[#allocation7 + $0x3a0] sm:$0xf] }
 0x174   :  { %2306 = vmatpush.bf16.msrb.mxu2 %v9625_v62  ;;  %2320 = vmatpush.bf16.msrb.mxu3 %v9753_v63  ;;  %v13164_v49 = vld [vmem:[#allocation7 + $0xa1c] sm:$0xf]  ;;  %15223 = vst [vmem:[#allocation37_spill] sm:$0xff] %v14571_v55  ;;  %v10154_v55 = vld [vmem:[#allocation7 + $0x8e8] sm:$0xf0] }
 0x175   :  { %v9690_v51 = vld [vmem:[#allocation7 + $0xa58] sm:$0xf0]  ;;  %v13276_v54 = vld [vmem:[#allocation7 + $0x82c] sm:$0xf] }
 0x176   :  { %2328 = vmatpush.bf16.msra.mxu0 %v9469_v60  ;;  %2342 = vmatpush.bf16.msra.mxu1 %v9597_v61  ;;  %v13196_v52 = vld [vmem:[#allocation7 + $0xe1c] sm:$0xf]  ;;  %v9549_v60 = vor.u32 %v13128_v47, %v9546_v48  ;;  %v9693_v63 = vor.u32 %v13164_v49, %v9690_v51  ;;  %v13273_v47 = vld [vmem:[#allocation7 + $0x7dc] sm:$0xf0]  ;;  %v1361_v49 = vmul.f32 %v14574_v25, %v14546_v10 }
 0x177   :  { %2307 = vmatmul.bf16.vlgmr.msrb.gmra.mxu2 %v14510_v45  ;;  %2321 = vmatmul.bf16.vlgmr.msrb.gmra.mxu3 %v14512_v46  ;;  %v13092_v61 = vld [vmem:[#allocation7 + $0x11c] sm:$0xf]  ;;  %v9821_v0 = vor.u32 %v13196_v52, %v9818_v53 }
 0x178   :  { %2355 = vmatpush.bf16.msra.mxu2 %v9741_v2  ;;  %2369 = vmatpush.bf16.msra.mxu3 %v9869_v3  ;;  %v9402_v62 = vld [vmem:[#allocation7 + $0x158] sm:$0xf0] }
 0x179   :  { %v13124_v1 = vld [vmem:[#allocation7 + $0x51c] sm:$0xf]  ;;  %v9405_v9 = vor.u32 %v13092_v61, %v9402_v62  ;;  %v9968_v61 = vld [vmem:[#allocation7 + $0x320] sm:$0xf] }
 0x17a   :  { %2329 = vmatpush.bf16.msra.mxu0 %v9453_v16  ;;  %2343 = vmatpush.bf16.msra.mxu1 %v9581_v17  ;;  %v9530_v2 = vld [vmem:[#allocation7 + $0x558] sm:$0xf0]  ;;  %v1277_v26 = vpop.f32.mrf.mxu2 }
 0x17b   :  { %v13160_v3 = vld [vmem:[#allocation7 + $0x99c] sm:$0xf]  ;;  %v9533_v11 = vor.u32 %v13124_v1, %v9530_v2  ;;  %v1278_v33 = vadd.f32 %v1277_v26, %v1264_v50  ;;  %v13237_v1 = vld [vmem:[#allocation7 + $0x35c] sm:$0xf0]  ;;  %v14591_v26 = vpop.f32.mrf.mxu1 }
 0x17c   :  { %2356 = vmatpush.bf16.msra.mxu2 %v9725_v21  ;;  %2370 = vmatpush.bf16.msra.mxu3 %v9853_v22  ;;  %v9674_v4 = vld [vmem:[#allocation7 + $0x9d8] sm:$0xf0]  ;;  %v10096_v2 = vld [vmem:[#allocation7 + $0x720] sm:$0xf] }
 0x17d   :  { %v13192_v6 = vld [vmem:[#allocation7 + $0xd9c] sm:$0xf]  ;;  %v9677_v14 = vor.u32 %v13160_v3, %v9674_v4 }
 0x17e   :  { %2330 = vmatpush.bf16.msra.mxu0 %v9437_v34  ;;  %2344 = vmatpush.bf16.msra.mxu1 %v9565_v37  ;;  %v9802_v8 = vld [vmem:[#allocation7 + $0xdd8] sm:$0xf0] }
 0x17f   :  { %v13088_v12 = vld [vmem:[#allocation7 + $0x9c] sm:$0xf]  ;;  %v9805_v15 = vor.u32 %v13192_v6, %v9802_v8  ;;  %v13269_v6 = vld [vmem:[#allocation7 + $0x75c] sm:$0xf0] }
 0x180   :  { %2357 = vmatpush.bf16.msra.mxu2 %v9709_v41  ;;  %2371 = vmatpush.bf16.msra.mxu3 %v9837_v44  ;;  %v9386_v13 = vld [vmem:[#allocation7 + $0xd8] sm:$0xf0]  ;;  %v1291_v41 = vpop.f32.mrf.mxu3  ;;  %v10112_v44 = vld [vmem:[#allocation7 + $0x7a0] sm:$0xf] }
 0x181   :  { %v13120_v16 = vld [vmem:[#allocation7 + $0x49c] sm:$0xf]  ;;  %v9389_v27 = vor.u32 %v13088_v12, %v9386_v13  ;;  %v1292_v51 = vadd.f32 %v1291_v41, %v1278_v33  ;;  %v13333_v41 = vld [vmem:[#allocation7 + $0xf5c] sm:$0xf0] }
 0x182   :  { %2331 = vmatpush.bf16.msra.mxu0 %v9421_v56  ;;  %2345 = vmatpush.bf16.msra.mxu1 %v9549_v60  ;;  %v9514_v17 = vld [vmem:[#allocation7 + $0x4d8] sm:$0xf0] }
 0x183   :  { %v13156_v19 = vld [vmem:[#allocation7 + $0x91c] sm:$0xf]  ;;  %v9517_v29 = vor.u32 %v13120_v16, %v9514_v17  ;;  %vm1354_vm2 = vcmp.ge.f32.partialorder %v1292_v51, 0.0  ;;  %v1363_v62 = vmul.f32 %v14574_v25, %v1292_v51  ;;  %v14587_v16 = vpop.f32.mrf.mxu0  ;;  %v13304_v17 = vld [vmem:[#allocation7 + $0xbac] sm:$0xf] }
 0x184   :  { %2358 = vmatpush.bf16.msra.mxu2 %v9693_v63  ;;  %2372 = vmatpush.bf16.msra.mxu3 %v9821_v0  ;;  %v9658_v20 = vld [vmem:[#allocation7 + $0x958] sm:$0xf0]  ;;  %v9985_v63 = vor.u32 %v13241_v40, %v9984_v39  ;;  %v10113_v0 = vor.u32 %v13273_v47, %v10112_v44  ;;  %v13301_v39 = vld [vmem:[#allocation7 + $0xb5c] sm:$0xf0]  ;;  %v15208_v44 = vperm.slane %v14532_v58, 3 }
 0x185   :  { %v13188_v21 = vld [vmem:[#allocation7 + $0xd1c] sm:$0xf]  ;;  %v9661_v34 = vor.u32 %v13156_v19, %v9658_v20  ;;  %v14585_v12 = vsel %vm1354_vm2, %v1292_v51, %v1363_v62  ;;  %v13305_v19 = vld [vmem:[#allocation7 + $0xbdc] sm:$0xf0] }
 0x186   :  { %v9786_v22 = vld [vmem:[#allocation7 + $0xd58] sm:$0xf0]  ;;  %2332 = vmatpush.bf16.msra.mxu0 %v9405_v9  ;;  %2346 = vmatpush.bf16.msra.mxu1 %v9533_v11  ;;  %v14583_v11 = vsel %vm1352_vm1, %v14546_v10, %v1361_v49  ;;  %v10368_v20 = vld [vmem:[#allocation7 + $0xfa0] sm:$0xf]  ;;  %v10097_v10 = vor.u32 %v13269_v6, %v10096_v2 }
 0x187   :  { %v13084_v30 = vld [vmem:[#allocation7 + $0x1c] sm:$0xf]  ;;  %v9789_v37 = vor.u32 %v13188_v21, %v9786_v22  ;;  %v13337_v21 = vld [vmem:[#allocation7 + $0xfdc] sm:$0xf0]  ;;  %v9969_v22 = vor.u32 %v13237_v1, %v9968_v61 }
 0x188   :  { %v9370_v31 = vld [vmem:[#allocation7 + $0x58] sm:$0xf0]  ;;  %2359 = vmatpush.bf16.msra.mxu2 %v9677_v14  ;;  %2373 = vmatpush.bf16.msra.mxu3 %v9805_v15  ;;  %v10240_v15 = vld [vmem:[#allocation7 + $0xba0] sm:$0xf]  ;;  %v10369_v33 = vor.u32 %v13337_v21, %v10368_v20  ;;  %v14600_v21 = vpop.f32.mrf.mxu2 }
 0x189   :  { %v13116_v32 = vld [vmem:[#allocation7 + $0x41c] sm:$0xf]  ;;  %v9373_v50 = vor.u32 %v13084_v30, %v9370_v31  ;;  %v9952_v30 = vld [vmem:[#allocation7 + $0x2a0] sm:$0xf] }
 0x18a   :  { %v9498_v38 = vld [vmem:[#allocation7 + $0x458] sm:$0xf0]  ;;  %2333 = vmatpush.bf16.msra.mxu0 %v9389_v27  ;;  %2347 = vmatpush.bf16.msra.mxu1 %v9517_v29  ;;  %v13233_v31 = vld [vmem:[#allocation7 + $0x2dc] sm:$0xf0] }
 0x18b   :  { %v13152_v48 = vld [vmem:[#allocation7 + $0x89c] sm:$0xf]  ;;  %v9501_v60 = vor.u32 %v13116_v32, %v9498_v38  ;;  %v10241_v32 = vor.u32 %v13305_v19, %v10240_v15  ;;  %v10224_v38 = vld [vmem:[#allocation7 + $0xb20] sm:$0xf]  ;;  %v9953_v47 = vor.u32 %v13233_v31, %v9952_v30 }
 0x18c   :  { %v9642_v52 = vld [vmem:[#allocation7 + $0x8d8] sm:$0xf0]  ;;  %2360 = vmatpush.bf16.msra.mxu2 %v9661_v34  ;;  %2374 = vmatpush.bf16.msra.mxu3 %v9789_v37  ;;  %v10080_v34 = vld [vmem:[#allocation7 + $0x6a0] sm:$0xf] }
 0x18d   :  { %v13184_v53 = vld [vmem:[#allocation7 + $0xc9c] sm:$0xf]  ;;  %v9645_v3 = vor.u32 %v13152_v48, %v9642_v52  ;;  %v13265_v37 = vld [vmem:[#allocation7 + $0x6dc] sm:$0xf0]  ;;  %v10225_v52 = vor.u32 %v13301_v39, %v10224_v38 }
 0x18e   :  { %v9770_v56 = vld [vmem:[#allocation7 + $0xcd8] sm:$0xf0]  ;;  %2334 = vmatpush.bf16.msra.mxu0 %v9373_v50  ;;  %2348 = vmatpush.bf16.msra.mxu1 %v9501_v60  ;;  %v10352_v40 = vld [vmem:[#allocation7 + $0xf20] sm:$0xf]  ;;  %v10081_v48 = vor.u32 %v13265_v37, %v10080_v34  ;;  %v1305_v61 = vpop.f32.mrf.mxu0  ;;  %v1319_v2 = vpop.f32.mrf.mxu1 }
 0x18f   :  { %v9773_v4 = vor.u32 %v13184_v53, %v9770_v56  ;;  %v13148_v8 = vld [vmem:[#allocation7 + $0x81c] sm:$0xf]  ;;  %v9936_v49 = vld [vmem:[#allocation7 + $0x220] sm:$0xf]  ;;  %v10353_v53 = vor.u32 %v13333_v41, %v10352_v40  ;;  %v1306_v1 = vadd.f32 %v1305_v61, %v15208_v44  ;;  %v10258_v44 = vld [vmem:[#allocation7 + $0xc60] sm:$0xf0] }
 0x190   :  { %v9626_v9 = vld [vmem:[#allocation7 + $0x858] sm:$0xf0]  ;;  %2361 = vmatpush.bf16.msra.mxu2 %v9645_v3  ;;  %v13229_v51 = vld [vmem:[#allocation7 + $0x25c] sm:$0xf0] }
 0x191   :  { %v13180_v13 = vld [vmem:[#allocation7 + $0xc1c] sm:$0xf]  ;;  %2375 = vmatpush.bf16.msra.mxu3 %v9773_v4  ;;  %v9629_v27 = vor.u32 %v13148_v8, %v9626_v9  ;;  %2335 = vmatmul.bf16.vlgmr.msra.gmra.mxu0 %v14504_v23  ;;  %v10064_v56 = vld [vmem:[#allocation7 + $0x620] sm:$0xf]  ;;  %v9937_v3 = vor.u32 %v13229_v51, %v9936_v49  ;;  %v1320_v9 = vadd.f32 %v1319_v2, %v1306_v1 }
 0x192   :  { %v9754_v14 = vld [vmem:[#allocation7 + $0xc58] sm:$0xf0]  ;;  %3193 = vmatpush.bf16.msrb.mxu0 %v9985_v63  ;;  %3207 = vmatpush.bf16.msrb.mxu1 %v10113_v0  ;;  %v13261_v50 = vld [vmem:[#allocation7 + $0x65c] sm:$0xf0] }
 0x193   :  { %v9757_v29 = vor.u32 %v13180_v13, %v9754_v14  ;;  %2349 = vmatmul.bf16.vlgmr.msra.gmra.mxu1 %v14506_v24  ;;  %v10208_v60 = vld [vmem:[#allocation7 + $0xaa0] sm:$0xf]  ;;  %v10065_v4 = vor.u32 %v13261_v50, %v10064_v56  ;;  %v13432_v57 = vld [vmem:[#allocation7 + $0xbbc] sm:$0xf] }
 0x194   :  { %2362 = vmatpush.bf16.msra.mxu2 %v9629_v27  ;;  %v13297_v62 = vld [vmem:[#allocation7 + $0xadc] sm:$0xf0] }
 0x195   :  { %2376 = vmatpush.bf16.msra.mxu3 %v9757_v29  ;;  %v10336_v63 = vld [vmem:[#allocation7 + $0xea0] sm:$0xf]  ;;  %v10209_v13 = vor.u32 %v13297_v62, %v10208_v60  ;;  %v14602_v29 = vpop.f32.mrf.mxu3 }
 0x196   :  { %3194 = vmatpush.bf16.msrb.mxu0 %v9969_v22  ;;  %3208 = vmatpush.bf16.msrb.mxu1 %v10097_v10  ;;  %v13329_v0 = vld [vmem:[#allocation7 + $0xedc] sm:$0xf0] }
 0x197   :  { %2363 = vmatmul.bf16.vlgmr.msra.gmra.mxu2 %v14510_v45  ;;  %v9920_v6 = vld [vmem:[#allocation7 + $0x1a0] sm:$0xf]  ;;  %v10337_v14 = vor.u32 %v13329_v0, %v10336_v63 }
 0x198   :  { %3221 = vmatpush.bf16.msrb.mxu2 %v10241_v32  ;;  %2377 = vmatmul.bf16.vlgmr.msra.gmra.mxu3 %v14512_v46  ;;  %v13225_v8 = vld [vmem:[#allocation7 + $0x1dc] sm:$0xf0] }
 0x199   :  { %3235 = vmatpush.bf16.msrb.mxu3 %v10369_v33  ;;  %v10048_v15 = vld [vmem:[#allocation7 + $0x5a0] sm:$0xf]  ;;  %v9921_v30 = vor.u32 %v13225_v8, %v9920_v6  ;;  %v1362_v6 = vmul.f32 %v14574_v25, %v14561_v28 }
 0x19a   :  { %3195 = vmatpush.bf16.msrb.mxu0 %v9953_v47  ;;  %3209 = vmatpush.bf16.msrb.mxu1 %v10081_v48  ;;  %v13257_v19 = vld [vmem:[#allocation7 + $0x5dc] sm:$0xf0]  ;;  %v1333_v63 = vpop.f32.mrf.mxu2 }
 0x19b   :  { %v10192_v20 = vld [vmem:[#allocation7 + $0xa20] sm:$0xf]  ;;  %v10049_v31 = vor.u32 %v13257_v19, %v10048_v15 }
 0x19c   :  { %3222 = vmatpush.bf16.msrb.mxu2 %v10225_v52  ;;  %v13293_v22 = vld [vmem:[#allocation7 + $0xa5c] sm:$0xf0] }
 0x19d   :  { %3236 = vmatpush.bf16.msrb.mxu3 %v10353_v53  ;;  %v10320_v10 = vld [vmem:[#allocation7 + $0xe20] sm:$0xf]  ;;  %v10193_v34 = vor.u32 %v13293_v22, %v10192_v20  ;;  %v1347_v8 = vpop.f32.mrf.mxu3 }
 0x19e   :  { %v13325_v27 = vld [vmem:[#allocation7 + $0xe5c] sm:$0xf0]  ;;  %3196 = vmatpush.bf16.msrb.mxu0 %v9937_v3  ;;  %3210 = vmatpush.bf16.msrb.mxu1 %v10065_v4  ;;  %v1334_v3 = vadd.f32 %v1333_v63, %v1320_v9  ;;  %v13271_v9 = vld [vmem:[#allocation7 + $0x7a4] sm:$0xf] }
 0x19f   :  { %v9904_v32 = vld [vmem:[#allocation7 + $0x120] sm:$0xf]  ;;  %v10321_v37 = vor.u32 %v13325_v27, %v10320_v10 }
 0x1a0   :  { %v13221_v33 = vld [vmem:[#allocation7 + $0x15c] sm:$0xf0]  ;;  %3223 = vmatpush.bf16.msrb.mxu2 %v10209_v13  ;;  %v1348_v22 = vadd.f32 %v1347_v8, %v1334_v3  ;;  %v14617_v3 = vpop.f32.mrf.mxu0  ;;  %v10370_v8 = vld [vmem:[#allocation7 + $0xfe0] sm:$0xf0] }
 0x1a1   :  { %3237 = vmatpush.bf16.msrb.mxu3 %v10337_v14  ;;  %v10032_v38 = vld [vmem:[#allocation7 + $0x520] sm:$0xf]  ;;  %v9905_v49 = vor.u32 %v13221_v33, %v9904_v32  ;;  %v10114_v32 = vld [vmem:[#allocation7 + $0x7e0] sm:$0xf0]  ;;  %15224 = vst [vmem:[#allocation38_spill] sm:$0xff] %v14617_v3 }
 0x1a2   :  { %v13253_v39 = vld [vmem:[#allocation7 + $0x55c] sm:$0xf0]  ;;  %3197 = vmatpush.bf16.msrb.mxu0 %v9921_v30  ;;  %3211 = vmatpush.bf16.msrb.mxu1 %v10049_v31  ;;  %v13239_v30 = vld [vmem:[#allocation7 + $0x3a4] sm:$0xf]  ;;  %vm1355_vm4 = vcmp.ge.f32.partialorder %v1348_v22, 0.0 }
 0x1a3   :  { %v10176_v40 = vld [vmem:[#allocation7 + $0x9a0] sm:$0xf]  ;;  %v10033_v51 = vor.u32 %v13253_v39, %v10032_v38  ;;  %v9986_v31 = vld [vmem:[#allocation7 + $0x3e0] sm:$0xf0]  ;;  %v13438_v3 = vld [vmem:[#allocation7 + $0xc74] sm:$0xf0] }
 0x1a4   :  { %v13289_v41 = vld [vmem:[#allocation7 + $0x9dc] sm:$0xf0]  ;;  %3224 = vmatpush.bf16.msrb.mxu2 %v10193_v34 }
 0x1a5   :  { %v10304_v47 = vld [vmem:[#allocation7 + $0xda0] sm:$0xf]  ;;  %3238 = vmatpush.bf16.msrb.mxu3 %v10321_v37  ;;  %v10177_v56 = vor.u32 %v13289_v41, %v10176_v40  ;;  %v1364_v37 = vmul.f32 %v14574_v25, %v1348_v22  ;;  %v14611_v40 = vsel %vm1353_vm3, %v14561_v28, %v1362_v6  ;;  %v10098_v28 = vld [vmem:[#allocation7 + $0x760] sm:$0xf0] }
 0x1a6   :  { %v13321_v48 = vld [vmem:[#allocation7 + $0xddc] sm:$0xf0]  ;;  %3198 = vmatpush.bf16.msrb.mxu0 %v9905_v49  ;;  %3212 = vmatpush.bf16.msrb.mxu1 %v10033_v51  ;;  %v9989_v49 = vor.u32 %v13239_v30, %v9986_v31  ;;  %v10117_v51 = vor.u32 %v13271_v9, %v10114_v32  ;;  %v13335_v6 = vld [vmem:[#allocation7 + $0xfa4] sm:$0xf] }
 0x1a7   :  { %v9888_v52 = vld [vmem:[#allocation7 + $0xa0] sm:$0xf]  ;;  %v10305_v50 = vor.u32 %v13321_v48, %v10304_v47  ;;  %v14613_v48 = vsel %vm1355_vm4, %v1348_v22, %v1364_v37  ;;  %v13231_v22 = vld [vmem:[#allocation7 + $0x2a4] sm:$0xf]  ;;  %v10373_v31 = vor.u32 %v13335_v6, %v10370_v8 }
 0x1a8   :  { %v13217_v53 = vld [vmem:[#allocation7 + $0xdc] sm:$0xf0]  ;;  %3225 = vmatpush.bf16.msrb.mxu2 %v10177_v56  ;;  %v13267_v56 = vld [vmem:[#allocation7 + $0x724] sm:$0xf] }
 0x1a9   :  { %v10016_v60 = vld [vmem:[#allocation7 + $0x4a0] sm:$0xf]  ;;  %v9889_v13 = vor.u32 %v13217_v53, %v9888_v52  ;;  %3239 = vmatpush.bf16.msrb.mxu3 %v10305_v50  ;;  %v13235_v52 = vld [vmem:[#allocation7 + $0x324] sm:$0xf]  ;;  %v13310_v50 = vld [vmem:[#allocation7 + $0xc64] sm:$0xf0] }
 0x1aa   :  { %v13249_v61 = vld [vmem:[#allocation7 + $0x4dc] sm:$0xf0]  ;;  %v9970_v53 = vld [vmem:[#allocation7 + $0x360] sm:$0xf0] }
 0x1ab   :  { %v10160_v62 = vld [vmem:[#allocation7 + $0x920] sm:$0xf]  ;;  %v10017_v14 = vor.u32 %v13249_v61, %v10016_v60  ;;  %3199 = vmatpush.bf16.msrb.mxu0 %v9889_v13  ;;  %v9973_v13 = vor.u32 %v13235_v52, %v9970_v53  ;;  %v13263_v9 = vld [vmem:[#allocation7 + $0x6a4] sm:$0xf] }
 0x1ac   :  { %v13285_v0 = vld [vmem:[#allocation7 + $0x95c] sm:$0xf0]  ;;  %v10082_v32 = vld [vmem:[#allocation7 + $0x6e0] sm:$0xf0] }
 0x1ad   :  { %v10288_v1 = vld [vmem:[#allocation7 + $0xd20] sm:$0xf]  ;;  %v10161_v10 = vor.u32 %v13285_v0, %v10160_v62  ;;  %3213 = vmatpush.bf16.msrb.mxu1 %v10017_v14  ;;  %v10101_v14 = vor.u32 %v13267_v56, %v10098_v28  ;;  %v13331_v37 = vld [vmem:[#allocation7 + $0xf24] sm:$0xf] }
 0x1ae   :  { %v13317_v2 = vld [vmem:[#allocation7 + $0xd5c] sm:$0xf0]  ;;  %v13259_v56 = vld [vmem:[#allocation7 + $0x624] sm:$0xf]  ;;  %v2168_v28 = vpop.f32.mrf.mxu0 }
 0x1af   :  { %v9872_v4 = vld [vmem:[#allocation7 + $0x20] sm:$0xf]  ;;  %v10289_v27 = vor.u32 %v13317_v2, %v10288_v1  ;;  %3226 = vmatpush.bf16.msrb.mxu2 %v10161_v10  ;;  %v13303_v2 = vld [vmem:[#allocation7 + $0xba4] sm:$0xf] }
 0x1b0   :  { %v13213_v15 = vld [vmem:[#allocation7 + $0x5c] sm:$0xf0]  ;;  %v9954_v10 = vld [vmem:[#allocation7 + $0x2e0] sm:$0xf0] }
 0x1b1   :  { %v10000_v19 = vld [vmem:[#allocation7 + $0x420] sm:$0xf]  ;;  %v9873_v41 = vor.u32 %v13213_v15, %v9872_v4  ;;  %3240 = vmatpush.bf16.msrb.mxu3 %v10289_v27  ;;  %v10242_v4 = vld [vmem:[#allocation7 + $0xbe0] sm:$0xf0]  ;;  %v14619_v15 = vpop.f32.mrf.mxu1 }
 0x1b2   :  { %v13245_v20 = vld [vmem:[#allocation7 + $0x45c] sm:$0xf0]  ;;  %15225 = vst [vmem:[#allocation39_spill] sm:$0xff] %v14619_v15  ;;  %v14621_v27 = vld [vmem:[#allocation9 + $0x4] sm:$0xf]  ;;  %v10245_v30 = vor.u32 %v13303_v2, %v10242_v4 }
 0x1b3   :  { %v10144_v33 = vld [vmem:[#allocation7 + $0x8a0] sm:$0xf]  ;;  %v10001_v47 = vor.u32 %v13245_v20, %v10000_v19  ;;  %3200 = vmatpush.bf16.msrb.mxu0 %v9873_v41  ;;  %v9957_v41 = vor.u32 %v13231_v22, %v9954_v10  ;;  %v13223_v8 = vld [vmem:[#allocation7 + $0x1a4] sm:$0xf]  ;;  %v13308_v15 = vld [vmem:[#allocation7 + $0xc2c] sm:$0xf] }
 0x1b4   :  { %v13281_v34 = vld [vmem:[#allocation7 + $0x8dc] sm:$0xf0]  ;;  %v13255_v22 = vld [vmem:[#allocation7 + $0x5a4] sm:$0xf] }
 0x1b5   :  { %v10272_v38 = vld [vmem:[#allocation7 + $0xca0] sm:$0xf]  ;;  %v10145_v60 = vor.u32 %v13281_v34, %v10144_v33  ;;  %3214 = vmatpush.bf16.msrb.mxu1 %v10001_v47  ;;  %v13299_v33 = vld [vmem:[#allocation7 + $0xb24] sm:$0xf]  ;;  %v10085_v47 = vor.u32 %v13263_v9, %v10082_v32 }
 0x1b6   :  { %v13313_v39 = vld [vmem:[#allocation7 + $0xcdc] sm:$0xf0]  ;;  %3201 = vmatmul.bf16.vlgmr.msrb.gmra.mxu0 %v14504_v23  ;;  %v10226_v34 = vld [vmem:[#allocation7 + $0xb60] sm:$0xf0] }
 0x1b7   :  { %v10273_v61 = vor.u32 %v13313_v39, %v10272_v38  ;;  %v10128_v62 = vld [vmem:[#allocation7 + $0x820] sm:$0xf]  ;;  %3249 = vmatpush.bf16.msra.mxu0 %v9989_v49  ;;  %3227 = vmatpush.bf16.msrb.mxu2 %v10145_v60  ;;  %v10354_v38 = vld [vmem:[#allocation7 + $0xf60] sm:$0xf0]  ;;  %v15210_v39 = vperm.slane %v14621_v27, 0  ;;  %v10229_v52 = vor.u32 %v13299_v33, %v10226_v34  ;;  %v14632_v34 = vpop.f32.mrf.mxu3 }
 0x1b8   :  { %v13277_v63 = vld [vmem:[#allocation7 + $0x85c] sm:$0xf0]  ;;  %3215 = vmatmul.bf16.vlgmr.msrb.gmra.mxu1 %v14506_v24  ;;  %v13227_v49 = vld [vmem:[#allocation7 + $0x224] sm:$0xf]  ;;  %v10357_v53 = vor.u32 %v13331_v37, %v10354_v38  ;;  %15227 = vst [vmem:[#allocation41_spill] sm:$0xff] %v14632_v34 }
 0x1b9   :  { %v10256_v0 = vld [vmem:[#allocation7 + $0xc20] sm:$0xf]  ;;  %3263 = vmatpush.bf16.msra.mxu1 %v10117_v51  ;;  %3241 = vmatpush.bf16.msrb.mxu3 %v10273_v61  ;;  %v10129_v19 = vor.u32 %v13277_v63, %v10128_v62  ;;  %v9938_v51 = vld [vmem:[#allocation7 + $0x260] sm:$0xf0]  ;;  %v2182_v2 = vpop.f32.mrf.mxu1 }
 0x1ba   :  { %v13309_v1 = vld [vmem:[#allocation7 + $0xc5c] sm:$0xf0]  ;;  %v10066_v60 = vld [vmem:[#allocation7 + $0x660] sm:$0xf0]  ;;  %v9941_v4 = vor.u32 %v13227_v49, %v9938_v51 }
 0x1bb   :  { %v10257_v20 = vor.u32 %v13309_v1, %v10256_v0  ;;  %3250 = vmatpush.bf16.msra.mxu0 %v9973_v13  ;;  %3228 = vmatpush.bf16.msrb.mxu2 %v10129_v19  ;;  %v13295_v61 = vld [vmem:[#allocation7 + $0xaa4] sm:$0xf]  ;;  %v2169_v1 = vadd.f32 %v2168_v28, %v15210_v39  ;;  %v10069_v6 = vor.u32 %v13259_v56, %v10066_v60  ;;  %v14636_v39 = vpop.f32.mrf.mxu0 }
 0x1bc   :  { %v10210_v62 = vld [vmem:[#allocation7 + $0xae0] sm:$0xf0] }
 0x1bd   :  { %3264 = vmatpush.bf16.msra.mxu1 %v10101_v14  ;;  %3242 = vmatpush.bf16.msrb.mxu3 %v10257_v20  ;;  %v13327_v63 = vld [vmem:[#allocation7 + $0xea4] sm:$0xf]  ;;  %v2183_v14 = vadd.f32 %v2182_v2, %v2169_v1  ;;  %v10213_v19 = vor.u32 %v13295_v61, %v10210_v62 }
 0x1be   :  { %v10338_v0 = vld [vmem:[#allocation7 + $0xee0] sm:$0xf0]  ;;  %3229 = vmatmul.bf16.vlgmr.msrb.gmra.mxu2 %v14510_v45 }
 0x1bf   :  { %3277 = vmatpush.bf16.msra.mxu2 %v10245_v30  ;;  %3251 = vmatpush.bf16.msra.mxu0 %v9957_v41  ;;  %v9922_v13 = vld [vmem:[#allocation7 + $0x1e0] sm:$0xf0]  ;;  %v10341_v20 = vor.u32 %v13327_v63, %v10338_v0 }
 0x1c0   :  { %3243 = vmatmul.bf16.vlgmr.msrb.gmra.mxu3 %v14512_v46  ;;  %v10050_v10 = vld [vmem:[#allocation7 + $0x5e0] sm:$0xf0]  ;;  %v9925_v37 = vor.u32 %v13223_v8, %v9922_v13 }
 0x1c1   :  { %3291 = vmatpush.bf16.msra.mxu3 %v10373_v31  ;;  %3265 = vmatpush.bf16.msra.mxu1 %v10085_v47  ;;  %v13291_v30 = vld [vmem:[#allocation7 + $0xa24] sm:$0xf]  ;;  %v14630_v31 = vpop.f32.mrf.mxu2  ;;  %v10053_v38 = vor.u32 %v13255_v22, %v10050_v10 }
 0x1c2   :  { %15226 = vst [vmem:[#allocation40_spill] sm:$0xff] %v14630_v31  ;;  %v10194_v9 = vld [vmem:[#allocation7 + $0xa60] sm:$0xf0]  ;;  %v13397_v31 = vld [vmem:[#allocation7 + $0x76c] sm:$0xf0] }
 0x1c3   :  { %3278 = vmatpush.bf16.msra.mxu2 %v10229_v52  ;;  %v13323_v32 = vld [vmem:[#allocation7 + $0xe24] sm:$0xf]  ;;  %3252 = vmatpush.bf16.msra.mxu0 %v9941_v4  ;;  %v10197_v49 = vor.u32 %v13291_v30, %v10194_v9  ;;  %v2210_v9 = vpop.f32.mrf.mxu3 }
 0x1c4   :  { %v10322_v33 = vld [vmem:[#allocation7 + $0xe60] sm:$0xf0] }
 0x1c5   :  { %3292 = vmatpush.bf16.msra.mxu3 %v10357_v53  ;;  %3266 = vmatpush.bf16.msra.mxu1 %v10069_v6  ;;  %v13219_v41 = vld [vmem:[#allocation7 + $0x124] sm:$0xf]  ;;  %v10325_v51 = vor.u32 %v13323_v32, %v10322_v33 }
 0x1c6   :  { %v9906_v47 = vld [vmem:[#allocation7 + $0x160] sm:$0xf0] }
 0x1c7   :  { %3279 = vmatpush.bf16.msra.mxu2 %v10213_v19  ;;  %v13251_v52 = vld [vmem:[#allocation7 + $0x524] sm:$0xf]  ;;  %3253 = vmatpush.bf16.msra.mxu0 %v9925_v37  ;;  %v9909_v62 = vor.u32 %v13219_v41, %v9906_v47 }
 0x1c8   :  { %v10034_v53 = vld [vmem:[#allocation7 + $0x560] sm:$0xf0] }
 0x1c9   :  { %3293 = vmatpush.bf16.msra.mxu3 %v10341_v20  ;;  %v13287_v56 = vld [vmem:[#allocation7 + $0x9a4] sm:$0xf]  ;;  %3267 = vmatpush.bf16.msra.mxu1 %v10053_v38  ;;  %v10037_v63 = vor.u32 %v13251_v52, %v10034_v53  ;;  %v2196_v19 = vpop.f32.mrf.mxu2  ;;  %v9992_v53 = vld [vmem:[#allocation7 + $0x3a8] sm:$0xf] }
 0x1ca   :  { %v10178_v60 = vld [vmem:[#allocation7 + $0x9e0] sm:$0xf0]  ;;  %v2197_v30 = vadd.f32 %v2196_v19, %v2183_v14 }
 0x1cb   :  { %v13319_v61 = vld [vmem:[#allocation7 + $0xda4] sm:$0xf]  ;;  %3280 = vmatpush.bf16.msra.mxu2 %v10197_v49  ;;  %v10181_v2 = vor.u32 %v13287_v56, %v10178_v60  ;;  %3254 = vmatpush.bf16.msra.mxu0 %v9909_v62  ;;  %v13242_v56 = vld [vmem:[#allocation7 + $0x3e4] sm:$0xf0] }
 0x1cc   :  { %v10306_v28 = vld [vmem:[#allocation7 + $0xde0] sm:$0xf0]  ;;  %v14634_v47 = vadd.f32 %v2210_v9, %v2197_v30  ;;  %v10120_v60 = vld [vmem:[#allocation7 + $0x7a8] sm:$0xf] }
 0x1cd   :  { %v13215_v0 = vld [vmem:[#allocation7 + $0xa4] sm:$0xf]  ;;  %3294 = vmatpush.bf16.msra.mxu3 %v10325_v51  ;;  %v10309_v4 = vor.u32 %v13319_v61, %v10306_v28  ;;  %3268 = vmatpush.bf16.msra.mxu1 %v10037_v63  ;;  %v13274_v61 = vld [vmem:[#allocation7 + $0x7e4] sm:$0xf0] }
 0x1ce   :  { %v9890_v1 = vld [vmem:[#allocation7 + $0xe0] sm:$0xf0]  ;;  %vm2383_vm5 = vcmp.ge.f32.partialorder %v14634_v47, 0.0 }
 0x1cf   :  { %v13247_v6 = vld [vmem:[#allocation7 + $0x4a4] sm:$0xf]  ;;  %v9893_v32 = vor.u32 %v13215_v0, %v9890_v1  ;;  %3281 = vmatpush.bf16.msra.mxu2 %v10181_v2  ;;  %v9993_v2 = vor.u32 %v13242_v56, %v9992_v53  ;;  %v9960_v53 = vld [vmem:[#allocation7 + $0x2a8] sm:$0xf] }
 0x1d0   :  { %v10018_v8 = vld [vmem:[#allocation7 + $0x4e0] sm:$0xf0]  ;;  %v13234_v56 = vld [vmem:[#allocation7 + $0x2e4] sm:$0xf0] }
 0x1d1   :  { %v13283_v13 = vld [vmem:[#allocation7 + $0x924] sm:$0xf]  ;;  %v10021_v33 = vor.u32 %v13247_v6, %v10018_v8  ;;  %3295 = vmatpush.bf16.msra.mxu3 %v10309_v4  ;;  %3255 = vmatpush.bf16.msra.mxu0 %v9893_v32  ;;  %v10121_v4 = vor.u32 %v13274_v61, %v10120_v60  ;;  %v9976_v6 = vld [vmem:[#allocation7 + $0x328] sm:$0xf] }
 0x1d2   :  { %v10162_v20 = vld [vmem:[#allocation7 + $0x960] sm:$0xf0]  ;;  %v13238_v8 = vld [vmem:[#allocation7 + $0x364] sm:$0xf0] }
 0x1d3   :  { %v13315_v22 = vld [vmem:[#allocation7 + $0xd24] sm:$0xf]  ;;  %v10165_v49 = vor.u32 %v13283_v13, %v10162_v20  ;;  %3269 = vmatpush.bf16.msra.mxu1 %v10021_v33  ;;  %v10104_v13 = vld [vmem:[#allocation7 + $0x728] sm:$0xf] }
 0x1d4   :  { %v10290_v10 = vld [vmem:[#allocation7 + $0xd60] sm:$0xf0]  ;;  %v13306_v32 = vld [vmem:[#allocation7 + $0xbe4] sm:$0xf0] }
 0x1d5   :  { %v13211_v37 = vld [vmem:[#allocation7 + $0x24] sm:$0xf]  ;;  %v10293_v51 = vor.u32 %v13315_v22, %v10290_v10  ;;  %3282 = vmatpush.bf16.msra.mxu2 %v10165_v49  ;;  %v13270_v22 = vld [vmem:[#allocation7 + $0x764] sm:$0xf0]  ;;  %v14638_v49 = vpop.f32.mrf.mxu1  ;;  %v10249_v60 = vor.u32 %v13306_v32, %v10248_v7 }
 0x1d6   :  { %v9874_v38 = vld [vmem:[#allocation7 + $0x60] sm:$0xf0]  ;;  %v10376_v33 = vld [vmem:[#allocation7 + $0xfa8] sm:$0xf] }
 0x1d7   :  { %v13243_v41 = vld [vmem:[#allocation7 + $0x424] sm:$0xf]  ;;  %v9877_v0 = vor.u32 %v13211_v37, %v9874_v38  ;;  %3296 = vmatpush.bf16.msra.mxu3 %v10293_v51  ;;  %v13338_v37 = vld [vmem:[#allocation7 + $0xfe4] sm:$0xf0]  ;;  %v9977_v38 = vor.u32 %v13238_v8, %v9976_v6 }
 0x1d8   :  { %v10002_v52 = vld [vmem:[#allocation7 + $0x460] sm:$0xf0]  ;;  %v10377_v61 = vor.u32 %v13338_v37, %v10376_v33  ;;  %v9944_v6 = vld [vmem:[#allocation7 + $0x228] sm:$0xf] }
 0x1d9   :  { %v13279_v14 = vld [vmem:[#allocation7 + $0x8a4] sm:$0xf]  ;;  %v10005_v1 = vor.u32 %v13243_v41, %v10002_v52  ;;  %3256 = vmatpush.bf16.msra.mxu0 %v9877_v0  ;;  %v10105_v41 = vor.u32 %v13270_v22, %v10104_v13  ;;  %v10360_v0 = vld [vmem:[#allocation7 + $0xf28] sm:$0xf] }
 0x1da   :  { %v10146_v28 = vld [vmem:[#allocation7 + $0x8e0] sm:$0xf0]  ;;  %v13230_v8 = vld [vmem:[#allocation7 + $0x264] sm:$0xf0] }
 0x1db   :  { %v13311_v62 = vld [vmem:[#allocation7 + $0xca4] sm:$0xf]  ;;  %v10149_v19 = vor.u32 %v13279_v14, %v10146_v28  ;;  %3270 = vmatpush.bf16.msra.mxu1 %v10005_v1  ;;  %v10088_v14 = vld [vmem:[#allocation7 + $0x6a8] sm:$0xf] }
 0x1dc   :  { %v10274_v63 = vld [vmem:[#allocation7 + $0xce0] sm:$0xf0]  ;;  %3257 = vmatmul.bf16.vlgmr.msra.gmra.mxu0 %v14504_v23  ;;  %v13266_v28 = vld [vmem:[#allocation7 + $0x6e4] sm:$0xf0] }
 0x1dd   :  { %v10277_v20 = vor.u32 %v13311_v62, %v10274_v63  ;;  %v13275_v10 = vld [vmem:[#allocation7 + $0x824] sm:$0xf]  ;;  %3305 = vmatpush.bf16.msrb.mxu0 %v9993_v2  ;;  %3283 = vmatpush.bf16.msra.mxu2 %v10149_v19  ;;  %v10232_v62 = vld [vmem:[#allocation7 + $0xb28] sm:$0xf]  ;;  %v15211_v2 = vperm.slane %v14621_v27, 1  ;;  %v2238_v37 = vpop.f32.mrf.mxu1 }
 0x1de   :  { %v10130_v30 = vld [vmem:[#allocation7 + $0x860] sm:$0xf0]  ;;  %3271 = vmatmul.bf16.vlgmr.msra.gmra.mxu1 %v14506_v24  ;;  %v13302_v63 = vld [vmem:[#allocation7 + $0xb64] sm:$0xf0] }
 0x1df   :  { %v13307_v9 = vld [vmem:[#allocation7 + $0xc24] sm:$0xf]  ;;  %3319 = vmatpush.bf16.msrb.mxu1 %v10121_v4  ;;  %3297 = vmatpush.bf16.msra.mxu3 %v10277_v20  ;;  %v10133_v51 = vor.u32 %v13275_v10, %v10130_v30  ;;  %v13334_v1 = vld [vmem:[#allocation7 + $0xf64] sm:$0xf0]  ;;  %v10089_v4 = vor.u32 %v13266_v28, %v10088_v14  ;;  %v10233_v7 = vor.u32 %v13302_v63, %v10232_v62  ;;  %v2224_v10 = vpop.f32.mrf.mxu0  ;;  %v14647_v62 = vpop.f32.mrf.mxu2 }
 0x1e0   :  { %v10261_v52 = vor.u32 %v13307_v9, %v10258_v44  ;;  %v9961_v44 = vor.u32 %v13234_v56, %v9960_v53  ;;  %v10361_v13 = vor.u32 %v13334_v1, %v10360_v0  ;;  %v10072_v19 = vld [vmem:[#allocation7 + $0x628] sm:$0xf]  ;;  %v2225_v33 = vadd.f32 %v2224_v10, %v15211_v2  ;;  %v13272_v2 = vld [vmem:[#allocation7 + $0x7ac] sm:$0xf] }
 0x1e1   :  { %3306 = vmatpush.bf16.msrb.mxu0 %v9977_v38  ;;  %3284 = vmatpush.bf16.msra.mxu2 %v10133_v51  ;;  %v13262_v20 = vld [vmem:[#allocation7 + $0x664] sm:$0xf0]  ;;  %v9945_v38 = vor.u32 %v13230_v8, %v9944_v6 }
 0x1e2   :  { %v10216_v22 = vld [vmem:[#allocation7 + $0xaa8] sm:$0xf]  ;;  %v2239_v53 = vadd.f32 %v2238_v37, %v2225_v33 }
 0x1e3   :  { %3320 = vmatpush.bf16.msrb.mxu1 %v10105_v41  ;;  %3298 = vmatpush.bf16.msra.mxu3 %v10261_v52  ;;  %v13298_v30 = vld [vmem:[#allocation7 + $0xae4] sm:$0xf0]  ;;  %v10073_v41 = vor.u32 %v13262_v20, %v10072_v19 }
 0x1e4   :  { %v10344_v9 = vld [vmem:[#allocation7 + $0xea8] sm:$0xf]  ;;  %3285 = vmatmul.bf16.vlgmr.msra.gmra.mxu2 %v14510_v45  ;;  %v10217_v56 = vor.u32 %v13298_v30, %v10216_v22 }
 0x1e5   :  { %3333 = vmatpush.bf16.msrb.mxu2 %v10249_v60  ;;  %v13330_v32 = vld [vmem:[#allocation7 + $0xee4] sm:$0xf0]  ;;  %3307 = vmatpush.bf16.msrb.mxu0 %v9961_v44  ;;  %v14649_v44 = vpop.f32.mrf.mxu3 }
 0x1e6   :  { %3299 = vmatmul.bf16.vlgmr.msra.gmra.mxu3 %v14512_v46  ;;  %v9928_v51 = vld [vmem:[#allocation7 + $0x1a8] sm:$0xf]  ;;  %v10345_v60 = vor.u32 %v13330_v32, %v10344_v9 }
 0x1e7   :  { %3347 = vmatpush.bf16.msrb.mxu3 %v10377_v61  ;;  %3321 = vmatpush.bf16.msrb.mxu1 %v10089_v4  ;;  %v13226_v52 = vld [vmem:[#allocation7 + $0x1e4] sm:$0xf0]  ;;  %v14653_v34 = vpop.f32.mrf.mxu0 }
 0x1e8   :  { %v10056_v61 = vld [vmem:[#allocation7 + $0x5a8] sm:$0xf]  ;;  %v9929_v4 = vor.u32 %v13226_v52, %v9928_v51  ;;  %15228 = vst [vmem:[#allocation42_spill] sm:$0xff] %v14653_v34  ;;  %v10768_v34 = vld [vmem:[#allocation7 + $0xc30] sm:$0xf] }
 0x1e9   :  { %3334 = vmatpush.bf16.msrb.mxu2 %v10233_v7  ;;  %v13258_v14 = vld [vmem:[#allocation7 + $0x5e4] sm:$0xf0]  ;;  %3308 = vmatpush.bf16.msrb.mxu0 %v9945_v38 }
 0x1ea   :  { %v10200_v28 = vld [vmem:[#allocation7 + $0xa28] sm:$0xf]  ;;  %v10057_v6 = vor.u32 %v13258_v14, %v10056_v61  ;;  %v2252_v14 = vpop.f32.mrf.mxu2 }
 0x1eb   :  { %3348 = vmatpush.bf16.msrb.mxu3 %v10361_v13  ;;  %v13294_v63 = vld [vmem:[#allocation7 + $0xa64] sm:$0xf0]  ;;  %3322 = vmatpush.bf16.msrb.mxu1 %v10073_v41 }
 0x1ec   :  { %v10328_v0 = vld [vmem:[#allocation7 + $0xe28] sm:$0xf]  ;;  %v10201_v13 = vor.u32 %v13294_v63, %v10200_v28 }
 0x1ed   :  { %v13326_v1 = vld [vmem:[#allocation7 + $0xe64] sm:$0xf0]  ;;  %3335 = vmatpush.bf16.msrb.mxu2 %v10217_v56  ;;  %3309 = vmatpush.bf16.msrb.mxu0 %v9929_v4  ;;  %v2266_v4 = vpop.f32.mrf.mxu3 }
 0x1ee   :  { %v9912_v8 = vld [vmem:[#allocation7 + $0x128] sm:$0xf]  ;;  %v10329_v19 = vor.u32 %v13326_v1, %v10328_v0  ;;  %v2253_v1 = vadd.f32 %v2252_v14, %v2239_v53 }
 0x1ef   :  { %v13222_v7 = vld [vmem:[#allocation7 + $0x164] sm:$0xf0]  ;;  %3349 = vmatpush.bf16.msrb.mxu3 %v10345_v60  ;;  %3323 = vmatpush.bf16.msrb.mxu1 %v10057_v6 }
 0x1f0   :  { %v10040_v20 = vld [vmem:[#allocation7 + $0x528] sm:$0xf]  ;;  %v9913_v33 = vor.u32 %v13222_v7, %v9912_v8 }
 0x1f1   :  { %v13254_v22 = vld [vmem:[#allocation7 + $0x564] sm:$0xf0]  ;;  %3336 = vmatpush.bf16.msrb.mxu2 %v10201_v13  ;;  %v14651_v13 = vadd.f32 %v2266_v4, %v2253_v1 }
 0x1f2   :  { %v10184_v10 = vld [vmem:[#allocation7 + $0x9a8] sm:$0xf]  ;;  %v10041_v37 = vor.u32 %v13254_v22, %v10040_v20  ;;  %3310 = vmatpush.bf16.msrb.mxu0 %v9913_v33 }
 0x1f3   :  { %v13290_v30 = vld [vmem:[#allocation7 + $0x9e4] sm:$0xf0]  ;;  %3350 = vmatpush.bf16.msrb.mxu3 %v10329_v19  ;;  %vm2384_vm7 = vcmp.ge.f32.partialorder %v14651_v13, 0.0 }
 0x1f4   :  { %v10312_v9 = vld [vmem:[#allocation7 + $0xda8] sm:$0xf]  ;;  %v10185_v51 = vor.u32 %v13290_v30, %v10184_v10  ;;  %3324 = vmatpush.bf16.msrb.mxu1 %v10041_v37 }
 0x1f5   :  { %v13322_v32 = vld [vmem:[#allocation7 + $0xde4] sm:$0xf0] }
 0x1f6   :  { %v9896_v38 = vld [vmem:[#allocation7 + $0xa8] sm:$0xf]  ;;  %v10313_v52 = vor.u32 %v13322_v32, %v10312_v9  ;;  %3337 = vmatpush.bf16.msrb.mxu2 %v10185_v51  ;;  %v13240_v9 = vld [vmem:[#allocation7 + $0x3ac] sm:$0xf] }
 0x1f7   :  { %v13218_v41 = vld [vmem:[#allocation7 + $0xe4] sm:$0xf0]  ;;  %v9994_v32 = vld [vmem:[#allocation7 + $0x3e8] sm:$0xf0] }
 0x1f8   :  { %v10024_v56 = vld [vmem:[#allocation7 + $0x4a8] sm:$0xf]  ;;  %v9897_v6 = vor.u32 %v13218_v41, %v9896_v38  ;;  %3351 = vmatpush.bf16.msrb.mxu3 %v10313_v52  ;;  %v9997_v51 = vor.u32 %v13240_v9, %v9994_v32  ;;  %v10125_v52 = vor.u32 %v13272_v2, %v10122_v18 }
 0x1f9   :  { %v13250_v60 = vld [vmem:[#allocation7 + $0x4e4] sm:$0xf0] }
 0x1fa   :  { %v10168_v61 = vld [vmem:[#allocation7 + $0x928] sm:$0xf]  ;;  %v10025_v8 = vor.u32 %v13250_v60, %v10024_v56  ;;  %3311 = vmatpush.bf16.msrb.mxu0 %v9897_v6  ;;  %v13236_v56 = vld [vmem:[#allocation7 + $0x32c] sm:$0xf] }
 0x1fb   :  { %v13286_v28 = vld [vmem:[#allocation7 + $0x964] sm:$0xf0]  ;;  %v9978_v60 = vld [vmem:[#allocation7 + $0x368] sm:$0xf0] }
 0x1fc   :  { %v10296_v63 = vld [vmem:[#allocation7 + $0xd28] sm:$0xf]  ;;  %v10169_v19 = vor.u32 %v13286_v28, %v10168_v61  ;;  %3325 = vmatpush.bf16.msrb.mxu1 %v10025_v8  ;;  %v13268_v61 = vld [vmem:[#allocation7 + $0x72c] sm:$0xf]  ;;  %v9981_v18 = vor.u32 %v13236_v56, %v9978_v60 }
 0x1fd   :  { %v13318_v0 = vld [vmem:[#allocation7 + $0xd64] sm:$0xf0]  ;;  %v10250_v6 = vld [vmem:[#allocation7 + $0xbe8] sm:$0xf0] }
 0x1fe   :  { %v9880_v7 = vld [vmem:[#allocation7 + $0x28] sm:$0xf]  ;;  %v10297_v10 = vor.u32 %v13318_v0, %v10296_v63  ;;  %3338 = vmatpush.bf16.msrb.mxu2 %v10169_v19  ;;  %v10106_v0 = vld [vmem:[#allocation7 + $0x768] sm:$0xf0]  ;;  %v10265_v19 = vor.u32 %v13310_v50, %v10264_v5  ;;  %v10253_v9 = vor.u32 %v13304_v17, %v10250_v6 }
 0x1ff   :  { %v13214_v20 = vld [vmem:[#allocation7 + $0x64] sm:$0xf0]  ;;  %v13336_v8 = vld [vmem:[#allocation7 + $0xfac] sm:$0xf]  ;;  %v10109_v2 = vor.u32 %v13268_v61, %v10106_v0  ;;  %v2280_v0 = vpop.f32.mrf.mxu0 }
 0x200   :  { %v10008_v22 = vld [vmem:[#allocation7 + $0x428] sm:$0xf]  ;;  %v9881_v38 = vor.u32 %v13214_v20, %v9880_v7  ;;  %3352 = vmatpush.bf16.msrb.mxu3 %v10297_v10  ;;  %v10378_v7 = vld [vmem:[#allocation7 + $0xfe8] sm:$0xf0]  ;;  %v14655_v20 = vpop.f32.mrf.mxu1 }
 0x201   :  { %v13246_v30 = vld [vmem:[#allocation7 + $0x464] sm:$0xf0]  ;;  %15229 = vst [vmem:[#allocation43_spill] sm:$0xff] %v14655_v20  ;;  %v13232_v10 = vld [vmem:[#allocation7 + $0x2ac] sm:$0xf]  ;;  %v10381_v32 = vor.u32 %v13336_v8, %v10378_v7 }
 0x202   :  { %v10152_v53 = vld [vmem:[#allocation7 + $0x8a8] sm:$0xf]  ;;  %v10009_v41 = vor.u32 %v13246_v30, %v10008_v22  ;;  %3312 = vmatpush.bf16.msrb.mxu0 %v9881_v38  ;;  %v9962_v30 = vld [vmem:[#allocation7 + $0x2e8] sm:$0xf0] }
 0x203   :  { %v13282_v33 = vld [vmem:[#allocation7 + $0x8e4] sm:$0xf0]  ;;  %v13332_v38 = vld [vmem:[#allocation7 + $0xf2c] sm:$0xf]  ;;  %v9965_v5 = vor.u32 %v13232_v10, %v9962_v30 }
 0x204   :  { %v10280_v37 = vld [vmem:[#allocation7 + $0xca8] sm:$0xf]  ;;  %v10153_v28 = vor.u32 %v13282_v33, %v10152_v53  ;;  %3326 = vmatpush.bf16.msrb.mxu1 %v10009_v41  ;;  %v13264_v53 = vld [vmem:[#allocation7 + $0x6ac] sm:$0xf] }
 0x205   :  { %v13314_v14 = vld [vmem:[#allocation7 + $0xce4] sm:$0xf0]  ;;  %3313 = vmatmul.bf16.vlgmr.msrb.gmra.mxu0 %v14504_v23  ;;  %v10090_v33 = vld [vmem:[#allocation7 + $0x6e8] sm:$0xf0] }
 0x206   :  { %v10281_v63 = vor.u32 %v13314_v14, %v10280_v37  ;;  %v10136_v1 = vld [vmem:[#allocation7 + $0x828] sm:$0xf]  ;;  %3361 = vmatpush.bf16.msra.mxu0 %v9997_v51  ;;  %3339 = vmatpush.bf16.msrb.mxu2 %v10153_v28  ;;  %v13300_v37 = vld [vmem:[#allocation7 + $0xb2c] sm:$0xf]  ;;  %v15214_v51 = vperm.slane %v14621_v27, 2  ;;  %v10093_v50 = vor.u32 %v13264_v53, %v10090_v33 }
 0x207   :  { %v13278_v4 = vld [vmem:[#allocation7 + $0x864] sm:$0xf0]  ;;  %3327 = vmatmul.bf16.vlgmr.msrb.gmra.mxu1 %v14506_v24  ;;  %v10234_v14 = vld [vmem:[#allocation7 + $0xb68] sm:$0xf0] }
 0x208   :  { %3375 = vmatpush.bf16.msra.mxu1 %v10125_v52  ;;  %3353 = vmatpush.bf16.msrb.mxu3 %v10281_v63  ;;  %v10137_v22 = vor.u32 %v13278_v4, %v10136_v1  ;;  %v10362_v41 = vld [vmem:[#allocation7 + $0xf68] sm:$0xf0]  ;;  %v10237_v17 = vor.u32 %v13300_v37, %v10234_v14  ;;  %v2281_v8 = vadd.f32 %v2280_v0, %v15214_v51  ;;  %v2294_v7 = vpop.f32.mrf.mxu1  ;;  %v14664_v37 = vpop.f32.mrf.mxu2  ;;  %v13369_v51 = vld [vmem:[#allocation7 + $0x3ec] sm:$0xf0] }
 0x209   :  { %v13228_v52 = vld [vmem:[#allocation7 + $0x22c] sm:$0xf]  ;;  %v10365_v60 = vor.u32 %v13332_v38, %v10362_v41  ;;  %15230 = vst [vmem:[#allocation44_spill] sm:$0xff] %v14664_v37 }
 0x20a   :  { %3362 = vmatpush.bf16.msra.mxu0 %v9981_v18  ;;  %3340 = vmatpush.bf16.msrb.mxu2 %v10137_v22  ;;  %v9946_v56 = vld [vmem:[#allocation7 + $0x268] sm:$0xf0]  ;;  %v2295_v10 = vadd.f32 %v2294_v7, %v2281_v8 }
 0x20b   :  { %v13260_v61 = vld [vmem:[#allocation7 + $0x62c] sm:$0xf]  ;;  %v9949_v18 = vor.u32 %v13228_v52, %v9946_v56 }
 0x20c   :  { %3376 = vmatpush.bf16.msra.mxu1 %v10109_v2  ;;  %3354 = vmatpush.bf16.msrb.mxu3 %v10265_v19  ;;  %v10074_v28 = vld [vmem:[#allocation7 + $0x668] sm:$0xf0] }
 0x20d   :  { %v13296_v63 = vld [vmem:[#allocation7 + $0xaac] sm:$0xf]  ;;  %3341 = vmatmul.bf16.vlgmr.msrb.gmra.mxu2 %v14510_v45  ;;  %v10077_v2 = vor.u32 %v13260_v61, %v10074_v28 }
 0x20e   :  { %3389 = vmatpush.bf16.msra.mxu2 %v10253_v9  ;;  %v10218_v1 = vld [vmem:[#allocation7 + $0xae8] sm:$0xf0]  ;;  %3363 = vmatpush.bf16.msra.mxu0 %v9965_v5  ;;  %v14666_v5 = vpop.f32.mrf.mxu3 }
 0x20f   :  { %v13328_v4 = vld [vmem:[#allocation7 + $0xeac] sm:$0xf]  ;;  %3355 = vmatmul.bf16.vlgmr.msrb.gmra.mxu3 %v14512_v46  ;;  %v10221_v30 = vor.u32 %v13296_v63, %v10218_v1  ;;  %15231 = vst [vmem:[#allocation45_spill] sm:$0xff] %v14666_v5 }
 0x210   :  { %3403 = vmatpush.bf16.msra.mxu3 %v10381_v32  ;;  %v10346_v6 = vld [vmem:[#allocation7 + $0xee8] sm:$0xf0]  ;;  %3377 = vmatpush.bf16.msra.mxu1 %v10093_v50 }
 0x211   :  { %v13224_v22 = vld [vmem:[#allocation7 + $0x1ac] sm:$0xf]  ;;  %v10349_v9 = vor.u32 %v13328_v4, %v10346_v6 }
 0x212   :  { %v9930_v19 = vld [vmem:[#allocation7 + $0x1e8] sm:$0xf0]  ;;  %3390 = vmatpush.bf16.msra.mxu2 %v10237_v17  ;;  %3364 = vmatpush.bf16.msra.mxu0 %v9949_v18 }
 0x213   :  { %v13256_v32 = vld [vmem:[#allocation7 + $0x5ac] sm:$0xf]  ;;  %v9933_v50 = vor.u32 %v13224_v22, %v9930_v19 }
 0x214   :  { %3404 = vmatpush.bf16.msra.mxu3 %v10365_v60  ;;  %v10058_v53 = vld [vmem:[#allocation7 + $0x5e8] sm:$0xf0]  ;;  %3378 = vmatpush.bf16.msra.mxu1 %v10077_v2 }
 0x215   :  { %v13292_v33 = vld [vmem:[#allocation7 + $0xa2c] sm:$0xf]  ;;  %v10061_v52 = vor.u32 %v13256_v32, %v10058_v53  ;;  %v2308_v53 = vpop.f32.mrf.mxu2 }
 0x216   :  { %v10202_v14 = vld [vmem:[#allocation7 + $0xa68] sm:$0xf0]  ;;  %3391 = vmatpush.bf16.msra.mxu2 %v10221_v30  ;;  %3365 = vmatpush.bf16.msra.mxu0 %v9933_v50 }
 0x217   :  { %v13324_v38 = vld [vmem:[#allocation7 + $0xe2c] sm:$0xf]  ;;  %v10205_v60 = vor.u32 %v13292_v33, %v10202_v14 }
 0x218   :  { %v10330_v41 = vld [vmem:[#allocation7 + $0xe68] sm:$0xf0]  ;;  %3405 = vmatpush.bf16.msra.mxu3 %v10349_v9  ;;  %3379 = vmatpush.bf16.msra.mxu1 %v10061_v52  ;;  %v2391_v52 = vmul.f32 %v14634_v47, %v14574_v25 }
 0x219   :  { %v13220_v56 = vld [vmem:[#allocation7 + $0x12c] sm:$0xf]  ;;  %v10333_v61 = vor.u32 %v13324_v38, %v10330_v41  ;;  %v2309_v41 = vadd.f32 %v2308_v53, %v2295_v10  ;;  %v10624_v10 = vld [vmem:[#allocation7 + $0x7b0] sm:$0xf] }
 0x21a   :  { %v9914_v17 = vld [vmem:[#allocation7 + $0x168] sm:$0xf0]  ;;  %3392 = vmatpush.bf16.msra.mxu2 %v10205_v60  ;;  %v13401_v53 = vld [vmem:[#allocation7 + $0x7ec] sm:$0xf0] }
 0x21b   :  { %v13252_v28 = vld [vmem:[#allocation7 + $0x52c] sm:$0xf]  ;;  %v9917_v8 = vor.u32 %v13220_v56, %v9914_v17  ;;  %v2322_v56 = vpop.f32.mrf.mxu3 }
 0x21c   :  { %v10042_v63 = vld [vmem:[#allocation7 + $0x568] sm:$0xf0]  ;;  %3406 = vmatpush.bf16.msra.mxu3 %v10333_v61 }
 0x21d   :  { %v13288_v0 = vld [vmem:[#allocation7 + $0x9ac] sm:$0xf]  ;;  %v10045_v7 = vor.u32 %v13252_v28, %v10042_v63  ;;  %3366 = vmatpush.bf16.msra.mxu0 %v9917_v8 }
 0x21e   :  { %v10186_v1 = vld [vmem:[#allocation7 + $0x9e8] sm:$0xf0] }
 0x21f   :  { %v13320_v4 = vld [vmem:[#allocation7 + $0xdac] sm:$0xf]  ;;  %v10189_v22 = vor.u32 %v13288_v0, %v10186_v1  ;;  %3380 = vmatpush.bf16.msra.mxu1 %v10045_v7  ;;  %v2323_v0 = vadd.f32 %v2322_v56, %v2309_v41 }
 0x220   :  { %v10314_v6 = vld [vmem:[#allocation7 + $0xde8] sm:$0xf0] }
 0x221   :  { %v13216_v18 = vld [vmem:[#allocation7 + $0xac] sm:$0xf]  ;;  %v10317_v19 = vor.u32 %v13320_v4, %v10314_v6  ;;  %3393 = vmatpush.bf16.msra.mxu2 %v10189_v22  ;;  %v10496_v6 = vld [vmem:[#allocation7 + $0x3b0] sm:$0xf]  ;;  %vm2385_vm6 = vcmp.ge.f32.partialorder %v2323_v0, 0.0  ;;  %v2393_v8 = vmul.f32 %v2323_v0, %v14574_v25 }
 0x222   :  { %v9898_v2 = vld [vmem:[#allocation7 + $0xe8] sm:$0xf0] }
 0x223   :  { %v13248_v30 = vld [vmem:[#allocation7 + $0x4ac] sm:$0xf]  ;;  %v9901_v17 = vor.u32 %v13216_v18, %v9898_v2  ;;  %3407 = vmatpush.bf16.msra.mxu3 %v10317_v19  ;;  %v2399_v2 = vsel %vm2383_vm5, %v14634_v47, %v2391_v52  ;;  %v10752_v52 = vld [vmem:[#allocation7 + $0xbb0] sm:$0xf] }
 0x224   :  { %v10026_v9 = vld [vmem:[#allocation7 + $0x4e8] sm:$0xf0] }
 0x225   :  { %v13284_v32 = vld [vmem:[#allocation7 + $0x92c] sm:$0xf]  ;;  %v10029_v60 = vor.u32 %v13248_v30, %v10026_v9  ;;  %3367 = vmatpush.bf16.msra.mxu0 %v9901_v17  ;;  %v2401_v30 = vsel %vm2385_vm6, %v2323_v0, %v2393_v8  ;;  %v10497_v9 = vor.u32 %v13369_v51, %v10496_v6  ;;  %v14675_v17 = vpop.f32.mrf.mxu0  ;;  %v13433_v51 = vld [vmem:[#allocation7 + $0xbec] sm:$0xf0] }
 0x226   :  { %v10170_v33 = vld [vmem:[#allocation7 + $0x968] sm:$0xf0]  ;;  %v2407_v41 = vmax.f32 %v2399_v2, %v2401_v30  ;;  %v13361_v6 = vld [vmem:[#allocation7 + $0x2ec] sm:$0xf0] }
 0x227   :  { %v13316_v14 = vld [vmem:[#allocation7 + $0xd2c] sm:$0xf]  ;;  %v10173_v1 = vor.u32 %v13284_v32, %v10170_v33  ;;  %3381 = vmatpush.bf16.msra.mxu1 %v10029_v60  ;;  %v10625_v32 = vor.u32 %v13401_v53, %v10624_v10  ;;  %v10480_v33 = vld [vmem:[#allocation7 + $0x330] sm:$0xf] }
 0x228   :  { %v10298_v38 = vld [vmem:[#allocation7 + $0xd68] sm:$0xf0]  ;;  %v10592_v10 = vld [vmem:[#allocation7 + $0x6b0] sm:$0xf] }
 0x229   :  { %v13212_v50 = vld [vmem:[#allocation7 + $0x2c] sm:$0xf]  ;;  %v10301_v4 = vor.u32 %v13316_v14, %v10298_v38  ;;  %3394 = vmatpush.bf16.msra.mxu2 %v10173_v1  ;;  %v13365_v14 = vld [vmem:[#allocation7 + $0x36c] sm:$0xf0] }
 0x22a   :  { %v9882_v61 = vld [vmem:[#allocation7 + $0x68] sm:$0xf0]  ;;  %v10608_v38 = vld [vmem:[#allocation7 + $0x730] sm:$0xf] }
 0x22b   :  { %v13244_v28 = vld [vmem:[#allocation7 + $0x42c] sm:$0xf]  ;;  %v9885_v22 = vor.u32 %v13212_v50, %v9882_v61  ;;  %3408 = vmatpush.bf16.msra.mxu3 %v10301_v4  ;;  %v15232_v50 = vmax.f32 %v14583_v11, %v14585_v12  ;;  %v10880_v61 = vld [vmem:[#allocation7 + $0xfb0] sm:$0xf]  ;;  %v10753_v11 = vor.u32 %v13433_v51, %v10752_v52 }
 0x22c   :  { %v10010_v63 = vld [vmem:[#allocation7 + $0x468] sm:$0xf0]  ;;  %v10464_v4 = vld [vmem:[#allocation7 + $0x2b0] sm:$0xf] }
 0x22d   :  { %v13280_v5 = vld [vmem:[#allocation7 + $0x8ac] sm:$0xf]  ;;  %v10013_v19 = vor.u32 %v13244_v28, %v10010_v63  ;;  %v14680_v60 = vmax.f32 %v15232_v50, %v2407_v41  ;;  %3368 = vmatpush.bf16.msra.mxu0 %v9885_v22  ;;  %v13465_v28 = vld [vmem:[#allocation7 + $0xfec] sm:$0xf0]  ;;  %v14682_v63 = vpop.f32.mrf.mxu1 }
 0x22e   :  { %v13312_v7 = vld [vmem:[#allocation7 + $0xcac] sm:$0xf]  ;;  %v10157_v56 = vor.u32 %v13280_v5, %v10154_v55  ;;  %v10481_v55 = vor.u32 %v13365_v14, %v10480_v33  ;;  %v10609_v5 = vor.u32 %v13397_v31, %v10608_v38  ;;  %v10881_v12 = vor.u32 %v13465_v28, %v10880_v61  ;;  %v13393_v53 = vld [vmem:[#allocation7 + $0x6ec] sm:$0xf0]  ;;  %v2336_v33 = vpop.f32.mrf.mxu0 }
 0x22f   :  { %v10282_v18 = vld [vmem:[#allocation7 + $0xce8] sm:$0xf0]  ;;  %3382 = vmatpush.bf16.msra.mxu1 %v10013_v19  ;;  %v10736_v8 = vld [vmem:[#allocation7 + $0xb30] sm:$0xf] }
 0x230   :  { %v10285_v37 = vor.u32 %v13312_v7, %v10282_v18  ;;  %v10138_v20 = vld [vmem:[#allocation7 + $0x868] sm:$0xf0]  ;;  %3395 = vmatpush.bf16.msra.mxu2 %v10157_v56  ;;  %3369 = vmatmul.bf16.vlgmr.msra.gmra.mxu0 %v14504_v23  ;;  %v13429_v7 = vld [vmem:[#allocation7 + $0xb6c] sm:$0xf0] }
 0x231   :  { %v10266_v47 = vld [vmem:[#allocation7 + $0xc68] sm:$0xf0]  ;;  %4227 = vmatpush.bf16.msrb.mxu0 %v10497_v9  ;;  %v10141_v0 = vor.u32 %v13276_v54, %v10138_v20  ;;  %v10864_v18 = vld [vmem:[#allocation7 + $0xf30] sm:$0xf]  ;;  %v10465_v54 = vor.u32 %v13361_v6, %v10464_v4  ;;  %v10737_v22 = vor.u32 %v13429_v7, %v10736_v8  ;;  %v14691_v6 = vpop.f32.mrf.mxu2 }
 0x232   :  { %3409 = vmatpush.bf16.msra.mxu3 %v10285_v37  ;;  %v10269_v1 = vor.u32 %v13308_v15, %v10266_v47  ;;  %3383 = vmatmul.bf16.vlgmr.msra.gmra.mxu1 %v14506_v24  ;;  %v13461_v31 = vld [vmem:[#allocation7 + $0xf6c] sm:$0xf0]  ;;  %v15215_v37 = vperm.slane %v14621_v27, 3  ;;  %v10593_v15 = vor.u32 %v13393_v53, %v10592_v10  ;;  %v14693_v53 = vpop.f32.mrf.mxu3 }
 0x233   :  { %4241 = vmatpush.bf16.msrb.mxu1 %v10625_v32  ;;  %v10448_v20 = vld [vmem:[#allocation7 + $0x230] sm:$0xf]  ;;  %v10865_v19 = vor.u32 %v13461_v31, %v10864_v18 }
 0x234   :  { %3396 = vmatpush.bf16.msra.mxu2 %v10141_v0  ;;  %v13357_v2 = vld [vmem:[#allocation7 + $0x26c] sm:$0xf0]  ;;  %v2337_v56 = vadd.f32 %v2336_v33, %v15215_v37 }
 0x235   :  { %4228 = vmatpush.bf16.msrb.mxu0 %v10481_v55  ;;  %v10576_v30 = vld [vmem:[#allocation7 + $0x630] sm:$0xf]  ;;  %v2350_v47 = vpop.f32.mrf.mxu1  ;;  %v10449_v52 = vor.u32 %v13357_v2, %v10448_v20 }
 0x236   :  { %3410 = vmatpush.bf16.msra.mxu3 %v10269_v1  ;;  %v13389_v9 = vld [vmem:[#allocation7 + $0x66c] sm:$0xf0]  ;;  %v2351_v28 = vadd.f32 %v2350_v47, %v2337_v56 }
 0x237   :  { %4242 = vmatpush.bf16.msrb.mxu1 %v10609_v5  ;;  %v10720_v32 = vld [vmem:[#allocation7 + $0xab0] sm:$0xf]  ;;  %3397 = vmatmul.bf16.vlgmr.msra.gmra.mxu2 %v14510_v45  ;;  %v10577_v50 = vor.u32 %v13389_v9, %v10576_v30 }
 0x238   :  { %4255 = vmatpush.bf16.msrb.mxu2 %v10753_v11  ;;  %v13425_v14 = vld [vmem:[#allocation7 + $0xaec] sm:$0xf0] }
 0x239   :  { %v10848_v38 = vld [vmem:[#allocation7 + $0xeb0] sm:$0xf]  ;;  %3411 = vmatmul.bf16.vlgmr.msra.gmra.mxu3 %v14512_v46  ;;  %4229 = vmatpush.bf16.msrb.mxu0 %v10465_v54  ;;  %v10721_v55 = vor.u32 %v13425_v14, %v10720_v32 }
 0x23a   :  { %4269 = vmatpush.bf16.msrb.mxu3 %v10881_v12  ;;  %v13457_v41 = vld [vmem:[#allocation7 + $0xeec] sm:$0xf0] }
 0x23b   :  { %4243 = vmatpush.bf16.msrb.mxu1 %v10593_v15  ;;  %v10432_v51 = vld [vmem:[#allocation7 + $0x1b0] sm:$0xf]  ;;  %v10849_v5 = vor.u32 %v13457_v41, %v10848_v38 }
 0x23c   :  { %v13353_v61 = vld [vmem:[#allocation7 + $0x1ec] sm:$0xf0]  ;;  %4256 = vmatpush.bf16.msrb.mxu2 %v10737_v22 }
 0x23d   :  { %v10560_v0 = vld [vmem:[#allocation7 + $0x5b0] sm:$0xf]  ;;  %4230 = vmatpush.bf16.msrb.mxu0 %v10449_v52  ;;  %v10433_v8 = vor.u32 %v13353_v61, %v10432_v51  ;;  %v2364_v51 = vpop.f32.mrf.mxu2 }
 0x23e   :  { %4270 = vmatpush.bf16.msrb.mxu3 %v10865_v19  ;;  %v13385_v1 = vld [vmem:[#allocation7 + $0x5ec] sm:$0xf0] }
 0x23f   :  { %v10704_v4 = vld [vmem:[#allocation7 + $0xa30] sm:$0xf]  ;;  %4244 = vmatpush.bf16.msrb.mxu1 %v10577_v50  ;;  %v10561_v7 = vor.u32 %v13385_v1, %v10560_v0  ;;  %v2365_v0 = vadd.f32 %v2364_v51, %v2351_v28  ;;  %v13399_v28 = vld [vmem:[#allocation7 + $0x7b4] sm:$0xf] }
 0x240   :  { %v13421_v11 = vld [vmem:[#allocation7 + $0xa6c] sm:$0xf0]  ;;  %4257 = vmatpush.bf16.msrb.mxu2 %v10721_v55  ;;  %v10482_v51 = vld [vmem:[#allocation7 + $0x370] sm:$0xf0] }
 0x241   :  { %v10832_v12 = vld [vmem:[#allocation7 + $0xe30] sm:$0xf]  ;;  %v10705_v54 = vor.u32 %v13421_v11, %v10704_v4  ;;  %4231 = vmatpush.bf16.msrb.mxu0 %v10433_v8  ;;  %v2392_v4 = vmul.f32 %v14651_v13, %v14574_v25  ;;  %v2378_v11 = vpop.f32.mrf.mxu3 }
 0x242   :  { %v13453_v10 = vld [vmem:[#allocation7 + $0xe6c] sm:$0xf0]  ;;  %4271 = vmatpush.bf16.msrb.mxu3 %v10849_v5 }
 0x243   :  { %v10416_v18 = vld [vmem:[#allocation7 + $0x130] sm:$0xf]  ;;  %v10833_v15 = vor.u32 %v13453_v10, %v10832_v12  ;;  %4245 = vmatpush.bf16.msrb.mxu1 %v10561_v7 }
 0x244   :  { %v13349_v31 = vld [vmem:[#allocation7 + $0x16c] sm:$0xf0]  ;;  %4258 = vmatpush.bf16.msrb.mxu2 %v10705_v54 }
 0x245   :  { %v10544_v20 = vld [vmem:[#allocation7 + $0x530] sm:$0xf]  ;;  %v10417_v32 = vor.u32 %v13349_v31, %v10416_v18  ;;  %v2379_v31 = vadd.f32 %v2378_v11, %v2365_v0  ;;  %v10610_v11 = vld [vmem:[#allocation7 + $0x770] sm:$0xf0] }
 0x246   :  { %v13381_v2 = vld [vmem:[#allocation7 + $0x56c] sm:$0xf0]  ;;  %4272 = vmatpush.bf16.msrb.mxu3 %v10833_v15 }
 0x247   :  { %v10688_v22 = vld [vmem:[#allocation7 + $0x9b0] sm:$0xf]  ;;  %v10545_v33 = vor.u32 %v13381_v2, %v10544_v20  ;;  %4232 = vmatpush.bf16.msrb.mxu0 %v10417_v32  ;;  %v13367_v20 = vld [vmem:[#allocation7 + $0x3b4] sm:$0xf]  ;;  %vm2386_vm8 = vcmp.ge.f32.partialorder %v2379_v31, 0.0 }
 0x248   :  { %v13417_v19 = vld [vmem:[#allocation7 + $0x9ec] sm:$0xf0]  ;;  %v10498_v2 = vld [vmem:[#allocation7 + $0x3f0] sm:$0xf0] }
 0x249   :  { %v10816_v30 = vld [vmem:[#allocation7 + $0xdb0] sm:$0xf]  ;;  %v10689_v41 = vor.u32 %v13417_v19, %v10688_v22  ;;  %4246 = vmatpush.bf16.msrb.mxu1 %v10545_v33  ;;  %v10626_v22 = vld [vmem:[#allocation7 + $0x7f0] sm:$0xf0] }
 0x24a   :  { %v13449_v9 = vld [vmem:[#allocation7 + $0xdec] sm:$0xf0] }
 0x24b   :  { %v10400_v14 = vld [vmem:[#allocation7 + $0xb0] sm:$0xf]  ;;  %v10817_v56 = vor.u32 %v13449_v9, %v10816_v30  ;;  %4259 = vmatpush.bf16.msrb.mxu2 %v10689_v41  ;;  %v2394_v9 = vmul.f32 %v2379_v31, %v14574_v25 }
 0x24c   :  { %v13345_v38 = vld [vmem:[#allocation7 + $0xec] sm:$0xf0] }
 0x24d   :  { %v10528_v47 = vld [vmem:[#allocation7 + $0x4b0] sm:$0xf]  ;;  %v10401_v12 = vor.u32 %v13345_v38, %v10400_v14  ;;  %4273 = vmatpush.bf16.msrb.mxu3 %v10817_v56  ;;  %v2400_v14 = vsel %vm2384_vm7, %v14651_v13, %v2392_v4  ;;  %v2402_v56 = vsel %vm2386_vm8, %v2379_v31, %v2394_v9  ;;  %v13431_v4 = vld [vmem:[#allocation7 + $0xbb4] sm:$0xf]  ;;  %vm4486_vm7 = vcmask 130048  }
 0x24e   :  { %v13377_v52 = vld [vmem:[#allocation7 + $0x4ec] sm:$0xf0]  ;;  %v10594_v9 = vld [vmem:[#allocation7 + $0x6f0] sm:$0xf0] }
 0x24f   :  { %v10672_v50 = vld [vmem:[#allocation7 + $0x930] sm:$0xf]  ;;  %v10529_v10 = vor.u32 %v13377_v52, %v10528_v47  ;;  %4233 = vmatpush.bf16.msrb.mxu0 %v10401_v12  ;;  %v10501_v47 = vor.u32 %v13367_v20, %v10498_v2  ;;  %v10629_v52 = vor.u32 %v13399_v28, %v10626_v22  ;;  %v14702_v12 = vpop.f32.mrf.mxu0  ;;  %v13359_v28 = vld [vmem:[#allocation7 + $0x2b4] sm:$0xf] }
 0x250   :  { %v13413_v61 = vld [vmem:[#allocation7 + $0x96c] sm:$0xf0]  ;;  %15233 = vst [vmem:[#allocation46_spill] sm:$0xff] %v14702_v12  ;;  %v10466_v22 = vld [vmem:[#allocation7 + $0x2f0] sm:$0xf0] }
 0x251   :  { %v10800_v55 = vld [vmem:[#allocation7 + $0xd30] sm:$0xf]  ;;  %v10673_v54 = vor.u32 %v13413_v61, %v10672_v50  ;;  %4247 = vmatpush.bf16.msrb.mxu1 %v10529_v10  ;;  %v13363_v50 = vld [vmem:[#allocation7 + $0x334] sm:$0xf] }
 0x252   :  { %v13445_v5 = vld [vmem:[#allocation7 + $0xd6c] sm:$0xf0]  ;;  %v13395_v61 = vld [vmem:[#allocation7 + $0x734] sm:$0xf]  ;;  %v10485_v31 = vor.u32 %v13363_v50, %v10482_v51 }
 0x253   :  { %v10384_v1 = vld [vmem:[#allocation7 + $0x30] sm:$0xf]  ;;  %v10801_v15 = vor.u32 %v13445_v5, %v10800_v55  ;;  %4260 = vmatpush.bf16.msrb.mxu2 %v10673_v54  ;;  %v2408_v55 = vmax.f32 %v2400_v14, %v2402_v56  ;;  %v10613_v54 = vor.u32 %v13395_v61, %v10610_v11  ;;  %v13459_v14 = vld [vmem:[#allocation7 + $0xf34] sm:$0xf] }
 0x254   :  { %v13341_v8 = vld [vmem:[#allocation7 + $0x6c] sm:$0xf0]  ;;  %v10450_v56 = vld [vmem:[#allocation7 + $0x270] sm:$0xf0] }
 0x255   :  { %v10512_v7 = vld [vmem:[#allocation7 + $0x430] sm:$0xf]  ;;  %v10385_v38 = vor.u32 %v13341_v8, %v10384_v1  ;;  %4274 = vmatpush.bf16.msrb.mxu3 %v10801_v15  ;;  %v15234_v1 = vmax.f32 %v14611_v40, %v14613_v48  ;;  %v10754_v8 = vld [vmem:[#allocation7 + $0xbf0] sm:$0xf0]  ;;  %v14709_v15 = vpop.f32.mrf.mxu1  ;;  %v14711_v40 = vld [vmem:[#allocation9 + $0x8] sm:$0xf] }
 0x256   :  { %v13373_v18 = vld [vmem:[#allocation7 + $0x46c] sm:$0xf0]  ;;  %15235 = vst [vmem:[#allocation47_spill] sm:$0xff] %v14709_v15  ;;  %v10757_v48 = vor.u32 %v13431_v4, %v10754_v8  ;;  %v13387_v50 = vld [vmem:[#allocation7 + $0x634] sm:$0xf] }
 0x257   :  { %v10656_v19 = vld [vmem:[#allocation7 + $0x8b0] sm:$0xf]  ;;  %v10513_v41 = vor.u32 %v13373_v18, %v10512_v7  ;;  %v14707_v10 = vmax.f32 %v15234_v1, %v2408_v55  ;;  %4234 = vmatpush.bf16.msrb.mxu0 %v10385_v38  ;;  %v13463_v7 = vld [vmem:[#allocation7 + $0xfb4] sm:$0xf]  ;;  %v3202_v55 = vpop.f32.mrf.mxu0  ;;  %v10776_v15 = vld [vmem:[#allocation7 + $0xc38] sm:$0xf] }
 0x258   :  { %v13409_v30 = vld [vmem:[#allocation7 + $0x8ec] sm:$0xf0]  ;;  %v10882_v18 = vld [vmem:[#allocation7 + $0xff0] sm:$0xf0] }
 0x259   :  { %v10784_v32 = vld [vmem:[#allocation7 + $0xcb0] sm:$0xf]  ;;  %v10657_v5 = vor.u32 %v13409_v30, %v10656_v19  ;;  %4248 = vmatpush.bf16.msrb.mxu1 %v10513_v41  ;;  %v10885_v19 = vor.u32 %v13463_v7, %v10882_v18  ;;  %v13391_v30 = vld [vmem:[#allocation7 + $0x6b4] sm:$0xf] }
 0x25a   :  { %v13441_v33 = vld [vmem:[#allocation7 + $0xcec] sm:$0xf0]  ;;  %4235 = vmatmul.bf16.vlgmr.msrb.gmra.mxu0 %v14504_v23  ;;  %v10866_v38 = vld [vmem:[#allocation7 + $0xf70] sm:$0xf0] }
 0x25b   :  { %v10785_v0 = vor.u32 %v13441_v33, %v10784_v32  ;;  %v10640_v37 = vld [vmem:[#allocation7 + $0x830] sm:$0xf]  ;;  %4283 = vmatpush.bf16.msra.mxu0 %v10501_v47  ;;  %4261 = vmatpush.bf16.msrb.mxu2 %v10657_v5  ;;  %v13427_v32 = vld [vmem:[#allocation7 + $0xb34] sm:$0xf] }
 0x25c   :  { %v13437_v13 = vld [vmem:[#allocation7 + $0xc6c] sm:$0xf0]  ;;  %v10641_v20 = vor.u32 %v13405_v59, %v10640_v37  ;;  %4249 = vmatmul.bf16.vlgmr.msrb.gmra.mxu1 %v14506_v24  ;;  %v10738_v33 = vld [vmem:[#allocation7 + $0xb70] sm:$0xf0]  ;;  %v15216_v59 = vperm.slane %v14711_v40, 0  ;;  %v10597_v37 = vor.u32 %v13391_v30, %v10594_v9 }
 0x25d   :  { %4297 = vmatpush.bf16.msra.mxu1 %v10629_v52  ;;  %4275 = vmatpush.bf16.msrb.mxu3 %v10785_v0  ;;  %v10769_v2 = vor.u32 %v13437_v13, %v10768_v34  ;;  %v10469_v34 = vor.u32 %v13359_v28, %v10466_v22  ;;  %v13355_v41 = vld [vmem:[#allocation7 + $0x234] sm:$0xf]  ;;  %v10741_v47 = vor.u32 %v13427_v32, %v10738_v33  ;;  %v3216_v4 = vpop.f32.mrf.mxu1  ;;  %v14722_v32 = vpop.f32.mrf.mxu3 }
 0x25e   :  { %v10869_v52 = vor.u32 %v13459_v14, %v10866_v38  ;;  %v10578_v51 = vld [vmem:[#allocation7 + $0x670] sm:$0xf0]  ;;  %v3203_v13 = vadd.f32 %v3202_v55, %v15216_v59  ;;  %v10453_v1 = vor.u32 %v13355_v41, %v10450_v56  ;;  %15237 = vst [vmem:[#allocation49_spill] sm:$0xff] %v14722_v32  ;;  %v10760_v59 = vld [vmem:[#allocation7 + $0xbb8] sm:$0xf] }
 0x25f   :  { %4284 = vmatpush.bf16.msra.mxu0 %v10485_v31  ;;  %4262 = vmatpush.bf16.msrb.mxu2 %v10641_v20  ;;  %v13423_v61 = vld [vmem:[#allocation7 + $0xab4] sm:$0xf]  ;;  %v10581_v8 = vor.u32 %v13387_v50, %v10578_v51  ;;  %v14726_v32 = vpop.f32.mrf.mxu0 }
 0x260   :  { %v10722_v5 = vld [vmem:[#allocation7 + $0xaf0] sm:$0xf0]  ;;  %v3217_v31 = vadd.f32 %v3216_v4, %v3203_v13 }
 0x261   :  { %4298 = vmatpush.bf16.msra.mxu1 %v10613_v54  ;;  %4276 = vmatpush.bf16.msrb.mxu3 %v10769_v2  ;;  %v13455_v0 = vld [vmem:[#allocation7 + $0xeb4] sm:$0xf]  ;;  %v10725_v54 = vor.u32 %v13423_v61, %v10722_v5 }
 0x262   :  { %v10850_v11 = vld [vmem:[#allocation7 + $0xef0] sm:$0xf0]  ;;  %4263 = vmatmul.bf16.vlgmr.msrb.gmra.mxu2 %v14510_v45 }
 0x263   :  { %4311 = vmatpush.bf16.msra.mxu2 %v10757_v48  ;;  %4285 = vmatpush.bf16.msra.mxu0 %v10469_v34  ;;  %v13351_v7 = vld [vmem:[#allocation7 + $0x1b4] sm:$0xf]  ;;  %v10853_v20 = vor.u32 %v13455_v0, %v10850_v11  ;;  %v14720_v48 = vpop.f32.mrf.mxu2 }
 0x264   :  { %4277 = vmatmul.bf16.vlgmr.msrb.gmra.mxu3 %v14512_v46  ;;  %v10434_v18 = vld [vmem:[#allocation7 + $0x1f0] sm:$0xf0]  ;;  %15236 = vst [vmem:[#allocation48_spill] sm:$0xff] %v14720_v48  ;;  %v10634_v48 = vld [vmem:[#allocation7 + $0x7f8] sm:$0xf0] }
 0x265   :  { %4325 = vmatpush.bf16.msra.mxu3 %v10885_v19  ;;  %4299 = vmatpush.bf16.msra.mxu1 %v10597_v37  ;;  %v13383_v2 = vld [vmem:[#allocation7 + $0x5b4] sm:$0xf]  ;;  %v10437_v33 = vor.u32 %v13351_v7, %v10434_v18 }
 0x266   :  { %v10562_v28 = vld [vmem:[#allocation7 + $0x5f0] sm:$0xf0] }
 0x267   :  { %4312 = vmatpush.bf16.msra.mxu2 %v10741_v47  ;;  %v13419_v22 = vld [vmem:[#allocation7 + $0xa34] sm:$0xf]  ;;  %4286 = vmatpush.bf16.msra.mxu0 %v10453_v1  ;;  %v10565_v14 = vor.u32 %v13383_v2, %v10562_v28 }
 0x268   :  { %v10706_v19 = vld [vmem:[#allocation7 + $0xa70] sm:$0xf0] }
 0x269   :  { %4326 = vmatpush.bf16.msra.mxu3 %v10869_v52  ;;  %v13451_v30 = vld [vmem:[#allocation7 + $0xe34] sm:$0xf]  ;;  %4300 = vmatpush.bf16.msra.mxu1 %v10581_v8  ;;  %v10709_v37 = vor.u32 %v13419_v22, %v10706_v19  ;;  %v3244_v22 = vpop.f32.mrf.mxu3 }
 0x26a   :  { %v10834_v9 = vld [vmem:[#allocation7 + $0xe70] sm:$0xf0] }
 0x26b   :  { %v13347_v38 = vld [vmem:[#allocation7 + $0x134] sm:$0xf]  ;;  %4313 = vmatpush.bf16.msra.mxu2 %v10725_v54  ;;  %v10837_v41 = vor.u32 %v13451_v30, %v10834_v9  ;;  %4287 = vmatpush.bf16.msra.mxu0 %v10437_v33  ;;  %v3230_v18 = vpop.f32.mrf.mxu2 }
 0x26c   :  { %v10418_v34 = vld [vmem:[#allocation7 + $0x170] sm:$0xf0]  ;;  %v3231_v28 = vadd.f32 %v3230_v18, %v3217_v31 }
 0x26d   :  { %4327 = vmatpush.bf16.msra.mxu3 %v10853_v20  ;;  %v13379_v56 = vld [vmem:[#allocation7 + $0x534] sm:$0xf]  ;;  %4301 = vmatpush.bf16.msra.mxu1 %v10565_v14  ;;  %v10421_v55 = vor.u32 %v13347_v38, %v10418_v34 }
 0x26e   :  { %v10546_v47 = vld [vmem:[#allocation7 + $0x570] sm:$0xf0]  ;;  %v14724_v38 = vadd.f32 %v3244_v22, %v3231_v28 }
 0x26f   :  { %v13415_v52 = vld [vmem:[#allocation7 + $0x9b4] sm:$0xf]  ;;  %v10549_v5 = vor.u32 %v13379_v56, %v10546_v47  ;;  %4314 = vmatpush.bf16.msra.mxu2 %v10709_v37  ;;  %4288 = vmatpush.bf16.msra.mxu0 %v10421_v55  ;;  %v10504_v56 = vld [vmem:[#allocation7 + $0x3b8] sm:$0xf] }
 0x270   :  { %v10690_v50 = vld [vmem:[#allocation7 + $0x9f0] sm:$0xf0]  ;;  %v13370_v47 = vld [vmem:[#allocation7 + $0x3f4] sm:$0xf0]  ;;  %vm3417_vm9 = vcmp.ge.f32.partialorder %v14724_v38, 0.0 }
 0x271   :  { %v13447_v51 = vld [vmem:[#allocation7 + $0xdb4] sm:$0xf]  ;;  %4328 = vmatpush.bf16.msra.mxu3 %v10837_v41  ;;  %v10693_v13 = vor.u32 %v13415_v52, %v10690_v50  ;;  %4302 = vmatpush.bf16.msra.mxu1 %v10549_v5  ;;  %v10632_v52 = vld [vmem:[#allocation7 + $0x7b8] sm:$0xf] }
 0x272   :  { %v10818_v61 = vld [vmem:[#allocation7 + $0xdf0] sm:$0xf0]  ;;  %v13402_v50 = vld [vmem:[#allocation7 + $0x7f4] sm:$0xf0] }
 0x273   :  { %v13343_v0 = vld [vmem:[#allocation7 + $0xb4] sm:$0xf]  ;;  %v10821_v4 = vor.u32 %v13447_v51, %v10818_v61  ;;  %4315 = vmatpush.bf16.msra.mxu2 %v10693_v13  ;;  %v10633_v13 = vor.u32 %v13402_v50, %v10632_v52 }
 0x274   :  { %v10402_v11 = vld [vmem:[#allocation7 + $0xf0] sm:$0xf0] }
 0x275   :  { %v13375_v1 = vld [vmem:[#allocation7 + $0x4b4] sm:$0xf]  ;;  %v10405_v19 = vor.u32 %v13343_v0, %v10402_v11  ;;  %4329 = vmatpush.bf16.msra.mxu3 %v10821_v4  ;;  %v10505_v11 = vor.u32 %v13370_v47, %v10504_v56  ;;  %v10488_v4 = vld [vmem:[#allocation7 + $0x338] sm:$0xf] }
 0x276   :  { %v10530_v8 = vld [vmem:[#allocation7 + $0x4f0] sm:$0xf0]  ;;  %v10472_v56 = vld [vmem:[#allocation7 + $0x2b8] sm:$0xf] }
 0x277   :  { %v13411_v7 = vld [vmem:[#allocation7 + $0x934] sm:$0xf]  ;;  %v10533_v30 = vor.u32 %v13375_v1, %v10530_v8  ;;  %4289 = vmatpush.bf16.msra.mxu0 %v10405_v19  ;;  %v13366_v1 = vld [vmem:[#allocation7 + $0x374] sm:$0xf0] }
 0x278   :  { %v10674_v54 = vld [vmem:[#allocation7 + $0x970] sm:$0xf0]  ;;  %v10616_v8 = vld [vmem:[#allocation7 + $0x738] sm:$0xf] }
 0x279   :  { %v13443_v20 = vld [vmem:[#allocation7 + $0xd34] sm:$0xf]  ;;  %v10677_v34 = vor.u32 %v13411_v7, %v10674_v54  ;;  %4303 = vmatpush.bf16.msra.mxu1 %v10533_v30  ;;  %v13398_v54 = vld [vmem:[#allocation7 + $0x774] sm:$0xf0] }
 0x27a   :  { %v10802_v2 = vld [vmem:[#allocation7 + $0xd70] sm:$0xf0]  ;;  %v13434_v19 = vld [vmem:[#allocation7 + $0xbf4] sm:$0xf0] }
 0x27b   :  { %v13339_v9 = vld [vmem:[#allocation7 + $0x34] sm:$0xf]  ;;  %v10805_v37 = vor.u32 %v13443_v20, %v10802_v2  ;;  %4316 = vmatpush.bf16.msra.mxu2 %v10677_v34  ;;  %v10888_v30 = vld [vmem:[#allocation7 + $0xfb8] sm:$0xf]  ;;  %v14728_v34 = vpop.f32.mrf.mxu1  ;;  %v10761_v52 = vor.u32 %v13434_v19, %v10760_v59 }
 0x27c   :  { %v10386_v33 = vld [vmem:[#allocation7 + $0x70] sm:$0xf0]  ;;  %v13362_v47 = vld [vmem:[#allocation7 + $0x2f4] sm:$0xf0] }
 0x27d   :  { %v13371_v14 = vld [vmem:[#allocation7 + $0x434] sm:$0xf]  ;;  %v10389_v5 = vor.u32 %v13339_v9, %v10386_v33  ;;  %4330 = vmatpush.bf16.msra.mxu3 %v10805_v37  ;;  %v13466_v9 = vld [vmem:[#allocation7 + $0xff4] sm:$0xf0]  ;;  %v10489_v33 = vor.u32 %v13366_v1, %v10488_v4 }
 0x27e   :  { %v10514_v41 = vld [vmem:[#allocation7 + $0x470] sm:$0xf0]  ;;  %v10889_v50 = vor.u32 %v13466_v9, %v10888_v30  ;;  %v10456_v1 = vld [vmem:[#allocation7 + $0x238] sm:$0xf] }
 0x27f   :  { %v13407_v31 = vld [vmem:[#allocation7 + $0x8b4] sm:$0xf]  ;;  %v10517_v0 = vor.u32 %v13371_v14, %v10514_v41  ;;  %4290 = vmatpush.bf16.msra.mxu0 %v10389_v5  ;;  %v10617_v14 = vor.u32 %v13398_v54, %v10616_v8  ;;  %v10872_v5 = vld [vmem:[#allocation7 + $0xf38] sm:$0xf] }
 0x280   :  { %v10658_v51 = vld [vmem:[#allocation7 + $0x8f0] sm:$0xf0]  ;;  %v13358_v8 = vld [vmem:[#allocation7 + $0x274] sm:$0xf0] }
 0x281   :  { %v13439_v61 = vld [vmem:[#allocation7 + $0xcb4] sm:$0xf]  ;;  %v10661_v7 = vor.u32 %v13407_v31, %v10658_v51  ;;  %4304 = vmatpush.bf16.msra.mxu1 %v10517_v0  ;;  %v10600_v31 = vld [vmem:[#allocation7 + $0x6b8] sm:$0xf] }
 0x282   :  { %v10786_v55 = vld [vmem:[#allocation7 + $0xcf0] sm:$0xf0]  ;;  %4291 = vmatmul.bf16.vlgmr.msra.gmra.mxu0 %v14504_v23  ;;  %v13394_v51 = vld [vmem:[#allocation7 + $0x6f4] sm:$0xf0] }
 0x283   :  { %v10789_v18 = vor.u32 %v13439_v61, %v10786_v55  ;;  %v13403_v20 = vld [vmem:[#allocation7 + $0x834] sm:$0xf]  ;;  %4339 = vmatpush.bf16.msrb.mxu0 %v10505_v11  ;;  %4317 = vmatpush.bf16.msra.mxu2 %v10661_v7  ;;  %v10744_v61 = vld [vmem:[#allocation7 + $0xb38] sm:$0xf]  ;;  %v15217_v11 = vperm.slane %v14711_v40, 1  ;;  %v10601_v4 = vor.u32 %v13394_v51, %v10600_v31  ;;  %v3272_v9 = vpop.f32.mrf.mxu1 }
 0x284   :  { %v10642_v2 = vld [vmem:[#allocation7 + $0x870] sm:$0xf0]  ;;  %4305 = vmatmul.bf16.vlgmr.msra.gmra.mxu1 %v14506_v24  ;;  %v13430_v55 = vld [vmem:[#allocation7 + $0xb74] sm:$0xf0] }
 0x285   :  { %v13435_v28 = vld [vmem:[#allocation7 + $0xc34] sm:$0xf]  ;;  %4353 = vmatpush.bf16.msrb.mxu1 %v10633_v13  ;;  %4331 = vmatpush.bf16.msra.mxu3 %v10789_v18  ;;  %v10645_v37 = vor.u32 %v13403_v20, %v10642_v2  ;;  %v13462_v0 = vld [vmem:[#allocation7 + $0xf74] sm:$0xf0]  ;;  %v10473_v13 = vor.u32 %v13362_v47, %v10472_v56  ;;  %v10745_v59 = vor.u32 %v13430_v55, %v10744_v61  ;;  %v3258_v2 = vpop.f32.mrf.mxu0  ;;  %v14737_v61 = vpop.f32.mrf.mxu2 }
 0x286   :  { %v10770_v22 = vld [vmem:[#allocation7 + $0xc70] sm:$0xf0]  ;;  %v10873_v7 = vor.u32 %v13462_v0, %v10872_v5  ;;  %v10584_v18 = vld [vmem:[#allocation7 + $0x638] sm:$0xf]  ;;  %v3259_v30 = vadd.f32 %v3258_v2, %v15217_v11  ;;  %v13400_v11 = vld [vmem:[#allocation7 + $0x7bc] sm:$0xf] }
 0x287   :  { %v10773_v41 = vor.u32 %v13435_v28, %v10770_v22  ;;  %4340 = vmatpush.bf16.msrb.mxu0 %v10489_v33  ;;  %4318 = vmatpush.bf16.msra.mxu2 %v10645_v37  ;;  %v13390_v54 = vld [vmem:[#allocation7 + $0x674] sm:$0xf0]  ;;  %v10457_v33 = vor.u32 %v13358_v8, %v10456_v1 }
 0x288   :  { %v10728_v20 = vld [vmem:[#allocation7 + $0xab8] sm:$0xf]  ;;  %v3273_v56 = vadd.f32 %v3272_v9, %v3259_v30 }
 0x289   :  { %4354 = vmatpush.bf16.msrb.mxu1 %v10617_v14  ;;  %4332 = vmatpush.bf16.msra.mxu3 %v10773_v41  ;;  %v13426_v28 = vld [vmem:[#allocation7 + $0xaf4] sm:$0xf0]  ;;  %v10585_v14 = vor.u32 %v13390_v54, %v10584_v18 }
 0x28a   :  { %v10856_v22 = vld [vmem:[#allocation7 + $0xeb8] sm:$0xf]  ;;  %4319 = vmatmul.bf16.vlgmr.msra.gmra.mxu2 %v14510_v45  ;;  %v10729_v47 = vor.u32 %v13426_v28, %v10728_v20 }
 0x28b   :  { %4367 = vmatpush.bf16.msrb.mxu2 %v10761_v52  ;;  %v13458_v19 = vld [vmem:[#allocation7 + $0xef4] sm:$0xf0]  ;;  %4341 = vmatpush.bf16.msrb.mxu0 %v10473_v13  ;;  %v14739_v13 = vpop.f32.mrf.mxu3 }
 0x28c   :  { %4333 = vmatmul.bf16.vlgmr.msra.gmra.mxu3 %v14512_v46  ;;  %v10440_v37 = vld [vmem:[#allocation7 + $0x1b8] sm:$0xf]  ;;  %v10857_v52 = vor.u32 %v13458_v19, %v10856_v22 }
 0x28d   :  { %4381 = vmatpush.bf16.msrb.mxu3 %v10889_v50  ;;  %4355 = vmatpush.bf16.msrb.mxu1 %v10601_v4  ;;  %v13354_v41 = vld [vmem:[#allocation7 + $0x1f4] sm:$0xf0]  ;;  %v14743_v12 = vpop.f32.mrf.mxu0 }
 0x28e   :  { %v10568_v50 = vld [vmem:[#allocation7 + $0x5b8] sm:$0xf]  ;;  %v10441_v4 = vor.u32 %v13354_v41, %v10440_v37 }
 0x28f   :  { %4368 = vmatpush.bf16.msrb.mxu2 %v10745_v59  ;;  %v13386_v31 = vld [vmem:[#allocation7 + $0x5f4] sm:$0xf0]  ;;  %4342 = vmatpush.bf16.msrb.mxu0 %v10457_v33 }
 0x290   :  { %v10712_v51 = vld [vmem:[#allocation7 + $0xa38] sm:$0xf]  ;;  %v10569_v1 = vor.u32 %v13386_v31, %v10568_v50  ;;  %v3286_v31 = vpop.f32.mrf.mxu2 }
 0x291   :  { %4382 = vmatpush.bf16.msrb.mxu3 %v10873_v7  ;;  %v13422_v55 = vld [vmem:[#allocation7 + $0xa74] sm:$0xf0]  ;;  %4356 = vmatpush.bf16.msrb.mxu1 %v10585_v14 }
 0x292   :  { %v10840_v5 = vld [vmem:[#allocation7 + $0xe38] sm:$0xf]  ;;  %v10713_v7 = vor.u32 %v13422_v55, %v10712_v51 }
 0x293   :  { %v13454_v0 = vld [vmem:[#allocation7 + $0xe74] sm:$0xf0]  ;;  %4369 = vmatpush.bf16.msrb.mxu2 %v10729_v47  ;;  %4343 = vmatpush.bf16.msrb.mxu0 %v10441_v4  ;;  %v3300_v4 = vpop.f32.mrf.mxu3 }
 0x294   :  { %v10424_v8 = vld [vmem:[#allocation7 + $0x138] sm:$0xf]  ;;  %v10841_v18 = vor.u32 %v13454_v0, %v10840_v5  ;;  %v3287_v0 = vadd.f32 %v3286_v31, %v3273_v56 }
 0x295   :  { %v13350_v59 = vld [vmem:[#allocation7 + $0x174] sm:$0xf0]  ;;  %4383 = vmatpush.bf16.msrb.mxu3 %v10857_v52  ;;  %4357 = vmatpush.bf16.msrb.mxu1 %v10569_v1 }
 0x296   :  { %v10552_v54 = vld [vmem:[#allocation7 + $0x538] sm:$0xf]  ;;  %v10425_v30 = vor.u32 %v13350_v59, %v10424_v8 }
 0x297   :  { %v13382_v20 = vld [vmem:[#allocation7 + $0x574] sm:$0xf0]  ;;  %4370 = vmatpush.bf16.msrb.mxu2 %v10713_v7  ;;  %v14741_v7 = vadd.f32 %v3300_v4, %v3287_v0 }
 0x298   :  { %v10696_v2 = vld [vmem:[#allocation7 + $0x9b8] sm:$0xf]  ;;  %v10553_v9 = vor.u32 %v13382_v20, %v10552_v54  ;;  %4344 = vmatpush.bf16.msrb.mxu0 %v10425_v30 }
 0x299   :  { %v13418_v28 = vld [vmem:[#allocation7 + $0x9f4] sm:$0xf0]  ;;  %4384 = vmatpush.bf16.msrb.mxu3 %v10841_v18  ;;  %vm3418_vm11 = vcmp.ge.f32.partialorder %v14741_v7, 0.0 }
 0x29a   :  { %v10824_v22 = vld [vmem:[#allocation7 + $0xdb8] sm:$0xf]  ;;  %v10697_v37 = vor.u32 %v13418_v28, %v10696_v2  ;;  %4358 = vmatpush.bf16.msrb.mxu1 %v10553_v9 }
 0x29b   :  { %v13450_v19 = vld [vmem:[#allocation7 + $0xdf4] sm:$0xf0] }
 0x29c   :  { %v10408_v33 = vld [vmem:[#allocation7 + $0xb8] sm:$0xf]  ;;  %v10825_v41 = vor.u32 %v13450_v19, %v10824_v22  ;;  %4371 = vmatpush.bf16.msrb.mxu2 %v10697_v37  ;;  %v13368_v22 = vld [vmem:[#allocation7 + $0x3bc] sm:$0xf] }
 0x29d   :  { %v13346_v14 = vld [vmem:[#allocation7 + $0xf4] sm:$0xf0]  ;;  %v10506_v19 = vld [vmem:[#allocation7 + $0x3f8] sm:$0xf0] }
 0x29e   :  { %v10536_v47 = vld [vmem:[#allocation7 + $0x4b8] sm:$0xf]  ;;  %v10409_v1 = vor.u32 %v13346_v14, %v10408_v33  ;;  %4385 = vmatpush.bf16.msrb.mxu3 %v10825_v41  ;;  %v10509_v37 = vor.u32 %v13368_v22, %v10506_v19  ;;  %v10637_v41 = vor.u32 %v13400_v11, %v10634_v48 }
 0x29f   :  { %v13378_v52 = vld [vmem:[#allocation7 + $0x4f4] sm:$0xf0] }
 0x2a0   :  { %v10680_v50 = vld [vmem:[#allocation7 + $0x938] sm:$0xf]  ;;  %v10537_v8 = vor.u32 %v13378_v52, %v10536_v47  ;;  %4345 = vmatpush.bf16.msrb.mxu0 %v10409_v1  ;;  %v13364_v47 = vld [vmem:[#allocation7 + $0x33c] sm:$0xf] }
 0x2a1   :  { %v13414_v51 = vld [vmem:[#allocation7 + $0x974] sm:$0xf0]  ;;  %v10490_v52 = vld [vmem:[#allocation7 + $0x378] sm:$0xf0] }
 0x2a2   :  { %v10808_v55 = vld [vmem:[#allocation7 + $0xd38] sm:$0xf]  ;;  %v10681_v18 = vor.u32 %v13414_v51, %v10680_v50  ;;  %4359 = vmatpush.bf16.msrb.mxu1 %v10537_v8  ;;  %v13396_v50 = vld [vmem:[#allocation7 + $0x73c] sm:$0xf]  ;;  %v10493_v48 = vor.u32 %v13364_v47, %v10490_v52 }
 0x2a3   :  { %v13446_v5 = vld [vmem:[#allocation7 + $0xd74] sm:$0xf0]  ;;  %v10762_v1 = vld [vmem:[#allocation7 + $0xbf8] sm:$0xf0] }
 0x2a4   :  { %v10392_v59 = vld [vmem:[#allocation7 + $0x38] sm:$0xf]  ;;  %v10809_v2 = vor.u32 %v13446_v5, %v10808_v55  ;;  %4372 = vmatpush.bf16.msrb.mxu2 %v10681_v18  ;;  %v10618_v5 = vld [vmem:[#allocation7 + $0x778] sm:$0xf0]  ;;  %v10777_v18 = vor.u32 %v13438_v3, %v10776_v15  ;;  %v10765_v22 = vor.u32 %v13432_v57, %v10762_v1 }
 0x2a5   :  { %v13342_v54 = vld [vmem:[#allocation7 + $0x74] sm:$0xf0]  ;;  %v13464_v8 = vld [vmem:[#allocation7 + $0xfbc] sm:$0xf]  ;;  %v10621_v11 = vor.u32 %v13396_v50, %v10618_v5  ;;  %v3314_v5 = vpop.f32.mrf.mxu0 }
 0x2a6   :  { %v10520_v20 = vld [vmem:[#allocation7 + $0x438] sm:$0xf]  ;;  %v10393_v33 = vor.u32 %v13342_v54, %v10392_v59  ;;  %4386 = vmatpush.bf16.msrb.mxu3 %v10809_v2  ;;  %v10890_v59 = vld [vmem:[#allocation7 + $0xff8] sm:$0xf0]  ;;  %v14745_v54 = vpop.f32.mrf.mxu1 }
 0x2a7   :  { %v13374_v28 = vld [vmem:[#allocation7 + $0x474] sm:$0xf0]  ;;  %v13360_v2 = vld [vmem:[#allocation7 + $0x2bc] sm:$0xf]  ;;  %v10893_v19 = vor.u32 %v13464_v8, %v10890_v59 }
 0x2a8   :  { %v10664_v56 = vld [vmem:[#allocation7 + $0x8b8] sm:$0xf]  ;;  %v10521_v14 = vor.u32 %v13374_v28, %v10520_v20  ;;  %4346 = vmatpush.bf16.msrb.mxu0 %v10393_v33  ;;  %v10474_v28 = vld [vmem:[#allocation7 + $0x2f8] sm:$0xf0] }
 0x2a9   :  { %v13410_v30 = vld [vmem:[#allocation7 + $0x8f4] sm:$0xf0]  ;;  %v13460_v33 = vld [vmem:[#allocation7 + $0xf3c] sm:$0xf]  ;;  %v10477_v3 = vor.u32 %v13360_v2, %v10474_v28 }
 0x2aa   :  { %v10792_v9 = vld [vmem:[#allocation7 + $0xcb8] sm:$0xf]  ;;  %v10665_v51 = vor.u32 %v13410_v30, %v10664_v56  ;;  %4360 = vmatpush.bf16.msrb.mxu1 %v10521_v14  ;;  %v13392_v56 = vld [vmem:[#allocation7 + $0x6bc] sm:$0xf] }
 0x2ab   :  { %v13442_v31 = vld [vmem:[#allocation7 + $0xcf4] sm:$0xf0]  ;;  %4347 = vmatmul.bf16.vlgmr.msrb.gmra.mxu0 %v14504_v23  ;;  %v10602_v30 = vld [vmem:[#allocation7 + $0x6f8] sm:$0xf0] }
 0x2ac   :  { %v10793_v55 = vor.u32 %v13442_v31, %v10792_v9  ;;  %v10648_v0 = vld [vmem:[#allocation7 + $0x838] sm:$0xf]  ;;  %4395 = vmatpush.bf16.msra.mxu0 %v10509_v37  ;;  %4373 = vmatpush.bf16.msrb.mxu2 %v10665_v51  ;;  %v13428_v9 = vld [vmem:[#allocation7 + $0xb3c] sm:$0xf]  ;;  %v15218_v37 = vperm.slane %v14711_v40, 2  ;;  %v10605_v15 = vor.u32 %v13392_v56, %v10602_v30 }
 0x2ad   :  { %v13406_v4 = vld [vmem:[#allocation7 + $0x874] sm:$0xf0]  ;;  %4361 = vmatmul.bf16.vlgmr.msrb.gmra.mxu1 %v14506_v24  ;;  %v10746_v31 = vld [vmem:[#allocation7 + $0xb78] sm:$0xf0] }
 0x2ae   :  { %4409 = vmatpush.bf16.msra.mxu1 %v10637_v41  ;;  %4387 = vmatpush.bf16.msrb.mxu3 %v10793_v55  ;;  %v10649_v20 = vor.u32 %v13406_v4, %v10648_v0  ;;  %v10874_v14 = vld [vmem:[#allocation7 + $0xf78] sm:$0xf0]  ;;  %v10749_v57 = vor.u32 %v13428_v9, %v10746_v31  ;;  %v3315_v8 = vadd.f32 %v3314_v5, %v15218_v37  ;;  %v3328_v59 = vpop.f32.mrf.mxu1  ;;  %v14754_v9 = vpop.f32.mrf.mxu2 }
 0x2af   :  { %v13356_v41 = vld [vmem:[#allocation7 + $0x23c] sm:$0xf]  ;;  %v10877_v52 = vor.u32 %v13460_v33, %v10874_v14 }
 0x2b0   :  { %4396 = vmatpush.bf16.msra.mxu0 %v10493_v48  ;;  %4374 = vmatpush.bf16.msrb.mxu2 %v10649_v20  ;;  %v10458_v47 = vld [vmem:[#allocation7 + $0x278] sm:$0xf0]  ;;  %v3329_v2 = vadd.f32 %v3328_v59, %v3315_v8 }
 0x2b1   :  { %v13388_v50 = vld [vmem:[#allocation7 + $0x63c] sm:$0xf]  ;;  %v10461_v48 = vor.u32 %v13356_v41, %v10458_v47 }
 0x2b2   :  { %4410 = vmatpush.bf16.msra.mxu1 %v10621_v11  ;;  %4388 = vmatpush.bf16.msrb.mxu3 %v10777_v18  ;;  %v10586_v51 = vld [vmem:[#allocation7 + $0x678] sm:$0xf0] }
 0x2b3   :  { %v13424_v55 = vld [vmem:[#allocation7 + $0xabc] sm:$0xf]  ;;  %4375 = vmatmul.bf16.vlgmr.msrb.gmra.mxu2 %v14510_v45  ;;  %v10589_v11 = vor.u32 %v13388_v50, %v10586_v51 }
 0x2b4   :  { %4423 = vmatpush.bf16.msra.mxu2 %v10765_v22  ;;  %v10730_v0 = vld [vmem:[#allocation7 + $0xaf8] sm:$0xf0]  ;;  %4397 = vmatpush.bf16.msra.mxu0 %v10477_v3  ;;  %v14756_v3 = vpop.f32.mrf.mxu3 }
 0x2b5   :  { %v13456_v4 = vld [vmem:[#allocation7 + $0xebc] sm:$0xf]  ;;  %4389 = vmatmul.bf16.vlgmr.msrb.gmra.mxu3 %v14512_v46  ;;  %v10733_v28 = vor.u32 %v13424_v55, %v10730_v0  ;;  %15238 = vst [vmem:[#allocation50_spill] sm:$0xff] %v14756_v3 }
 0x2b6   :  { %4437 = vmatpush.bf16.msra.mxu3 %v10893_v19  ;;  %v10858_v1 = vld [vmem:[#allocation7 + $0xef8] sm:$0xf0]  ;;  %4411 = vmatpush.bf16.msra.mxu1 %v10605_v15 }
 0x2b7   :  { %v13352_v20 = vld [vmem:[#allocation7 + $0x1bc] sm:$0xf]  ;;  %v10861_v22 = vor.u32 %v13456_v4, %v10858_v1 }
 0x2b8   :  { %v10442_v18 = vld [vmem:[#allocation7 + $0x1f8] sm:$0xf0]  ;;  %4424 = vmatpush.bf16.msra.mxu2 %v10749_v57  ;;  %4398 = vmatpush.bf16.msra.mxu0 %v10461_v48 }
 0x2b9   :  { %v13384_v19 = vld [vmem:[#allocation7 + $0x5bc] sm:$0xf]  ;;  %v10445_v15 = vor.u32 %v13352_v20, %v10442_v18 }
 0x2ba   :  { %4438 = vmatpush.bf16.msra.mxu3 %v10877_v52  ;;  %v10570_v56 = vld [vmem:[#allocation7 + $0x5f8] sm:$0xf0]  ;;  %4412 = vmatpush.bf16.msra.mxu1 %v10589_v11 }
 0x2bb   :  { %v13420_v30 = vld [vmem:[#allocation7 + $0xa3c] sm:$0xf]  ;;  %v10573_v41 = vor.u32 %v13384_v19, %v10570_v56  ;;  %v3342_v56 = vpop.f32.mrf.mxu2 }
 0x2bc   :  { %v10714_v31 = vld [vmem:[#allocation7 + $0xa78] sm:$0xf0]  ;;  %4425 = vmatpush.bf16.msra.mxu2 %v10733_v28  ;;  %4399 = vmatpush.bf16.msra.mxu0 %v10445_v15  ;;  %v3425_v15 = vmul.f32 %v14724_v38, %v14574_v25 }
 0x2bd   :  { %v13452_v33 = vld [vmem:[#allocation7 + $0xe3c] sm:$0xf]  ;;  %v10717_v52 = vor.u32 %v13420_v30, %v10714_v31 }
 0x2be   :  { %v10842_v14 = vld [vmem:[#allocation7 + $0xe78] sm:$0xf0]  ;;  %4439 = vmatpush.bf16.msra.mxu3 %v10861_v22  ;;  %4413 = vmatpush.bf16.msra.mxu1 %v10573_v41  ;;  %v3356_v41 = vpop.f32.mrf.mxu3 }
 0x2bf   :  { %v13348_v47 = vld [vmem:[#allocation7 + $0x13c] sm:$0xf]  ;;  %v10845_v50 = vor.u32 %v13452_v33, %v10842_v14  ;;  %v3343_v14 = vadd.f32 %v3342_v56, %v3329_v2 }
 0x2c0   :  { %v10426_v57 = vld [vmem:[#allocation7 + $0x178] sm:$0xf0]  ;;  %4426 = vmatpush.bf16.msra.mxu2 %v10717_v52 }
 0x2c1   :  { %v13380_v51 = vld [vmem:[#allocation7 + $0x53c] sm:$0xf]  ;;  %v10429_v8 = vor.u32 %v13348_v47, %v10426_v57 }
 0x2c2   :  { %v10554_v55 = vld [vmem:[#allocation7 + $0x578] sm:$0xf0]  ;;  %4440 = vmatpush.bf16.msra.mxu3 %v10845_v50 }
 0x2c3   :  { %v13416_v5 = vld [vmem:[#allocation7 + $0x9bc] sm:$0xf]  ;;  %v10557_v59 = vor.u32 %v13380_v51, %v10554_v55  ;;  %4400 = vmatpush.bf16.msra.mxu0 %v10429_v8  ;;  %v3357_v51 = vadd.f32 %v3356_v41, %v3343_v14  ;;  %v3316_v14 = vpop.f32.mrf.mxu0 }
 0x2c4   :  { %v10698_v0 = vld [vmem:[#allocation7 + $0x9f8] sm:$0xf0] }
 0x2c5   :  { %v13448_v4 = vld [vmem:[#allocation7 + $0xdbc] sm:$0xf]  ;;  %v10701_v20 = vor.u32 %v13416_v5, %v10698_v0  ;;  %4414 = vmatpush.bf16.msra.mxu1 %v10557_v59  ;;  %vm3419_vm10 = vcmp.ge.f32.partialorder %v3357_v51, 0.0  ;;  %v3427_v8 = vmul.f32 %v3357_v51, %v14574_v25  ;;  %v3433_v59 = vsel %vm3417_vm9, %v14724_v38, %v3425_v15 }
 0x2c6   :  { %v10826_v1 = vld [vmem:[#allocation7 + $0xdf8] sm:$0xf0] }
 0x2c7   :  { %v13344_v48 = vld [vmem:[#allocation7 + $0xbc] sm:$0xf]  ;;  %v10829_v18 = vor.u32 %v13448_v4, %v10826_v1  ;;  %4427 = vmatpush.bf16.msra.mxu2 %v10701_v20  ;;  %v3435_v20 = vsel %vm3419_vm10, %v3357_v51, %v3427_v8  ;;  %v3344_v51 = vpop.f32.mrf.mxu2 }
 0x2c8   :  { %v10410_v11 = vld [vmem:[#allocation7 + $0xf8] sm:$0xf0] }
 0x2c9   :  { %v13376_v28 = vld [vmem:[#allocation7 + $0x4bc] sm:$0xf]  ;;  %v10413_v47 = vor.u32 %v13344_v48, %v10410_v11  ;;  %4441 = vmatpush.bf16.msra.mxu3 %v10829_v18 }
 0x2ca   :  { %v10538_v22 = vld [vmem:[#allocation7 + $0x4f8] sm:$0xf0] }
 0x2cb   :  { %v13412_v19 = vld [vmem:[#allocation7 + $0x93c] sm:$0xf]  ;;  %v10541_v57 = vor.u32 %v13376_v28, %v10538_v22  ;;  %4401 = vmatpush.bf16.msra.mxu0 %v10413_v47  ;;  %v3330_v47 = vpop.f32.mrf.mxu1 }
 0x2cc   :  { %v10682_v30 = vld [vmem:[#allocation7 + $0x978] sm:$0xf0] }
 0x2cd   :  { %v13444_v31 = vld [vmem:[#allocation7 + $0xd3c] sm:$0xf]  ;;  %v10685_v55 = vor.u32 %v13412_v19, %v10682_v30  ;;  %4415 = vmatpush.bf16.msra.mxu1 %v10541_v57  ;;  %v3441_v19 = vmax.f32 %v3433_v59, %v3435_v20 }
 0x2ce   :  { %v10810_v33 = vld [vmem:[#allocation7 + $0xd78] sm:$0xf0] }
 0x2cf   :  { %v13340_v52 = vld [vmem:[#allocation7 + $0x3c] sm:$0xf]  ;;  %v10813_v5 = vor.u32 %v13444_v31, %v10810_v33  ;;  %4428 = vmatpush.bf16.msra.mxu2 %v10685_v55  ;;  %v14766_v41 = vmax.f32 %v14680_v60, %v3441_v19  ;;  %v3370_v60 = vpop.f32.mrf.mxu0  ;;  %v14775_v55 = vpop.f32.mrf.mxu3 }
 0x2d0   :  { %v10394_v50 = vld [vmem:[#allocation7 + $0x78] sm:$0xf0] }
 0x2d1   :  { %v13372_v0 = vld [vmem:[#allocation7 + $0x43c] sm:$0xf]  ;;  %v10397_v48 = vor.u32 %v13340_v52, %v10394_v50  ;;  %4442 = vmatpush.bf16.msra.mxu3 %v10813_v5 }
 0x2d2   :  { %v10522_v4 = vld [vmem:[#allocation7 + $0x478] sm:$0xf0] }
 0x2d3   :  { %v13408_v2 = vld [vmem:[#allocation7 + $0x8bc] sm:$0xf]  ;;  %v10525_v11 = vor.u32 %v13372_v0, %v10522_v4  ;;  %4402 = vmatpush.bf16.msra.mxu0 %v10397_v48  ;;  %v3384_v52 = vpop.f32.mrf.mxu1  ;;  %v3426_v0 = vmul.f32 %v14741_v7, %v14574_v25 }
 0x2d4   :  { %v10666_v1 = vld [vmem:[#allocation7 + $0x8f8] sm:$0xf0] }
 0x2d5   :  { %v13440_v56 = vld [vmem:[#allocation7 + $0xcbc] sm:$0xf]  ;;  %v10669_v18 = vor.u32 %v13408_v2, %v10666_v1  ;;  %4416 = vmatpush.bf16.msra.mxu1 %v10525_v11 }
 0x2d6   :  { %v10794_v37 = vld [vmem:[#allocation7 + $0xcf8] sm:$0xf0]  ;;  %4403 = vmatmul.bf16.vlgmr.msra.gmra.mxu0 %v14504_v23  ;;  %v3398_v23 = vpop.f32.mrf.mxu2 }
 0x2d7   :  { %v10797_v28 = vor.u32 %v13440_v56, %v10794_v37  ;;  %v13404_v22 = vld [vmem:[#allocation7 + $0x83c] sm:$0xf]  ;;  %4429 = vmatpush.bf16.msra.mxu2 %v10669_v18  ;;  %v15219_v37 = vperm.slane %v14711_v40, 3  ;;  %v14785_v8 = vpop.f32.mrf.mxu0 }
 0x2d8   :  { %v10650_v30 = vld [vmem:[#allocation7 + $0x878] sm:$0xf0]  ;;  %4417 = vmatmul.bf16.vlgmr.msra.gmra.mxu1 %v14506_v24  ;;  %v3412_v24 = vpop.f32.mrf.mxu3 }
 0x2d9   :  { %v13436_v31 = vld [vmem:[#allocation7 + $0xc3c] sm:$0xf]  ;;  %4443 = vmatpush.bf16.msra.mxu3 %v10797_v28  ;;  %v10653_v38 = vor.u32 %v13404_v22, %v10650_v30  ;;  %v3371_v57 = vadd.f32 %v3370_v60, %v15219_v37 }
 0x2da   :  { %v10778_v33 = vld [vmem:[#allocation7 + $0xc78] sm:$0xf0] }
 0x2db   :  { %v10781_v15 = vor.u32 %v13436_v31, %v10778_v33  ;;  %4430 = vmatpush.bf16.msra.mxu2 %v10653_v38  ;;  %v3385_v50 = vadd.f32 %v3384_v52, %v3371_v57  ;;  %v14787_v59 = vpop.f32.mrf.mxu1  ;;  %v15242_v57 = vperm.slane %v14621_v27, 2 }
 0x2dd   :  { %4444 = vmatpush.bf16.msra.mxu3 %v10781_v15  ;;  %v3399_v5 = vadd.f32 %v3398_v23, %v3385_v50  ;;  %v2283_v52 = vadd.f32 %v14675_v17, %v15242_v57  ;;  %v14808_v50 = vld [vmem:[#allocation9 + $0xc] sm:$0xf] }
 0x2de   :  { %4431 = vmatmul.bf16.vlgmr.msra.gmra.mxu2 %v14510_v45  ;;  %v14789_v11 = vpop.f32.mrf.mxu2  ;;  %v3579_v57 = vperm.slane %v14808_v50, 0  ;;  %v3581_v37 = vperm.slane %v14808_v50, 2 }
 0x2df   :  { %v3413_v4 = vadd.f32 %v3412_v24, %v3399_v5  ;;  %v4236_v48 = vpop.f32.mrf.mxu0  ;;  %v15243_v24 = vperm.slane %v14532_v58, 0 }
 0x2e0   :  { %4445 = vmatmul.bf16.vlgmr.msra.gmra.mxu3 %v14512_v46  ;;  %v3434_v46 = vsel %vm3418_vm11, %v14741_v7, %v3426_v0  ;;  %v14791_v20 = vpop.f32.mrf.mxu3  ;;  %v4237_v3 = vadd.f32 %v4236_v48, %v3579_v57 }
 0x2e1   :  { %vm3420_vm12 = vcmp.ge.f32.partialorder %v3413_v4, 0.0  ;;  %v3428_v45 = vmul.f32 %v3413_v4, %v14574_v25  ;;  %v1140_v0 = vadd.f32 %v14541_v42, %v15243_v24  ;;  %v15249_v24 = vperm.slane %v14711_v40, 0 }
 0x2e3   :  { %v3436_v2 = vsel %vm3420_vm12, %v3413_v4, %v3428_v45  ;;  %v4250_v18 = vpop.f32.mrf.mxu1  ;;  %v15244_v4 = vperm.slane %v14532_v58, 2 }
 0x2e4   :  { %v3442_v1 = vmax.f32 %v3434_v46, %v3436_v2  ;;  %v15245_v46 = vperm.slane %v14621_v27, 0 }
 0x2e5   :  { %v1252_v45 = vadd.f32 %v14587_v16, %v15244_v4  ;;  %v3205_v16 = vadd.f32 %v14726_v32, %v15249_v24  ;;  %v1154_v4 = vadd.f32 %v14543_v43, %v1140_v0  ;;  %v4251_v0 = vadd.f32 %v4250_v18, %v4237_v3 }
 0x2e6   :  { %v14783_v56 = vmax.f32 %v14707_v10, %v3442_v1  ;;  %v4264_v22 = vpop.f32.mrf.mxu2  ;;  %v2171_v2 = vadd.f32 %v14636_v39, %v15245_v46  ;;  %v15246_v1 = vperm.slane %v14711_v40, 2 }
 0x2e7   :  { %v4238_v28 = vpop.f32.mrf.mxu0  ;;  %v1266_v39 = vadd.f32 %v14591_v26, %v1252_v45  ;;  %v3219_v32 = vadd.f32 %v14728_v34, %v3205_v16 }
 0x2e8   :  { %15239 = vst [vmem:[#allocation51_spill] sm:$0xff] %v14783_v56  ;;  %v4278_v19 = vpop.f32.mrf.mxu3  ;;  %v3317_v17 = vadd.f32 %v3316_v14, %v15246_v1  ;;  %v2297_v56 = vadd.f32 %v14682_v63, %v2283_v52  ;;  %v2185_v14 = vadd.f32 %v14638_v49, %v2171_v2  ;;  %v1168_v63 = vadd.f32 %v14550_v35, %v1154_v4 }
 0x2e9   :  { %v1280_v52 = vadd.f32 %v14600_v21, %v1266_v39  ;;  %v4239_v43 = vadd.f32 %v4238_v28, %v3579_v57  ;;  %v3233_v49 = vadd.f32 %v14737_v61, %v3219_v32 }
 0x2ea   :  { %v2311_v46 = vadd.f32 %v14691_v6, %v2297_v56  ;;  %v3331_v1 = vadd.f32 %v3330_v47, %v3317_v17  ;;  %v1182_v56 = vadd.f32 %v14552_v36, %v1168_v63 }
 0x2eb   :  { %v4252_v30 = vpop.f32.mrf.mxu1  ;;  %v1294_v35 = vadd.f32 %v14602_v29, %v1280_v52  ;;  %v3247_v61 = vadd.f32 %v14739_v13, %v3233_v49 }
 0x2ec   :  { %v3345_v24 = vadd.f32 %v3344_v51, %v3331_v1  ;;  %v2325_v26 = vadd.f32 %v14693_v53, %v2311_v46  ;;  %v4253_v34 = vadd.f32 %v4252_v30, %v4239_v43  ;;  %v4265_v51 = vadd.f32 %v4264_v22, %v4251_v0 }
 0x2ed   :  { %vm1356_vm14 = vcmp.ge.f32.partialorder %v1182_v56, 0.0  ;;  %v1367_v36 = vmul.f32 %v14574_v25, %v1294_v35  ;;  %vm1358_vm15 = vcmp.ge.f32.partialorder %v1294_v35, 0.0  ;;  %v1365_v22 = vmul.f32 %v14574_v25, %v1182_v56 }
 0x2ee   :  { %v4266_v31 = vpop.f32.mrf.mxu2  ;;  %vm2389_vm13 = vcmp.ge.f32.partialorder %v2325_v26, 0.0  ;;  %v2397_v53 = vmul.f32 %v2325_v26, %v14574_v25  ;;  %v3429_v13 = vmul.f32 %v3247_v61, %v14574_v25  ;;  %vm3421_vm2 = vcmp.ge.f32.partialorder %v3247_v61, 0.0 }
 0x2ef   :  { %v4267_v3 = vadd.f32 %v4266_v31, %v4253_v34  ;;  %v1375_v2 = vsel %vm1358_vm15, %v1294_v35, %v1367_v36  ;;  %v1373_v4 = vsel %vm1356_vm14, %v1182_v56, %v1365_v22  ;;  %v15250_v35 = vperm.slane %v14621_v27, 3  ;;  %v15257_v36 = vld [vmem:[#allocation42_spill] sm:$0xff] }
 0x2f0   :  { %v14795_v33 = vpop.f32.mrf.mxu3  ;;  %v2405_v30 = vsel %vm2389_vm13, %v2325_v26, %v2397_v53  ;;  %v3437_v46 = vsel %vm3421_vm2, %v3247_v61, %v3429_v13  ;;  %v1379_v52 = vmax.f32 %v1373_v4, %v1375_v2  ;;  %v15254_v61 = vperm.slane %v14532_v58, 3 }
 0x2f1   :  { %v3582_v22 = vperm.slane %v14808_v50, 3 }
 0x2ff   :  { %v14793_v7 = vpop.f32.mrf.mxu0 }
 0x301   :  { %v14797_v10 = vpop.f32.mrf.mxu1 }
 0x307   :  { %v14799_v38 = vpop.f32.mrf.mxu0 }
 0x309   :  { %v14810_v23 = vpop.f32.mrf.mxu1 }
 0x30d   :  { %v14801_v15 = vpop.f32.mrf.mxu2 }
 0x30e   :  { %15240 = vst [vmem:[#allocation52_spill] sm:$0xff] %v14801_v15 }
 0x30f   :  { %v14803_v60 = vpop.f32.mrf.mxu3 }
 0x310   :  { %15241 = vst [vmem:[#allocation53_spill] sm:$0xff] %v14803_v60 }
 0x315   :  { %v14826_v60 = vpop.f32.mrf.mxu2 }
 0x316   :  { %15247 = vst [vmem:[#allocation54_spill] sm:$0xff] %v14826_v60 }
 0x317   :  { %v14828_v42 = vpop.f32.mrf.mxu3 }
 0x318   :  { %15248 = vst [vmem:[#allocation55_spill] sm:$0xff] %v14828_v42  ;;  %v2199_v42 = vadd.f32 %v14647_v62, %v2185_v14 }
 0x31a   :  { %v2213_v21 = vadd.f32 %v14649_v44, %v2199_v42 }
 0x31c   :  { %v2395_v29 = vmul.f32 %v2213_v21, %v14574_v25  ;;  %vm2387_vm0 = vcmp.ge.f32.partialorder %v2213_v21, 0.0 }
 0x31e   :  { %v2403_v57 = vsel %vm2387_vm0, %v2213_v21, %v2395_v29  ;;  %v15251_v21 = vld [vmem:[#allocation46_spill] sm:$0xff] }
 0x31f   :  { %v2409_v39 = vmax.f32 %v2403_v57, %v2405_v30 }
 0x321   :  { %v2413_v26 = vmax.f32 %v1379_v52, %v2409_v39  ;;  %v15266_v39 = vld [vmem:[#allocation40_spill] sm:$0xff] }
 0x328   :  { %v4348_v5 = vpop.f32.mrf.mxu0 }
 0x329   :  { %v4349_v15 = vadd.f32 %v4348_v5, %v3581_v37  ;;  %v3359_v5 = vadd.f32 %v14775_v55, %v3345_v24  ;;  %v4279_v55 = vadd.f32 %v4278_v19, %v4265_v51  ;;  %v15252_v51 = vperm.slane %v14532_v58, 1 }
 0x32a   :  { %v4362_v60 = vpop.f32.mrf.mxu1  ;;  %v15260_v58 = vperm.slane %v14711_v40, 1 }
 0x32b   :  { %v4363_v6 = vadd.f32 %v4362_v60, %v4349_v15  ;;  %v3431_v44 = vmul.f32 %v3359_v5, %v14574_v25  ;;  %vm3423_vm1 = vcmp.ge.f32.partialorder %v3359_v5, 0.0  ;;  %v4459_v19 = vmul.f32 %v4279_v55, %v14574_v25 }
 0x32c   :  { %vm4451_vm4 = vcmp.ge.f32.partialorder %v4279_v55, 0.0 }
 0x32d   :  { %v3439_v42 = vsel %vm3423_vm1, %v3359_v5, %v3431_v44  ;;  %v4467_v24 = vsel %vm4451_vm4, %v4279_v55, %v4459_v19  ;;  %v15258_v44 = vperm.slane %v14711_v40, 3 }
 0x32e   :  { %v3443_v32 = vmax.f32 %v3437_v46, %v3439_v42  ;;  %v15267_v46 = vld [vmem:[#allocation44_spill] sm:$0xff] }
 0x32f   :  { %v3373_v55 = vadd.f32 %v14785_v8, %v15258_v44  ;;  %v15262_v8 = vld [vmem:[#allocation39_spill] sm:$0xff] }
 0x330   :  { %v4350_v47 = vpop.f32.mrf.mxu0 }
 0x331   :  { %v4351_v18 = vadd.f32 %v4350_v47, %v3581_v37  ;;  %v4281_v37 = vadd.f32 %v14795_v33, %v4267_v3  ;;  %v3447_v47 = vmax.f32 %v2413_v26, %v3443_v32  ;;  %v15255_v3 = vld [vmem:[#allocation38_spill] sm:$0xff]  ;;  %v3387_v19 = vadd.f32 %v14787_v59, %v3373_v55  ;;  %v15268_v59 = vld [vmem:[#allocation49_spill] sm:$0xff] }
 0x332   :  { %v4364_v60 = vpop.f32.mrf.mxu1 }
 0x333   :  { %v4365_v31 = vadd.f32 %v4364_v60, %v4351_v18  ;;  %v4463_v33 = vmul.f32 %v4281_v37, %v14574_v25  ;;  %vm4455_vm5 = vcmp.ge.f32.partialorder %v4281_v37, 0.0  ;;  %v1308_v18 = vadd.f32 %v15255_v3, %v15254_v61  ;;  %v15259_v60 = vld [vmem:[#allocation47_spill] sm:$0xff] }
 0x334   :  { %v3401_v52 = vadd.f32 %v14789_v11, %v3387_v19 }
 0x335   :  { %v4471_v0 = vsel %vm4455_vm5, %v4281_v37, %v4463_v33  ;;  %v3261_v37 = vadd.f32 %v14743_v12, %v15260_v58  ;;  %v1322_v2 = vadd.f32 %v15262_v8, %v1308_v18 }
 0x336   :  { %v4376_v48 = vpop.f32.mrf.mxu2  ;;  %v3415_v11 = vadd.f32 %v14791_v20, %v3401_v52 }
 0x337   :  { %v4377_v28 = vadd.f32 %v4376_v48, %v4363_v6  ;;  %v2339_v48 = vadd.f32 %v15251_v21, %v15250_v35  ;;  %v15271_v35 = vld [vmem:[#allocation45_spill] sm:$0xff] }
 0x338   :  { %v4390_v62 = vpop.f32.mrf.mxu3  ;;  %vm3424_vm12 = vcmp.ge.f32.partialorder %v3415_v11, 0.0 }
 0x339   :  { %v4391_v15 = vadd.f32 %v4390_v62, %v4377_v28  ;;  %v15253_v28 = vld [vmem:[#allocation34_spill] sm:$0xff]  ;;  %v2353_v13 = vadd.f32 %v15259_v60, %v2339_v48 }
 0x33a   :  { %v1196_v53 = vadd.f32 %v15253_v28, %v15252_v51  ;;  %v15274_v28 = vld [vmem:[#allocation54_spill] sm:$0xff] }
 0x33b   :  { %v4461_v45 = vmul.f32 %v4391_v15, %v14574_v25  ;;  %vm4453_vm3 = vcmp.ge.f32.partialorder %v4391_v15, 0.0 }
 0x33d   :  { %v4469_v1 = vsel %vm4453_vm3, %v4391_v15, %v4461_v45  ;;  %v15256_v15 = vperm.slane %v14621_v27, 1  ;;  %v14885_v27 = vld [vmem:[#allocation10] sm:$0xf] }
 0x33e   :  { %v4378_v17 = vpop.f32.mrf.mxu2  ;;  %v4475_v49 = vmax.f32 %v4467_v24, %v4469_v1 }
 0x33f   :  { %v4379_v16 = vadd.f32 %v4378_v17, %v4365_v31  ;;  %v2227_v29 = vadd.f32 %v15257_v36, %v15256_v15  ;;  %v15261_v31 = vld [vmem:[#allocation35_spill] sm:$0xff]  ;;  %v15275_v15 = vld [vmem:[#allocation53_spill] sm:$0xff] }
 0x340   :  { %v4392_v14 = vpop.f32.mrf.mxu3  ;;  %v4479_v62 = vmax.f32 %v14766_v41, %v4475_v49  ;;  %v3580_v41 = vperm.slane %v14808_v50, 1  ;;  %v1210_v45 = vadd.f32 %v15261_v31, %v1196_v53  ;;  %v15263_v17 = vld [vmem:[#allocation43_spill] sm:$0xff]  ;;  %v15264_v50 = vld [vmem:[#allocation48_spill] sm:$0xff] }
 0x341   :  { %v4393_v63 = vadd.f32 %v4392_v14, %v4379_v16  ;;  %v2241_v57 = vadd.f32 %v15263_v17, %v2227_v29  ;;  %v2367_v42 = vadd.f32 %v15264_v50, %v2353_v13  ;;  %v15265_v16 = vld [vmem:[#allocation36_spill] sm:$0xff]  ;;  %v1336_v14 = vadd.f32 %v15266_v39, %v1322_v2 }
 0x342   :  { %v4293_v40 = vadd.f32 %v14793_v7, %v3580_v41  ;;  %v1224_v4 = vadd.f32 %v15265_v16, %v1210_v45  ;;  %v4295_v32 = vadd.f32 %v14799_v38, %v3580_v41 }
 0x343   :  { %vm4457_vm6 = vcmp.ge.f32.partialorder %v4393_v63, 0.0  ;;  %v4465_v43 = vmul.f32 %v4393_v63, %v14574_v25  ;;  %v2255_v33 = vadd.f32 %v15267_v46, %v2241_v57  ;;  %v2381_v24 = vadd.f32 %v15268_v59, %v2367_v42  ;;  %v4548_v57 = vld [vmem:[#allocation10 + $0x8] sm:$0xf] }
 0x344   :  { %v4309_v38 = vadd.f32 %v14810_v23, %v4295_v32  ;;  %v3432_v23 = vmul.f32 %v3415_v11, %v14574_v25 }
 0x345   :  { %v4473_v6 = vsel %vm4457_vm6, %v4393_v63, %v4465_v43  ;;  %v3275_v63 = vadd.f32 %v14745_v54, %v3261_v37  ;;  %v4307_v43 = vadd.f32 %v14797_v10, %v4293_v40  ;;  %v2269_v21 = vadd.f32 %v15271_v35, %v2255_v33  ;;  %v15273_v10 = vld [vmem:[#allocation50_spill] sm:$0xff]  ;;  %v13519_v35 = vld [vmem:[#allocation12 + $0x19c] sm:$0xf0] }
 0x346   :  { %v4477_v56 = vmax.f32 %v4471_v0, %v4473_v6  ;;  %v15269_v0 = vld [vmem:[#allocation37_spill] sm:$0xff]  ;;  %vm2390_vm8 = vcmp.ge.f32.partialorder %v2381_v24, 0.0  ;;  %v4323_v53 = vadd.f32 %v15274_v28, %v4309_v38  ;;  %v3440_v8 = vsel %vm3424_vm12, %v3415_v11, %v3432_v23  ;;  %v11384_v11 = vld [vmem:[#allocation12 + $0x3c0] sm:$0xf] }
 0x347   :  { %v3289_v7 = vadd.f32 %v14754_v9, %v3275_v63  ;;  %v1238_v6 = vadd.f32 %v15269_v0, %v1224_v4  ;;  %v2398_v9 = vmul.f32 %v2381_v24, %v14574_v25  ;;  %v2396_v20 = vmul.f32 %v2269_v21, %v14574_v25  ;;  %v4517_v0 = vld [vmem:[#allocation10 + $0x4] sm:$0xf]  ;;  %v11352_v28 = vld [vmem:[#allocation12 + $0x380] sm:$0xf] }
 0x348   :  { %v4481_v5 = vmax.f32 %v3447_v47, %v4477_v56  ;;  %v15270_v47 = vld [vmem:[#allocation41_spill] sm:$0xff]  ;;  %vm2388_vm11 = vcmp.ge.f32.partialorder %v2269_v21, 0.0  ;;  %v11000_v23 = vld [vmem:[#allocation12 + $0xc0] sm:$0xf] }
 0x349   :  { %v1350_v56 = vadd.f32 %v15270_v47, %v1336_v14  ;;  %v3303_v51 = vadd.f32 %v15273_v10, %v3289_v7  ;;  %vm1357_vm9 = vcmp.ge.f32.partialorder %v1238_v6, 0.0  ;;  %v1366_v29 = vmul.f32 %v14574_v25, %v1238_v6  ;;  %v15277_v7 = vld [vmem:[#allocation51_spill] sm:$0xff]  ;;  %v11096_v47 = vld [vmem:[#allocation12 + $0x180] sm:$0xf] }
 0x34a   :  { %v14878_v30 = vpack.c.bf16 %v4481_v5, %v4479_v62  ;;  %v15272_v62 = vld [vmem:[#allocation52_spill] sm:$0xff]  ;;  %v2406_v44 = vsel %vm2390_vm8, %v2381_v24, %v2398_v9  ;;  %v2404_v45 = vsel %vm2388_vm11, %v2269_v21, %v2396_v20  ;;  %v11097_v21 = vor.u32 %v13519_v35, %v11096_v47 }
 0x34b   :  { %v4321_v5 = vadd.f32 %v15272_v62, %v4307_v43  ;;  %v1368_v18 = vmul.f32 %v14574_v25, %v1350_v56  ;;  %vm1359_vm10 = vcmp.ge.f32.partialorder %v1350_v56, 0.0  ;;  %v3430_v41 = vmul.f32 %v3303_v51, %v14574_v25  ;;  %v13591_v62 = vld [vmem:[#allocation12 + $0x3dc] sm:$0xf0] }
 0x34c   :  { %4497 = vmatpush.bf16.msrb.mxu0 %v14878_v30  ;;  %vm3422_vm13 = vcmp.ge.f32.partialorder %v3303_v51, 0.0  ;;  %v1374_v50 = vsel %vm1357_vm9, %v1238_v6, %v1366_v29  ;;  %v2410_v42 = vmax.f32 %v2404_v45, %v2406_v44  ;;  %v13527_v6 = vld [vmem:[#allocation12 + $0x1dc] sm:$0xf0]  ;;  %v11385_v10 = vor.u32 %v13591_v62, %v11384_v11 }
 0x34d   :  { %v4335_v36 = vadd.f32 %v15275_v15, %v4321_v5  ;;  %v1376_v37 = vsel %vm1359_vm10, %v1350_v56, %v1368_v18  ;;  %v3438_v40 = vsel %vm3422_vm13, %v3303_v51, %v3430_v41  ;;  %v13719_v5 = vld [vmem:[#allocation12 + $0x7dc] sm:$0xf0]  ;;  %vm8731_vm10 = vcmask 64512  }
 0x34e   :  { %v1380_v39 = vmax.f32 %v1374_v50, %v1376_v37  ;;  %v3444_v14 = vmax.f32 %v3438_v40, %v3440_v8  ;;  %v13503_v9 = vld [vmem:[#allocation12 + $0x11c] sm:$0xf0] }
 0x34f   :  { %10894 = vmatmul.msk.bf16.vlgmr.msrb.gmra.mxu0 %vm4486_vm7, %v14885_v27  ;;  %v4460_v2 = vmul.f32 %v4335_v36, %v14574_v25  ;;  %vm4452_vm15 = vcmp.ge.f32.partialorder %v4335_v36, 0.0  ;;  %v13495_v15 = vld [vmem:[#allocation12 + $0xdc] sm:$0xf0] }
 0x350   :  { %4559 = vmatpush.bf16.msra.mxu0 %v14878_v30  ;;  %v13575_v29 = vld [vmem:[#allocation12 + $0x35c] sm:$0xf0] }
 0x351   :  { %v4468_v46 = vsel %vm4452_vm15, %v4335_v36, %v4460_v2  ;;  %v11320_v36 = vld [vmem:[#allocation12 + $0x340] sm:$0xf] }
 0x352   :  { %v11832_v44 = vld [vmem:[#allocation12 + $0x740] sm:$0xf] }
 0x353   :  { %v4404_v34 = vpop.f32.mrf.mxu0  ;;  %v13703_v41 = vld [vmem:[#allocation12 + $0x75c] sm:$0xf0] }
 0x354   :  { %v4405_v12 = vadd.f32 %v4404_v34, %v3582_v22  ;;  %v13487_v37 = vld [vmem:[#allocation12 + $0x9c] sm:$0xf0] }
 0x355   :  { %v4418_v1 = vpop.f32.mrf.mxu1  ;;  %v13567_v45 = vld [vmem:[#allocation12 + $0x31c] sm:$0xf0] }
 0x356   :  { %v4419_v26 = vadd.f32 %v4418_v1, %v4405_v12  ;;  %v2414_v1 = vmax.f32 %v1380_v39, %v2410_v42  ;;  %v11800_v8 = vld [vmem:[#allocation12 + $0x700] sm:$0xf] }
 0x357   :  { %v13695_v2 = vld [vmem:[#allocation12 + $0x71c] sm:$0xf0] }
 0x358   :  { %v3448_v59 = vmax.f32 %v2414_v1, %v3444_v14  ;;  %v10936_v42 = vld [vmem:[#allocation12 + $0x40] sm:$0xf] }
 0x359   :  { %v11256_v40 = vld [vmem:[#allocation12 + $0x2c0] sm:$0xf] }
 0x35a   :  { %v11768_v39 = vld [vmem:[#allocation12 + $0x6c0] sm:$0xf] }
 0x35b   :  { %v4406_v49 = vpop.f32.mrf.mxu0  ;;  %v13687_v14 = vld [vmem:[#allocation12 + $0x6dc] sm:$0xf0] }
 0x35c   :  { %v4407_v61 = vadd.f32 %v4406_v49, %v3582_v22  ;;  %v15276_v22 = vld [vmem:[#allocation55_spill] sm:$0xff]  ;;  %v11769_v1 = vor.u32 %v13687_v14, %v11768_v39  ;;  %v13759_v35 = vld [vmem:[#allocation12 + $0x91c] sm:$0xf0] }
 0x35d   :  { %v4420_v55 = vpop.f32.mrf.mxu1  ;;  %v4337_v60 = vadd.f32 %v15276_v22, %v4323_v53  ;;  %v11864_v53 = vld [vmem:[#allocation12 + $0x780] sm:$0xf]  ;;  %v11321_v22 = vor.u32 %v13575_v29, %v11320_v36 }
 0x35e   :  { %v4421_v13 = vadd.f32 %v4420_v55, %v4407_v61  ;;  %v13711_v61 = vld [vmem:[#allocation12 + $0x79c] sm:$0xf0]  ;;  %v4579_v55 = vld [vmem:[#allocation10 + $0xc] sm:$0xf] }
 0x35f   :  { %v4464_v12 = vmul.f32 %v4337_v60, %v14574_v25  ;;  %vm4456_vm0 = vcmp.ge.f32.partialorder %v4337_v60, 0.0  ;;  %10898 = vmatmul.msk.bf16.vlgmr.msra.gmra.mxu0 %vm4486_vm7, %v4548_v57  ;;  %v11865_v18 = vor.u32 %v13711_v61, %v11864_v53  ;;  %v13743_v62 = vld [vmem:[#allocation12 + $0x89c] sm:$0xf0] }
 0x360   :  { %v13647_v53 = vld [vmem:[#allocation12 + $0x59c] sm:$0xf0] }
 0x361   :  { %v4432_v48 = vpop.f32.mrf.mxu2  ;;  %v4472_v52 = vsel %vm4456_vm0, %v4337_v60, %v4464_v12  ;;  %v11833_v60 = vor.u32 %v13703_v41, %v11832_v44  ;;  %v13559_v12 = vld [vmem:[#allocation12 + $0x2dc] sm:$0xf0] }
 0x362   :  { %v4433_v34 = vadd.f32 %v4432_v48, %v4419_v26  ;;  %v11064_v48 = vld [vmem:[#allocation12 + $0x140] sm:$0xf] }
 0x363   :  { %v4446_v54 = vpop.f32.mrf.mxu3  ;;  %v11736_v61 = vld [vmem:[#allocation12 + $0x680] sm:$0xf] }
 0x364   :  { %v4447_v3 = vadd.f32 %v4446_v54, %v4433_v34  ;;  %v13511_v54 = vld [vmem:[#allocation12 + $0x15c] sm:$0xf0] }
 0x365   :  { %v11065_v38 = vor.u32 %v13511_v54, %v11064_v48  ;;  %v11032_v34 = vld [vmem:[#allocation12 + $0x100] sm:$0xf] }
 0x366   :  { %v4462_v58 = vmul.f32 %v4447_v3, %v14574_v25  ;;  %vm4454_vm14 = vcmp.ge.f32.partialorder %v4447_v3, 0.0  ;;  %v11033_v20 = vor.u32 %v13503_v9, %v11032_v34  ;;  %v12024_v48 = vld [vmem:[#allocation12 + $0x8c0] sm:$0xf] }
 0x367   :  { %v13751_v54 = vld [vmem:[#allocation12 + $0x8dc] sm:$0xf0] }
 0x368   :  { %v4470_v16 = vsel %vm4454_vm14, %v4447_v3, %v4462_v58  ;;  %v10968_v58 = vld [vmem:[#allocation12 + $0x80] sm:$0xf]  ;;  %v12025_v11 = vor.u32 %v13751_v54, %v12024_v48 }
 0x369   :  { %v4434_v31 = vpop.f32.mrf.mxu2  ;;  %v4476_v63 = vmax.f32 %v4468_v46, %v4470_v16  ;;  %v10969_v50 = vor.u32 %v13487_v37, %v10968_v58  ;;  %v11640_v16 = vld [vmem:[#allocation12 + $0x5c0] sm:$0xf]  ;;  %v11257_v46 = vor.u32 %v13559_v12, %v11256_v40 }
 0x36a   :  { %v4435_v17 = vadd.f32 %v4434_v31, %v4421_v13  ;;  %v11001_v13 = vor.u32 %v13495_v15, %v11000_v23  ;;  %v11288_v31 = vld [vmem:[#allocation12 + $0x300] sm:$0xf] }
 0x36b   :  { %v4448_v19 = vpop.f32.mrf.mxu3  ;;  %v4480_v43 = vmax.f32 %v15277_v7, %v4476_v63  ;;  %v13735_v34 = vld [vmem:[#allocation12 + $0x85c] sm:$0xf0] }
 0x36c   :  { %v4449_v4 = vadd.f32 %v4448_v19, %v4435_v17  ;;  %v11289_v17 = vor.u32 %v13567_v45, %v11288_v31  ;;  %v13479_v19 = vld [vmem:[#allocation12 + $0x5c] sm:$0xf0] }
 0x36d   :  { %v10937_v63 = vor.u32 %v13479_v19, %v10936_v42  ;;  %v11928_v23 = vld [vmem:[#allocation12 + $0x800] sm:$0xf] }
 0x36e   :  { %vm4458_vm1 = vcmp.ge.f32.partialorder %v4449_v4, 0.0  ;;  %v4466_v33 = vmul.f32 %v4449_v4, %v14574_v25  ;;  %v11128_v25 = vld [vmem:[#allocation12 + $0x1c0] sm:$0xf] }
 0x36f   :  { %v11129_v56 = vor.u32 %v13527_v6, %v11128_v25  ;;  %v12088_v25 = vld [vmem:[#allocation12 + $0x940] sm:$0xf] }
 0x370   :  { %v4474_v32 = vsel %vm4458_vm1, %v4449_v4, %v4466_v33  ;;  %v13655_v4 = vld [vmem:[#allocation12 + $0x5dc] sm:$0xf0] }
 0x371   :  { %v4478_v24 = vmax.f32 %v4472_v52, %v4474_v32  ;;  %7707 = vmatpush.bf16.msrb.mxu0 %v11129_v56  ;;  %v11641_v33 = vor.u32 %v13655_v4, %v11640_v16  ;;  %v10904_v52 = vld [vmem:[#allocation12] sm:$0xf] }
 0x372   :  { %v13471_v32 = vld [vmem:[#allocation12 + $0x1c] sm:$0xf0] }
 0x373   :  { %v4482_v26 = vmax.f32 %v3448_v59, %v4478_v24  ;;  %v12152_v59 = vld [vmem:[#allocation12 + $0x9c0] sm:$0xf]  ;;  %v10905_v7 = vor.u32 %v13471_v32, %v10904_v52 }
 0x374   :  { %v13783_v24 = vld [vmem:[#allocation12 + $0x9dc] sm:$0xf0] }
 0x375   :  { %v4484_v49 = vpack.c.bf16 %v4482_v26, %v4480_v43  ;;  %7708 = vmatpush.bf16.msrb.mxu0 %v11097_v21  ;;  %v12153_v43 = vor.u32 %v13783_v24, %v12152_v59  ;;  %v12120_v26 = vld [vmem:[#allocation12 + $0x980] sm:$0xf] }
 0x376   :  { %v13767_v6 = vld [vmem:[#allocation12 + $0x95c] sm:$0xf0] }
 0x377   :  { %4510 = vmatpush.bf16.msrb.mxu2 %v4484_v49  ;;  %4541 = vmatpush.bf16.msrb.mxu3 %v4484_v49  ;;  %v12089_v47 = vor.u32 %v13767_v6, %v12088_v25  ;;  %v12056_v56 = vld [vmem:[#allocation12 + $0x900] sm:$0xf] }
 0x378   :  { %4572 = vmatpush.bf16.msrb.mxu1 %v4484_v49  ;;  %v12057_v21 = vor.u32 %v13759_v35, %v12056_v56  ;;  %v13727_v15 = vld [vmem:[#allocation12 + $0x81c] sm:$0xf0] }
 0x379   :  { %7709 = vmatpush.bf16.msrb.mxu0 %v11065_v38  ;;  %v11992_v38 = vld [vmem:[#allocation12 + $0x880] sm:$0xf]  ;;  %v11929_v36 = vor.u32 %v13727_v15, %v11928_v23 }
 0x37a   :  { %10895 = vmatmul.msk.bf16.vlgmr.msrb.gmra.mxu2 %vm4486_vm7, %v14885_v27  ;;  %10897 = vmatmul.msk.bf16.vlgmr.msrb.gmra.mxu3 %vm4486_vm7, %v4517_v0  ;;  %v11896_v27 = vld [vmem:[#allocation12 + $0x7c0] sm:$0xf] }
 0x37b   :  { %4528 = vmatpush.bf16.msra.mxu2 %v14878_v30  ;;  %4603 = vmatpush.bf16.msra.mxu3 %v4484_v49  ;;  %v11897_v51 = vor.u32 %v13719_v5, %v11896_v27  ;;  %v13775_v49 = vld [vmem:[#allocation12 + $0x99c] sm:$0xf0]  ;;  %v11993_v27 = vor.u32 %v13743_v62, %v11992_v38 }
 0x37c   :  { %10899 = vmatmul.msk.bf16.vlgmr.msrb.gmra.mxu1 %vm4486_vm7, %v4548_v57  ;;  %v11801_v57 = vor.u32 %v13695_v2, %v11800_v8  ;;  %v11960_v5 = vld [vmem:[#allocation12 + $0x840] sm:$0xf] }
 0x37d   :  { %7720 = vmatpush.bf16.msra.mxu1 %v11385_v10  ;;  %7710 = vmatpush.bf16.msrb.mxu0 %v11033_v20  ;;  %v11961_v9 = vor.u32 %v13735_v34, %v11960_v5  ;;  %v11224_v10 = vld [vmem:[#allocation12 + $0x280] sm:$0xf] }
 0x37e   :  { %v11192_v29 = vld [vmem:[#allocation12 + $0x240] sm:$0xf] }
 0x37f   :  { %4590 = vmatpush.bf16.msrb.mxu2 %v14878_v30  ;;  %v13583_v30 = vld [vmem:[#allocation12 + $0x39c] sm:$0xf0]  ;;  %7746 = vmatpush.bf16.msrb.mxu3 %v11897_v51 }
 0x380   :  { %v11353_v3 = vor.u32 %v13583_v30, %v11352_v28  ;;  %v13551_v51 = vld [vmem:[#allocation12 + $0x29c] sm:$0xf0] }
 0x381   :  { %7711 = vmatpush.bf16.msrb.mxu0 %v11001_v13  ;;  %v11608_v28 = vld [vmem:[#allocation12 + $0x580] sm:$0xf]  ;;  %v11225_v30 = vor.u32 %v13551_v51, %v11224_v10 }
 0x382   :  { %7721 = vmatpush.bf16.msra.mxu1 %v11353_v3  ;;  %v13679_v3 = vld [vmem:[#allocation12 + $0x69c] sm:$0xf0] }
 0x383   :  { %7747 = vmatpush.bf16.msrb.mxu3 %v11865_v18  ;;  %v11609_v18 = vor.u32 %v13647_v53, %v11608_v28  ;;  %v11737_v20 = vor.u32 %v13679_v3, %v11736_v61  ;;  %v13543_v44 = vld [vmem:[#allocation12 + $0x25c] sm:$0xf0] }
 0x384   :  { %v11193_v41 = vor.u32 %v13543_v44, %v11192_v29  ;;  %v13671_v13 = vld [vmem:[#allocation12 + $0x65c] sm:$0xf0] }
 0x385   :  { %7712 = vmatpush.bf16.msrb.mxu0 %v10969_v50  ;;  %v11160_v31 = vld [vmem:[#allocation12 + $0x200] sm:$0xf] }
 0x386   :  { %7722 = vmatpush.bf16.msra.mxu1 %v11321_v22  ;;  %v13639_v22 = vld [vmem:[#allocation12 + $0x55c] sm:$0xf0] }
 0x387   :  { %7748 = vmatpush.bf16.msrb.mxu3 %v11833_v60  ;;  %v11704_v60 = vld [vmem:[#allocation12 + $0x640] sm:$0xf] }
 0x388   :  { %v11705_v37 = vor.u32 %v13671_v13, %v11704_v60  ;;  %v13535_v45 = vld [vmem:[#allocation12 + $0x21c] sm:$0xf0]  ;;  %v13523_v13 = vld [vmem:[#allocation12 + $0x1c4] sm:$0xf] }
 0x389   :  { %7713 = vmatpush.bf16.msrb.mxu0 %v10937_v63  ;;  %v11544_v8 = vld [vmem:[#allocation12 + $0x500] sm:$0xf]  ;;  %v11161_v2 = vor.u32 %v13535_v45, %v11160_v31 }
 0x38a   :  { %10896 = vmatmul.msk.bf16.vlgmr.msra.gmra.mxu2 %vm4486_vm7, %v4517_v0  ;;  %10901 = vmatmul.msk.bf16.vlgmr.msra.gmra.mxu3 %vm4486_vm7, %v4579_v55  ;;  %v12121_v0 = vor.u32 %v13775_v49, %v12120_v26  ;;  %v13663_v50 = vld [vmem:[#allocation12 + $0x61c] sm:$0xf0] }
 0x38b   :  { %7723 = vmatpush.bf16.msra.mxu1 %v11289_v17  ;;  %7749 = vmatpush.bf16.msrb.mxu3 %v11801_v57  ;;  %v13631_v17 = vld [vmem:[#allocation12 + $0x51c] sm:$0xf0] }
 0x38c   :  { %7733 = vmatpush.bf16.msra.mxu2 %v11641_v33  ;;  %v11672_v57 = vld [vmem:[#allocation12 + $0x600] sm:$0xf]  ;;  %v11545_v42 = vor.u32 %v13631_v17, %v11544_v8 }
 0x38d   :  { %7714 = vmatpush.bf16.msrb.mxu0 %v10905_v7  ;;  %v11673_v19 = vor.u32 %v13663_v50, %v11672_v57  ;;  %v12408_v40 = vld [vmem:[#allocation12 + $0xbc0] sm:$0xf] }
 0x38e   :  { %v13847_v12 = vld [vmem:[#allocation12 + $0xbdc] sm:$0xf0] }
 0x38f   :  { %7724 = vmatpush.bf16.msra.mxu1 %v11257_v46  ;;  %7750 = vmatpush.bf16.msrb.mxu3 %v11769_v1  ;;  %v12920_v16 = vld [vmem:[#allocation12 + $0xfc0] sm:$0xf]  ;;  %v12409_v4 = vor.u32 %v13847_v12, %v12408_v40 }
 0x390   :  { %7734 = vmatpush.bf16.msra.mxu2 %v11609_v18  ;;  %v13975_v39 = vld [vmem:[#allocation12 + $0xfdc] sm:$0xf0] }
 0x391   :  { %7759 = vmatpush.bf16.msra.mxu0 %v12153_v43  ;;  %v12921_v14 = vor.u32 %v13975_v39, %v12920_v16  ;;  %v11512_v46 = vld [vmem:[#allocation12 + $0x4c0] sm:$0xf]  ;;  %v13515_v16 = vld [vmem:[#allocation12 + $0x184] sm:$0xf] }
 0x392   :  { %v13623_v33 = vld [vmem:[#allocation12 + $0x4dc] sm:$0xf0] }
 0x393   :  { %7725 = vmatpush.bf16.msra.mxu1 %v11225_v30  ;;  %7751 = vmatpush.bf16.msrb.mxu3 %v11737_v20  ;;  %v11513_v1 = vor.u32 %v13623_v33, %v11512_v46  ;;  %v12376_v63 = vld [vmem:[#allocation12 + $0xb80] sm:$0xf] }
 0x394   :  { %v13839_v52 = vld [vmem:[#allocation12 + $0xb9c] sm:$0xf0] }
 0x395   :  { %7760 = vmatpush.bf16.msra.mxu0 %v12121_v0  ;;  %v12888_v32 = vld [vmem:[#allocation12 + $0xf80] sm:$0xf]  ;;  %v12377_v59 = vor.u32 %v13839_v52, %v12376_v63 }
 0x396   :  { %v13967_v24 = vld [vmem:[#allocation12 + $0xf9c] sm:$0xf0] }
 0x397   :  { %7726 = vmatpush.bf16.msra.mxu1 %v11193_v41  ;;  %7752 = vmatpush.bf16.msrb.mxu3 %v11705_v37  ;;  %v12889_v7 = vor.u32 %v13967_v24, %v12888_v32  ;;  %v11480_v43 = vld [vmem:[#allocation12 + $0x480] sm:$0xf] }
 0x398   :  { %v13615_v26 = vld [vmem:[#allocation12 + $0x49c] sm:$0xf0] }
 0x399   :  { %7761 = vmatpush.bf16.msra.mxu0 %v12089_v47  ;;  %v11481_v49 = vor.u32 %v13615_v26, %v11480_v43  ;;  %v12344_v0 = vld [vmem:[#allocation12 + $0xb40] sm:$0xf]  ;;  %v11066_v43 = vld [vmem:[#allocation12 + $0x160] sm:$0xf0] }
 0x39a   :  { %10900 = vmatmul.msk.bf16.vlgmr.msrb.gmra.mxu2 %vm4486_vm7, %v4579_v55  ;;  %v11576_v55 = vld [vmem:[#allocation12 + $0x540] sm:$0xf] }
 0x39b   :  { %v11577_v58 = vor.u32 %v13639_v22, %v11576_v55  ;;  %7727 = vmatpush.bf16.msra.mxu1 %v11161_v2  ;;  %7753 = vmatpush.bf16.msrb.mxu3 %v11673_v19  ;;  %v13831_v25 = vld [vmem:[#allocation12 + $0xb5c] sm:$0xf0] }
 0x39c   :  { %v12856_v6 = vld [vmem:[#allocation12 + $0xf40] sm:$0xf]  ;;  %v12345_v47 = vor.u32 %v13831_v25, %v12344_v0 }
 0x39d   :  { %7762 = vmatpush.bf16.msra.mxu0 %v12057_v21  ;;  %7735 = vmatpush.bf16.msra.mxu2 %v11577_v58  ;;  %v13959_v56 = vld [vmem:[#allocation12 + $0xf5c] sm:$0xf0]  ;;  %v11130_v58 = vld [vmem:[#allocation12 + $0x1e0] sm:$0xf0] }
 0x39e   :  { %v12857_v35 = vor.u32 %v13959_v56, %v12856_v6  ;;  %v11448_v21 = vld [vmem:[#allocation12 + $0x440] sm:$0xf]  ;;  %v11133_v57 = vor.u32 %v13523_v13, %v11130_v58  ;;  %v13771_v58 = vld [vmem:[#allocation12 + $0x984] sm:$0xf] }
 0x39f   :  { %7772 = vmatpush.bf16.msrb.mxu1 %v12409_v4  ;;  %7798 = vmatpush.bf16.msra.mxu3 %v12921_v14  ;;  %v13607_v48 = vld [vmem:[#allocation12 + $0x45c] sm:$0xf0]  ;;  %v11098_v4 = vld [vmem:[#allocation12 + $0x1a0] sm:$0xf0] }
 0x3a0   :  { %v11449_v54 = vor.u32 %v13607_v48, %v11448_v21  ;;  %v13823_v38 = vld [vmem:[#allocation12 + $0xb1c] sm:$0xf0]  ;;  %v11101_v63 = vor.u32 %v13515_v16, %v11098_v4  ;;  %v11034_v21 = vld [vmem:[#allocation12 + $0x120] sm:$0xf0] }
 0x3a1   :  { %7763 = vmatpush.bf16.msra.mxu0 %v12025_v11  ;;  %7736 = vmatpush.bf16.msra.mxu2 %v11545_v42  ;;  %v12312_v11 = vld [vmem:[#allocation12 + $0xb00] sm:$0xf] }
 0x3a2   :  { %v12824_v62 = vld [vmem:[#allocation12 + $0xf00] sm:$0xf] }
 0x3a3   :  { %7773 = vmatpush.bf16.msrb.mxu1 %v12377_v59  ;;  %7799 = vmatpush.bf16.msra.mxu3 %v12889_v7  ;;  %v13951_v5 = vld [vmem:[#allocation12 + $0xf1c] sm:$0xf0]  ;;  %v13507_v7 = vld [vmem:[#allocation12 + $0x144] sm:$0xf] }
 0x3a4   :  { %v12825_v34 = vor.u32 %v13951_v5, %v12824_v62  ;;  %v13599_v10 = vld [vmem:[#allocation12 + $0x41c] sm:$0xf0]  ;;  %v11069_v6 = vor.u32 %v13507_v7, %v11066_v43  ;;  %v13491_v62 = vld [vmem:[#allocation12 + $0xc4] sm:$0xf] }
 0x3a5   :  { %7764 = vmatpush.bf16.msra.mxu0 %v11993_v27  ;;  %7737 = vmatpush.bf16.msra.mxu2 %v11513_v1  ;;  %v12313_v27 = vor.u32 %v13823_v38, %v12312_v11  ;;  %v12280_v28 = vld [vmem:[#allocation12 + $0xac0] sm:$0xf] }
 0x3a6   :  { %v13815_v30 = vld [vmem:[#allocation12 + $0xadc] sm:$0xf0] }
 0x3a7   :  { %7774 = vmatpush.bf16.msrb.mxu1 %v12345_v47  ;;  %7800 = vmatpush.bf16.msra.mxu3 %v12857_v35  ;;  %v12664_v53 = vld [vmem:[#allocation12 + $0xdc0] sm:$0xf]  ;;  %v12281_v61 = vor.u32 %v13815_v30, %v12280_v28  ;;  %v13499_v35 = vld [vmem:[#allocation12 + $0x104] sm:$0xf] }
 0x3a8   :  { %v13911_v3 = vld [vmem:[#allocation12 + $0xddc] sm:$0xf0]  ;;  %v11037_v11 = vor.u32 %v13499_v35, %v11034_v21  ;;  %v13483_v28 = vld [vmem:[#allocation12 + $0x84] sm:$0xf] }
 0x3a9   :  { %7765 = vmatpush.bf16.msra.mxu0 %v11961_v9  ;;  %7738 = vmatpush.bf16.msra.mxu2 %v11481_v49  ;;  %v11416_v9 = vld [vmem:[#allocation12 + $0x400] sm:$0xf]  ;;  %v12665_v23 = vor.u32 %v13911_v3, %v12664_v53  ;;  %v10970_v30 = vld [vmem:[#allocation12 + $0xa0] sm:$0xf0] }
 0x3aa   :  { %v11417_v51 = vor.u32 %v13599_v10, %v11416_v9  ;;  %v12792_v18 = vld [vmem:[#allocation12 + $0xec0] sm:$0xf] }
 0x3ab   :  { %7775 = vmatpush.bf16.msrb.mxu1 %v12313_v27  ;;  %7801 = vmatpush.bf16.msra.mxu3 %v12825_v34  ;;  %v13943_v20 = vld [vmem:[#allocation12 + $0xedc] sm:$0xf0]  ;;  %v11002_v27 = vld [vmem:[#allocation12 + $0xe0] sm:$0xf0] }
 0x3ac   :  { %v12793_v15 = vor.u32 %v13943_v20, %v12792_v18  ;;  %v13807_v29 = vld [vmem:[#allocation12 + $0xa9c] sm:$0xf0]  ;;  %v11005_v9 = vor.u32 %v13491_v62, %v11002_v27  ;;  %v10973_v18 = vor.u32 %v13483_v28, %v10970_v30  ;;  %v13691_v62 = vld [vmem:[#allocation12 + $0x704] sm:$0xf] }
 0x3ad   :  { %7766 = vmatpush.bf16.msra.mxu0 %v11929_v36  ;;  %7739 = vmatpush.bf16.msra.mxu2 %v11449_v54  ;;  %v12248_v36 = vld [vmem:[#allocation12 + $0xa80] sm:$0xf]  ;;  %v11802_v27 = vld [vmem:[#allocation12 + $0x720] sm:$0xf0] }
 0x3ae   :  { %v12632_v44 = vld [vmem:[#allocation12 + $0xd80] sm:$0xf]  ;;  %v12249_v55 = vor.u32 %v13807_v29, %v12248_v36  ;;  %v13555_v28 = vld [vmem:[#allocation12 + $0x2c4] sm:$0xf] }
 0x3af   :  { %7776 = vmatpush.bf16.msrb.mxu1 %v12281_v61  ;;  %7802 = vmatpush.bf16.msra.mxu3 %v12793_v15  ;;  %v13903_v41 = vld [vmem:[#allocation12 + $0xd9c] sm:$0xf0]  ;;  %v10938_v15 = vld [vmem:[#allocation12 + $0x60] sm:$0xf0] }
 0x3b0   :  { %v12760_v22 = vld [vmem:[#allocation12 + $0xe80] sm:$0xf]  ;;  %v12633_v37 = vor.u32 %v13903_v41, %v12632_v44  ;;  %v13467_v44 = vld [vmem:[#allocation12 + $0x4] sm:$0xf] }
 0x3b1   :  { %7740 = vmatpush.bf16.msra.mxu2 %v11417_v51  ;;  %v13935_v60 = vld [vmem:[#allocation12 + $0xe9c] sm:$0xf0]  ;;  %v13779_v41 = vld [vmem:[#allocation12 + $0x9c4] sm:$0xf] }
 0x3b2   :  { %v12761_v31 = vor.u32 %v13935_v60, %v12760_v22  ;;  %v12216_v45 = vld [vmem:[#allocation12 + $0xa40] sm:$0xf]  ;;  %v12154_v22 = vld [vmem:[#allocation12 + $0x9e0] sm:$0xf0] }
 0x3b3   :  { %7777 = vmatpush.bf16.msrb.mxu1 %v12249_v55  ;;  %v13799_v8 = vld [vmem:[#allocation12 + $0xa5c] sm:$0xf0]  ;;  %v10906_v55 = vld [vmem:[#allocation12 + $0x20] sm:$0xf0]  ;;  %v12157_v13 = vor.u32 %v13779_v41, %v12154_v22 }
 0x3b4   :  { %v12600_v2 = vld [vmem:[#allocation12 + $0xd40] sm:$0xf]  ;;  %7803 = vmatpush.bf16.msra.mxu3 %v12761_v31  ;;  %v12217_v50 = vor.u32 %v13799_v8, %v12216_v45  ;;  %v10909_v60 = vor.u32 %v13467_v44, %v10906_v55  ;;  %v13587_v45 = vld [vmem:[#allocation12 + $0x3c4] sm:$0xf] }
 0x3b5   :  { %7785 = vmatpush.bf16.msrb.mxu2 %v12665_v23  ;;  %v13895_v42 = vld [vmem:[#allocation12 + $0xd5c] sm:$0xf0]  ;;  %v13475_v23 = vld [vmem:[#allocation12 + $0x44] sm:$0xf] }
 0x3b6   :  { %v12728_v19 = vld [vmem:[#allocation12 + $0xe40] sm:$0xf]  ;;  %v12601_v39 = vor.u32 %v13895_v42, %v12600_v2  ;;  %v10941_v36 = vor.u32 %v13475_v23, %v10938_v15  ;;  %v11386_v8 = vld [vmem:[#allocation12 + $0x3e0] sm:$0xf0] }
 0x3b7   :  { %v13927_v40 = vld [vmem:[#allocation12 + $0xe5c] sm:$0xf0]  ;;  %7778 = vmatpush.bf16.msrb.mxu1 %v12217_v50  ;;  %v13715_v2 = vld [vmem:[#allocation12 + $0x7c4] sm:$0xf]  ;;  %v11389_v16 = vor.u32 %v13587_v45, %v11386_v8 }
 0x3b8   :  { %v12729_v14 = vor.u32 %v13927_v40, %v12728_v19  ;;  %v12184_v46 = vld [vmem:[#allocation12 + $0xa00] sm:$0xf]  ;;  %v13763_v50 = vld [vmem:[#allocation12 + $0x944] sm:$0xf] }
 0x3b9   :  { %7786 = vmatpush.bf16.msrb.mxu2 %v12633_v37  ;;  %v13791_v33 = vld [vmem:[#allocation12 + $0xa1c] sm:$0xf0]  ;;  %v12122_v37 = vld [vmem:[#allocation12 + $0x9a0] sm:$0xf0] }
 0x3ba   :  { %v12568_v1 = vld [vmem:[#allocation12 + $0xd00] sm:$0xf]  ;;  %v12185_v52 = vor.u32 %v13791_v33, %v12184_v46  ;;  %7804 = vmatpush.bf16.msra.mxu3 %v12729_v14  ;;  %v12090_v42 = vld [vmem:[#allocation12 + $0x960] sm:$0xf0] }
 0x3bb   :  { %v13887_v32 = vld [vmem:[#allocation12 + $0xd1c] sm:$0xf0]  ;;  %v11354_v33 = vld [vmem:[#allocation12 + $0x3a0] sm:$0xf0] }
 0x3bc   :  { %v12696_v59 = vld [vmem:[#allocation12 + $0xe00] sm:$0xf]  ;;  %v12569_v26 = vor.u32 %v13887_v32, %v12568_v1  ;;  %7779 = vmatpush.bf16.msrb.mxu1 %v12185_v52  ;;  %v13707_v1 = vld [vmem:[#allocation12 + $0x784] sm:$0xf]  ;;  %v12093_v52 = vor.u32 %v13763_v50, %v12090_v42 }
 0x3bd   :  { %7787 = vmatpush.bf16.msrb.mxu2 %v12601_v39  ;;  %v13919_v24 = vld [vmem:[#allocation12 + $0xe1c] sm:$0xf0]  ;;  %v13579_v39 = vld [vmem:[#allocation12 + $0x384] sm:$0xf] }
 0x3be   :  { %v12697_v49 = vor.u32 %v13919_v24, %v12696_v59  ;;  %v12536_v0 = vld [vmem:[#allocation12 + $0xcc0] sm:$0xf]  ;;  %v13755_v32 = vld [vmem:[#allocation12 + $0x904] sm:$0xf]  ;;  %v11357_v7 = vor.u32 %v13579_v39, %v11354_v33 }
 0x3bf   :  { %v13879_v25 = vld [vmem:[#allocation12 + $0xcdc] sm:$0xf0]  ;;  %v12058_v59 = vld [vmem:[#allocation12 + $0x920] sm:$0xf0] }
 0x3c0   :  { %v12537_v56 = vor.u32 %v13879_v25, %v12536_v0  ;;  %7805 = vmatpush.bf16.msra.mxu3 %v12697_v49  ;;  %v12504_v48 = vld [vmem:[#allocation12 + $0xc80] sm:$0xf]  ;;  %v11322_v49 = vld [vmem:[#allocation12 + $0x360] sm:$0xf0] }
 0x3c1   :  { %7788 = vmatpush.bf16.msrb.mxu2 %v12569_v26  ;;  %v13871_v54 = vld [vmem:[#allocation12 + $0xc9c] sm:$0xf0]  ;;  %v13571_v26 = vld [vmem:[#allocation12 + $0x344] sm:$0xf] }
 0x3c2   :  { %v12505_v38 = vor.u32 %v13871_v54, %v12504_v48  ;;  %v12472_v5 = vld [vmem:[#allocation12 + $0xc40] sm:$0xf]  ;;  %v13699_v0 = vld [vmem:[#allocation12 + $0x744] sm:$0xf]  ;;  %v11325_v48 = vor.u32 %v13571_v26, %v11322_v49  ;;  %v11104_v49 = vld [vmem:[#allocation12 + $0x188] sm:$0xf] }
 0x3c3   :  { %v13863_v34 = vld [vmem:[#allocation12 + $0xc5c] sm:$0xf0]  ;;  %v11834_v25 = vld [vmem:[#allocation12 + $0x760] sm:$0xf0] }
 0x3c4   :  { %v12473_v51 = vor.u32 %v13863_v34, %v12472_v5  ;;  %v12440_v61 = vld [vmem:[#allocation12 + $0xc00] sm:$0xf]  ;;  %v11837_v54 = vor.u32 %v13699_v0, %v11834_v25  ;;  %v13739_v34 = vld [vmem:[#allocation12 + $0x884] sm:$0xf]  ;;  %v13520_v0 = vld [vmem:[#allocation12 + $0x1a4] sm:$0xf0] }
 0x3c5   :  { %7789 = vmatpush.bf16.msrb.mxu2 %v12537_v56  ;;  %v13855_v3 = vld [vmem:[#allocation12 + $0xc1c] sm:$0xf0]  ;;  %v12026_v56 = vld [vmem:[#allocation12 + $0x8e0] sm:$0xf0] }
 0x3c6   :  { %v12441_v20 = vor.u32 %v13855_v3, %v12440_v61  ;;  %v11258_v30 = vld [vmem:[#allocation12 + $0x2e0] sm:$0xf0] }
 0x3c7   :  { %v13651_v61 = vld [vmem:[#allocation12 + $0x5c4] sm:$0xf]  ;;  %v11261_v41 = vor.u32 %v13555_v28, %v11258_v30 }
 0x3c8   :  { %v11770_v23 = vld [vmem:[#allocation12 + $0x6e0] sm:$0xf0] }
 0x3c9   :  { %7790 = vmatpush.bf16.msrb.mxu2 %v12505_v38  ;;  %v11290_v38 = vld [vmem:[#allocation12 + $0x320] sm:$0xf0] }
 0x3ca   :  { %v11226_v45 = vld [vmem:[#allocation12 + $0x2a0] sm:$0xf0] }
 0x3cb   :  { %v13643_v8 = vld [vmem:[#allocation12 + $0x584] sm:$0xf] }
 0x3cc   :  { %v4499_v17 = vpop.f32.mrf.mxu0  ;;  %v13723_v50 = vld [vmem:[#allocation12 + $0x804] sm:$0xf] }
 0x3cd   :  { %v14937_v12 = vpack.c.bf16 %v4499_v17, %v4499_v17  ;;  %7791 = vmatpush.bf16.msrb.mxu2 %v12473_v51  ;;  %v11898_v17 = vld [vmem:[#allocation12 + $0x7e0] sm:$0xf0]  ;;  %v11805_v51 = vor.u32 %v13691_v62, %v11802_v27  ;;  %v11105_v62 = vor.u32 %v13520_v0, %v11104_v49  ;;  %v10976_v49 = vld [vmem:[#allocation12 + $0x88] sm:$0xf] }
 0x3ce   :  { %v11901_v4 = vor.u32 %v13715_v2, %v11898_v17  ;;  %v13675_v17 = vld [vmem:[#allocation12 + $0x684] sm:$0xf]  ;;  %v13488_v0 = vld [vmem:[#allocation12 + $0xa4] sm:$0xf0] }
 0x3cf   :  { %7715 = vmatmul.bf16.vlgmr.msrb.gmra.mxu0 %v14937_v12  ;;  %v11930_v42 = vld [vmem:[#allocation12 + $0x820] sm:$0xf0] }
 0x3d0   :  { %7811 = vmatpush.bf16.msrb.mxu0 %v11133_v57  ;;  %v12125_v57 = vor.u32 %v13771_v58, %v12122_v37  ;;  %v13547_v37 = vld [vmem:[#allocation12 + $0x284] sm:$0xf] }
 0x3d1   :  { %7792 = vmatpush.bf16.msrb.mxu2 %v12441_v20  ;;  %v13683_v20 = vld [vmem:[#allocation12 + $0x6c4] sm:$0xf] }
 0x3d2   :  { %v11773_v58 = vor.u32 %v13683_v20, %v11770_v23  ;;  %v13539_v33 = vld [vmem:[#allocation12 + $0x244] sm:$0xf] }
 0x3d3   :  { %v13531_v25 = vld [vmem:[#allocation12 + $0x204] sm:$0xf] }
 0x3d4   :  { %7812 = vmatpush.bf16.msrb.mxu0 %v11101_v63  ;;  %v4501_v47 = vpop.f32.mrf.mxu0  ;;  %v11866_v63 = vld [vmem:[#allocation12 + $0x7a0] sm:$0xf0] }
 0x3d5   :  { %v11869_v43 = vor.u32 %v13707_v1, %v11866_v63  ;;  %v13747_v47 = vld [vmem:[#allocation12 + $0x8c4] sm:$0xf] }
 0x3d6   :  { %v12029_v5 = vor.u32 %v13747_v47, %v12026_v56  ;;  %v11194_v1 = vld [vmem:[#allocation12 + $0x260] sm:$0xf0] }
 0x3d7   :  { %v13635_v63 = vld [vmem:[#allocation12 + $0x544] sm:$0xf]  ;;  %v11197_v26 = vor.u32 %v13539_v33, %v11194_v1 }
 0x3d8   :  { %7813 = vmatpush.bf16.msrb.mxu0 %v11069_v6  ;;  %v12061_v6 = vor.u32 %v13755_v32, %v12058_v59  ;;  %v11578_v32 = vld [vmem:[#allocation12 + $0x560] sm:$0xf0] }
 0x3d9   :  { %v13667_v59 = vld [vmem:[#allocation12 + $0x644] sm:$0xf]  ;;  %v11581_v47 = vor.u32 %v13635_v63, %v11578_v32 }
 0x3da   :  { %v12410_v27 = vld [vmem:[#allocation12 + $0xbe0] sm:$0xf0] }
 0x3db   :  { %v11514_v20 = vld [vmem:[#allocation12 + $0x4e0] sm:$0xf0] }
 0x3dc   :  { %7814 = vmatpush.bf16.msrb.mxu0 %v11037_v11  ;;  %v4561_v10 = vpop.f32.mrf.mxu0  ;;  %v13563_v11 = vld [vmem:[#allocation12 + $0x304] sm:$0xf] }
 0x3dd   :  { %v14940_v53 = vpack.c.bf16 %v4561_v10, %v4561_v10  ;;  %v11293_v10 = vor.u32 %v13563_v11, %v11290_v38  ;;  %v11674_v11 = vld [vmem:[#allocation12 + $0x620] sm:$0xf0] }
 0x3de   :  { %v13843_v38 = vld [vmem:[#allocation12 + $0xbc4] sm:$0xf] }
 0x3df   :  { %7767 = vmatmul.bf16.vlgmr.msra.gmra.mxu0 %v14940_v53  ;;  %v13835_v23 = vld [vmem:[#allocation12 + $0xb84] sm:$0xf] }
 0x3e0   :  { %7815 = vmatpush.bf16.msrb.mxu0 %v11005_v9  ;;  %v11994_v9 = vld [vmem:[#allocation12 + $0x8a0] sm:$0xf0] }
 0x3e1   :  { %v11997_v3 = vor.u32 %v13739_v34, %v11994_v9  ;;  %v12922_v34 = vld [vmem:[#allocation12 + $0xfe0] sm:$0xf0] }
 0x3e2   :  { %v13603_v63 = vld [vmem:[#allocation12 + $0x444] sm:$0xf] }
 0x3e3   :  { %v13819_v32 = vld [vmem:[#allocation12 + $0xb04] sm:$0xf] }
 0x3e4   :  { %7816 = vmatpush.bf16.msrb.mxu0 %v10973_v18  ;;  %v4563_v29 = vpop.f32.mrf.mxu0  ;;  %v11642_v18 = vld [vmem:[#allocation12 + $0x5e0] sm:$0xf0] }
 0x3e5   :  { %v11962_v29 = vld [vmem:[#allocation12 + $0x860] sm:$0xf0] }
 0x3e8   :  { %7817 = vmatpush.bf16.msrb.mxu0 %v10941_v36  ;;  %v13731_v36 = vld [vmem:[#allocation12 + $0x844] sm:$0xf] }
 0x3e9   :  { %v11965_v2 = vor.u32 %v13731_v36, %v11962_v29  ;;  %v12378_v29 = vld [vmem:[#allocation12 + $0xba0] sm:$0xf0] }
 0x3ec   :  { %7818 = vmatpush.bf16.msrb.mxu0 %v10909_v60 }
 0x3ef   :  { %7819 = vmatmul.bf16.vlgmr.msrb.gmra.mxu0 %v14937_v12 }
 0x3f0   :  { %7863 = vmatpush.bf16.msra.mxu0 %v12157_v13  ;;  %v11645_v13 = vor.u32 %v13651_v61, %v11642_v18  ;;  %v12413_v61 = vor.u32 %v13843_v38, %v12410_v27  ;;  %v13619_v18 = vld [vmem:[#allocation12 + $0x4c4] sm:$0xf] }
 0x3f1   :  { %v12666_v38 = vld [vmem:[#allocation12 + $0xde0] sm:$0xf0] }
 0x3f2   :  { %v12794_v27 = vld [vmem:[#allocation12 + $0xee0] sm:$0xf0] }
 0x3f4   :  { %7864 = vmatpush.bf16.msra.mxu0 %v12125_v57  ;;  %v11738_v57 = vld [vmem:[#allocation12 + $0x6a0] sm:$0xf0] }
 0x3f5   :  { %v11741_v39 = vor.u32 %v13675_v17, %v11738_v57  ;;  %v11482_v17 = vld [vmem:[#allocation12 + $0x4a0] sm:$0xf0] }
 0x3f6   :  { %v13827_v57 = vld [vmem:[#allocation12 + $0xb44] sm:$0xf] }
 0x3f8   :  { %7865 = vmatpush.bf16.msra.mxu0 %v12093_v52  ;;  %v11933_v52 = vor.u32 %v13723_v50, %v11930_v42  ;;  %v12346_v42 = vld [vmem:[#allocation12 + $0xb60] sm:$0xf0] }
 0x3f9   :  { %v14943_v31 = vpop.f32.mrf.mxu1  ;;  %v12349_v33 = vor.u32 %v13827_v57, %v12346_v42  ;;  %v12602_v57 = vld [vmem:[#allocation12 + $0xd60] sm:$0xf0] }
 0x3fa   :  { %v14954_v15 = vpack.c.bf16 %v14943_v31, %v14943_v31  ;;  %v11610_v31 = vld [vmem:[#allocation12 + $0x5a0] sm:$0xf0] }
 0x3fb   :  { %v13923_v42 = vld [vmem:[#allocation12 + $0xe44] sm:$0xf] }
 0x3fc   :  { %7866 = vmatpush.bf16.msra.mxu0 %v12061_v6 }
 0x3fd   :  { %v4512_v19 = vpop.f32.mrf.mxu2  ;;  %v4543_v40 = vpop.f32.mrf.mxu3 }
 0x3fe   :  { %v14946_v14 = vpack.c.bf16 %v4512_v19, %v4512_v19  ;;  %v14948_v46 = vpack.c.bf16 %v4543_v40, %v4543_v40  ;;  %v11229_v19 = vor.u32 %v13547_v37, %v11226_v45  ;;  %v11136_v40 = vld [vmem:[#allocation12 + $0x1c8] sm:$0xf]  ;;  %v11517_v45 = vor.u32 %v13619_v18, %v11514_v20  ;;  %v13899_v18 = vld [vmem:[#allocation12 + $0xd84] sm:$0xf] }
 0x3ff   :  { %v12634_v20 = vld [vmem:[#allocation12 + $0xda0] sm:$0xf0] }
 0x400   :  { %7728 = vmatmul.bf16.vlgmr.msra.gmra.mxu1 %v14946_v14  ;;  %7754 = vmatmul.bf16.vlgmr.msrb.gmra.mxu3 %v14948_v46 }
 0x401   :  { %v4576_v24 = vpop.f32.mrf.mxu1  ;;  %7824 = vmatpush.bf16.msra.mxu1 %v11389_v16  ;;  %7850 = vmatpush.bf16.msrb.mxu3 %v11901_v4  ;;  %v13528_v16 = vld [vmem:[#allocation12 + $0x1e4] sm:$0xf0]  ;;  %v11613_v4 = vor.u32 %v13643_v8, %v11610_v31  ;;  %v12381_v8 = vor.u32 %v13835_v23, %v12378_v29  ;;  %v13611_v31 = vld [vmem:[#allocation12 + $0x484] sm:$0xf] }
 0x402   :  { %7867 = vmatpush.bf16.msra.mxu0 %v12029_v5  ;;  %v11706_v24 = vld [vmem:[#allocation12 + $0x660] sm:$0xf0]  ;;  %v10912_v29 = vld [vmem:[#allocation12 + $0x8] sm:$0xf] }
 0x403   :  { %v11709_v56 = vor.u32 %v13667_v59, %v11706_v24  ;;  %v13971_v5 = vld [vmem:[#allocation12 + $0xfc4] sm:$0xf] }
 0x404   :  { %v12314_v24 = vld [vmem:[#allocation12 + $0xb20] sm:$0xf0] }
 0x405   :  { %7825 = vmatpush.bf16.msra.mxu1 %v11357_v7  ;;  %7851 = vmatpush.bf16.msrb.mxu3 %v11869_v43  ;;  %v4514_v35 = vpop.f32.mrf.mxu2  ;;  %v4545_v21 = vpop.f32.mrf.mxu3  ;;  %v11137_v7 = vor.u32 %v13528_v16, %v11136_v40  ;;  %v12858_v40 = vld [vmem:[#allocation12 + $0xf60] sm:$0xf0]  ;;  %v11008_v16 = vld [vmem:[#allocation12 + $0xc8] sm:$0xf] }
 0x406   :  { %7868 = vmatpush.bf16.msra.mxu0 %v11997_v3  ;;  %v11162_v35 = vld [vmem:[#allocation12 + $0x220] sm:$0xf0]  ;;  %v12925_v3 = vor.u32 %v13971_v5, %v12922_v34  ;;  %v10944_v5 = vld [vmem:[#allocation12 + $0x48] sm:$0xf] }
 0x407   :  { %v13627_v21 = vld [vmem:[#allocation12 + $0x504] sm:$0xf]  ;;  %v11165_v9 = vor.u32 %v13531_v25, %v11162_v35  ;;  %v13480_v34 = vld [vmem:[#allocation12 + $0x64] sm:$0xf0] }
 0x408   :  { %v11418_v35 = vld [vmem:[#allocation12 + $0x420] sm:$0xf0] }
 0x409   :  { %7826 = vmatpush.bf16.msra.mxu1 %v11325_v48  ;;  %7852 = vmatpush.bf16.msrb.mxu3 %v11837_v54  ;;  %v11546_v48 = vld [vmem:[#allocation12 + $0x520] sm:$0xf0] }
 0x40a   :  { %7869 = vmatpush.bf16.msra.mxu0 %v11965_v2  ;;  %v13659_v54 = vld [vmem:[#allocation12 + $0x604] sm:$0xf]  ;;  %v11549_v28 = vor.u32 %v13627_v21, %v11546_v48 }
 0x40b   :  { %v11677_v30 = vor.u32 %v13659_v54, %v11674_v11  ;;  %v13811_v21 = vld [vmem:[#allocation12 + $0xac4] sm:$0xf]  ;;  %v10977_v54 = vor.u32 %v13488_v0, %v10976_v49  ;;  %v11904_v49 = vld [vmem:[#allocation12 + $0x7c8] sm:$0xf] }
 0x40c   :  { %v12282_v48 = vld [vmem:[#allocation12 + $0xae0] sm:$0xf0]  ;;  %v13720_v0 = vld [vmem:[#allocation12 + $0x7e4] sm:$0xf0] }
 0x40d   :  { %7827 = vmatpush.bf16.msra.mxu1 %v11293_v10  ;;  %7853 = vmatpush.bf16.msrb.mxu3 %v11805_v51  ;;  %v4530_v44 = vpop.f32.mrf.mxu2  ;;  %v4605_v55 = vpop.f32.mrf.mxu3  ;;  %v11072_v10 = vld [vmem:[#allocation12 + $0x148] sm:$0xf]  ;;  %v13907_v11 = vld [vmem:[#allocation12 + $0xdc4] sm:$0xf] }
 0x40e   :  { %v14956_v22 = vpack.c.bf16 %v4530_v44, %v4530_v44  ;;  %v14958_v60 = vpack.c.bf16 %v4605_v55, %v4605_v55  ;;  %7870 = vmatpush.bf16.msra.mxu0 %v11933_v52  ;;  %v13512_v51 = vld [vmem:[#allocation12 + $0x164] sm:$0xf0]  ;;  %v13963_v44 = vld [vmem:[#allocation12 + $0xf84] sm:$0xf] }
 0x40f   :  { %v11073_v36 = vor.u32 %v13512_v51, %v11072_v10  ;;  %v12890_v55 = vld [vmem:[#allocation12 + $0xfa0] sm:$0xf0]  ;;  %v12285_v10 = vor.u32 %v13811_v21, %v12282_v48  ;;  %v12669_v51 = vor.u32 %v13907_v11, %v12666_v38  ;;  %v11905_v11 = vor.u32 %v13720_v0, %v11904_v49 }
 0x410   :  { %7741 = vmatmul.bf16.vlgmr.msra.gmra.mxu2 %v14956_v22  ;;  %7780 = vmatmul.bf16.vlgmr.msrb.gmra.mxu1 %v14954_v15  ;;  %v12893_v2 = vor.u32 %v13963_v44, %v12890_v55  ;;  %v11450_v52 = vld [vmem:[#allocation12 + $0x460] sm:$0xf0]  ;;  %v13472_v44 = vld [vmem:[#allocation12 + $0x24] sm:$0xf0] }
 0x411   :  { %7806 = vmatmul.bf16.vlgmr.msra.gmra.mxu3 %v14958_v60  ;;  %7828 = vmatpush.bf16.msra.mxu1 %v11261_v41  ;;  %v11453_v25 = vor.u32 %v13603_v63, %v11450_v52  ;;  %v13931_v23 = vld [vmem:[#allocation12 + $0xe84] sm:$0xf]  ;;  %v12160_v55 = vld [vmem:[#allocation12 + $0x9c8] sm:$0xf] }
 0x412   :  { %7837 = vmatpush.bf16.msra.mxu2 %v11645_v13  ;;  %7854 = vmatpush.bf16.msrb.mxu3 %v11773_v58  ;;  %v11040_v13 = vld [vmem:[#allocation12 + $0x108] sm:$0xf]  ;;  %v13883_v63 = vld [vmem:[#allocation12 + $0xd04] sm:$0xf] }
 0x413   :  { %7915 = vmatpush.bf16.msrb.mxu0 %v11137_v7  ;;  %v13504_v58 = vld [vmem:[#allocation12 + $0x124] sm:$0xf0]  ;;  %v13947_v7 = vld [vmem:[#allocation12 + $0xf04] sm:$0xf] }
 0x414   :  { %7871 = vmatmul.bf16.vlgmr.msra.gmra.mxu0 %v14940_v53  ;;  %v11041_v50 = vor.u32 %v13504_v58, %v11040_v13  ;;  %v12637_v58 = vor.u32 %v13899_v18, %v12634_v20  ;;  %v13875_v48 = vld [vmem:[#allocation12 + $0xcc4] sm:$0xf]  ;;  %v11328_v20 = vld [vmem:[#allocation12 + $0x348] sm:$0xf] }
 0x415   :  { %7829 = vmatpush.bf16.msra.mxu1 %v11229_v19  ;;  %v4532_v43 = vpop.f32.mrf.mxu2  ;;  %v4607_v6 = vpop.f32.mrf.mxu3  ;;  %v13955_v19 = vld [vmem:[#allocation12 + $0xf44] sm:$0xf] }
 0x416   :  { %7838 = vmatpush.bf16.msra.mxu2 %v11613_v4  ;;  %7855 = vmatpush.bf16.msrb.mxu3 %v11741_v39  ;;  %v13496_v4 = vld [vmem:[#allocation12 + $0xe4] sm:$0xf0]  ;;  %v11485_v39 = vor.u32 %v13611_v31, %v11482_v17  ;;  %v12861_v1 = vor.u32 %v13955_v19, %v12858_v40  ;;  %v12826_v43 = vld [vmem:[#allocation12 + $0xf20] sm:$0xf0] }
 0x417   :  { %7916 = vmatpush.bf16.msrb.mxu0 %v11105_v62  ;;  %v11009_v59 = vor.u32 %v13496_v4, %v11008_v16  ;;  %v13595_v6 = vld [vmem:[#allocation12 + $0x404] sm:$0xf]  ;;  %v12128_v40 = vld [vmem:[#allocation12 + $0x988] sm:$0xf] }
 0x418   :  { %v13939_v62 = vld [vmem:[#allocation12 + $0xec4] sm:$0xf]  ;;  %v13776_v16 = vld [vmem:[#allocation12 + $0x9a4] sm:$0xf0] }
 0x419   :  { %7830 = vmatpush.bf16.msra.mxu1 %v11197_v26  ;;  %v12218_v31 = vld [vmem:[#allocation12 + $0xa60] sm:$0xf0] }
 0x41a   :  { %7839 = vmatpush.bf16.msra.mxu2 %v11581_v47  ;;  %7856 = vmatpush.bf16.msrb.mxu3 %v11709_v56  ;;  %v12317_v47 = vor.u32 %v13819_v32, %v12314_v24  ;;  %v12829_v56 = vor.u32 %v13947_v7, %v12826_v43  ;;  %v13891_v17 = vld [vmem:[#allocation12 + $0xd44] sm:$0xf]  ;;  %v12129_v7 = vor.u32 %v13776_v16, %v12128_v40  ;;  %v11392_v43 = vld [vmem:[#allocation12 + $0x3c8] sm:$0xf] }
 0x41b   :  { %7917 = vmatpush.bf16.msrb.mxu0 %v11073_v36  ;;  %v12762_v36 = vld [vmem:[#allocation12 + $0xea0] sm:$0xf0] }
 0x41c   :  { %v12730_v19 = vld [vmem:[#allocation12 + $0xe60] sm:$0xf0] }
 0x41d   :  { %7831 = vmatpush.bf16.msra.mxu1 %v11165_v9  ;;  %v4592_v41 = vpop.f32.mrf.mxu2  ;;  %v11421_v9 = vor.u32 %v13595_v6, %v11418_v35  ;;  %v12733_v52 = vor.u32 %v13923_v42, %v12730_v19  ;;  %v12570_v32 = vld [vmem:[#allocation12 + $0xd20] sm:$0xf0]  ;;  %v13768_v6 = vld [vmem:[#allocation12 + $0x964] sm:$0xf0] }
 0x41e   :  { %7840 = vmatpush.bf16.msra.mxu2 %v11549_v28  ;;  %7857 = vmatpush.bf16.msrb.mxu3 %v11677_v30  ;;  %v14964_v37 = vpack.c.bf16 %v4592_v41, %v4592_v41  ;;  %v13803_v28 = vld [vmem:[#allocation12 + $0xa84] sm:$0xf]  ;;  %v13784_v41 = vld [vmem:[#allocation12 + $0x9e4] sm:$0xf0] }
 0x41f   :  { %7918 = vmatpush.bf16.msrb.mxu0 %v11041_v50  ;;  %v12250_v30 = vld [vmem:[#allocation12 + $0xaa0] sm:$0xf0]  ;;  %v12161_v50 = vor.u32 %v13784_v41, %v12160_v55  ;;  %v13752_v55 = vld [vmem:[#allocation12 + $0x8e4] sm:$0xf0] }
 0x420   :  { %7793 = vmatmul.bf16.vlgmr.msrb.gmra.mxu2 %v14964_v37  ;;  %7832 = vmatmul.bf16.vlgmr.msra.gmra.mxu1 %v14946_v14  ;;  %v12253_v13 = vor.u32 %v13803_v28, %v12250_v30  ;;  %v12698_v24 = vld [vmem:[#allocation12 + $0xe20] sm:$0xf0]  ;;  %v12000_v42 = vld [vmem:[#allocation12 + $0x888] sm:$0xf] }
 0x421   :  { %7876 = vmatpush.bf16.msrb.mxu1 %v12413_v61  ;;  %7858 = vmatmul.bf16.vlgmr.msrb.gmra.mxu3 %v14948_v46  ;;  %v12797_v61 = vor.u32 %v13939_v62, %v12794_v27  ;;  %v11360_v62 = vld [vmem:[#allocation12 + $0x388] sm:$0xf]  ;;  %v13867_v30 = vld [vmem:[#allocation12 + $0xc84] sm:$0xf] }
 0x422   :  { %7902 = vmatpush.bf16.msra.mxu3 %v12925_v3  ;;  %7841 = vmatpush.bf16.msra.mxu2 %v11517_v45  ;;  %v10945_v3 = vor.u32 %v13480_v34, %v10944_v5  ;;  %v13795_v45 = vld [vmem:[#allocation12 + $0xa44] sm:$0xf]  ;;  %v13584_v27 = vld [vmem:[#allocation12 + $0x3a4] sm:$0xf0] }
 0x423   :  { %7919 = vmatpush.bf16.msrb.mxu0 %v11009_v59  ;;  %v12221_v4 = vor.u32 %v13795_v45, %v12218_v31  ;;  %v13915_v59 = vld [vmem:[#allocation12 + $0xe04] sm:$0xf]  ;;  %v11872_v5 = vld [vmem:[#allocation12 + $0x788] sm:$0xf]  ;;  %v11361_v28 = vor.u32 %v13584_v27, %v11360_v62  ;;  %v13524_v27 = vld [vmem:[#allocation12 + $0x1cc] sm:$0xf] }
 0x424   :  { %v12701_v35 = vor.u32 %v13915_v59, %v12698_v24  ;;  %v13712_v34 = vld [vmem:[#allocation12 + $0x7a4] sm:$0xf0]  ;;  %v12474_v45 = vld [vmem:[#allocation12 + $0xc60] sm:$0xf0] }
 0x425   :  { %7877 = vmatpush.bf16.msrb.mxu1 %v12381_v8  ;;  %v4594_v26 = vpop.f32.mrf.mxu2  ;;  %v12765_v8 = vor.u32 %v13931_v23, %v12762_v36  ;;  %v13576_v23 = vld [vmem:[#allocation12 + $0x364] sm:$0xf0]  ;;  %v13851_v16 = vld [vmem:[#allocation12 + $0xc04] sm:$0xf] }
 0x426   :  { %7903 = vmatpush.bf16.msra.mxu3 %v12893_v2  ;;  %7842 = vmatpush.bf16.msra.mxu2 %v11485_v39  ;;  %v10913_v2 = vor.u32 %v13472_v44, %v10912_v29  ;;  %v12605_v39 = vor.u32 %v13891_v17, %v12602_v57  ;;  %v13592_v26 = vld [vmem:[#allocation12 + $0x3e4] sm:$0xf0] }
 0x427   :  { %7920 = vmatpush.bf16.msrb.mxu0 %v10977_v54  ;;  %v11393_v21 = vor.u32 %v13592_v26, %v11392_v43  ;;  %v12538_v54 = vld [vmem:[#allocation12 + $0xce0] sm:$0xf0]  ;;  %v11840_v36 = vld [vmem:[#allocation12 + $0x748] sm:$0xf] }
 0x428   :  { %v13704_v29 = vld [vmem:[#allocation12 + $0x764] sm:$0xf0] }
 0x429   :  { %7878 = vmatpush.bf16.msrb.mxu1 %v12349_v33  ;;  %v13787_v33 = vld [vmem:[#allocation12 + $0xa04] sm:$0xf]  ;;  %v12032_v44 = vld [vmem:[#allocation12 + $0x8c8] sm:$0xf] }
 0x42a   :  { %7904 = vmatpush.bf16.msra.mxu3 %v12861_v1  ;;  %7843 = vmatpush.bf16.msra.mxu2 %v11453_v25  ;;  %v12186_v1 = vld [vmem:[#allocation12 + $0xa20] sm:$0xf0]  ;;  %v12096_v25 = vld [vmem:[#allocation12 + $0x948] sm:$0xf] }
 0x42b   :  { %7921 = vmatpush.bf16.msrb.mxu0 %v10945_v3  ;;  %v12097_v38 = vor.u32 %v13768_v6, %v12096_v25  ;;  %v11873_v3 = vor.u32 %v13712_v34, %v11872_v5  ;;  %v11296_v31 = vld [vmem:[#allocation12 + $0x308] sm:$0xf]  ;;  %v11138_v5 = vld [vmem:[#allocation12 + $0x1e8] sm:$0xf0] }
 0x42c   :  { %v13568_v17 = vld [vmem:[#allocation12 + $0x324] sm:$0xf0] }
 0x42d   :  { %7879 = vmatpush.bf16.msrb.mxu1 %v12317_v47  ;;  %v12189_v47 = vor.u32 %v13787_v33, %v12186_v1  ;;  %v11808_v57 = vld [vmem:[#allocation12 + $0x708] sm:$0xf] }
 0x42e   :  { %7905 = vmatpush.bf16.msra.mxu3 %v12829_v56  ;;  %7844 = vmatpush.bf16.msra.mxu2 %v11421_v9  ;;  %v12573_v56 = vor.u32 %v13883_v63, %v12570_v32  ;;  %v12064_v9 = vld [vmem:[#allocation12 + $0x908] sm:$0xf] }
 0x42f   :  { %7922 = vmatpush.bf16.msrb.mxu0 %v10913_v2  ;;  %v12033_v2 = vor.u32 %v13752_v55, %v12032_v44  ;;  %v13744_v19 = vld [vmem:[#allocation12 + $0x8a4] sm:$0xf0] }
 0x430   :  { %v11264_v33 = vld [vmem:[#allocation12 + $0x2c8] sm:$0xf] }
 0x431   :  { %7880 = vmatpush.bf16.msrb.mxu1 %v12285_v10  ;;  %7845 = vmatmul.bf16.vlgmr.msra.gmra.mxu2 %v14956_v22  ;;  %v13760_v10 = vld [vmem:[#allocation12 + $0x924] sm:$0xf0] }
 0x432   :  { %7889 = vmatpush.bf16.msrb.mxu2 %v12669_v51  ;;  %7906 = vmatpush.bf16.msra.mxu3 %v12797_v61  ;;  %v12541_v51 = vor.u32 %v13875_v48, %v12538_v54  ;;  %v12506_v61 = vld [vmem:[#allocation12 + $0xca0] sm:$0xf0]  ;;  %v12065_v18 = vor.u32 %v13760_v10, %v12064_v9  ;;  %v13560_v1 = vld [vmem:[#allocation12 + $0x2e4] sm:$0xf0] }
 0x433   :  { %7967 = vmatpush.bf16.msra.mxu0 %v12161_v50  ;;  %v12509_v41 = vor.u32 %v13867_v30, %v12506_v61  ;;  %v13696_v50 = vld [vmem:[#allocation12 + $0x724] sm:$0xf0]  ;;  %v11265_v0 = vor.u32 %v13560_v1, %v11264_v33 }
 0x434   :  { %7923 = vmatmul.bf16.vlgmr.msrb.gmra.mxu0 %v14937_v12  ;;  %v11809_v63 = vor.u32 %v13696_v50, %v11808_v57  ;;  %v11648_v32 = vld [vmem:[#allocation12 + $0x5c8] sm:$0xf] }
 0x435   :  { %7881 = vmatpush.bf16.msrb.mxu1 %v12253_v13  ;;  %v11329_v13 = vor.u32 %v13576_v23, %v11328_v20  ;;  %v13656_v59 = vld [vmem:[#allocation12 + $0x5e4] sm:$0xf0] }
 0x436   :  { %7890 = vmatpush.bf16.msrb.mxu2 %v12637_v58  ;;  %7907 = vmatpush.bf16.msra.mxu3 %v12765_v8  ;;  %v13859_v58 = vld [vmem:[#allocation12 + $0xc44] sm:$0xf]  ;;  %v11841_v8 = vor.u32 %v13704_v29, %v11840_v36  ;;  %v11776_v24 = vld [vmem:[#allocation12 + $0x6c8] sm:$0xf]  ;;  %v11649_v25 = vor.u32 %v13656_v59, %v11648_v32  ;;  %v13516_v36 = vld [vmem:[#allocation12 + $0x18c] sm:$0xf] }
 0x437   :  { %7968 = vmatpush.bf16.msra.mxu0 %v12129_v7  ;;  %v12477_v40 = vor.u32 %v13859_v58, %v12474_v45  ;;  %v13688_v7 = vld [vmem:[#allocation12 + $0x6e4] sm:$0xf0]  ;;  %v11106_v29 = vld [vmem:[#allocation12 + $0x1a8] sm:$0xf0] }
 0x438   :  { %v11968_v43 = vld [vmem:[#allocation12 + $0x848] sm:$0xf] }
 0x439   :  { %7882 = vmatpush.bf16.msrb.mxu1 %v12221_v4  ;;  %v11297_v4 = vor.u32 %v13568_v17, %v11296_v31  ;;  %v13736_v26 = vld [vmem:[#allocation12 + $0x864] sm:$0xf0]  ;;  %v11109_v17 = vor.u32 %v13516_v36, %v11106_v29  ;;  %v10978_v36 = vld [vmem:[#allocation12 + $0xa8] sm:$0xf0] }
 0x43a   :  { %7891 = vmatpush.bf16.msrb.mxu2 %v12605_v39  ;;  %7908 = vmatpush.bf16.msra.mxu3 %v12733_v52  ;;  %v12442_v39 = vld [vmem:[#allocation12 + $0xc20] sm:$0xf0]  ;;  %v12001_v52 = vor.u32 %v13744_v19, %v12000_v42  ;;  %v11232_v6 = vld [vmem:[#allocation12 + $0x288] sm:$0xf] }
 0x43b   :  { %7969 = vmatpush.bf16.msra.mxu0 %v12097_v38  ;;  %v12445_v49 = vor.u32 %v13851_v16, %v12442_v39  ;;  %v13648_v48 = vld [vmem:[#allocation12 + $0x5a4] sm:$0xf0]  ;;  %v11074_v16 = vld [vmem:[#allocation12 + $0x168] sm:$0xf0] }
 0x43c   :  { %v11744_v54 = vld [vmem:[#allocation12 + $0x688] sm:$0xf] }
 0x43d   :  { %7883 = vmatpush.bf16.msrb.mxu1 %v12189_v47  ;;  %v13552_v47 = vld [vmem:[#allocation12 + $0x2a4] sm:$0xf0] }
 0x43e   :  { %7892 = vmatpush.bf16.msrb.mxu2 %v12573_v56  ;;  %7909 = vmatpush.bf16.msra.mxu3 %v12701_v35  ;;  %v11777_v56 = vor.u32 %v13688_v7, %v11776_v24  ;;  %v11969_v35 = vor.u32 %v13736_v26, %v11968_v43  ;;  %v11936_v38 = vld [vmem:[#allocation12 + $0x808] sm:$0xf]  ;;  %v11233_v34 = vor.u32 %v13552_v47, %v11232_v6 }
 0x43f   :  { %7970 = vmatpush.bf16.msra.mxu0 %v12065_v18  ;;  %v13728_v62 = vld [vmem:[#allocation12 + $0x824] sm:$0xf0]  ;;  %v11141_v18 = vor.u32 %v13524_v27, %v11138_v5  ;;  %v13492_v27 = vld [vmem:[#allocation12 + $0xcc] sm:$0xf] }
 0x440   :  { %7884 = vmatmul.bf16.vlgmr.msrb.gmra.mxu1 %v14954_v15  ;;  %v11200_v10 = vld [vmem:[#allocation12 + $0x248] sm:$0xf]  ;;  %v11010_v5 = vld [vmem:[#allocation12 + $0xe8] sm:$0xf0] }
 0x441   :  { %7928 = vmatpush.bf16.msra.mxu1 %v11393_v21  ;;  %7910 = vmatmul.bf16.vlgmr.msra.gmra.mxu3 %v14958_v60  ;;  %v11616_v21 = vld [vmem:[#allocation12 + $0x588] sm:$0xf] }
 0x442   :  { %7954 = vmatpush.bf16.msrb.mxu3 %v11905_v11  ;;  %7893 = vmatpush.bf16.msrb.mxu2 %v12541_v51  ;;  %v13680_v11 = vld [vmem:[#allocation12 + $0x6a4] sm:$0xf0]  ;;  %v11617_v9 = vor.u32 %v13648_v48, %v11616_v21 }
 0x443   :  { %7971 = vmatpush.bf16.msra.mxu0 %v12033_v2  ;;  %v11745_v51 = vor.u32 %v13680_v11, %v11744_v54  ;;  %v13544_v30 = vld [vmem:[#allocation12 + $0x264] sm:$0xf0] }
 0x444   :  { %v11584_v61 = vld [vmem:[#allocation12 + $0x548] sm:$0xf]  ;;  %v11201_v44 = vor.u32 %v13544_v30, %v11200_v10  ;;  %v11013_v30 = vor.u32 %v13492_v27, %v11010_v5  ;;  %v13772_v5 = vld [vmem:[#allocation12 + $0x98c] sm:$0xf] }
 0x445   :  { %7929 = vmatpush.bf16.msra.mxu1 %v11361_v28  ;;  %v11937_v28 = vor.u32 %v13728_v62, %v11936_v38  ;;  %v11712_v20 = vld [vmem:[#allocation12 + $0x648] sm:$0xf] }
 0x446   :  { %7955 = vmatpush.bf16.msrb.mxu3 %v11873_v3  ;;  %7894 = vmatpush.bf16.msrb.mxu2 %v12509_v41  ;;  %v13640_v3 = vld [vmem:[#allocation12 + $0x564] sm:$0xf0] }
 0x447   :  { %7972 = vmatpush.bf16.msra.mxu0 %v12001_v52  ;;  %v13672_v23 = vld [vmem:[#allocation12 + $0x664] sm:$0xf0]  ;;  %v11585_v55 = vor.u32 %v13640_v3, %v11584_v61 }
 0x448   :  { %v11168_v41 = vld [vmem:[#allocation12 + $0x208] sm:$0xf]  ;;  %v11713_v45 = vor.u32 %v13672_v23, %v11712_v20  ;;  %v13484_v23 = vld [vmem:[#allocation12 + $0x8c] sm:$0xf] }
 0x449   :  { %7930 = vmatpush.bf16.msra.mxu1 %v11329_v13  ;;  %v13536_v13 = vld [vmem:[#allocation12 + $0x224] sm:$0xf0] }
 0x44a   :  { %7956 = vmatpush.bf16.msrb.mxu3 %v11841_v8  ;;  %7895 = vmatpush.bf16.msrb.mxu2 %v12477_v40  ;;  %v11552_v58 = vld [vmem:[#allocation12 + $0x508] sm:$0xf]  ;;  %v13508_v40 = vld [vmem:[#allocation12 + $0x14c] sm:$0xf] }
 0x44b   :  { %7973 = vmatpush.bf16.msra.mxu0 %v11969_v35  ;;  %v13632_v8 = vld [vmem:[#allocation12 + $0x524] sm:$0xf0]  ;;  %v11077_v59 = vor.u32 %v13508_v40, %v11074_v16 }
 0x44c   :  { %v11680_v2 = vld [vmem:[#allocation12 + $0x608] sm:$0xf]  ;;  %v11553_v39 = vor.u32 %v13632_v8, %v11552_v58  ;;  %v14975_v38 = vpop.f32.mrf.mxu0  ;;  %v10981_v8 = vor.u32 %v13484_v23, %v10978_v36  ;;  %v13588_v36 = vld [vmem:[#allocation12 + $0x3cc] sm:$0xf] }
 0x44d   :  { %7931 = vmatpush.bf16.msra.mxu1 %v11297_v4  ;;  %v13664_v31 = vld [vmem:[#allocation12 + $0x624] sm:$0xf0]  ;;  %v11169_v4 = vor.u32 %v13536_v13, %v11168_v41 }
 0x44e   :  { %7957 = vmatpush.bf16.msrb.mxu3 %v11809_v63  ;;  %7896 = vmatpush.bf16.msrb.mxu2 %v12445_v49  ;;  %v12416_v57 = vld [vmem:[#allocation12 + $0xbc8] sm:$0xf]  ;;  %v11681_v33 = vor.u32 %v13664_v31, %v11680_v2  ;;  %v13500_v49 = vld [vmem:[#allocation12 + $0x10c] sm:$0xf] }
 0x44f   :  { %7974 = vmatpush.bf16.msra.mxu0 %v11937_v28  ;;  %v13848_v50 = vld [vmem:[#allocation12 + $0xbe4] sm:$0xf0] }
 0x450   :  { %v12928_v42 = vld [vmem:[#allocation12 + $0xfc8] sm:$0xf]  ;;  %v12417_v1 = vor.u32 %v13848_v50, %v12416_v57 }
 0x451   :  { %7932 = vmatpush.bf16.msra.mxu1 %v11265_v0  ;;  %7897 = vmatmul.bf16.vlgmr.msrb.gmra.mxu2 %v14964_v37  ;;  %v13976_v19 = vld [vmem:[#allocation12 + $0xfe4] sm:$0xf0]  ;;  %v11042_v0 = vld [vmem:[#allocation12 + $0x128] sm:$0xf0] }
 0x452   :  { %7941 = vmatpush.bf16.msra.mxu2 %v11649_v25  ;;  %7958 = vmatpush.bf16.msrb.mxu3 %v11777_v56  ;;  %v11520_v63 = vld [vmem:[#allocation12 + $0x4c8] sm:$0xf]  ;;  %v12929_v32 = vor.u32 %v13976_v19, %v12928_v42  ;;  %v11045_v21 = vor.u32 %v13500_v49, %v11042_v0  ;;  %v13476_v42 = vld [vmem:[#allocation12 + $0x4c] sm:$0xf] }
 0x453   :  { %8019 = vmatpush.bf16.msrb.mxu0 %v11141_v18  ;;  %v13624_v52 = vld [vmem:[#allocation12 + $0x4e4] sm:$0xf0]  ;;  %v10946_v19 = vld [vmem:[#allocation12 + $0x68] sm:$0xf0] }
 0x454   :  { %7975 = vmatmul.bf16.vlgmr.msra.gmra.mxu0 %v14940_v53  ;;  %v12384_v24 = vld [vmem:[#allocation12 + $0xb88] sm:$0xf]  ;;  %v11521_v25 = vor.u32 %v13624_v52, %v11520_v63  ;;  %v7718_v57 = vpop.f32.mrf.mxu0  ;;  %v10949_v63 = vor.u32 %v13476_v42, %v10946_v19  ;;  %v12162_v49 = vld [vmem:[#allocation12 + $0x9e8] sm:$0xf0] }
 0x455   :  { %7933 = vmatpush.bf16.msra.mxu1 %v11233_v34  ;;  %v13840_v7 = vld [vmem:[#allocation12 + $0xba4] sm:$0xf0] }
 0x456   :  { %7942 = vmatpush.bf16.msra.mxu2 %v11617_v9  ;;  %7959 = vmatpush.bf16.msrb.mxu3 %v11745_v51  ;;  %v12896_v43 = vld [vmem:[#allocation12 + $0xf88] sm:$0xf]  ;;  %v12385_v6 = vor.u32 %v13840_v7, %v12384_v24  ;;  %v13468_v7 = vld [vmem:[#allocation12 + $0xc] sm:$0xf] }
 0x457   :  { %8020 = vmatpush.bf16.msrb.mxu0 %v11109_v17  ;;  %v13968_v26 = vld [vmem:[#allocation12 + $0xfa4] sm:$0xf0] }
 0x458   :  { %v11488_v47 = vld [vmem:[#allocation12 + $0x488] sm:$0xf]  ;;  %v12897_v35 = vor.u32 %v13968_v26, %v12896_v43  ;;  %v10914_v43 = vld [vmem:[#allocation12 + $0x28] sm:$0xf0] }
 0x459   :  { %7934 = vmatpush.bf16.msra.mxu1 %v11201_v44  ;;  %v13616_v56 = vld [vmem:[#allocation12 + $0x4a4] sm:$0xf0]  ;;  %v13780_v26 = vld [vmem:[#allocation12 + $0x9cc] sm:$0xf] }
 0x45a   :  { %7943 = vmatpush.bf16.msra.mxu2 %v11585_v55  ;;  %7960 = vmatpush.bf16.msrb.mxu3 %v11713_v45  ;;  %v12352_v48 = vld [vmem:[#allocation12 + $0xb48] sm:$0xf]  ;;  %v11489_v34 = vor.u32 %v13616_v56, %v11488_v47  ;;  %v10917_v56 = vor.u32 %v13468_v7, %v10914_v43 }
 0x45b   :  { %8021 = vmatpush.bf16.msrb.mxu0 %v11077_v59  ;;  %v13832_v54 = vld [vmem:[#allocation12 + $0xb64] sm:$0xf0] }
 0x45c   :  { %v12864_v11 = vld [vmem:[#allocation12 + $0xf48] sm:$0xf]  ;;  %v12353_v9 = vor.u32 %v13832_v54, %v12352_v48  ;;  %v14979_v54 = vpop.f32.mrf.mxu0 }
 0x45d   :  { %7935 = vmatpush.bf16.msra.mxu1 %v11169_v4  ;;  %v13960_v62 = vld [vmem:[#allocation12 + $0xf64] sm:$0xf0] }
 0x45e   :  { %7944 = vmatpush.bf16.msra.mxu2 %v11553_v39  ;;  %7961 = vmatpush.bf16.msrb.mxu3 %v11681_v33  ;;  %v11456_v10 = vld [vmem:[#allocation12 + $0x448] sm:$0xf]  ;;  %v12865_v28 = vor.u32 %v13960_v62, %v12864_v11  ;;  %v12165_v11 = vor.u32 %v13780_v26, %v12162_v49  ;;  %v13572_v26 = vld [vmem:[#allocation12 + $0x34c] sm:$0xf] }
 0x45f   :  { %v13608_v51 = vld [vmem:[#allocation12 + $0x464] sm:$0xf0]  ;;  %8022 = vmatpush.bf16.msrb.mxu0 %v11045_v21  ;;  %v11330_v49 = vld [vmem:[#allocation12 + $0x368] sm:$0xf0] }
 0x460   :  { %7936 = vmatmul.bf16.vlgmr.msra.gmra.mxu1 %v14946_v14  ;;  %v12320_v61 = vld [vmem:[#allocation12 + $0xb08] sm:$0xf]  ;;  %v11457_v29 = vor.u32 %v13608_v51, %v11456_v10 }
 0x461   :  { %7980 = vmatpush.bf16.msrb.mxu1 %v12417_v1  ;;  %7962 = vmatmul.bf16.vlgmr.msrb.gmra.mxu3 %v14948_v46  ;;  %v13824_v3 = vld [vmem:[#allocation12 + $0xb24] sm:$0xf0] }
 0x462   :  { %8006 = vmatpush.bf16.msra.mxu3 %v12929_v32  ;;  %7945 = vmatpush.bf16.msra.mxu2 %v11521_v25  ;;  %v12832_v18 = vld [vmem:[#allocation12 + $0xf08] sm:$0xf]  ;;  %v12321_v55 = vor.u32 %v13824_v3, %v12320_v61 }
 0x463   :  { %v13952_v20 = vld [vmem:[#allocation12 + $0xf24] sm:$0xf0]  ;;  %8023 = vmatpush.bf16.msrb.mxu0 %v11013_v30 }
 0x464   :  { %v11424_v44 = vld [vmem:[#allocation12 + $0x408] sm:$0xf]  ;;  %v12833_v45 = vor.u32 %v13952_v20, %v12832_v18 }
 0x465   :  { %7981 = vmatpush.bf16.msrb.mxu1 %v12385_v6  ;;  %v13600_v41 = vld [vmem:[#allocation12 + $0x424] sm:$0xf0] }
 0x466   :  { %8007 = vmatpush.bf16.msra.mxu3 %v12897_v35  ;;  %7946 = vmatpush.bf16.msra.mxu2 %v11489_v34  ;;  %v12288_v13 = vld [vmem:[#allocation12 + $0xac8] sm:$0xf]  ;;  %v11425_v40 = vor.u32 %v13600_v41, %v11424_v44  ;;  %v12130_v34 = vld [vmem:[#allocation12 + $0x9a8] sm:$0xf0] }
 0x467   :  { %v13816_v58 = vld [vmem:[#allocation12 + $0xae4] sm:$0xf0]  ;;  %8024 = vmatpush.bf16.msrb.mxu0 %v10981_v8  ;;  %v12133_v23 = vor.u32 %v13772_v5, %v12130_v34  ;;  %v13716_v44 = vld [vmem:[#allocation12 + $0x7cc] sm:$0xf]  ;;  %v14982_v8 = vld [vmem:[#allocation13] sm:$0xff] }
 0x468   :  { %v12672_v2 = vld [vmem:[#allocation12 + $0xdc8] sm:$0xf]  ;;  %v12289_v16 = vor.u32 %v13816_v58, %v12288_v13  ;;  %v13764_v41 = vld [vmem:[#allocation12 + $0x94c] sm:$0xf] }
 0x469   :  { %7982 = vmatpush.bf16.msrb.mxu1 %v12353_v9  ;;  %v13912_v31 = vld [vmem:[#allocation12 + $0xde4] sm:$0xf0]  ;;  %v12098_v13 = vld [vmem:[#allocation12 + $0x968] sm:$0xf0] }
 0x46a   :  { %8008 = vmatpush.bf16.msra.mxu3 %v12865_v28  ;;  %v12800_v17 = vld [vmem:[#allocation12 + $0xec8] sm:$0xf]  ;;  %7947 = vmatpush.bf16.msra.mxu2 %v11457_v29  ;;  %v12673_v4 = vor.u32 %v13912_v31, %v12672_v2  ;;  %v11394_v29 = vld [vmem:[#allocation12 + $0x3e8] sm:$0xf0]  ;;  %v12101_v19 = vor.u32 %v13764_v41, %v12098_v13 }
 0x46b   :  { %v13944_v50 = vld [vmem:[#allocation12 + $0xee4] sm:$0xf0]  ;;  %8025 = vmatpush.bf16.msrb.mxu0 %v10949_v63  ;;  %v11397_v31 = vor.u32 %v13588_v36, %v11394_v29  ;;  %v13564_v34 = vld [vmem:[#allocation12 + $0x30c] sm:$0xf] }
 0x46c   :  { %v12256_v39 = vld [vmem:[#allocation12 + $0xa88] sm:$0xf]  ;;  %v12801_v1 = vor.u32 %v13944_v50, %v12800_v17  ;;  %v7770_v50 = vpop.f32.mrf.mxu0  ;;  %v13556_v36 = vld [vmem:[#allocation12 + $0x2cc] sm:$0xf] }
 0x46d   :  { %7983 = vmatpush.bf16.msrb.mxu1 %v12321_v55  ;;  %v13808_v33 = vld [vmem:[#allocation12 + $0xaa4] sm:$0xf0]  ;;  %v11906_v55 = vld [vmem:[#allocation12 + $0x7e8] sm:$0xf0] }
 0x46e   :  { %8009 = vmatpush.bf16.msra.mxu3 %v12833_v45  ;;  %v12640_v52 = vld [vmem:[#allocation12 + $0xd88] sm:$0xf]  ;;  %7948 = vmatpush.bf16.msra.mxu2 %v11425_v40  ;;  %v12257_v0 = vor.u32 %v13808_v33, %v12256_v39  ;;  %v11909_v42 = vor.u32 %v13716_v44, %v11906_v55  ;;  %v13580_v40 = vld [vmem:[#allocation12 + $0x38c] sm:$0xf] }
 0x46f   :  { %v13904_v32 = vld [vmem:[#allocation12 + $0xda4] sm:$0xf0]  ;;  %8026 = vmatpush.bf16.msrb.mxu0 %v10917_v56  ;;  %v11874_v39 = vld [vmem:[#allocation12 + $0x7a8] sm:$0xf0] }
 0x470   :  { %v12768_v59 = vld [vmem:[#allocation12 + $0xe88] sm:$0xf]  ;;  %v12641_v25 = vor.u32 %v13904_v32, %v12640_v52  ;;  %v13756_v33 = vld [vmem:[#allocation12 + $0x90c] sm:$0xf]  ;;  %v5131_v52 = vperm.slane %v14982_v8, 0 }
 0x471   :  { %v13936_v24 = vld [vmem:[#allocation12 + $0xea4] sm:$0xf0]  ;;  %7984 = vmatpush.bf16.msrb.mxu1 %v12289_v16  ;;  %7949 = vmatmul.bf16.vlgmr.msra.gmra.mxu2 %v14956_v22  ;;  %v11362_v16 = vld [vmem:[#allocation12 + $0x3a8] sm:$0xf0] }
 0x472   :  { %7993 = vmatpush.bf16.msrb.mxu2 %v12673_v4  ;;  %v12224_v6 = vld [vmem:[#allocation12 + $0xa48] sm:$0xf]  ;;  %8010 = vmatpush.bf16.msra.mxu3 %v12801_v1  ;;  %v12769_v47 = vor.u32 %v13936_v24, %v12768_v59  ;;  %v13708_v4 = vld [vmem:[#allocation12 + $0x78c] sm:$0xf]  ;;  %v11365_v32 = vor.u32 %v13580_v40, %v11362_v16 }
 0x473   :  { %v13800_v35 = vld [vmem:[#allocation12 + $0xa64] sm:$0xf0]  ;;  %8071 = vmatpush.bf16.msra.mxu0 %v12165_v11  ;;  %v12066_v1 = vld [vmem:[#allocation12 + $0x928] sm:$0xf0]  ;;  %v11877_v7 = vor.u32 %v13708_v4, %v11874_v39 }
 0x474   :  { %v12608_v21 = vld [vmem:[#allocation12 + $0xd48] sm:$0xf]  ;;  %v12225_v9 = vor.u32 %v13800_v35, %v12224_v6  ;;  %8027 = vmatmul.bf16.vlgmr.msrb.gmra.mxu0 %v14937_v12  ;;  %v12069_v43 = vor.u32 %v13756_v33, %v12066_v1  ;;  %v13748_v6 = vld [vmem:[#allocation12 + $0x8cc] sm:$0xf]  ;;  %v7717_v35 = vadd.f32 %v14975_v38, %v5131_v52 }
 0x475   :  { %v13896_v48 = vld [vmem:[#allocation12 + $0xd64] sm:$0xf0]  ;;  %7985 = vmatpush.bf16.msrb.mxu1 %v12257_v0  ;;  %v13700_v0 = vld [vmem:[#allocation12 + $0x74c] sm:$0xf] }
 0x476   :  { %v12736_v62 = vld [vmem:[#allocation12 + $0xe48] sm:$0xf]  ;;  %7994 = vmatpush.bf16.msrb.mxu2 %v12641_v25  ;;  %v12609_v10 = vor.u32 %v13896_v48, %v12608_v21  ;;  %8011 = vmatpush.bf16.msra.mxu3 %v12769_v47  ;;  %v11842_v25 = vld [vmem:[#allocation12 + $0x768] sm:$0xf0]  ;;  %v11333_v21 = vor.u32 %v13572_v26, %v11330_v49 }
 0x477   :  { %v13928_v27 = vld [vmem:[#allocation12 + $0xe64] sm:$0xf0]  ;;  %8072 = vmatpush.bf16.msra.mxu0 %v12133_v23  ;;  %v12034_v47 = vld [vmem:[#allocation12 + $0x8e8] sm:$0xf0] }
 0x478   :  { %v12192_v51 = vld [vmem:[#allocation12 + $0xa08] sm:$0xf]  ;;  %v12737_v61 = vor.u32 %v13928_v27, %v12736_v62  ;;  %v14989_v62 = vpop.f32.mrf.mxu0  ;;  %v11845_v27 = vor.u32 %v13700_v0, %v11842_v25  ;;  %v12037_v5 = vor.u32 %v13748_v6, %v12034_v47  ;;  %v11266_v29 = vld [vmem:[#allocation12 + $0x2e8] sm:$0xf0] }
 0x479   :  { %v13792_v28 = vld [vmem:[#allocation12 + $0xa24] sm:$0xf0]  ;;  %7986 = vmatpush.bf16.msrb.mxu1 %v12225_v9  ;;  %v11298_v9 = vld [vmem:[#allocation12 + $0x328] sm:$0xf0] }
 0x47a   :  { %v12576_v30 = vld [vmem:[#allocation12 + $0xd08] sm:$0xf]  ;;  %7995 = vmatpush.bf16.msrb.mxu2 %v12609_v10  ;;  %v12193_v58 = vor.u32 %v13792_v28, %v12192_v51  ;;  %8012 = vmatpush.bf16.msra.mxu3 %v12737_v61  ;;  %v13692_v10 = vld [vmem:[#allocation12 + $0x70c] sm:$0xf] }
 0x47b   :  { %v13888_v3 = vld [vmem:[#allocation12 + $0xd24] sm:$0xf0]  ;;  %8073 = vmatpush.bf16.msra.mxu0 %v12101_v19  ;;  %v11810_v51 = vld [vmem:[#allocation12 + $0x728] sm:$0xf0] }
 0x47c   :  { %v12704_v18 = vld [vmem:[#allocation12 + $0xe08] sm:$0xf]  ;;  %v12577_v45 = vor.u32 %v13888_v3, %v12576_v30  ;;  %v13740_v28 = vld [vmem:[#allocation12 + $0x88c] sm:$0xf]  ;;  %v11813_v44 = vor.u32 %v13692_v10, %v11810_v51 }
 0x47d   :  { %v13920_v20 = vld [vmem:[#allocation12 + $0xe24] sm:$0xf0]  ;;  %7987 = vmatpush.bf16.msrb.mxu1 %v12193_v58  ;;  %v12002_v30 = vld [vmem:[#allocation12 + $0x8a8] sm:$0xf0]  ;;  %v7729_v61 = vpop.f32.mrf.mxu1 }
 0x47e   :  { %v12705_v2 = vor.u32 %v13920_v20, %v12704_v18  ;;  %v12544_v17 = vld [vmem:[#allocation12 + $0xcc8] sm:$0xf]  ;;  %7996 = vmatpush.bf16.msrb.mxu2 %v12577_v45  ;;  %v14991_v18 = vadd.f32 %v7729_v61, %v7717_v35  ;;  %v11301_v20 = vor.u32 %v13564_v34, %v11298_v9  ;;  %v12005_v55 = vor.u32 %v13740_v28, %v12002_v30  ;;  %v13652_v41 = vld [vmem:[#allocation12 + $0x5cc] sm:$0xf] }
 0x47f   :  { %v13880_v57 = vld [vmem:[#allocation12 + $0xce4] sm:$0xf0]  ;;  %8074 = vmatpush.bf16.msra.mxu0 %v12069_v43  ;;  %v11650_v13 = vld [vmem:[#allocation12 + $0x5e8] sm:$0xf0]  ;;  %v13529_v43 = vld [vmem:[#allocation12 + $0x1ec] sm:$0xf0] }
 0x480   :  { %v12545_v63 = vor.u32 %v13880_v57, %v12544_v17  ;;  %8013 = vmatpush.bf16.msra.mxu3 %v12705_v2  ;;  %v12512_v59 = vld [vmem:[#allocation12 + $0xc88] sm:$0xf]  ;;  %7988 = vmatmul.bf16.vlgmr.msrb.gmra.mxu1 %v14954_v15  ;;  %v13684_v58 = vld [vmem:[#allocation12 + $0x6cc] sm:$0xf]  ;;  %v11269_v57 = vor.u32 %v13556_v36, %v11266_v29  ;;  %v11653_v50 = vor.u32 %v13652_v41, %v11650_v13  ;;  %v7822_v40 = vpop.f32.mrf.mxu0  ;;  %v11080_v13 = vld [vmem:[#allocation12 + $0x150] sm:$0xf] }
 0x481   :  { %8032 = vmatpush.bf16.msra.mxu1 %v11397_v31  ;;  %v13872_v24 = vld [vmem:[#allocation12 + $0xca4] sm:$0xf0]  ;;  %v11778_v45 = vld [vmem:[#allocation12 + $0x6e8] sm:$0xf0] }
 0x482   :  { %7997 = vmatpush.bf16.msrb.mxu2 %v12545_v63  ;;  %v12513_v56 = vor.u32 %v13872_v24, %v12512_v59  ;;  %v12480_v48 = vld [vmem:[#allocation12 + $0xc48] sm:$0xf]  ;;  %v13732_v2 = vld [vmem:[#allocation12 + $0x84c] sm:$0xf]  ;;  %v11781_v4 = vor.u32 %v13684_v58, %v11778_v45  ;;  %v13513_v58 = vld [vmem:[#allocation12 + $0x16c] sm:$0xf0] }
 0x483   :  { %8014 = vmatmul.bf16.vlgmr.msra.gmra.mxu3 %v14958_v60  ;;  %v13864_v11 = vld [vmem:[#allocation12 + $0xc64] sm:$0xf0]  ;;  %8075 = vmatpush.bf16.msra.mxu0 %v12037_v5  ;;  %v11970_v31 = vld [vmem:[#allocation12 + $0x868] sm:$0xf0]  ;;  %v14993_v16 = vpop.f32.mrf.mxu3  ;;  %v13521_v5 = vld [vmem:[#allocation12 + $0x1ac] sm:$0xf0] }
 0x484   :  { %8058 = vmatpush.bf16.msrb.mxu3 %v11909_v42  ;;  %v12481_v3 = vor.u32 %v13864_v11, %v12480_v48  ;;  %v12448_v38 = vld [vmem:[#allocation12 + $0xc08] sm:$0xf]  ;;  %v13548_v42 = vld [vmem:[#allocation12 + $0x28c] sm:$0xf]  ;;  %v11973_v39 = vor.u32 %v13732_v2, %v11970_v31 }
 0x485   :  { %8033 = vmatpush.bf16.msra.mxu1 %v11365_v32  ;;  %v13856_v23 = vld [vmem:[#allocation12 + $0xc24] sm:$0xf0]  ;;  %v11234_v19 = vld [vmem:[#allocation12 + $0x2a8] sm:$0xf0]  ;;  %v7731_v24 = vpop.f32.mrf.mxu1 }
 0x486   :  { %7998 = vmatpush.bf16.msrb.mxu2 %v12513_v56  ;;  %v12449_v17 = vor.u32 %v13856_v23, %v12448_v38  ;;  %v13644_v33 = vld [vmem:[#allocation12 + $0x58c] sm:$0xf]  ;;  %v11237_v26 = vor.u32 %v13548_v42, %v11234_v19  ;;  %v11081_v19 = vor.u32 %v13513_v58, %v11080_v13 }
 0x487   :  { %8076 = vmatpush.bf16.msra.mxu0 %v12005_v55  ;;  %v11618_v1 = vld [vmem:[#allocation12 + $0x5a8] sm:$0xf0] }
 0x488   :  { %8059 = vmatpush.bf16.msrb.mxu3 %v11877_v7  ;;  %v13676_v63 = vld [vmem:[#allocation12 + $0x68c] sm:$0xf]  ;;  %v11144_v7 = vld [vmem:[#allocation12 + $0x1d0] sm:$0xf]  ;;  %v11621_v49 = vor.u32 %v13644_v33, %v11618_v1 }
 0x489   :  { %8034 = vmatpush.bf16.msra.mxu1 %v11333_v21  ;;  %v11746_v52 = vld [vmem:[#allocation12 + $0x6a8] sm:$0xf0]  ;;  %v11145_v21 = vor.u32 %v13529_v43, %v11144_v7  ;;  %v11048_v1 = vld [vmem:[#allocation12 + $0x110] sm:$0xf] }
 0x48a   :  { %7999 = vmatpush.bf16.msrb.mxu2 %v12481_v3  ;;  %v13724_v32 = vld [vmem:[#allocation12 + $0x80c] sm:$0xf]  ;;  %v11749_v25 = vor.u32 %v13676_v63, %v11746_v52  ;;  %v13505_v63 = vld [vmem:[#allocation12 + $0x12c] sm:$0xf0] }
 0x48b   :  { %v11938_v59 = vld [vmem:[#allocation12 + $0x828] sm:$0xf0]  ;;  %8077 = vmatpush.bf16.msra.mxu0 %v11973_v39  ;;  %v7757_v30 = vpop.f32.mrf.mxu3 }
 0x48c   :  { %8060 = vmatpush.bf16.msrb.mxu3 %v11845_v27  ;;  %v13540_v0 = vld [vmem:[#allocation12 + $0x24c] sm:$0xf]  ;;  %v11941_v6 = vor.u32 %v13724_v32, %v11938_v59  ;;  %v11112_v27 = vld [vmem:[#allocation12 + $0x190] sm:$0xf] }
 0x48d   :  { %8035 = vmatpush.bf16.msra.mxu1 %v11301_v20  ;;  %v11202_v47 = vld [vmem:[#allocation12 + $0x268] sm:$0xf0]  ;;  %v11113_v23 = vor.u32 %v13521_v5, %v11112_v27  ;;  %v14996_v55 = vpop.f32.mrf.mxu1  ;;  %v5132_v27 = vperm.slane %v14982_v8, 1 }
 0x48e   :  { %8000 = vmatpush.bf16.msrb.mxu2 %v12449_v17  ;;  %v13636_v56 = vld [vmem:[#allocation12 + $0x54c] sm:$0xf]  ;;  %v11205_v34 = vor.u32 %v13540_v0, %v11202_v47  ;;  %v11049_v0 = vor.u32 %v13505_v63, %v11048_v1 }
 0x48f   :  { %v11586_v35 = vld [vmem:[#allocation12 + $0x568] sm:$0xf0]  ;;  %8078 = vmatpush.bf16.msra.mxu0 %v11941_v6 }
 0x490   :  { %8061 = vmatpush.bf16.msrb.mxu3 %v11813_v44  ;;  %v13668_v48 = vld [vmem:[#allocation12 + $0x64c] sm:$0xf]  ;;  %v11589_v9 = vor.u32 %v13636_v56, %v11586_v35 }
 0x491   :  { %8036 = vmatpush.bf16.msra.mxu1 %v11269_v57  ;;  %8001 = vmatmul.bf16.vlgmr.msrb.gmra.mxu2 %v14964_v37  ;;  %v11714_v11 = vld [vmem:[#allocation12 + $0x668] sm:$0xf0] }
 0x492   :  { %8045 = vmatpush.bf16.msra.mxu2 %v11653_v50  ;;  %v13532_v10 = vld [vmem:[#allocation12 + $0x20c] sm:$0xf]  ;;  %v11717_v61 = vor.u32 %v13668_v48, %v11714_v11  ;;  %8079 = vmatmul.bf16.vlgmr.msra.gmra.mxu0 %v14940_v53  ;;  %v13497_v48 = vld [vmem:[#allocation12 + $0xec] sm:$0xf0] }
 0x493   :  { %v11170_v51 = vld [vmem:[#allocation12 + $0x228] sm:$0xf0]  ;;  %8123 = vmatpush.bf16.msrb.mxu0 %v11145_v21  ;;  %v7742_v32 = vpop.f32.mrf.mxu2  ;;  %v11016_v21 = vld [vmem:[#allocation12 + $0xd0] sm:$0xf] }
 0x494   :  { %8062 = vmatpush.bf16.msrb.mxu3 %v11781_v4  ;;  %v13628_v28 = vld [vmem:[#allocation12 + $0x50c] sm:$0xf]  ;;  %v11173_v45 = vor.u32 %v13532_v10, %v11170_v51  ;;  %v7743_v43 = vadd.f32 %v7742_v32, %v14991_v18  ;;  %v11017_v51 = vor.u32 %v13497_v48, %v11016_v21 }
 0x495   :  { %8037 = vmatpush.bf16.msra.mxu1 %v11237_v26  ;;  %v11554_v3 = vld [vmem:[#allocation12 + $0x528] sm:$0xf0]  ;;  %v15000_v26 = vpop.f32.mrf.mxu3  ;;  %v7783_v56 = vpop.f32.mrf.mxu1 }
 0x496   :  { %8046 = vmatpush.bf16.msra.mxu2 %v11621_v49  ;;  %v13660_v38 = vld [vmem:[#allocation12 + $0x60c] sm:$0xf]  ;;  %v11557_v2 = vor.u32 %v13628_v28, %v11554_v3  ;;  %v7756_v11 = vadd.f32 %v14993_v16, %v7743_v43  ;;  %v15007_v16 = vpop.f32.mrf.mxu0  ;;  %v13785_v56 = vld [vmem:[#allocation12 + $0x9ec] sm:$0xf0] }
 0x497   :  { %v11682_v20 = vld [vmem:[#allocation12 + $0x628] sm:$0xf0]  ;;  %8124 = vmatpush.bf16.msrb.mxu0 %v11113_v23  ;;  %v13489_v23 = vld [vmem:[#allocation12 + $0xac] sm:$0xf0] }
 0x498   :  { %8063 = vmatpush.bf16.msrb.mxu3 %v11749_v25  ;;  %v13844_v36 = vld [vmem:[#allocation12 + $0xbcc] sm:$0xf]  ;;  %v11685_v31 = vor.u32 %v13660_v38, %v11682_v20  ;;  %v7769_v3 = vadd.f32 %v14979_v54, %v7756_v11  ;;  %v10984_v20 = vld [vmem:[#allocation12 + $0x90] sm:$0xf] }
 0x499   :  { %v12418_v29 = vld [vmem:[#allocation12 + $0xbe8] sm:$0xf0]  ;;  %8038 = vmatpush.bf16.msra.mxu1 %v11205_v34 }
 0x49a   :  { %v13972_v44 = vld [vmem:[#allocation12 + $0xfcc] sm:$0xf]  ;;  %8047 = vmatpush.bf16.msra.mxu2 %v11589_v9  ;;  %v12421_v17 = vor.u32 %v13844_v36, %v12418_v29  ;;  %v7782_v29 = vadd.f32 %v14996_v55, %v7769_v3 }
 0x49b   :  { %v12930_v41 = vld [vmem:[#allocation12 + $0xfe8] sm:$0xf0]  ;;  %8125 = vmatpush.bf16.msrb.mxu0 %v11081_v19 }
 0x49c   :  { %8064 = vmatpush.bf16.msrb.mxu3 %v11717_v61  ;;  %v13620_v57 = vld [vmem:[#allocation12 + $0x4cc] sm:$0xf]  ;;  %v12933_v42 = vor.u32 %v13972_v44, %v12930_v41  ;;  %v7744_v44 = vpop.f32.mrf.mxu2 }
 0x49d   :  { %v11522_v50 = vld [vmem:[#allocation12 + $0x4e8] sm:$0xf0]  ;;  %8039 = vmatpush.bf16.msra.mxu1 %v11173_v45  ;;  %v7833_v55 = vpop.f32.mrf.mxu1 }
 0x49e   :  { %v13836_v40 = vld [vmem:[#allocation12 + $0xb8c] sm:$0xf]  ;;  %8048 = vmatpush.bf16.msra.mxu2 %v11557_v2  ;;  %v11525_v52 = vor.u32 %v13620_v57, %v11522_v50  ;;  %v7809_v2 = vpop.f32.mrf.mxu3 }
 0x49f   :  { %v12386_v4 = vld [vmem:[#allocation12 + $0xba8] sm:$0xf0]  ;;  %8126 = vmatpush.bf16.msrb.mxu0 %v11049_v0 }
 0x4a0   :  { %v13964_v39 = vld [vmem:[#allocation12 + $0xf8c] sm:$0xf]  ;;  %8065 = vmatpush.bf16.msrb.mxu3 %v11685_v31  ;;  %v12389_v59 = vor.u32 %v13836_v40, %v12386_v4  ;;  %8040 = vmatmul.bf16.vlgmr.msra.gmra.mxu1 %v14946_v14  ;;  %v10985_v31 = vor.u32 %v13489_v23, %v10984_v20  ;;  %v10952_v40 = vld [vmem:[#allocation12 + $0x50] sm:$0xf] }
 0x4a1   :  { %v12898_v33 = vld [vmem:[#allocation12 + $0xfa8] sm:$0xf0]  ;;  %8084 = vmatpush.bf16.msrb.mxu1 %v12421_v17  ;;  %v13481_v4 = vld [vmem:[#allocation12 + $0x6c] sm:$0xf0] }
 0x4a2   :  { %v13612_v24 = vld [vmem:[#allocation12 + $0x48c] sm:$0xf]  ;;  %v12901_v49 = vor.u32 %v13964_v39, %v12898_v33  ;;  %8049 = vmatpush.bf16.msra.mxu2 %v11525_v52  ;;  %v12136_v20 = vld [vmem:[#allocation12 + $0x990] sm:$0xf] }
 0x4a3   :  { %v11490_v7 = vld [vmem:[#allocation12 + $0x4a8] sm:$0xf0]  ;;  %8066 = vmatmul.bf16.vlgmr.msrb.gmra.mxu3 %v14948_v46  ;;  %8127 = vmatpush.bf16.msrb.mxu0 %v11017_v51  ;;  %v13777_v23 = vld [vmem:[#allocation12 + $0x9ac] sm:$0xf0] }
 0x4a4   :  { %8110 = vmatpush.bf16.msra.mxu3 %v12933_v42  ;;  %v13828_v25 = vld [vmem:[#allocation12 + $0xb4c] sm:$0xf]  ;;  %v11493_v18 = vor.u32 %v13612_v24, %v11490_v7  ;;  %v7821_v42 = vadd.f32 %v14989_v62, %v5132_v27  ;;  %v10953_v24 = vor.u32 %v13481_v4, %v10952_v40 }
 0x4a5   :  { %v12354_v6 = vld [vmem:[#allocation12 + $0xb68] sm:$0xf0]  ;;  %8085 = vmatpush.bf16.msrb.mxu1 %v12389_v59 }
 0x4a6   :  { %v13956_v47 = vld [vmem:[#allocation12 + $0xf4c] sm:$0xf]  ;;  %v12357_v5 = vor.u32 %v13828_v25, %v12354_v6  ;;  %8050 = vmatpush.bf16.msra.mxu2 %v11493_v18  ;;  %v15011_v33 = vadd.f32 %v7833_v55, %v7821_v42  ;;  %v10920_v25 = vld [vmem:[#allocation12 + $0x10] sm:$0xf]  ;;  %v15013_v27 = vpop.f32.mrf.mxu3 }
 0x4a7   :  { %v12866_v35 = vld [vmem:[#allocation12 + $0xf68] sm:$0xf0]  ;;  %8128 = vmatpush.bf16.msrb.mxu0 %v10985_v31  ;;  %v13473_v6 = vld [vmem:[#allocation12 + $0x2c] sm:$0xf0] }
 0x4a8   :  { %v13604_v34 = vld [vmem:[#allocation12 + $0x44c] sm:$0xf]  ;;  %8111 = vmatpush.bf16.msra.mxu3 %v12901_v49  ;;  %v12869_v10 = vor.u32 %v13956_v47, %v12866_v35  ;;  %v7874_v49 = vpop.f32.mrf.mxu0  ;;  %v12168_v47 = vld [vmem:[#allocation12 + $0x9d0] sm:$0xf]  ;;  %v7794_v35 = vpop.f32.mrf.mxu2 }
 0x4a9   :  { %v11458_v9 = vld [vmem:[#allocation12 + $0x468] sm:$0xf0]  ;;  %8086 = vmatpush.bf16.msrb.mxu1 %v12357_v5  ;;  %v7795_v18 = vadd.f32 %v7794_v35, %v7782_v29  ;;  %v13593_v31 = vld [vmem:[#allocation12 + $0x3ec] sm:$0xf0] }
 0x4aa   :  { %v13820_v28 = vld [vmem:[#allocation12 + $0xb0c] sm:$0xf]  ;;  %v11461_v8 = vor.u32 %v13604_v34, %v11458_v9  ;;  %v10921_v34 = vor.u32 %v13473_v6, %v10920_v25  ;;  %v13769_v42 = vld [vmem:[#allocation12 + $0x96c] sm:$0xf0] }
 0x4ab   :  { %v12322_v30 = vld [vmem:[#allocation12 + $0xb28] sm:$0xf0]  ;;  %8129 = vmatpush.bf16.msrb.mxu0 %v10953_v24  ;;  %v15017_v3 = vadd.f32 %v15000_v26, %v7795_v18  ;;  %v11400_v26 = vld [vmem:[#allocation12 + $0x3d0] sm:$0xf] }
 0x4ac   :  { %v13948_v61 = vld [vmem:[#allocation12 + $0xf0c] sm:$0xf]  ;;  %v12325_v41 = vor.u32 %v13820_v28, %v12322_v30  ;;  %8112 = vmatpush.bf16.msra.mxu3 %v12869_v10  ;;  %8051 = vmatpush.bf16.msra.mxu2 %v11461_v8  ;;  %v12169_v28 = vor.u32 %v13785_v56, %v12168_v47  ;;  %v11368_v24 = vld [vmem:[#allocation12 + $0x390] sm:$0xf] }
 0x4ad   :  { %v12834_v38 = vld [vmem:[#allocation12 + $0xf28] sm:$0xf0]  ;;  %v12072_v49 = vld [vmem:[#allocation12 + $0x910] sm:$0xf]  ;;  %vm8539_vm2 = vcmp.ge.f32.partialorder %v15017_v3, 0.0 }
 0x4ae   :  { %v13596_v36 = vld [vmem:[#allocation12 + $0x40c] sm:$0xf]  ;;  %v12837_v54 = vor.u32 %v13948_v61, %v12834_v38  ;;  %8087 = vmatpush.bf16.msrb.mxu1 %v12325_v41  ;;  %v7835_v38 = vpop.f32.mrf.mxu1  ;;  %v7861_v55 = vpop.f32.mrf.mxu3  ;;  %v11848_v18 = vld [vmem:[#allocation12 + $0x750] sm:$0xf] }
 0x4af   :  { %v11426_v13 = vld [vmem:[#allocation12 + $0x428] sm:$0xf0]  ;;  %8130 = vmatpush.bf16.msrb.mxu0 %v10921_v34  ;;  %v12040_v34 = vld [vmem:[#allocation12 + $0x8d0] sm:$0xf] }
 0x4b0   :  { %v13812_v58 = vld [vmem:[#allocation12 + $0xacc] sm:$0xf]  ;;  %v11429_v39 = vor.u32 %v13596_v36, %v11426_v13  ;;  %8113 = vmatpush.bf16.msra.mxu3 %v12837_v54  ;;  %v12137_v54 = vor.u32 %v13777_v23, %v12136_v20  ;;  %v13689_v55 = vld [vmem:[#allocation12 + $0x6ec] sm:$0xf0] }
 0x4b1   :  { %v12290_v45 = vld [vmem:[#allocation12 + $0xae8] sm:$0xf0]  ;;  %v15023_v20 = vpop.f32.mrf.mxu0 }
 0x4b2   :  { %v13908_v17 = vld [vmem:[#allocation12 + $0xdcc] sm:$0xf]  ;;  %v12293_v1 = vor.u32 %v13812_v58, %v12290_v45  ;;  %8052 = vmatpush.bf16.msra.mxu2 %v11429_v39  ;;  %8131 = vmatmul.bf16.vlgmr.msrb.gmra.mxu0 %v14937_v12 }
 0x4b3   :  { %v12674_v57 = vld [vmem:[#allocation12 + $0xde8] sm:$0xf0]  ;;  %8175 = vmatpush.bf16.msra.mxu0 %v12169_v28 }
 0x4b4   :  { %v13940_v50 = vld [vmem:[#allocation12 + $0xecc] sm:$0xf]  ;;  %v12677_v63 = vor.u32 %v13908_v17, %v12674_v57  ;;  %8088 = vmatpush.bf16.msrb.mxu1 %v12293_v1  ;;  %v11912_v17 = vld [vmem:[#allocation12 + $0x7d0] sm:$0xf]  ;;  %v11401_v1 = vor.u32 %v13593_v31, %v11400_v26 }
 0x4b5   :  { %v12802_v19 = vld [vmem:[#allocation12 + $0xee8] sm:$0xf0]  ;;  %8053 = vmatmul.bf16.vlgmr.msra.gmra.mxu2 %v14956_v22  ;;  %v13721_v57 = vld [vmem:[#allocation12 + $0x7ec] sm:$0xf0] }
 0x4b6   :  { %v13804_v52 = vld [vmem:[#allocation12 + $0xa8c] sm:$0xf]  ;;  %v12805_v59 = vor.u32 %v13940_v50, %v12802_v19  ;;  %8097 = vmatpush.bf16.msrb.mxu2 %v12677_v63  ;;  %v12104_v50 = vld [vmem:[#allocation12 + $0x950] sm:$0xf]  ;;  %v7796_v19 = vpop.f32.mrf.mxu2 }
 0x4b7   :  { %v12258_v32 = vld [vmem:[#allocation12 + $0xaa8] sm:$0xf0]  ;;  %8176 = vmatpush.bf16.msra.mxu0 %v12137_v54  ;;  %v11656_v19 = vld [vmem:[#allocation12 + $0x5d0] sm:$0xf] }
 0x4b8   :  { %v13900_v7 = vld [vmem:[#allocation12 + $0xd8c] sm:$0xf]  ;;  %v12261_v21 = vor.u32 %v13804_v52, %v12258_v32  ;;  %8114 = vmatpush.bf16.msra.mxu3 %v12805_v59  ;;  %v11913_v32 = vor.u32 %v13721_v57, %v11912_v17  ;;  %v12105_v59 = vor.u32 %v13769_v42, %v12104_v50  ;;  %v13561_v17 = vld [vmem:[#allocation12 + $0x2ec] sm:$0xf0] }
 0x4b9   :  { %v12642_v43 = vld [vmem:[#allocation12 + $0xda8] sm:$0xf0] }
 0x4ba   :  { %v13932_v62 = vld [vmem:[#allocation12 + $0xe8c] sm:$0xf]  ;;  %v12645_v48 = vor.u32 %v13900_v7, %v12642_v43  ;;  %8089 = vmatpush.bf16.msrb.mxu1 %v12261_v21  ;;  %v13585_v7 = vld [vmem:[#allocation12 + $0x3ac] sm:$0xf0] }
 0x4bb   :  { %v12770_v0 = vld [vmem:[#allocation12 + $0xea8] sm:$0xf0]  ;;  %v11880_v43 = vld [vmem:[#allocation12 + $0x790] sm:$0xf]  ;;  %v11369_v6 = vor.u32 %v13585_v7, %v11368_v24  ;;  %8177 = vmatpush.bf16.msra.mxu0 %v12105_v59 }
 0x4bc   :  { %v13796_v11 = vld [vmem:[#allocation12 + $0xa4c] sm:$0xf]  ;;  %v12773_v5 = vor.u32 %v13932_v62, %v12770_v0  ;;  %8098 = vmatpush.bf16.msrb.mxu2 %v12645_v48  ;;  %v13713_v62 = vld [vmem:[#allocation12 + $0x7ac] sm:$0xf0] }
 0x4bd   :  { %v12226_v9 = vld [vmem:[#allocation12 + $0xa68] sm:$0xf0]  ;;  %v13761_v0 = vld [vmem:[#allocation12 + $0x92c] sm:$0xf0]  ;;  %v11881_v35 = vor.u32 %v13713_v62, %v11880_v43 }
 0x4be   :  { %v13892_v10 = vld [vmem:[#allocation12 + $0xd4c] sm:$0xf]  ;;  %v12229_v8 = vor.u32 %v13796_v11, %v12226_v9  ;;  %8115 = vmatpush.bf16.msra.mxu3 %v12773_v5  ;;  %v12073_v21 = vor.u32 %v13761_v0, %v12072_v49  ;;  %v11336_v48 = vld [vmem:[#allocation12 + $0x350] sm:$0xf] }
 0x4bf   :  { %v12610_v51 = vld [vmem:[#allocation12 + $0xd68] sm:$0xf0]  ;;  %v13577_v11 = vld [vmem:[#allocation12 + $0x36c] sm:$0xf0] }
 0x4c0   :  { %v13924_v30 = vld [vmem:[#allocation12 + $0xe4c] sm:$0xf]  ;;  %v12613_v36 = vor.u32 %v13892_v10, %v12610_v51  ;;  %8090 = vmatpush.bf16.msrb.mxu1 %v12229_v8  ;;  %v13705_v5 = vld [vmem:[#allocation12 + $0x76c] sm:$0xf0]  ;;  %v7846_v51 = vpop.f32.mrf.mxu2  ;;  %v11337_v28 = vor.u32 %v13577_v11, %v11336_v48  ;;  %8178 = vmatpush.bf16.msra.mxu0 %v12073_v21  ;;  %v13525_v21 = vld [vmem:[#allocation12 + $0x1d4] sm:$0xf] }
 0x4c1   :  { %v12738_v61 = vld [vmem:[#allocation12 + $0xe68] sm:$0xf0]  ;;  %v13753_v9 = vld [vmem:[#allocation12 + $0x8ec] sm:$0xf0]  ;;  %v7847_v38 = vadd.f32 %v7846_v51, %v15011_v33  ;;  %v11849_v23 = vor.u32 %v13705_v5, %v11848_v18  ;;  %v11146_v48 = vld [vmem:[#allocation12 + $0x1f0] sm:$0xf0] }
 0x4c2   :  { %v13788_v29 = vld [vmem:[#allocation12 + $0xa0c] sm:$0xf]  ;;  %v12741_v13 = vor.u32 %v13924_v30, %v12738_v61  ;;  %8099 = vmatpush.bf16.msrb.mxu2 %v12613_v36  ;;  %v12041_v8 = vor.u32 %v13753_v9, %v12040_v34  ;;  %v11304_v36 = vld [vmem:[#allocation12 + $0x310] sm:$0xf] }
 0x4c3   :  { %v12194_v44 = vld [vmem:[#allocation12 + $0xa28] sm:$0xf0]  ;;  %v11272_v33 = vld [vmem:[#allocation12 + $0x2d0] sm:$0xf] }
 0x4c4   :  { %v13884_v41 = vld [vmem:[#allocation12 + $0xd0c] sm:$0xf]  ;;  %v12197_v40 = vor.u32 %v13788_v29, %v12194_v44  ;;  %8116 = vmatpush.bf16.msra.mxu3 %v12741_v13  ;;  %v13569_v29 = vld [vmem:[#allocation12 + $0x32c] sm:$0xf0]  ;;  %8179 = vmatpush.bf16.msra.mxu0 %v12041_v8  ;;  %v11273_v59 = vor.u32 %v13561_v17, %v11272_v33 }
 0x4c5   :  { %v12578_v58 = vld [vmem:[#allocation12 + $0xd28] sm:$0xf0]  ;;  %v11816_v44 = vld [vmem:[#allocation12 + $0x710] sm:$0xf]  ;;  %v11305_v26 = vor.u32 %v13569_v29, %v11304_v36  ;;  %v13517_v36 = vld [vmem:[#allocation12 + $0x194] sm:$0xf] }
 0x4c6   :  { %v13916_v45 = vld [vmem:[#allocation12 + $0xe0c] sm:$0xf]  ;;  %v12581_v4 = vor.u32 %v13884_v41, %v12578_v58  ;;  %8091 = vmatpush.bf16.msrb.mxu1 %v12197_v40  ;;  %v13697_v41 = vld [vmem:[#allocation12 + $0x72c] sm:$0xf0]  ;;  %v11114_v29 = vld [vmem:[#allocation12 + $0x1b0] sm:$0xf0] }
 0x4c7   :  { %v12706_v2 = vld [vmem:[#allocation12 + $0xe28] sm:$0xf0]  ;;  %v12008_v13 = vld [vmem:[#allocation12 + $0x890] sm:$0xf]  ;;  %v11817_v50 = vor.u32 %v13697_v41, %v11816_v44  ;;  %v11117_v33 = vor.u32 %v13517_v36, %v11114_v29 }
 0x4c8   :  { %v12709_v39 = vor.u32 %v13916_v45, %v12706_v2  ;;  %v13876_v63 = vld [vmem:[#allocation12 + $0xccc] sm:$0xf]  ;;  %8100 = vmatpush.bf16.msrb.mxu2 %v12581_v4  ;;  %v13745_v58 = vld [vmem:[#allocation12 + $0x8ac] sm:$0xf0]  ;;  %v7860_v45 = vadd.f32 %v15013_v27, %v7847_v38 }
 0x4c9   :  { %v12546_v52 = vld [vmem:[#allocation12 + $0xce8] sm:$0xf0]  ;;  %8092 = vmatmul.bf16.vlgmr.msrb.gmra.mxu1 %v14954_v15  ;;  %v12009_v42 = vor.u32 %v13745_v58, %v12008_v13  ;;  %v13657_v40 = vld [vmem:[#allocation12 + $0x5ec] sm:$0xf0] }
 0x4ca   :  { %v12549_v25 = vor.u32 %v13876_v63, %v12546_v52  ;;  %8117 = vmatpush.bf16.msra.mxu3 %v12709_v39  ;;  %8136 = vmatpush.bf16.msra.mxu1 %v11401_v1  ;;  %v13868_v47 = vld [vmem:[#allocation12 + $0xc8c] sm:$0xf]  ;;  %v7873_v57 = vadd.f32 %v15007_v16, %v7860_v45  ;;  %v11784_v4 = vld [vmem:[#allocation12 + $0x6d0] sm:$0xf]  ;;  %v7885_v1 = vpop.f32.mrf.mxu1  ;;  %v11657_v24 = vor.u32 %v13657_v40, %v11656_v19  ;;  %v7926_v16 = vpop.f32.mrf.mxu0  ;;  %v13509_v19 = vld [vmem:[#allocation12 + $0x154] sm:$0xf] }
 0x4cb   :  { %v12514_v56 = vld [vmem:[#allocation12 + $0xca8] sm:$0xf0]  ;;  %v11976_v39 = vld [vmem:[#allocation12 + $0x850] sm:$0xf]  ;;  %8180 = vmatpush.bf16.msra.mxu0 %v12009_v42  ;;  %v11785_v62 = vor.u32 %v13689_v55, %v11784_v4  ;;  %v11082_v40 = vld [vmem:[#allocation12 + $0x170] sm:$0xf0] }
 0x4cc   :  { %8101 = vmatpush.bf16.msrb.mxu2 %v12549_v25  ;;  %v12517_v10 = vor.u32 %v13868_v47, %v12514_v56  ;;  %v13860_v30 = vld [vmem:[#allocation12 + $0xc4c] sm:$0xf]  ;;  %v13737_v27 = vld [vmem:[#allocation12 + $0x86c] sm:$0xf0]  ;;  %v15027_v52 = vadd.f32 %v7885_v1, %v7873_v57 }
 0x4cd   :  { %8118 = vmatmul.bf16.vlgmr.msra.gmra.mxu3 %v14958_v60  ;;  %v12482_v61 = vld [vmem:[#allocation12 + $0xc68] sm:$0xf0]  ;;  %v11240_v7 = vld [vmem:[#allocation12 + $0x290] sm:$0xf]  ;;  %v11977_v49 = vor.u32 %v13737_v27, %v11976_v39 }
 0x4ce   :  { %8162 = vmatpush.bf16.msrb.mxu3 %v11913_v32  ;;  %8137 = vmatpush.bf16.msra.mxu1 %v11369_v6  ;;  %v12485_v2 = vor.u32 %v13860_v30, %v12482_v61  ;;  %v13852_v54 = vld [vmem:[#allocation12 + $0xc0c] sm:$0xf]  ;;  %v7848_v32 = vpop.f32.mrf.mxu2  ;;  %v13553_v43 = vld [vmem:[#allocation12 + $0x2ac] sm:$0xf0]  ;;  %v15029_v30 = vpop.f32.mrf.mxu3  ;;  %v11149_v61 = vor.u32 %v13525_v21, %v11146_v48 }
 0x4cf   :  { %v12450_v31 = vld [vmem:[#allocation12 + $0xc28] sm:$0xf0]  ;;  %v11624_v0 = vld [vmem:[#allocation12 + $0x590] sm:$0xf]  ;;  %v11241_v11 = vor.u32 %v13553_v43, %v11240_v7  ;;  %8181 = vmatpush.bf16.msra.mxu0 %v11977_v49  ;;  %v13501_v49 = vld [vmem:[#allocation12 + $0x114] sm:$0xf] }
 0x4d0   :  { %8102 = vmatpush.bf16.msrb.mxu2 %v12517_v10  ;;  %v12453_v63 = vor.u32 %v13852_v54, %v12450_v31  ;;  %v13649_v25 = vld [vmem:[#allocation12 + $0x5ac] sm:$0xf0] }
 0x4d1   :  { %v11752_v6 = vld [vmem:[#allocation12 + $0x690] sm:$0xf]  ;;  %v11625_v18 = vor.u32 %v13649_v25, %v11624_v0  ;;  %v11050_v0 = vld [vmem:[#allocation12 + $0x130] sm:$0xf0] }
 0x4d2   :  { %8163 = vmatpush.bf16.msrb.mxu3 %v11881_v35  ;;  %8138 = vmatpush.bf16.msra.mxu1 %v11337_v28  ;;  %v13681_v47 = vld [vmem:[#allocation12 + $0x6ac] sm:$0xf0]  ;;  %v7887_v8 = vpop.f32.mrf.mxu1  ;;  %v11053_v21 = vor.u32 %v13501_v49, %v11050_v0  ;;  %v15041_v36 = vpop.f32.mrf.mxu0 }
 0x4d3   :  { %v11944_v56 = vld [vmem:[#allocation12 + $0x810] sm:$0xf]  ;;  %v11753_v34 = vor.u32 %v13681_v47, %v11752_v6 }
 0x4d4   :  { %8103 = vmatpush.bf16.msrb.mxu2 %v12485_v2  ;;  %v13729_v35 = vld [vmem:[#allocation12 + $0x82c] sm:$0xf0] }
 0x4d5   :  { %v11208_v5 = vld [vmem:[#allocation12 + $0x250] sm:$0xf]  ;;  %v11945_v9 = vor.u32 %v13729_v35, %v11944_v56 }
 0x4d6   :  { %8164 = vmatpush.bf16.msrb.mxu3 %v11849_v23  ;;  %8139 = vmatpush.bf16.msra.mxu1 %v11305_v26  ;;  %v13545_v10 = vld [vmem:[#allocation12 + $0x26c] sm:$0xf0]  ;;  %v7913_v32 = vpop.f32.mrf.mxu3 }
 0x4d7   :  { %v11592_v51 = vld [vmem:[#allocation12 + $0x550] sm:$0xf]  ;;  %v11209_v44 = vor.u32 %v13545_v10, %v11208_v5  ;;  %8182 = vmatpush.bf16.msra.mxu0 %v11945_v9  ;;  %v11018_v9 = vld [vmem:[#allocation12 + $0xf0] sm:$0xf0] }
 0x4d8   :  { %8104 = vmatpush.bf16.msrb.mxu2 %v12453_v63  ;;  %v13641_v28 = vld [vmem:[#allocation12 + $0x56c] sm:$0xf0] }
 0x4d9   :  { %v11720_v38 = vld [vmem:[#allocation12 + $0x650] sm:$0xf]  ;;  %v11593_v41 = vor.u32 %v13641_v28, %v11592_v51  ;;  %v15038_v51 = vstv %s15032_s23  ;;  %v7898_v28 = vpop.f32.mrf.mxu2 }
 0x4da   :  { %8165 = vmatpush.bf16.msrb.mxu3 %v11817_v50  ;;  %8140 = vmatpush.bf16.msra.mxu1 %v11273_v59  ;;  %v13673_v23 = vld [vmem:[#allocation12 + $0x66c] sm:$0xf0]  ;;  %v7899_v8 = vadd.f32 %v7898_v28, %v15027_v52 }
 0x4db   :  { %8105 = vmatmul.bf16.vlgmr.msrb.gmra.mxu2 %v14964_v37  ;;  %v11176_v13 = vld [vmem:[#allocation12 + $0x210] sm:$0xf]  ;;  %v11721_v2 = vor.u32 %v13673_v23, %v11720_v38  ;;  %8227 = vmatpush.bf16.msrb.mxu0 %v11149_v61 }
 0x4dc   :  { %8149 = vmatpush.bf16.msra.mxu2 %v11657_v24  ;;  %v13537_v58 = vld [vmem:[#allocation12 + $0x22c] sm:$0xf0]  ;;  %8183 = vmatmul.bf16.vlgmr.msra.gmra.mxu0 %v14940_v53  ;;  %v11085_v24 = vor.u32 %v13509_v19, %v11082_v40 }
 0x4dd   :  { %v11560_v45 = vld [vmem:[#allocation12 + $0x510] sm:$0xf]  ;;  %v11177_v4 = vor.u32 %v13537_v58, %v11176_v13 }
 0x4de   :  { %8166 = vmatpush.bf16.msrb.mxu3 %v11785_v62  ;;  %8141 = vmatpush.bf16.msra.mxu1 %v11241_v11  ;;  %v13633_v54 = vld [vmem:[#allocation12 + $0x52c] sm:$0xf0] }
 0x4df   :  { %v11688_v26 = vld [vmem:[#allocation12 + $0x610] sm:$0xf]  ;;  %v11561_v55 = vor.u32 %v13633_v54, %v11560_v45  ;;  %8228 = vmatpush.bf16.msrb.mxu0 %v11117_v33  ;;  %v10986_v54 = vld [vmem:[#allocation12 + $0xb0] sm:$0xf0] }
 0x4e0   :  { %8150 = vmatpush.bf16.msra.mxu2 %v11625_v18  ;;  %v13665_v31 = vld [vmem:[#allocation12 + $0x62c] sm:$0xf0] }
 0x4e1   :  { %v12424_v17 = vld [vmem:[#allocation12 + $0xbd0] sm:$0xf]  ;;  %v11689_v39 = vor.u32 %v13665_v31, %v11688_v26  ;;  %v8548_v26 = vmul.f32 %v15038_v51, %v15017_v3  ;;  %v7912_v31 = vadd.f32 %v15029_v30, %v7899_v8  ;;  %v13477_v30 = vld [vmem:[#allocation12 + $0x54] sm:$0xf] }
 0x4e2   :  { %8167 = vmatpush.bf16.msrb.mxu3 %v11753_v34  ;;  %v13849_v57 = vld [vmem:[#allocation12 + $0xbec] sm:$0xf0]  ;;  %8142 = vmatpush.bf16.msra.mxu1 %v11209_v44  ;;  %v13493_v34 = vld [vmem:[#allocation12 + $0xd4] sm:$0xf] }
 0x4e3   :  { %v12936_v50 = vld [vmem:[#allocation12 + $0xfd0] sm:$0xf]  ;;  %v12425_v27 = vor.u32 %v13849_v57, %v12424_v17  ;;  %8229 = vmatpush.bf16.msrb.mxu0 %v11085_v24  ;;  %v11021_v44 = vor.u32 %v13493_v34, %v11018_v9  ;;  %vm8540_vm3 = vcmp.ge.f32.partialorder %v7912_v31, 0.0  ;;  %v8549_v40 = vmul.f32 %v15038_v51, %v7912_v31  ;;  %v15055_v24 = vpop.f32.mrf.mxu1  ;;  %v12170_v34 = vld [vmem:[#allocation12 + $0x9f0] sm:$0xf0] }
 0x4e4   :  { %v13977_v42 = vld [vmem:[#allocation12 + $0xfec] sm:$0xf0]  ;;  %8151 = vmatpush.bf16.msra.mxu2 %v11593_v41  ;;  %v15051_v32 = vsel %vm8539_vm2, %v15017_v3, %v8548_v26 }
 0x4e5   :  { %v11528_v1 = vld [vmem:[#allocation12 + $0x4d0] sm:$0xf]  ;;  %v12937_v59 = vor.u32 %v13977_v42, %v12936_v50 }
 0x4e6   :  { %8168 = vmatpush.bf16.msrb.mxu3 %v11721_v2  ;;  %v13625_v63 = vld [vmem:[#allocation12 + $0x4ec] sm:$0xf0]  ;;  %8143 = vmatpush.bf16.msra.mxu1 %v11177_v4  ;;  %v13485_v2 = vld [vmem:[#allocation12 + $0x94] sm:$0xf] }
 0x4e7   :  { %v12392_v7 = vld [vmem:[#allocation12 + $0xb90] sm:$0xf]  ;;  %v11529_v25 = vor.u32 %v13625_v63, %v11528_v1  ;;  %8230 = vmatpush.bf16.msrb.mxu0 %v11053_v21  ;;  %v10954_v63 = vld [vmem:[#allocation12 + $0x70] sm:$0xf0] }
 0x4e8   :  { %v13841_v43 = vld [vmem:[#allocation12 + $0xbac] sm:$0xf0]  ;;  %8152 = vmatpush.bf16.msra.mxu2 %v11561_v55  ;;  %v10989_v55 = vor.u32 %v13485_v2, %v10986_v54  ;;  %v13773_v2 = vld [vmem:[#allocation12 + $0x994] sm:$0xf] }
 0x4e9   :  { %v12904_v16 = vld [vmem:[#allocation12 + $0xf90] sm:$0xf]  ;;  %v12393_v6 = vor.u32 %v13841_v43, %v12392_v7  ;;  %8144 = vmatmul.bf16.vlgmr.msra.gmra.mxu1 %v14946_v14  ;;  %v12138_v54 = vld [vmem:[#allocation12 + $0x9b0] sm:$0xf0] }
 0x4ea   :  { %v13969_v62 = vld [vmem:[#allocation12 + $0xfac] sm:$0xf0]  ;;  %8169 = vmatpush.bf16.msrb.mxu3 %v11689_v39  ;;  %8188 = vmatpush.bf16.msrb.mxu1 %v12425_v27 }
 0x4eb   :  { %v11496_v47 = vld [vmem:[#allocation12 + $0x490] sm:$0xf]  ;;  %v12905_v35 = vor.u32 %v13969_v62, %v12904_v16  ;;  %8231 = vmatpush.bf16.msrb.mxu0 %v11021_v44  ;;  %v7900_v16 = vpop.f32.mrf.mxu2  ;;  %v15059_v44 = vpop.f32.mrf.mxu3 }
 0x4ec   :  { %v13617_v56 = vld [vmem:[#allocation12 + $0x4ac] sm:$0xf0]  ;;  %8153 = vmatpush.bf16.msra.mxu2 %v11529_v25  ;;  %v15062_v16 = vld [vmem:[#allocation13] sm:$0xff] }
 0x4ed   :  { %v12360_v48 = vld [vmem:[#allocation12 + $0xb50] sm:$0xf]  ;;  %8170 = vmatmul.bf16.vlgmr.msrb.gmra.mxu3 %v14948_v46  ;;  %v11497_v10 = vor.u32 %v13617_v56, %v11496_v47  ;;  %v10957_v47 = vor.u32 %v13477_v30, %v10954_v63  ;;  %v12106_v30 = vld [vmem:[#allocation12 + $0x970] sm:$0xf0] }
 0x4ee   :  { %8214 = vmatpush.bf16.msra.mxu3 %v12937_v59  ;;  %v13833_v11 = vld [vmem:[#allocation12 + $0xb6c] sm:$0xf0]  ;;  %8189 = vmatpush.bf16.msrb.mxu1 %v12393_v6  ;;  %v15053_v59 = vsel %vm8540_vm3, %v7912_v31, %v8549_v40  ;;  %v7978_v6 = vpop.f32.mrf.mxu0  ;;  %v12141_v40 = vor.u32 %v13773_v2, %v12138_v54 }
 0x4ef   :  { %v12872_v18 = vld [vmem:[#allocation12 + $0xf50] sm:$0xf]  ;;  %v12361_v61 = vor.u32 %v13833_v11, %v12360_v48  ;;  %v8564_v43 = vmax.f32 %v15051_v32, %v15053_v59  ;;  %8232 = vmatpush.bf16.msrb.mxu0 %v10989_v55  ;;  %v13469_v11 = vld [vmem:[#allocation12 + $0x14] sm:$0xf]  ;;  %v10928_v32 = vld [vmem:[#allocation12 + $0x18] sm:$0xf] }
 0x4f0   :  { %v13961_v5 = vld [vmem:[#allocation12 + $0xf6c] sm:$0xf0]  ;;  %8154 = vmatpush.bf16.msra.mxu2 %v11497_v10  ;;  %v11402_v55 = vld [vmem:[#allocation12 + $0x3f0] sm:$0xf0]  ;;  %v13474_v59 = vld [vmem:[#allocation12 + $0x34] sm:$0xf0] }
 0x4f1   :  { %v11464_v38 = vld [vmem:[#allocation12 + $0x450] sm:$0xf]  ;;  %v12873_v29 = vor.u32 %v13961_v5, %v12872_v18  ;;  %v10922_v18 = vld [vmem:[#allocation12 + $0x30] sm:$0xf0] }
 0x4f2   :  { %v13609_v23 = vld [vmem:[#allocation12 + $0x46c] sm:$0xf0]  ;;  %8215 = vmatpush.bf16.msra.mxu3 %v12905_v35  ;;  %8190 = vmatpush.bf16.msrb.mxu1 %v12361_v61  ;;  %v13781_v5 = vld [vmem:[#allocation12 + $0x9d4] sm:$0xf] }
 0x4f3   :  { %v12328_v41 = vld [vmem:[#allocation12 + $0xb10] sm:$0xf]  ;;  %v11465_v52 = vor.u32 %v13609_v23, %v11464_v38  ;;  %8233 = vmatpush.bf16.msrb.mxu0 %v10957_v47  ;;  %v10925_v38 = vor.u32 %v13469_v11, %v10922_v18  ;;  %v11882_v11 = vld [vmem:[#allocation12 + $0x7b0] sm:$0xf0] }
 0x4f4   :  { %v13825_v13 = vld [vmem:[#allocation12 + $0xb2c] sm:$0xf0]  ;;  %v13757_v18 = vld [vmem:[#allocation12 + $0x914] sm:$0xf] }
 0x4f5   :  { %v12840_v58 = vld [vmem:[#allocation12 + $0xf10] sm:$0xf]  ;;  %v12329_v57 = vor.u32 %v13825_v13, %v12328_v41  ;;  %8155 = vmatpush.bf16.msra.mxu2 %v11465_v52  ;;  %v12173_v41 = vor.u32 %v13781_v5, %v12170_v34  ;;  %v12074_v5 = vld [vmem:[#allocation12 + $0x930] sm:$0xf0] }
 0x4f6   :  { %v13953_v45 = vld [vmem:[#allocation12 + $0xf2c] sm:$0xf0]  ;;  %8216 = vmatpush.bf16.msra.mxu3 %v12873_v29 }
 0x4f7   :  { %v11432_v33 = vld [vmem:[#allocation12 + $0x410] sm:$0xf]  ;;  %v12841_v4 = vor.u32 %v13953_v45, %v12840_v58  ;;  %8191 = vmatpush.bf16.msrb.mxu1 %v12329_v57  ;;  %v7939_v45 = vpop.f32.mrf.mxu1  ;;  %8234 = vmatpush.bf16.msrb.mxu0 %v10925_v38 }
 0x4f8   :  { %v13601_v17 = vld [vmem:[#allocation12 + $0x42c] sm:$0xf0]  ;;  %v12042_v45 = vld [vmem:[#allocation12 + $0x8f0] sm:$0xf0] }
 0x4f9   :  { %v12296_v50 = vld [vmem:[#allocation12 + $0xad0] sm:$0xf]  ;;  %v11433_v7 = vor.u32 %v13601_v17, %v11432_v33 }
 0x4fa   :  { %v13817_v42 = vld [vmem:[#allocation12 + $0xaec] sm:$0xf0]  ;;  %8217 = vmatpush.bf16.msra.mxu3 %v12841_v4  ;;  %v13589_v4 = vld [vmem:[#allocation12 + $0x3d4] sm:$0xf]  ;;  %8235 = vmatmul.bf16.vlgmr.msrb.gmra.mxu0 %v14937_v12 }
 0x4fb   :  { %v12680_v19 = vld [vmem:[#allocation12 + $0xdd0] sm:$0xf]  ;;  %v12297_v62 = vor.u32 %v13817_v42, %v12296_v50  ;;  %8156 = vmatpush.bf16.msra.mxu2 %v11433_v7  ;;  %8279 = vmatpush.bf16.msra.mxu0 %v12173_v41  ;;  %v13701_v41 = vld [vmem:[#allocation12 + $0x754] sm:$0xf] }
 0x4fc   :  { %v13913_v39 = vld [vmem:[#allocation12 + $0xdec] sm:$0xf0] }
 0x4fd   :  { %v12808_v27 = vld [vmem:[#allocation12 + $0xed0] sm:$0xf]  ;;  %v12681_v49 = vor.u32 %v13913_v39, %v12680_v19  ;;  %8192 = vmatpush.bf16.msrb.mxu1 %v12297_v62  ;;  %v13717_v39 = vld [vmem:[#allocation12 + $0x7d4] sm:$0xf]  ;;  %v5133_v62 = vperm.slane %v15062_v16, 2 }
 0x4fe   :  { %v13945_v1 = vld [vmem:[#allocation12 + $0xeec] sm:$0xf0]  ;;  %8157 = vmatmul.bf16.vlgmr.msra.gmra.mxu2 %v14956_v22 }
 0x4ff   :  { %v12264_v0 = vld [vmem:[#allocation12 + $0xa90] sm:$0xf]  ;;  %v12809_v3 = vor.u32 %v13945_v1, %v12808_v27  ;;  %8201 = vmatpush.bf16.msrb.mxu2 %v12681_v49  ;;  %v11914_v27 = vld [vmem:[#allocation12 + $0x7f0] sm:$0xf0]  ;;  %8280 = vmatpush.bf16.msra.mxu0 %v12141_v40 }
 0x500   :  { %v13809_v25 = vld [vmem:[#allocation12 + $0xaac] sm:$0xf0]  ;;  %v13765_v1 = vld [vmem:[#allocation12 + $0x954] sm:$0xf]  ;;  %v11917_v47 = vor.u32 %v13717_v39, %v11914_v27 }
 0x501   :  { %v12648_v56 = vld [vmem:[#allocation12 + $0xd90] sm:$0xf]  ;;  %v12265_v9 = vor.u32 %v13809_v25, %v12264_v0  ;;  %8218 = vmatpush.bf16.msra.mxu3 %v12809_v3  ;;  %v11405_v0 = vor.u32 %v13589_v4, %v11402_v55  ;;  %v7965_v3 = vpop.f32.mrf.mxu3  ;;  %v13693_v40 = vld [vmem:[#allocation12 + $0x714] sm:$0xf] }
 0x502   :  { %v13905_v35 = vld [vmem:[#allocation12 + $0xdac] sm:$0xf0]  ;;  %v13741_v4 = vld [vmem:[#allocation12 + $0x894] sm:$0xf] }
 0x503   :  { %v12776_v21 = vld [vmem:[#allocation12 + $0xe90] sm:$0xf]  ;;  %v12649_v10 = vor.u32 %v13905_v35, %v12648_v56  ;;  %8193 = vmatpush.bf16.msrb.mxu1 %v12265_v9  ;;  %v12109_v56 = vor.u32 %v13765_v1, %v12106_v30  ;;  %v13581_v35 = vld [vmem:[#allocation12 + $0x394] sm:$0xf] }
 0x504   :  { %v13937_v48 = vld [vmem:[#allocation12 + $0xeac] sm:$0xf0]  ;;  %v12010_v55 = vld [vmem:[#allocation12 + $0x8b0] sm:$0xf0] }
 0x505   :  { %v12232_v28 = vld [vmem:[#allocation12 + $0xa50] sm:$0xf]  ;;  %v12777_v61 = vor.u32 %v13937_v48, %v12776_v21  ;;  %8202 = vmatpush.bf16.msrb.mxu2 %v12649_v10  ;;  %v11370_v21 = vld [vmem:[#allocation12 + $0x3b0] sm:$0xf0]  ;;  %8281 = vmatpush.bf16.msra.mxu0 %v12109_v56 }
 0x506   :  { %v13801_v23 = vld [vmem:[#allocation12 + $0xa6c] sm:$0xf0]  ;;  %v13709_v48 = vld [vmem:[#allocation12 + $0x794] sm:$0xf]  ;;  %v11373_v9 = vor.u32 %v13581_v35, %v11370_v21  ;;  %v7989_v21 = vpop.f32.mrf.mxu1 }
 0x507   :  { %v12616_v8 = vld [vmem:[#allocation12 + $0xd50] sm:$0xf]  ;;  %v12233_v26 = vor.u32 %v13801_v23, %v12232_v28  ;;  %8219 = vmatpush.bf16.msra.mxu3 %v12777_v61  ;;  %v7925_v61 = vadd.f32 %v15023_v20, %v5133_v62  ;;  %v11885_v38 = vor.u32 %v13709_v48, %v11882_v11  ;;  %v12077_v23 = vor.u32 %v13757_v18, %v12074_v5  ;;  %v11274_v62 = vld [vmem:[#allocation12 + $0x2f0] sm:$0xf0] }
 0x508   :  { %v13897_v29 = vld [vmem:[#allocation12 + $0xd6c] sm:$0xf0]  ;;  %v11658_v3 = vld [vmem:[#allocation12 + $0x5f0] sm:$0xf0] }
 0x509   :  { %v12744_v13 = vld [vmem:[#allocation12 + $0xe50] sm:$0xf]  ;;  %v12617_v31 = vor.u32 %v13897_v29, %v12616_v8  ;;  %8194 = vmatpush.bf16.msrb.mxu1 %v12233_v26  ;;  %v13573_v8 = vld [vmem:[#allocation12 + $0x354] sm:$0xf]  ;;  %v7938_v2 = vadd.f32 %v15055_v24, %v7925_v61  ;;  %v7950_v26 = vpop.f32.mrf.mxu2  ;;  %8282 = vmatpush.bf16.msra.mxu0 %v12077_v23 }
 0x50a   :  { %v13929_v58 = vld [vmem:[#allocation12 + $0xe6c] sm:$0xf0]  ;;  %v11338_v29 = vld [vmem:[#allocation12 + $0x370] sm:$0xf0] }
 0x50b   :  { %v12200_v52 = vld [vmem:[#allocation12 + $0xa10] sm:$0xf]  ;;  %v12745_v57 = vor.u32 %v13929_v58, %v12744_v13  ;;  %8203 = vmatpush.bf16.msrb.mxu2 %v12617_v31  ;;  %v11850_v13 = vld [vmem:[#allocation12 + $0x770] sm:$0xf0]  ;;  %v11341_v20 = vor.u32 %v13573_v8, %v11338_v29 }
 0x50c   :  { %v13793_v33 = vld [vmem:[#allocation12 + $0xa2c] sm:$0xf0]  ;;  %v13749_v58 = vld [vmem:[#allocation12 + $0x8d4] sm:$0xf] }
 0x50d   :  { %v12584_v17 = vld [vmem:[#allocation12 + $0xd10] sm:$0xf]  ;;  %v12201_v63 = vor.u32 %v13793_v33, %v12200_v52  ;;  %8220 = vmatpush.bf16.msra.mxu3 %v12745_v57  ;;  %v7951_v33 = vadd.f32 %v7950_v26, %v7938_v2  ;;  %v11853_v57 = vor.u32 %v13701_v41, %v11850_v13  ;;  %v11818_v24 = vld [vmem:[#allocation12 + $0x730] sm:$0xf0] }
 0x50e   :  { %v13889_v50 = vld [vmem:[#allocation12 + $0xd2c] sm:$0xf0]  ;;  %v11786_v56 = vld [vmem:[#allocation12 + $0x6f0] sm:$0xf0] }
 0x50f   :  { %v12712_v42 = vld [vmem:[#allocation12 + $0xe10] sm:$0xf]  ;;  %v12585_v7 = vor.u32 %v13889_v50, %v12584_v17  ;;  %8195 = vmatpush.bf16.msrb.mxu1 %v12201_v63  ;;  %v15070_v17 = vpop.f32.mrf.mxu0  ;;  %v12045_v50 = vor.u32 %v13749_v58, %v12042_v45  ;;  %v7964_v39 = vadd.f32 %v15059_v44, %v7951_v33  ;;  %v13733_v35 = vld [vmem:[#allocation12 + $0x854] sm:$0xf]  ;;  %v11152_v58 = vld [vmem:[#allocation12 + $0x1d8] sm:$0xf] }
 0x510   :  { %v13921_v19 = vld [vmem:[#allocation12 + $0xe2c] sm:$0xf0]  ;;  %v11978_v44 = vld [vmem:[#allocation12 + $0x870] sm:$0xf0]  ;;  %v13530_v45 = vld [vmem:[#allocation12 + $0x1f4] sm:$0xf0] }
 0x511   :  { %v12713_v49 = vor.u32 %v13921_v19, %v12712_v42  ;;  %v12552_v25 = vld [vmem:[#allocation12 + $0xcd0] sm:$0xf]  ;;  %8204 = vmatpush.bf16.msrb.mxu2 %v12585_v7  ;;  %v13565_v42 = vld [vmem:[#allocation12 + $0x314] sm:$0xf]  ;;  %8283 = vmatpush.bf16.msra.mxu0 %v12045_v50  ;;  %v7952_v18 = vpop.f32.mrf.mxu2  ;;  %v11981_v61 = vor.u32 %v13733_v35, %v11978_v44  ;;  %v15076_v50 = vpop.f32.mrf.mxu3  ;;  %v11088_v35 = vld [vmem:[#allocation12 + $0x158] sm:$0xf] }
 0x512   :  { %v13881_v6 = vld [vmem:[#allocation12 + $0xcec] sm:$0xf0]  ;;  %8196 = vmatmul.bf16.vlgmr.msrb.gmra.mxu1 %v14954_v15  ;;  %v11306_v19 = vld [vmem:[#allocation12 + $0x330] sm:$0xf0]  ;;  %v13514_v44 = vld [vmem:[#allocation12 + $0x174] sm:$0xf0] }
 0x513   :  { %v12553_v34 = vor.u32 %v13881_v6, %v12552_v25  ;;  %8221 = vmatpush.bf16.msra.mxu3 %v12713_v49  ;;  %8240 = vmatpush.bf16.msra.mxu1 %v11405_v0  ;;  %v12520_v10 = vld [vmem:[#allocation12 + $0xc90] sm:$0xf]  ;;  %v11309_v30 = vor.u32 %v13565_v42, %v11306_v19  ;;  %v13557_v7 = vld [vmem:[#allocation12 + $0x2d4] sm:$0xf]  ;;  %v7977_v49 = vadd.f32 %v15041_v36, %v7964_v39 }
 0x514   :  { %v13873_v28 = vld [vmem:[#allocation12 + $0xcac] sm:$0xf0]  ;;  %v11821_v0 = vor.u32 %v13693_v40, %v11818_v24  ;;  %v12013_v25 = vor.u32 %v13741_v4, %v12010_v55  ;;  %v13653_v6 = vld [vmem:[#allocation12 + $0x5d4] sm:$0xf]  ;;  %v11277_v5 = vor.u32 %v13557_v7, %v11274_v62  ;;  %v11153_v42 = vor.u32 %v13530_v45, %v11152_v58  ;;  %v7991_v24 = vpop.f32.mrf.mxu1  ;;  %v11120_v4 = vld [vmem:[#allocation12 + $0x198] sm:$0xf] }
 0x515   :  { %8205 = vmatpush.bf16.msrb.mxu2 %v12553_v34  ;;  %v12521_v54 = vor.u32 %v13873_v28, %v12520_v10  ;;  %v12488_v31 = vld [vmem:[#allocation12 + $0xc50] sm:$0xf]  ;;  %v15074_v11 = vadd.f32 %v7989_v21, %v7977_v49  ;;  %v11661_v34 = vor.u32 %v13653_v6, %v11658_v3  ;;  %v11242_v10 = vld [vmem:[#allocation12 + $0x2b0] sm:$0xf0]  ;;  %v13522_v55 = vld [vmem:[#allocation12 + $0x1b4] sm:$0xf0] }
 0x516   :  { %8222 = vmatmul.bf16.vlgmr.msra.gmra.mxu3 %v14958_v60  ;;  %v13865_v52 = vld [vmem:[#allocation12 + $0xc6c] sm:$0xf0]  ;;  %8284 = vmatpush.bf16.msra.mxu0 %v12013_v25  ;;  %v11626_v23 = vld [vmem:[#allocation12 + $0x5b0] sm:$0xf0]  ;;  %v11121_v25 = vor.u32 %v13522_v55, %v11120_v4 }
 0x517   :  { %8266 = vmatpush.bf16.msrb.mxu3 %v11917_v47  ;;  %8241 = vmatpush.bf16.msra.mxu1 %v11373_v9  ;;  %v12489_v27 = vor.u32 %v13865_v52, %v12488_v31  ;;  %v12456_v1 = vld [vmem:[#allocation12 + $0xc10] sm:$0xf]  ;;  %v13685_v47 = vld [vmem:[#allocation12 + $0x6d4] sm:$0xf]  ;;  %v8030_v36 = vpop.f32.mrf.mxu0 }
 0x518   :  { %v13857_v63 = vld [vmem:[#allocation12 + $0xc2c] sm:$0xf0]  ;;  %v13549_v9 = vld [vmem:[#allocation12 + $0x294] sm:$0xf]  ;;  %v11789_v28 = vor.u32 %v13685_v47, %v11786_v56 }
 0x519   :  { %8206 = vmatpush.bf16.msrb.mxu2 %v12521_v54  ;;  %v12457_v48 = vor.u32 %v13857_v63, %v12456_v1  ;;  %v13677_v8 = vld [vmem:[#allocation12 + $0x694] sm:$0xf]  ;;  %v11245_v2 = vor.u32 %v13549_v9, %v11242_v10  ;;  %v8017_v10 = vpop.f32.mrf.mxu3  ;;  %v8002_v24 = vpop.f32.mrf.mxu2 }
 0x51a   :  { %v11754_v29 = vld [vmem:[#allocation12 + $0x6b0] sm:$0xf0]  ;;  %8285 = vmatpush.bf16.msra.mxu0 %v11981_v61 }
 0x51b   :  { %8267 = vmatpush.bf16.msrb.mxu3 %v11885_v38  ;;  %8242 = vmatpush.bf16.msra.mxu1 %v11341_v20  ;;  %v13645_v38 = vld [vmem:[#allocation12 + $0x594] sm:$0xf]  ;;  %v11757_v20 = vor.u32 %v13677_v8, %v11754_v29  ;;  %v11056_v29 = vld [vmem:[#allocation12 + $0x118] sm:$0xf] }
 0x51c   :  { %v13725_v41 = vld [vmem:[#allocation12 + $0x814] sm:$0xf]  ;;  %v11629_v54 = vor.u32 %v13645_v38, %v11626_v23 }
 0x51d   :  { %8207 = vmatpush.bf16.msrb.mxu2 %v12489_v27  ;;  %v11946_v13 = vld [vmem:[#allocation12 + $0x830] sm:$0xf0] }
 0x51e   :  { %v13541_v26 = vld [vmem:[#allocation12 + $0x254] sm:$0xf]  ;;  %v11949_v31 = vor.u32 %v13725_v41, %v11946_v13  ;;  %v13506_v41 = vld [vmem:[#allocation12 + $0x134] sm:$0xf0] }
 0x51f   :  { %8268 = vmatpush.bf16.msrb.mxu3 %v11853_v57  ;;  %8243 = vmatpush.bf16.msra.mxu1 %v11309_v30  ;;  %v11210_v52 = vld [vmem:[#allocation12 + $0x270] sm:$0xf0] }
 0x520   :  { %v13637_v33 = vld [vmem:[#allocation12 + $0x554] sm:$0xf]  ;;  %v11213_v39 = vor.u32 %v13541_v26, %v11210_v52  ;;  %8286 = vmatpush.bf16.msra.mxu0 %v11949_v31  ;;  %v11057_v26 = vor.u32 %v13506_v41, %v11056_v29 }
 0x521   :  { %8208 = vmatpush.bf16.msrb.mxu2 %v12457_v48  ;;  %v11594_v57 = vld [vmem:[#allocation12 + $0x570] sm:$0xf0] }
 0x522   :  { %v13669_v19 = vld [vmem:[#allocation12 + $0x654] sm:$0xf]  ;;  %v11597_v27 = vor.u32 %v13637_v33, %v11594_v57  ;;  %v11024_v57 = vld [vmem:[#allocation12 + $0xd8] sm:$0xf] }
 0x523   :  { %8269 = vmatpush.bf16.msrb.mxu3 %v11821_v0  ;;  %8244 = vmatpush.bf16.msra.mxu1 %v11277_v5  ;;  %v11722_v40 = vld [vmem:[#allocation12 + $0x670] sm:$0xf0] }
 0x524   :  { %8209 = vmatmul.bf16.vlgmr.msrb.gmra.mxu2 %v14964_v37  ;;  %v13533_v1 = vld [vmem:[#allocation12 + $0x214] sm:$0xf]  ;;  %v11725_v7 = vor.u32 %v13669_v19, %v11722_v40  ;;  %8331 = vmatpush.bf16.msrb.mxu0 %v11153_v42  ;;  %v13498_v42 = vld [vmem:[#allocation12 + $0xf4] sm:$0xf0]  ;;  %v5134_v40 = vperm.slane %v15062_v16, 3 }
 0x525   :  { %8253 = vmatpush.bf16.msra.mxu2 %v11661_v34  ;;  %v11178_v30 = vld [vmem:[#allocation12 + $0x230] sm:$0xf0]  ;;  %8287 = vmatmul.bf16.vlgmr.msra.gmra.mxu0 %v14940_v53 }
 0x526   :  { %v13629_v63 = vld [vmem:[#allocation12 + $0x514] sm:$0xf]  ;;  %v11181_v21 = vor.u32 %v13533_v1, %v11178_v30  ;;  %v15084_v1 = vpop.f32.mrf.mxu0 }
 0x527   :  { %8270 = vmatpush.bf16.msrb.mxu3 %v11789_v28  ;;  %8245 = vmatpush.bf16.msra.mxu1 %v11245_v2  ;;  %v11562_v62 = vld [vmem:[#allocation12 + $0x530] sm:$0xf0]  ;;  %v11089_v28 = vor.u32 %v13514_v44, %v11088_v35 }
 0x528   :  { %v13661_v49 = vld [vmem:[#allocation12 + $0x614] sm:$0xf]  ;;  %v11565_v48 = vor.u32 %v13629_v63, %v11562_v62  ;;  %8332 = vmatpush.bf16.msrb.mxu0 %v11121_v25  ;;  %v11025_v63 = vor.u32 %v13498_v42, %v11024_v57  ;;  %v10992_v25 = vld [vmem:[#allocation12 + $0x98] sm:$0xf] }
 0x529   :  { %8254 = vmatpush.bf16.msra.mxu2 %v11629_v54  ;;  %v11690_v0 = vld [vmem:[#allocation12 + $0x630] sm:$0xf0]  ;;  %v13786_v42 = vld [vmem:[#allocation12 + $0x9f4] sm:$0xf0] }
 0x52a   :  { %v13845_v6 = vld [vmem:[#allocation12 + $0xbd4] sm:$0xf]  ;;  %v11693_v18 = vor.u32 %v13661_v49, %v11690_v0 }
 0x52b   :  { %8271 = vmatpush.bf16.msrb.mxu3 %v11757_v20  ;;  %v12426_v3 = vld [vmem:[#allocation12 + $0xbf0] sm:$0xf0]  ;;  %8246 = vmatpush.bf16.msra.mxu1 %v11213_v39 }
 0x52c   :  { %v13973_v47 = vld [vmem:[#allocation12 + $0xfd4] sm:$0xf]  ;;  %v12429_v5 = vor.u32 %v13845_v6, %v12426_v3  ;;  %8333 = vmatpush.bf16.msrb.mxu0 %v11089_v28  ;;  %v13490_v6 = vld [vmem:[#allocation12 + $0xb4] sm:$0xf0] }
 0x52d   :  { %v12938_v56 = vld [vmem:[#allocation12 + $0xff0] sm:$0xf0]  ;;  %8255 = vmatpush.bf16.msra.mxu2 %v11597_v27  ;;  %v8003_v27 = vadd.f32 %v8002_v24, %v15074_v11  ;;  %v10960_v28 = vld [vmem:[#allocation12 + $0x58] sm:$0xf] }
 0x52e   :  { %v13621_v34 = vld [vmem:[#allocation12 + $0x4d4] sm:$0xf]  ;;  %v12941_v36 = vor.u32 %v13973_v47, %v12938_v56 }
 0x52f   :  { %8272 = vmatpush.bf16.msrb.mxu3 %v11725_v7  ;;  %v11530_v9 = vld [vmem:[#allocation12 + $0x4f0] sm:$0xf0]  ;;  %8247 = vmatpush.bf16.msra.mxu1 %v11181_v21  ;;  %v8016_v3 = vadd.f32 %v15076_v50, %v8003_v27  ;;  %v8029_v50 = vadd.f32 %v15070_v17, %v5134_v40 }
 0x530   :  { %v13837_v61 = vld [vmem:[#allocation12 + $0xb94] sm:$0xf]  ;;  %v11533_v13 = vor.u32 %v13621_v34, %v11530_v9  ;;  %8334 = vmatpush.bf16.msrb.mxu0 %v11057_v26  ;;  %v10993_v34 = vor.u32 %v13490_v6, %v10992_v25  ;;  %v12144_v25 = vld [vmem:[#allocation12 + $0x998] sm:$0xf] }
 0x531   :  { %v12394_v38 = vld [vmem:[#allocation12 + $0xbb0] sm:$0xf0]  ;;  %8256 = vmatpush.bf16.msra.mxu2 %v11565_v48  ;;  %vm8541_vm4 = vcmp.ge.f32.partialorder %v8016_v3, 0.0  ;;  %v13778_v6 = vld [vmem:[#allocation12 + $0x9b4] sm:$0xf0] }
 0x532   :  { %v13965_v23 = vld [vmem:[#allocation12 + $0xf94] sm:$0xf]  ;;  %v12397_v58 = vor.u32 %v13837_v61, %v12394_v38  ;;  %8248 = vmatmul.bf16.vlgmr.msra.gmra.mxu1 %v14946_v14  ;;  %v13482_v61 = vld [vmem:[#allocation12 + $0x74] sm:$0xf0] }
 0x533   :  { %v12906_v8 = vld [vmem:[#allocation12 + $0xfb0] sm:$0xf0]  ;;  %8273 = vmatpush.bf16.msrb.mxu3 %v11693_v18  ;;  %8292 = vmatpush.bf16.msrb.mxu1 %v12429_v5  ;;  %v8550_v18 = vmul.f32 %v15038_v51, %v8016_v3 }
 0x534   :  { %v13613_v45 = vld [vmem:[#allocation12 + $0x494] sm:$0xf]  ;;  %v12909_v54 = vor.u32 %v13965_v23, %v12906_v8  ;;  %8335 = vmatpush.bf16.msrb.mxu0 %v11025_v63  ;;  %v8041_v23 = vpop.f32.mrf.mxu1  ;;  %v15096_v63 = vpop.f32.mrf.mxu3 }
 0x535   :  { %v11498_v2 = vld [vmem:[#allocation12 + $0x4b0] sm:$0xf0]  ;;  %8257 = vmatpush.bf16.msra.mxu2 %v11533_v13  ;;  %v8558_v38 = vsel %vm8541_vm4, %v8016_v3, %v8550_v18  ;;  %v15094_v41 = vadd.f32 %v8041_v23, %v8029_v50  ;;  %v8004_v13 = vpop.f32.mrf.mxu2  ;;  %v13722_v50 = vld [vmem:[#allocation12 + $0x7f4] sm:$0xf0] }
 0x536   :  { %v13829_v20 = vld [vmem:[#allocation12 + $0xb54] sm:$0xf]  ;;  %8274 = vmatmul.bf16.vlgmr.msrb.gmra.mxu3 %v14948_v46  ;;  %v11501_v19 = vor.u32 %v13613_v45, %v11498_v2  ;;  %v15092_v29 = vmax.f32 %v8564_v43, %v8558_v38  ;;  %v12176_v43 = vld [vmem:[#allocation12 + $0x9d8] sm:$0xf] }
 0x537   :  { %8318 = vmatpush.bf16.msra.mxu3 %v12941_v36  ;;  %v12362_v31 = vld [vmem:[#allocation12 + $0xb70] sm:$0xf0]  ;;  %8293 = vmatpush.bf16.msrb.mxu1 %v12397_v58 }
 0x538   :  { %v13957_v52 = vld [vmem:[#allocation12 + $0xf54] sm:$0xf]  ;;  %v12365_v4 = vor.u32 %v13829_v20, %v12362_v31  ;;  %8336 = vmatpush.bf16.msrb.mxu0 %v10993_v34  ;;  %v10961_v20 = vor.u32 %v13482_v61, %v10960_v28  ;;  %v11408_v34 = vld [vmem:[#allocation12 + $0x3d8] sm:$0xf] }
 0x539   :  { %v12874_v33 = vld [vmem:[#allocation12 + $0xf70] sm:$0xf0]  ;;  %8258 = vmatpush.bf16.msra.mxu2 %v11501_v19  ;;  %v13770_v28 = vld [vmem:[#allocation12 + $0x974] sm:$0xf0] }
 0x53a   :  { %v13605_v55 = vld [vmem:[#allocation12 + $0x454] sm:$0xf]  ;;  %v12877_v30 = vor.u32 %v13957_v52, %v12874_v33 }
 0x53b   :  { %v11466_v39 = vld [vmem:[#allocation12 + $0x470] sm:$0xf0]  ;;  %8319 = vmatpush.bf16.msra.mxu3 %v12909_v54  ;;  %8294 = vmatpush.bf16.msrb.mxu1 %v12365_v4  ;;  %v8082_v54 = vpop.f32.mrf.mxu0 }
 0x53c   :  { %v13821_v7 = vld [vmem:[#allocation12 + $0xb14] sm:$0xf]  ;;  %v11469_v47 = vor.u32 %v13605_v55, %v11466_v39  ;;  %8337 = vmatpush.bf16.msrb.mxu0 %v10961_v20  ;;  %v10929_v55 = vor.u32 %v13474_v59, %v10928_v32  ;;  %v11376_v54 = vld [vmem:[#allocation12 + $0x398] sm:$0xf] }
 0x53d   :  { %v12330_v62 = vld [vmem:[#allocation12 + $0xb30] sm:$0xf0]  ;;  %v11888_v20 = vld [vmem:[#allocation12 + $0x798] sm:$0xf] }
 0x53e   :  { %v13949_v49 = vld [vmem:[#allocation12 + $0xf14] sm:$0xf]  ;;  %v12333_v11 = vor.u32 %v13821_v7, %v12330_v62  ;;  %8259 = vmatpush.bf16.msra.mxu2 %v11469_v47  ;;  %v12177_v7 = vor.u32 %v13786_v42, %v12176_v43 }
 0x53f   :  { %v12842_v0 = vld [vmem:[#allocation12 + $0xf30] sm:$0xf0]  ;;  %8320 = vmatpush.bf16.msra.mxu3 %v12877_v30 }
 0x540   :  { %v13597_v56 = vld [vmem:[#allocation12 + $0x414] sm:$0xf]  ;;  %v12845_v5 = vor.u32 %v13949_v49, %v12842_v0  ;;  %8295 = vmatpush.bf16.msrb.mxu1 %v12333_v11  ;;  %v8043_v0 = vpop.f32.mrf.mxu1  ;;  %8338 = vmatpush.bf16.msrb.mxu0 %v10929_v55  ;;  %v13706_v55 = vld [vmem:[#allocation12 + $0x774] sm:$0xf0] }
 0x541   :  { %v11434_v35 = vld [vmem:[#allocation12 + $0x430] sm:$0xf0] }
 0x542   :  { %v13813_v44 = vld [vmem:[#allocation12 + $0xad4] sm:$0xf]  ;;  %v11437_v8 = vor.u32 %v13597_v56, %v11434_v35 }
 0x543   :  { %v12298_v21 = vld [vmem:[#allocation12 + $0xaf0] sm:$0xf0]  ;;  %8321 = vmatpush.bf16.msra.mxu3 %v12845_v5  ;;  %v12145_v5 = vor.u32 %v13778_v6, %v12144_v25  ;;  %8339 = vmatmul.bf16.vlgmr.msrb.gmra.mxu0 %v14937_v12  ;;  %v15103_v6 = vpop.f32.mrf.mxu0 }
 0x544   :  { %v13909_v48 = vld [vmem:[#allocation12 + $0xdd4] sm:$0xf]  ;;  %v12301_v58 = vor.u32 %v13813_v44, %v12298_v21  ;;  %8260 = vmatpush.bf16.msra.mxu2 %v11437_v8  ;;  %8383 = vmatpush.bf16.msra.mxu0 %v12177_v7  ;;  %v8054_v7 = vpop.f32.mrf.mxu2 }
 0x545   :  { %v12682_v9 = vld [vmem:[#allocation12 + $0xdf0] sm:$0xf0]  ;;  %v8055_v25 = vadd.f32 %v8054_v7, %v15094_v41 }
 0x546   :  { %v13941_v10 = vld [vmem:[#allocation12 + $0xed4] sm:$0xf]  ;;  %v12685_v45 = vor.u32 %v13909_v48, %v12682_v9  ;;  %8296 = vmatpush.bf16.msrb.mxu1 %v12301_v58  ;;  %v13594_v9 = vld [vmem:[#allocation12 + $0x3f4] sm:$0xf0] }
 0x547   :  { %v12810_v36 = vld [vmem:[#allocation12 + $0xef0] sm:$0xf0]  ;;  %8261 = vmatmul.bf16.vlgmr.msra.gmra.mxu2 %v14956_v22  ;;  %v11409_v8 = vor.u32 %v13594_v9, %v11408_v34 }
 0x548   :  { %v13805_v2 = vld [vmem:[#allocation12 + $0xa94] sm:$0xf]  ;;  %v12813_v26 = vor.u32 %v13941_v10, %v12810_v36  ;;  %8305 = vmatpush.bf16.msrb.mxu2 %v12685_v45  ;;  %v11920_v10 = vld [vmem:[#allocation12 + $0x7d8] sm:$0xf]  ;;  %v8069_v45 = vpop.f32.mrf.mxu3  ;;  %8384 = vmatpush.bf16.msra.mxu0 %v12145_v5 }
 0x549   :  { %v12266_v17 = vld [vmem:[#allocation12 + $0xab0] sm:$0xf0]  ;;  %v12112_v36 = vld [vmem:[#allocation12 + $0x958] sm:$0xf]  ;;  %v8093_v45 = vpop.f32.mrf.mxu1 }
 0x54a   :  { %v13901_v31 = vld [vmem:[#allocation12 + $0xd94] sm:$0xf]  ;;  %v12269_v19 = vor.u32 %v13805_v2, %v12266_v17  ;;  %8322 = vmatpush.bf16.msra.mxu3 %v12813_v26  ;;  %v11921_v2 = vor.u32 %v13722_v50, %v11920_v10  ;;  %v12113_v17 = vor.u32 %v13770_v28, %v12112_v36  ;;  %v13586_v26 = vld [vmem:[#allocation12 + $0x3b4] sm:$0xf0] }
 0x54b   :  { %v12650_v52 = vld [vmem:[#allocation12 + $0xdb0] sm:$0xf0]  ;;  %v11377_v32 = vor.u32 %v13586_v26, %v11376_v54  ;;  %v11280_v10 = vld [vmem:[#allocation12 + $0x2d8] sm:$0xf] }
 0x54c   :  { %v13933_v33 = vld [vmem:[#allocation12 + $0xe94] sm:$0xf]  ;;  %v12653_v40 = vor.u32 %v13901_v31, %v12650_v52  ;;  %8297 = vmatpush.bf16.msrb.mxu1 %v12269_v19  ;;  %v13714_v31 = vld [vmem:[#allocation12 + $0x7b4] sm:$0xf0]  ;;  %8385 = vmatpush.bf16.msra.mxu0 %v12113_v17  ;;  %v8056_v54 = vpop.f32.mrf.mxu2 }
 0x54d   :  { %v12778_v57 = vld [vmem:[#allocation12 + $0xeb0] sm:$0xf0]  ;;  %v12080_v52 = vld [vmem:[#allocation12 + $0x918] sm:$0xf]  ;;  %v11889_v42 = vor.u32 %v13714_v31, %v11888_v20 }
 0x54e   :  { %v13797_v24 = vld [vmem:[#allocation12 + $0xa54] sm:$0xf]  ;;  %v12781_v4 = vor.u32 %v13933_v33, %v12778_v57  ;;  %8306 = vmatpush.bf16.msrb.mxu2 %v12653_v40  ;;  %v13762_v33 = vld [vmem:[#allocation12 + $0x934] sm:$0xf0] }
 0x54f   :  { %v12234_v39 = vld [vmem:[#allocation12 + $0xa70] sm:$0xf0]  ;;  %v12081_v19 = vor.u32 %v13762_v33, %v12080_v52  ;;  %v11344_v40 = vld [vmem:[#allocation12 + $0x358] sm:$0xf] }
 0x550   :  { %v13893_v27 = vld [vmem:[#allocation12 + $0xd54] sm:$0xf]  ;;  %v12237_v3 = vor.u32 %v13797_v24, %v12234_v39  ;;  %8323 = vmatpush.bf16.msra.mxu3 %v12781_v4  ;;  %v13578_v24 = vld [vmem:[#allocation12 + $0x374] sm:$0xf0] }
 0x551   :  { %v12618_v30 = vld [vmem:[#allocation12 + $0xd70] sm:$0xf0]  ;;  %v11856_v4 = vld [vmem:[#allocation12 + $0x758] sm:$0xf]  ;;  %8386 = vmatpush.bf16.msra.mxu0 %v12081_v19 }
 0x552   :  { %v13925_v62 = vld [vmem:[#allocation12 + $0xe54] sm:$0xf]  ;;  %v12621_v47 = vor.u32 %v13893_v27, %v12618_v30  ;;  %8298 = vmatpush.bf16.msrb.mxu1 %v12237_v3  ;;  %v12048_v39 = vld [vmem:[#allocation12 + $0x8d8] sm:$0xf]  ;;  %v11857_v3 = vor.u32 %v13706_v55, %v11856_v4  ;;  %v11154_v4 = vld [vmem:[#allocation12 + $0x1f8] sm:$0xf0] }
 0x553   :  { %v12746_v49 = vld [vmem:[#allocation12 + $0xe70] sm:$0xf0]  ;;  %v13754_v27 = vld [vmem:[#allocation12 + $0x8f4] sm:$0xf0] }
 0x554   :  { %v13789_v56 = vld [vmem:[#allocation12 + $0xa14] sm:$0xf]  ;;  %v12749_v44 = vor.u32 %v13925_v62, %v12746_v49  ;;  %8307 = vmatpush.bf16.msrb.mxu2 %v12621_v47  ;;  %v11345_v62 = vor.u32 %v13578_v24, %v11344_v40  ;;  %v12049_v47 = vor.u32 %v13754_v27, %v12048_v39  ;;  %v13562_v50 = vld [vmem:[#allocation12 + $0x2f4] sm:$0xf0]  ;;  %v13526_v24 = vld [vmem:[#allocation12 + $0x1dc] sm:$0xf] }
 0x555   :  { %v12202_v35 = vld [vmem:[#allocation12 + $0xa30] sm:$0xf0]  ;;  %v11281_v26 = vor.u32 %v13562_v50, %v11280_v10  ;;  %v11248_v31 = vld [vmem:[#allocation12 + $0x298] sm:$0xf] }
 0x556   :  { %v13885_v11 = vld [vmem:[#allocation12 + $0xd14] sm:$0xf]  ;;  %v12205_v61 = vor.u32 %v13789_v56, %v12202_v35  ;;  %8324 = vmatpush.bf16.msra.mxu3 %v12749_v44  ;;  %v11312_v56 = vld [vmem:[#allocation12 + $0x318] sm:$0xf]  ;;  %8387 = vmatpush.bf16.msra.mxu0 %v12049_v47 }
 0x557   :  { %v12586_v21 = vld [vmem:[#allocation12 + $0xd30] sm:$0xf0]  ;;  %v13570_v35 = vld [vmem:[#allocation12 + $0x334] sm:$0xf0] }
 0x558   :  { %v13917_v48 = vld [vmem:[#allocation12 + $0xe14] sm:$0xf]  ;;  %v12589_v38 = vor.u32 %v13885_v11, %v12586_v21  ;;  %8299 = vmatpush.bf16.msrb.mxu1 %v12205_v61  ;;  %v11824_v11 = vld [vmem:[#allocation12 + $0x718] sm:$0xf]  ;;  %v11313_v9 = vor.u32 %v13570_v35, %v11312_v56  ;;  %v8095_v35 = vpop.f32.mrf.mxu1 }
 0x559   :  { %v12714_v18 = vld [vmem:[#allocation12 + $0xe30] sm:$0xf0]  ;;  %v13698_v44 = vld [vmem:[#allocation12 + $0x734] sm:$0xf0] }
 0x55a   :  { %v12717_v23 = vor.u32 %v13917_v48, %v12714_v18  ;;  %v13877_v13 = vld [vmem:[#allocation12 + $0xcd4] sm:$0xf]  ;;  %8308 = vmatpush.bf16.msrb.mxu2 %v12589_v38  ;;  %v12016_v21 = vld [vmem:[#allocation12 + $0x898] sm:$0xf]  ;;  %v8068_v18 = vadd.f32 %v15096_v63, %v8055_v25  ;;  %v11825_v28 = vor.u32 %v13698_v44, %v11824_v11  ;;  %v15109_v25 = vpop.f32.mrf.mxu3  ;;  %v13518_v11 = vld [vmem:[#allocation12 + $0x19c] sm:$0xf] }
 0x55b   :  { %v12554_v58 = vld [vmem:[#allocation12 + $0xcf0] sm:$0xf0]  ;;  %8300 = vmatmul.bf16.vlgmr.msrb.gmra.mxu1 %v14954_v15  ;;  %v13746_v48 = vld [vmem:[#allocation12 + $0x8b4] sm:$0xf0]  ;;  %v11122_v44 = vld [vmem:[#allocation12 + $0x1b8] sm:$0xf0] }
 0x55c   :  { %v12557_v57 = vor.u32 %v13877_v13, %v12554_v58  ;;  %8325 = vmatpush.bf16.msra.mxu3 %v12717_v23  ;;  %8344 = vmatpush.bf16.msra.mxu1 %v11409_v8  ;;  %v13869_v59 = vld [vmem:[#allocation12 + $0xc94] sm:$0xf]  ;;  %v8081_v36 = vadd.f32 %v15084_v1, %v8068_v18  ;;  %v12017_v61 = vor.u32 %v13746_v48, %v12016_v21  ;;  %v11664_v38 = vld [vmem:[#allocation12 + $0x5d8] sm:$0xf]  ;;  %v8134_v1 = vpop.f32.mrf.mxu0 }
 0x55d   :  { %v12522_v43 = vld [vmem:[#allocation12 + $0xcb0] sm:$0xf0]  ;;  %v13658_v23 = vld [vmem:[#allocation12 + $0x5f4] sm:$0xf0] }
 0x55e   :  { %8309 = vmatpush.bf16.msrb.mxu2 %v12557_v57  ;;  %v12525_v30 = vor.u32 %v13869_v59, %v12522_v43  ;;  %v13861_v49 = vld [vmem:[#allocation12 + $0xc54] sm:$0xf]  ;;  %v11792_v8 = vld [vmem:[#allocation12 + $0x6d8] sm:$0xf]  ;;  %v15107_v17 = vadd.f32 %v8093_v45, %v8081_v36  ;;  %v11665_v20 = vor.u32 %v13658_v23, %v11664_v38  ;;  %8388 = vmatpush.bf16.msra.mxu0 %v12017_v61 }
 0x55f   :  { %8326 = vmatmul.bf16.vlgmr.msra.gmra.mxu3 %v14958_v60  ;;  %v12490_v0 = vld [vmem:[#allocation12 + $0xc70] sm:$0xf0]  ;;  %v13690_v13 = vld [vmem:[#allocation12 + $0x6f4] sm:$0xf0]  ;;  %v11125_v36 = vor.u32 %v13518_v11, %v11122_v44 }
 0x560   :  { %8370 = vmatpush.bf16.msrb.mxu3 %v11921_v2  ;;  %8345 = vmatpush.bf16.msra.mxu1 %v11377_v32  ;;  %v12493_v5 = vor.u32 %v13861_v49, %v12490_v0  ;;  %v13853_v34 = vld [vmem:[#allocation12 + $0xc14] sm:$0xf]  ;;  %v11984_v58 = vld [vmem:[#allocation12 + $0x858] sm:$0xf]  ;;  %v11793_v33 = vor.u32 %v13690_v13, %v11792_v8  ;;  %v13510_v8 = vld [vmem:[#allocation12 + $0x15c] sm:$0xf] }
 0x561   :  { %v12458_v41 = vld [vmem:[#allocation12 + $0xc30] sm:$0xf0]  ;;  %v13738_v63 = vld [vmem:[#allocation12 + $0x874] sm:$0xf0]  ;;  %v11090_v13 = vld [vmem:[#allocation12 + $0x178] sm:$0xf0] }
 0x562   :  { %8310 = vmatpush.bf16.msrb.mxu2 %v12525_v30  ;;  %v12461_v2 = vor.u32 %v13853_v34, %v12458_v41  ;;  %v13554_v52 = vld [vmem:[#allocation12 + $0x2b4] sm:$0xf0]  ;;  %v11985_v57 = vor.u32 %v13738_v63, %v11984_v58 }
 0x563   :  { %v11632_v32 = vld [vmem:[#allocation12 + $0x598] sm:$0xf]  ;;  %v11249_v55 = vor.u32 %v13554_v52, %v11248_v31  ;;  %v11093_v52 = vor.u32 %v13510_v8, %v11090_v13 }
 0x564   :  { %8371 = vmatpush.bf16.msrb.mxu3 %v11889_v42  ;;  %8346 = vmatpush.bf16.msra.mxu1 %v11345_v62  ;;  %v13650_v59 = vld [vmem:[#allocation12 + $0x5b4] sm:$0xf0] }
 0x565   :  { %v11760_v43 = vld [vmem:[#allocation12 + $0x698] sm:$0xf]  ;;  %v11633_v39 = vor.u32 %v13650_v59, %v11632_v32  ;;  %8389 = vmatpush.bf16.msra.mxu0 %v11985_v57  ;;  %v13502_v59 = vld [vmem:[#allocation12 + $0x11c] sm:$0xf] }
 0x566   :  { %8311 = vmatpush.bf16.msrb.mxu2 %v12493_v5  ;;  %v13682_v42 = vld [vmem:[#allocation12 + $0x6b4] sm:$0xf0] }
 0x567   :  { %v11952_v19 = vld [vmem:[#allocation12 + $0x818] sm:$0xf]  ;;  %v11761_v30 = vor.u32 %v13682_v42, %v11760_v43  ;;  %v11058_v43 = vld [vmem:[#allocation12 + $0x138] sm:$0xf0] }
 0x568   :  { %8372 = vmatpush.bf16.msrb.mxu3 %v11857_v3  ;;  %8347 = vmatpush.bf16.msra.mxu1 %v11313_v9  ;;  %v13730_v40 = vld [vmem:[#allocation12 + $0x834] sm:$0xf0]  ;;  %v11157_v3 = vor.u32 %v13526_v24, %v11154_v4 }
 0x569   :  { %v11216_v27 = vld [vmem:[#allocation12 + $0x258] sm:$0xf]  ;;  %v11953_v7 = vor.u32 %v13730_v40, %v11952_v19 }
 0x56a   :  { %8312 = vmatpush.bf16.msrb.mxu2 %v12461_v2  ;;  %v13546_v62 = vld [vmem:[#allocation12 + $0x274] sm:$0xf0] }
 0x56b   :  { %v11600_v49 = vld [vmem:[#allocation12 + $0x558] sm:$0xf]  ;;  %v11217_v21 = vor.u32 %v13546_v62, %v11216_v27  ;;  %8390 = vmatpush.bf16.msra.mxu0 %v11953_v7  ;;  %v13494_v62 = vld [vmem:[#allocation12 + $0xdc] sm:$0xf] }
 0x56c   :  { %8373 = vmatpush.bf16.msrb.mxu3 %v11825_v28  ;;  %8348 = vmatpush.bf16.msra.mxu1 %v11281_v26  ;;  %v13642_v0 = vld [vmem:[#allocation12 + $0x574] sm:$0xf0] }
 0x56d   :  { %8313 = vmatmul.bf16.vlgmr.msrb.gmra.mxu2 %v14964_v37  ;;  %v11728_v47 = vld [vmem:[#allocation12 + $0x658] sm:$0xf]  ;;  %v11601_v48 = vor.u32 %v13642_v0, %v11600_v49  ;;  %v11026_v49 = vld [vmem:[#allocation12 + $0xf8] sm:$0xf0] }
 0x56e   :  { %8357 = vmatpush.bf16.msra.mxu2 %v11665_v20  ;;  %v13674_v56 = vld [vmem:[#allocation12 + $0x674] sm:$0xf0]  ;;  %8391 = vmatmul.bf16.vlgmr.msra.gmra.mxu0 %v14940_v53  ;;  %v8121_v20 = vpop.f32.mrf.mxu3 }
 0x56f   :  { %v11184_v18 = vld [vmem:[#allocation12 + $0x218] sm:$0xf]  ;;  %v11729_v9 = vor.u32 %v13674_v56, %v11728_v47  ;;  %8435 = vmatpush.bf16.msrb.mxu0 %v11157_v3  ;;  %v5135_v3 = vperm.slane %v15062_v16, 4  ;;  %v8106_v47 = vpop.f32.mrf.mxu2  ;;  %v10962_v20 = vld [vmem:[#allocation12 + $0x78] sm:$0xf0] }
 0x570   :  { %8374 = vmatpush.bf16.msrb.mxu3 %v11793_v33  ;;  %8349 = vmatpush.bf16.msra.mxu1 %v11249_v55  ;;  %v13538_v5 = vld [vmem:[#allocation12 + $0x234] sm:$0xf0]  ;;  %v11061_v55 = vor.u32 %v13502_v59, %v11058_v43  ;;  %v8107_v44 = vadd.f32 %v8106_v47, %v15107_v17 }
 0x571   :  { %v11568_v34 = vld [vmem:[#allocation12 + $0x518] sm:$0xf]  ;;  %v11185_v58 = vor.u32 %v13538_v5, %v11184_v18  ;;  %v11029_v18 = vor.u32 %v13494_v62, %v11026_v49  ;;  %v13782_v62 = vld [vmem:[#allocation12 + $0x9dc] sm:$0xf] }
 0x572   :  { %8358 = vmatpush.bf16.msra.mxu2 %v11633_v39  ;;  %v13634_v41 = vld [vmem:[#allocation12 + $0x534] sm:$0xf0]  ;;  %v8120_v16 = vadd.f32 %v15109_v25, %v8107_v44  ;;  %v8133_v25 = vadd.f32 %v15103_v6, %v5135_v3  ;;  %v12178_v49 = vld [vmem:[#allocation12 + $0x9f8] sm:$0xf0] }
 0x573   :  { %v11696_v10 = vld [vmem:[#allocation12 + $0x618] sm:$0xf]  ;;  %v11569_v63 = vor.u32 %v13634_v41, %v11568_v34  ;;  %8436 = vmatpush.bf16.msrb.mxu0 %v11125_v36 }
 0x574   :  { %8375 = vmatpush.bf16.msrb.mxu3 %v11761_v30  ;;  %v13666_v50 = vld [vmem:[#allocation12 + $0x634] sm:$0xf0]  ;;  %8350 = vmatpush.bf16.msra.mxu1 %v11217_v21  ;;  %v15117_v21 = vpop.f32.mrf.mxu0  ;;  %vm8542_vm5 = vcmp.ge.f32.partialorder %v8120_v16, 0.0  ;;  %v8551_v13 = vmul.f32 %v15038_v51, %v8120_v16 }
 0x575   :  { %v12432_v28 = vld [vmem:[#allocation12 + $0xbd8] sm:$0xf]  ;;  %v11697_v45 = vor.u32 %v13666_v50, %v11696_v10  ;;  %v13486_v10 = vld [vmem:[#allocation12 + $0x9c] sm:$0xf] }
 0x576   :  { %v13850_v61 = vld [vmem:[#allocation12 + $0xbf4] sm:$0xf0]  ;;  %8359 = vmatpush.bf16.msra.mxu2 %v11601_v48  ;;  %v10994_v50 = vld [vmem:[#allocation12 + $0xb8] sm:$0xf0] }
 0x577   :  { %v12944_v38 = vld [vmem:[#allocation12 + $0xfd8] sm:$0xf]  ;;  %v12433_v2 = vor.u32 %v13850_v61, %v12432_v28  ;;  %8437 = vmatpush.bf16.msrb.mxu0 %v11093_v52  ;;  %v8145_v52 = vpop.f32.mrf.mxu1 }
 0x578   :  { %v13978_v23 = vld [vmem:[#allocation12 + $0xff4] sm:$0xf0]  ;;  %8376 = vmatpush.bf16.msrb.mxu3 %v11729_v9  ;;  %8351 = vmatpush.bf16.msra.mxu1 %v11185_v58 }
 0x579   :  { %v11536_v54 = vld [vmem:[#allocation12 + $0x4d8] sm:$0xf]  ;;  %v12945_v31 = vor.u32 %v13978_v23, %v12944_v38 }
 0x57a   :  { %v13626_v26 = vld [vmem:[#allocation12 + $0x4f4] sm:$0xf0]  ;;  %8360 = vmatpush.bf16.msra.mxu2 %v11569_v63  ;;  %v10997_v63 = vor.u32 %v13486_v10, %v10994_v50  ;;  %v13774_v10 = vld [vmem:[#allocation12 + $0x99c] sm:$0xf] }
 0x57b   :  { %v12400_v1 = vld [vmem:[#allocation12 + $0xb98] sm:$0xf]  ;;  %v11537_v42 = vor.u32 %v13626_v26, %v11536_v54  ;;  %8352 = vmatmul.bf16.vlgmr.msra.gmra.mxu1 %v14946_v14  ;;  %8438 = vmatpush.bf16.msrb.mxu0 %v11061_v55  ;;  %v13478_v26 = vld [vmem:[#allocation12 + $0x5c] sm:$0xf] }
 0x57c   :  { %v13842_v33 = vld [vmem:[#allocation12 + $0xbb4] sm:$0xf0]  ;;  %8377 = vmatpush.bf16.msrb.mxu3 %v11697_v45  ;;  %8396 = vmatpush.bf16.msrb.mxu1 %v12433_v2  ;;  %v8186_v6 = vpop.f32.mrf.mxu0  ;;  %v12146_v50 = vld [vmem:[#allocation12 + $0x9b8] sm:$0xf0] }
 0x57d   :  { %v12912_v57 = vld [vmem:[#allocation12 + $0xf98] sm:$0xf]  ;;  %v12401_v19 = vor.u32 %v13842_v33, %v12400_v1 }
 0x57e   :  { %v13970_v32 = vld [vmem:[#allocation12 + $0xfb4] sm:$0xf0]  ;;  %8361 = vmatpush.bf16.msra.mxu2 %v11537_v42 }
 0x57f   :  { %v11504_v40 = vld [vmem:[#allocation12 + $0x498] sm:$0xf]  ;;  %v12913_v4 = vor.u32 %v13970_v32, %v12912_v57  ;;  %8378 = vmatmul.bf16.vlgmr.msrb.gmra.mxu3 %v14948_v46  ;;  %8439 = vmatpush.bf16.msrb.mxu0 %v11029_v18  ;;  %v15126_v57 = vadd.f32 %v8145_v52, %v8133_v25  ;;  %v8108_v32 = vpop.f32.mrf.mxu2  ;;  %v15128_v18 = vpop.f32.mrf.mxu3  ;;  %v11922_v25 = vld [vmem:[#allocation12 + $0x7f8] sm:$0xf0] }
 0x580   :  { %v13618_v24 = vld [vmem:[#allocation12 + $0x4b4] sm:$0xf0]  ;;  %8422 = vmatpush.bf16.msra.mxu3 %v12945_v31  ;;  %8397 = vmatpush.bf16.msrb.mxu1 %v12401_v19  ;;  %v15122_v31 = vsel %vm8542_vm5, %v8120_v16, %v8551_v13 }
 0x581   :  { %v12368_v39 = vld [vmem:[#allocation12 + $0xb58] sm:$0xf]  ;;  %v11505_v0 = vor.u32 %v13618_v24, %v11504_v40  ;;  %v8566_v33 = vmax.f32 %v15092_v29, %v15122_v31  ;;  %v10965_v24 = vor.u32 %v13478_v26, %v10962_v20  ;;  %v12114_v26 = vld [vmem:[#allocation12 + $0x978] sm:$0xf0] }
 0x582   :  { %v13834_v27 = vld [vmem:[#allocation12 + $0xb74] sm:$0xf0] }
 0x583   :  { %v12880_v30 = vld [vmem:[#allocation12 + $0xf58] sm:$0xf]  ;;  %v12369_v56 = vor.u32 %v13834_v27, %v12368_v39  ;;  %8362 = vmatpush.bf16.msra.mxu2 %v11505_v0  ;;  %8440 = vmatpush.bf16.msrb.mxu0 %v10997_v63  ;;  %v13590_v63 = vld [vmem:[#allocation12 + $0x3dc] sm:$0xf] }
 0x584   :  { %v13962_v7 = vld [vmem:[#allocation12 + $0xf74] sm:$0xf0]  ;;  %8423 = vmatpush.bf16.msra.mxu3 %v12913_v4 }
 0x585   :  { %v11472_v35 = vld [vmem:[#allocation12 + $0x458] sm:$0xf]  ;;  %v12881_v48 = vor.u32 %v13962_v7, %v12880_v30  ;;  %8398 = vmatpush.bf16.msrb.mxu1 %v12369_v56  ;;  %v13470_v30 = vld [vmem:[#allocation12 + $0x1c] sm:$0xf] }
 0x586   :  { %v13610_v11 = vld [vmem:[#allocation12 + $0x474] sm:$0xf0]  ;;  %v10930_v7 = vld [vmem:[#allocation12 + $0x38] sm:$0xf0] }
 0x587   :  { %v12336_v5 = vld [vmem:[#allocation12 + $0xb18] sm:$0xf]  ;;  %v11473_v36 = vor.u32 %v13610_v11, %v11472_v35  ;;  %8441 = vmatpush.bf16.msrb.mxu0 %v10965_v24  ;;  %v10933_v35 = vor.u32 %v13470_v30, %v10930_v7  ;;  %v11378_v24 = vld [vmem:[#allocation12 + $0x3b8] sm:$0xf0] }
 0x588   :  { %v13826_v34 = vld [vmem:[#allocation12 + $0xb34] sm:$0xf0]  ;;  %8424 = vmatpush.bf16.msra.mxu3 %v12881_v48 }
 0x589   :  { %v12848_v9 = vld [vmem:[#allocation12 + $0xf18] sm:$0xf]  ;;  %v12337_v17 = vor.u32 %v13826_v34, %v12336_v5  ;;  %8363 = vmatpush.bf16.msra.mxu2 %v11473_v36  ;;  %v12181_v5 = vor.u32 %v13782_v62, %v12178_v49 }
 0x58a   :  { %v13954_v41 = vld [vmem:[#allocation12 + $0xf34] sm:$0xf0] }
 0x58b   :  { %v11440_v28 = vld [vmem:[#allocation12 + $0x418] sm:$0xf]  ;;  %v12849_v58 = vor.u32 %v13954_v41, %v12848_v9  ;;  %8399 = vmatpush.bf16.msrb.mxu1 %v12337_v17  ;;  %v8147_v41 = vpop.f32.mrf.mxu1  ;;  %8442 = vmatpush.bf16.msrb.mxu0 %v10933_v35  ;;  %v11858_v35 = vld [vmem:[#allocation12 + $0x778] sm:$0xf0] }
 0x58c   :  { %v13602_v61 = vld [vmem:[#allocation12 + $0x434] sm:$0xf0] }
 0x58d   :  { %v12304_v38 = vld [vmem:[#allocation12 + $0xad8] sm:$0xf]  ;;  %v11441_v1 = vor.u32 %v13602_v61, %v11440_v28  ;;  %8425 = vmatpush.bf16.msra.mxu3 %v12849_v58  ;;  %v12149_v58 = vor.u32 %v13774_v10, %v12146_v50  ;;  %v15135_v50 = vpop.f32.mrf.mxu0 }
 0x58e   :  { %v13818_v23 = vld [vmem:[#allocation12 + $0xaf4] sm:$0xf0]  ;;  %8443 = vmatmul.bf16.vlgmr.msrb.gmra.mxu0 %v14937_v12 }
 0x58f   :  { %v12688_v8 = vld [vmem:[#allocation12 + $0xdd8] sm:$0xf]  ;;  %v12305_v59 = vor.u32 %v13818_v23, %v12304_v38  ;;  %8364 = vmatpush.bf16.msra.mxu2 %v11441_v1  ;;  %8487 = vmatpush.bf16.msra.mxu0 %v12181_v5  ;;  %v8158_v5 = vpop.f32.mrf.mxu2 }
 0x590   :  { %v13914_v45 = vld [vmem:[#allocation12 + $0xdf4] sm:$0xf0]  ;;  %v8159_v10 = vadd.f32 %v8158_v5, %v15126_v57  ;;  %v13638_v5 = vld [vmem:[#allocation12 + $0x55c] sm:$0xf] }
 0x591   :  { %v12816_v2 = vld [vmem:[#allocation12 + $0xed8] sm:$0xf]  ;;  %v12689_v43 = vor.u32 %v13914_v45, %v12688_v8  ;;  %8400 = vmatpush.bf16.msrb.mxu1 %v12305_v59  ;;  %v11410_v45 = vld [vmem:[#allocation12 + $0x3f8] sm:$0xf0] }
 0x592   :  { %v13946_v54 = vld [vmem:[#allocation12 + $0xef4] sm:$0xf0]  ;;  %8365 = vmatmul.bf16.vlgmr.msra.gmra.mxu2 %v14956_v22  ;;  %v11413_v32 = vor.u32 %v13590_v63, %v11410_v45 }
 0x593   :  { %v12272_v42 = vld [vmem:[#allocation12 + $0xa98] sm:$0xf]  ;;  %v12817_v40 = vor.u32 %v13946_v54, %v12816_v2  ;;  %8409 = vmatpush.bf16.msrb.mxu2 %v12689_v43  ;;  %v13718_v2 = vld [vmem:[#allocation12 + $0x7dc] sm:$0xf]  ;;  %8488 = vmatpush.bf16.msra.mxu0 %v12149_v58 }
 0x594   :  { %v13810_v19 = vld [vmem:[#allocation12 + $0xab4] sm:$0xf0]  ;;  %v13766_v54 = vld [vmem:[#allocation12 + $0x95c] sm:$0xf] }
 0x595   :  { %v12656_v4 = vld [vmem:[#allocation12 + $0xd98] sm:$0xf]  ;;  %v12273_v0 = vor.u32 %v13810_v19, %v12272_v42  ;;  %8426 = vmatpush.bf16.msra.mxu3 %v12817_v40  ;;  %v8173_v42 = vpop.f32.mrf.mxu3  ;;  %v11925_v19 = vor.u32 %v13718_v2, %v11922_v25  ;;  %v12117_v6 = vor.u32 %v13766_v54, %v12114_v26  ;;  %v13582_v40 = vld [vmem:[#allocation12 + $0x39c] sm:$0xf] }
 0x596   :  { %v13906_v55 = vld [vmem:[#allocation12 + $0xdb4] sm:$0xf0]  ;;  %v11381_v12 = vor.u32 %v13582_v40, %v11378_v24  ;;  %v13558_v2 = vld [vmem:[#allocation12 + $0x2dc] sm:$0xf]  ;;  %v8197_v42 = vpop.f32.mrf.mxu1 }
 0x597   :  { %v12784_v39 = vld [vmem:[#allocation12 + $0xe98] sm:$0xf]  ;;  %v12657_v3 = vor.u32 %v13906_v55, %v12656_v4  ;;  %8401 = vmatpush.bf16.msrb.mxu1 %v12273_v0  ;;  %v13710_v4 = vld [vmem:[#allocation12 + $0x79c] sm:$0xf]  ;;  %8489 = vmatpush.bf16.msra.mxu0 %v12117_v6  ;;  %v8160_v40 = vpop.f32.mrf.mxu2 }
 0x598   :  { %v13938_v27 = vld [vmem:[#allocation12 + $0xeb4] sm:$0xf0]  ;;  %v11890_v55 = vld [vmem:[#allocation12 + $0x7b8] sm:$0xf0] }
 0x599   :  { %v12240_v47 = vld [vmem:[#allocation12 + $0xa58] sm:$0xf]  ;;  %v12785_v56 = vor.u32 %v13938_v27, %v12784_v39  ;;  %8410 = vmatpush.bf16.msrb.mxu2 %v12657_v3  ;;  %v13758_v39 = vld [vmem:[#allocation12 + $0x91c] sm:$0xf]  ;;  %v11893_v49 = vor.u32 %v13710_v4, %v11890_v55 }
 0x59a   :  { %v13802_v11 = vld [vmem:[#allocation12 + $0xa74] sm:$0xf0]  ;;  %v12082_v27 = vld [vmem:[#allocation12 + $0x938] sm:$0xf0] }
 0x59b   :  { %v12624_v44 = vld [vmem:[#allocation12 + $0xd58] sm:$0xf]  ;;  %v12241_v16 = vor.u32 %v13802_v11, %v12240_v47  ;;  %8427 = vmatpush.bf16.msra.mxu3 %v12785_v56  ;;  %v12085_v0 = vor.u32 %v13758_v39, %v12082_v27  ;;  %v13574_v3 = vld [vmem:[#allocation12 + $0x35c] sm:$0xf] }
 0x59c   :  { %v13898_v48 = vld [vmem:[#allocation12 + $0xd74] sm:$0xf0]  ;;  %v11346_v47 = vld [vmem:[#allocation12 + $0x378] sm:$0xf0] }
 0x59d   :  { %v12752_v34 = vld [vmem:[#allocation12 + $0xe58] sm:$0xf]  ;;  %v12625_v36 = vor.u32 %v13898_v48, %v12624_v44  ;;  %8402 = vmatpush.bf16.msrb.mxu1 %v12241_v16  ;;  %v13702_v56 = vld [vmem:[#allocation12 + $0x75c] sm:$0xf]  ;;  %8490 = vmatpush.bf16.msra.mxu0 %v12085_v0 }
 0x59e   :  { %v13930_v9 = vld [vmem:[#allocation12 + $0xe74] sm:$0xf0]  ;;  %v13750_v11 = vld [vmem:[#allocation12 + $0x8dc] sm:$0xf]  ;;  %v11861_v16 = vor.u32 %v13702_v56, %v11858_v35 }
 0x59f   :  { %v12208_v28 = vld [vmem:[#allocation12 + $0xa18] sm:$0xf]  ;;  %v12753_v38 = vor.u32 %v13930_v9, %v12752_v34  ;;  %8411 = vmatpush.bf16.msrb.mxu2 %v12625_v36  ;;  %v12050_v44 = vld [vmem:[#allocation12 + $0x8f8] sm:$0xf0]  ;;  %v11349_v34 = vor.u32 %v13574_v3, %v11346_v47 }
 0x5a0   :  { %v13794_v61 = vld [vmem:[#allocation12 + $0xa34] sm:$0xf0]  ;;  %v12053_v36 = vor.u32 %v13750_v11, %v12050_v44  ;;  %v11282_v25 = vld [vmem:[#allocation12 + $0x2f8] sm:$0xf0] }
 0x5a1   :  { %v12592_v17 = vld [vmem:[#allocation12 + $0xd18] sm:$0xf]  ;;  %v12209_v20 = vor.u32 %v13794_v61, %v12208_v28  ;;  %8428 = vmatpush.bf16.msra.mxu3 %v12753_v38  ;;  %v13566_v28 = vld [vmem:[#allocation12 + $0x31c] sm:$0xf]  ;;  %v11285_v24 = vor.u32 %v13558_v2, %v11282_v25 }
 0x5a2   :  { %v13890_v23 = vld [vmem:[#allocation12 + $0xd34] sm:$0xf0]  ;;  %v11314_v61 = vld [vmem:[#allocation12 + $0x338] sm:$0xf0]  ;;  %8491 = vmatpush.bf16.msra.mxu0 %v12053_v36 }
 0x5a3   :  { %v12720_v8 = vld [vmem:[#allocation12 + $0xe18] sm:$0xf]  ;;  %v12593_v52 = vor.u32 %v13890_v23, %v12592_v17  ;;  %8403 = vmatpush.bf16.msrb.mxu1 %v12209_v20  ;;  %v13694_v17 = vld [vmem:[#allocation12 + $0x71c] sm:$0xf]  ;;  %v11317_v45 = vor.u32 %v13566_v28, %v11314_v61 }
 0x5a4   :  { %v13922_v13 = vld [vmem:[#allocation12 + $0xe34] sm:$0xf0]  ;;  %v11826_v38 = vld [vmem:[#allocation12 + $0x738] sm:$0xf0] }
 0x5a5   :  { %v12721_v1 = vor.u32 %v13922_v13, %v12720_v8  ;;  %v12560_v59 = vld [vmem:[#allocation12 + $0xcd8] sm:$0xf]  ;;  %8412 = vmatpush.bf16.msrb.mxu2 %v12593_v52  ;;  %v13742_v23 = vld [vmem:[#allocation12 + $0x89c] sm:$0xf]  ;;  %v8172_v13 = vadd.f32 %v15128_v18, %v8159_v10  ;;  %v11829_v26 = vor.u32 %v13694_v17, %v11826_v38 }
 0x5a6   :  { %v13882_v43 = vld [vmem:[#allocation12 + $0xcf4] sm:$0xf0]  ;;  %8404 = vmatmul.bf16.vlgmr.msrb.gmra.mxu1 %v14954_v15  ;;  %v12018_v8 = vld [vmem:[#allocation12 + $0x8b8] sm:$0xf0] }
 0x5a7   :  { %v12561_v30 = vor.u32 %v13882_v43, %v12560_v59  ;;  %8429 = vmatpush.bf16.msra.mxu3 %v12721_v1  ;;  %8448 = vmatpush.bf16.msra.mxu1 %v11413_v32  ;;  %v12528_v7 = vld [vmem:[#allocation12 + $0xc98] sm:$0xf]  ;;  %v8185_v54 = vadd.f32 %v15117_v21, %v8172_v13  ;;  %v12021_v20 = vor.u32 %v13742_v23, %v12018_v8  ;;  %v13654_v52 = vld [vmem:[#allocation12 + $0x5dc] sm:$0xf]  ;;  %v8238_v21 = vpop.f32.mrf.mxu0 }
 0x5a8   :  { %v13874_v62 = vld [vmem:[#allocation12 + $0xcb4] sm:$0xf0]  ;;  %v11666_v1 = vld [vmem:[#allocation12 + $0x5f8] sm:$0xf0] }
 0x5a9   :  { %8413 = vmatpush.bf16.msrb.mxu2 %v12561_v30  ;;  %v12529_v48 = vor.u32 %v13874_v62, %v12528_v7  ;;  %v12496_v9 = vld [vmem:[#allocation12 + $0xc58] sm:$0xf]  ;;  %v13686_v32 = vld [vmem:[#allocation12 + $0x6dc] sm:$0xf]  ;;  %v15139_v6 = vadd.f32 %v8197_v42, %v8185_v54  ;;  %v11669_v4 = vor.u32 %v13654_v52, %v11666_v1  ;;  %8492 = vmatpush.bf16.msra.mxu0 %v12021_v20 }
 0x5aa   :  { %8430 = vmatmul.bf16.vlgmr.msra.gmra.mxu3 %v14958_v60  ;;  %v13866_v41 = vld [vmem:[#allocation12 + $0xc74] sm:$0xf0]  ;;  %v11794_v59 = vld [vmem:[#allocation12 + $0x6f8] sm:$0xf0] }
 0x5ab   :  { %8474 = vmatpush.bf16.msrb.mxu3 %v11925_v19  ;;  %8449 = vmatpush.bf16.msra.mxu1 %v11381_v12  ;;  %v12497_v58 = vor.u32 %v13866_v41, %v12496_v9  ;;  %v12464_v63 = vld [vmem:[#allocation12 + $0xc18] sm:$0xf]  ;;  %v13734_v43 = vld [vmem:[#allocation12 + $0x85c] sm:$0xf]  ;;  %v11797_v27 = vor.u32 %v13686_v32, %v11794_v59  ;;  %v15141_v9 = vpop.f32.mrf.mxu3 }
 0x5ac   :  { %v13858_v57 = vld [vmem:[#allocation12 + $0xc34] sm:$0xf0]  ;;  %v11986_v18 = vld [vmem:[#allocation12 + $0x878] sm:$0xf0] }
 0x5ad   :  { %8414 = vmatpush.bf16.msrb.mxu2 %v12529_v48  ;;  %v12465_v19 = vor.u32 %v13858_v57, %v12464_v63  ;;  %v13550_v55 = vld [vmem:[#allocation12 + $0x29c] sm:$0xf]  ;;  %v11989_v30 = vor.u32 %v13734_v43, %v11986_v18 }
 0x5ae   :  { %v11250_v39 = vld [vmem:[#allocation12 + $0x2b8] sm:$0xf0] }
 0x5af   :  { %8475 = vmatpush.bf16.msrb.mxu3 %v11893_v49  ;;  %8450 = vmatpush.bf16.msra.mxu1 %v11349_v34  ;;  %v13646_v12 = vld [vmem:[#allocation12 + $0x59c] sm:$0xf]  ;;  %v11253_v47 = vor.u32 %v13550_v55, %v11250_v39 }
 0x5b0   :  { %v11634_v7 = vld [vmem:[#allocation12 + $0x5b8] sm:$0xf0]  ;;  %8493 = vmatpush.bf16.msra.mxu0 %v11989_v30 }
 0x5b1   :  { %8415 = vmatpush.bf16.msrb.mxu2 %v12497_v58  ;;  %v13678_v62 = vld [vmem:[#allocation12 + $0x69c] sm:$0xf]  ;;  %v11637_v56 = vor.u32 %v13646_v12, %v11634_v7  ;;  %v8210_v7 = vpop.f32.mrf.mxu2 }
 0x5b2   :  { %v11762_v49 = vld [vmem:[#allocation12 + $0x6b8] sm:$0xf0] }
 0x5b3   :  { %8476 = vmatpush.bf16.msrb.mxu3 %v11861_v16  ;;  %8451 = vmatpush.bf16.msra.mxu1 %v11317_v45  ;;  %v13726_v0 = vld [vmem:[#allocation12 + $0x81c] sm:$0xf]  ;;  %v11765_v11 = vor.u32 %v13678_v62, %v11762_v49  ;;  %v8199_v16 = vpop.f32.mrf.mxu1  ;;  %v8225_v32 = vpop.f32.mrf.mxu3 }
 0x5b4   :  { %v11954_v3 = vld [vmem:[#allocation12 + $0x838] sm:$0xf0] }
 0x5b5   :  { %8416 = vmatpush.bf16.msrb.mxu2 %v12465_v19  ;;  %v13542_v35 = vld [vmem:[#allocation12 + $0x25c] sm:$0xf]  ;;  %v11957_v44 = vor.u32 %v13726_v0, %v11954_v3  ;;  %v8211_v3 = vadd.f32 %v8210_v7, %v15139_v6 }
 0x5b6   :  { %v11218_v48 = vld [vmem:[#allocation12 + $0x278] sm:$0xf0] }
 0x5b7   :  { %8477 = vmatpush.bf16.msrb.mxu3 %v11829_v26  ;;  %8452 = vmatpush.bf16.msra.mxu1 %v11285_v24  ;;  %v11602_v34 = vld [vmem:[#allocation12 + $0x578] sm:$0xf0]  ;;  %v11221_v36 = vor.u32 %v13542_v35, %v11218_v48 }
 0x5b8   :  { %8417 = vmatmul.bf16.vlgmr.msrb.gmra.mxu2 %v14964_v37  ;;  %v13670_v41 = vld [vmem:[#allocation12 + $0x65c] sm:$0xf]  ;;  %v11605_v28 = vor.u32 %v13638_v5, %v11602_v34  ;;  %8494 = vmatpush.bf16.msra.mxu0 %v11957_v44  ;;  %v8224_v5 = vadd.f32 %v15141_v9, %v8211_v3 }
 0x5b9   :  { %8461 = vmatpush.bf16.msra.mxu2 %v11669_v4  ;;  %v11730_v10 = vld [vmem:[#allocation12 + $0x678] sm:$0xf0] }
 0x5ba   :  { %v13534_v61 = vld [vmem:[#allocation12 + $0x21c] sm:$0xf]  ;;  %v11733_v38 = vor.u32 %v13670_v41, %v11730_v10  ;;  %vm8543_vm6 = vcmp.ge.f32.partialorder %v8224_v5, 0.0 }
 0x5bb   :  { %8478 = vmatpush.bf16.msrb.mxu3 %v11797_v27  ;;  %8453 = vmatpush.bf16.msra.mxu1 %v11253_v47  ;;  %v11186_v17 = vld [vmem:[#allocation12 + $0x238] sm:$0xf0]  ;;  %v15148_v47 = vpop.f32.mrf.mxu0 }
 0x5bc   :  { %v13630_v23 = vld [vmem:[#allocation12 + $0x51c] sm:$0xf]  ;;  %v11189_v25 = vor.u32 %v13534_v61, %v11186_v17  ;;  %8495 = vmatmul.bf16.vlgmr.msra.gmra.mxu0 %v14940_v53 }
 0x5bd   :  { %8462 = vmatpush.bf16.msra.mxu2 %v11637_v56  ;;  %v11570_v8 = vld [vmem:[#allocation12 + $0x538] sm:$0xf0] }
 0x5be   :  { %v13662_v13 = vld [vmem:[#allocation12 + $0x61c] sm:$0xf]  ;;  %v11573_v54 = vor.u32 %v13630_v23, %v11570_v8 }
 0x5bf   :  { %8479 = vmatpush.bf16.msrb.mxu3 %v11765_v11  ;;  %v11698_v58 = vld [vmem:[#allocation12 + $0x638] sm:$0xf0]  ;;  %8454 = vmatpush.bf16.msra.mxu1 %v11221_v36 }
 0x5c0   :  { %v13846_v63 = vld [vmem:[#allocation12 + $0xbdc] sm:$0xf]  ;;  %v11701_v26 = vor.u32 %v13662_v13, %v11698_v58  ;;  %v8249_v58 = vpop.f32.mrf.mxu1 }
 0x5c1   :  { %v12434_v45 = vld [vmem:[#allocation12 + $0xbf8] sm:$0xf0]  ;;  %8463 = vmatpush.bf16.msra.mxu2 %v11605_v28  ;;  %v8552_v28 = vmul.f32 %v15038_v51, %v8224_v5 }
 0x5c2   :  { %v13974_v57 = vld [vmem:[#allocation12 + $0xfdc] sm:$0xf]  ;;  %v12437_v20 = vor.u32 %v13846_v63, %v12434_v45 }
 0x5c3   :  { %v12946_v2 = vld [vmem:[#allocation12 + $0xff8] sm:$0xf0]  ;;  %8480 = vmatpush.bf16.msrb.mxu3 %v11733_v38  ;;  %8455 = vmatpush.bf16.msra.mxu1 %v11189_v25  ;;  %v8560_v9 = vsel %vm8543_vm6, %v8224_v5, %v8552_v28 }
 0x5c4   :  { %v13622_v52 = vld [vmem:[#allocation12 + $0x4dc] sm:$0xf]  ;;  %v12949_v59 = vor.u32 %v13974_v57, %v12946_v2  ;;  %v15159_v45 = vmax.f32 %v8566_v33, %v8560_v9  ;;  %v8212_v2 = vpop.f32.mrf.mxu2 }
 0x5c5   :  { %v11538_v1 = vld [vmem:[#allocation12 + $0x4f8] sm:$0xf0]  ;;  %8464 = vmatpush.bf16.msra.mxu2 %v11573_v54 }
 0x5c6   :  { %v13838_v43 = vld [vmem:[#allocation12 + $0xb9c] sm:$0xf]  ;;  %v11541_v40 = vor.u32 %v13622_v52, %v11538_v1  ;;  %8456 = vmatmul.bf16.vlgmr.msra.gmra.mxu1 %v14946_v14  ;;  %v15150_v14 = vld [vmem:[#allocation13] sm:$0xff] }
 0x5c7   :  { %v12402_v18 = vld [vmem:[#allocation12 + $0xbb8] sm:$0xf0]  ;;  %8481 = vmatpush.bf16.msrb.mxu3 %v11701_v26  ;;  %8500 = vmatpush.bf16.msrb.mxu1 %v12437_v20  ;;  %v5136_v44 = vperm.slane %v15150_v14, 5 }
 0x5c8   :  { %v13966_v42 = vld [vmem:[#allocation12 + $0xf9c] sm:$0xf]  ;;  %v12405_v24 = vor.u32 %v13838_v43, %v12402_v18 }
 0x5c9   :  { %v12914_v19 = vld [vmem:[#allocation12 + $0xfb8] sm:$0xf0]  ;;  %8465 = vmatpush.bf16.msra.mxu2 %v11541_v40  ;;  %v8237_v23 = vadd.f32 %v15135_v50, %v5136_v44  ;;  %v8290_v50 = vpop.f32.mrf.mxu0 }
 0x5ca   :  { %v13614_v4 = vld [vmem:[#allocation12 + $0x49c] sm:$0xf]  ;;  %v12917_v53 = vor.u32 %v13966_v42, %v12914_v19  ;;  %8482 = vmatmul.bf16.vlgmr.msrb.gmra.mxu3 %v14948_v46 }
 0x5cb   :  { %v11506_v55 = vld [vmem:[#allocation12 + $0x4b8] sm:$0xf0]  ;;  %8526 = vmatpush.bf16.msra.mxu3 %v12949_v59  ;;  %8501 = vmatpush.bf16.msrb.mxu1 %v12405_v24  ;;  %v15161_v57 = vadd.f32 %v8249_v58, %v8237_v23  ;;  %v8275_v24 = vpop.f32.mrf.mxu3 }
 0x5cc   :  { %v13830_v39 = vld [vmem:[#allocation12 + $0xb5c] sm:$0xf]  ;;  %v11509_v12 = vor.u32 %v13614_v4, %v11506_v55 }
 0x5cd   :  { %v12370_v21 = vld [vmem:[#allocation12 + $0xb78] sm:$0xf0] }
 0x5ce   :  { %v13958_v27 = vld [vmem:[#allocation12 + $0xf5c] sm:$0xf]  ;;  %v12373_v62 = vor.u32 %v13830_v39, %v12370_v21  ;;  %8466 = vmatpush.bf16.msra.mxu2 %v11509_v12 }
 0x5cf   :  { %v12882_v30 = vld [vmem:[#allocation12 + $0xf78] sm:$0xf0]  ;;  %8527 = vmatpush.bf16.msra.mxu3 %v12917_v53  ;;  %v8251_v53 = vpop.f32.mrf.mxu1 }
 0x5d0   :  { %v13606_v49 = vld [vmem:[#allocation12 + $0x45c] sm:$0xf]  ;;  %v12885_v56 = vor.u32 %v13958_v27, %v12882_v30  ;;  %8502 = vmatpush.bf16.msrb.mxu1 %v12373_v62 }
 0x5d1   :  { %v11474_v0 = vld [vmem:[#allocation12 + $0x478] sm:$0xf0] }
 0x5d2   :  { %v13822_v35 = vld [vmem:[#allocation12 + $0xb1c] sm:$0xf]  ;;  %v11477_v34 = vor.u32 %v13606_v49, %v11474_v0 }
 0x5d3   :  { %v12338_v11 = vld [vmem:[#allocation12 + $0xb38] sm:$0xf0]  ;;  %8528 = vmatpush.bf16.msra.mxu3 %v12885_v56  ;;  %v8277_v44 = vpop.f32.mrf.mxu3 }
 0x5d4   :  { %v13950_v46 = vld [vmem:[#allocation12 + $0xf1c] sm:$0xf]  ;;  %v12341_v10 = vor.u32 %v13822_v35, %v12338_v11  ;;  %8467 = vmatpush.bf16.msra.mxu2 %v11477_v34 }
 0x5d5   :  { %v12850_v48 = vld [vmem:[#allocation12 + $0xf38] sm:$0xf0] }
 0x5d6   :  { %v13598_v41 = vld [vmem:[#allocation12 + $0x41c] sm:$0xf]  ;;  %v12853_v61 = vor.u32 %v13950_v46, %v12850_v48  ;;  %8503 = vmatpush.bf16.msrb.mxu1 %v12341_v10 }
 0x5d7   :  { %v11442_v6 = vld [vmem:[#allocation12 + $0x438] sm:$0xf0] }
 0x5d8   :  { %v13814_v16 = vld [vmem:[#allocation12 + $0xadc] sm:$0xf]  ;;  %v11445_v63 = vor.u32 %v13598_v41, %v11442_v6  ;;  %8529 = vmatpush.bf16.msra.mxu3 %v12853_v61  ;;  %v8262_v41 = vpop.f32.mrf.mxu2 }
 0x5d9   :  { %v12306_v36 = vld [vmem:[#allocation12 + $0xaf8] sm:$0xf0] }
 0x5da   :  { %v13910_v17 = vld [vmem:[#allocation12 + $0xddc] sm:$0xf]  ;;  %v12309_v25 = vor.u32 %v13814_v16, %v12306_v36  ;;  %8468 = vmatpush.bf16.msra.mxu2 %v11445_v63  ;;  %v8263_v16 = vadd.f32 %v8262_v41, %v15161_v57  ;;  %v8340_v36 = vpop.f32.mrf.mxu0 }
 0x5db   :  { %v12690_v38 = vld [vmem:[#allocation12 + $0xdf8] sm:$0xf0] }
 0x5dc   :  { %v13942_v8 = vld [vmem:[#allocation12 + $0xedc] sm:$0xf]  ;;  %v12693_v54 = vor.u32 %v13910_v17, %v12690_v38  ;;  %8504 = vmatpush.bf16.msrb.mxu1 %v12309_v25  ;;  %v8276_v28 = vadd.f32 %v8275_v24, %v8263_v16 }
 0x5dd   :  { %v12818_v13 = vld [vmem:[#allocation12 + $0xef8] sm:$0xf0]  ;;  %8469 = vmatmul.bf16.vlgmr.msra.gmra.mxu2 %v14956_v22 }
 0x5de   :  { %v13806_v26 = vld [vmem:[#allocation12 + $0xa9c] sm:$0xf]  ;;  %v12821_v20 = vor.u32 %v13942_v8, %v12818_v13  ;;  %8513 = vmatpush.bf16.msrb.mxu2 %v12693_v54  ;;  %v8289_v23 = vadd.f32 %v15148_v47, %v8276_v28  ;;  %v8301_v8 = vpop.f32.mrf.mxu1 }
 0x5df   :  { %v12274_v52 = vld [vmem:[#allocation12 + $0xab8] sm:$0xf0] }
 0x5e0   :  { %v13902_v1 = vld [vmem:[#allocation12 + $0xd9c] sm:$0xf]  ;;  %v12277_v29 = vor.u32 %v13806_v26, %v12274_v52  ;;  %8530 = vmatpush.bf16.msra.mxu3 %v12821_v20  ;;  %v8302_v13 = vadd.f32 %v8301_v8, %v8289_v23  ;;  %v5137_v26 = vperm.slane %v15150_v14, 6  ;;  %v8622_v23 = vld [vmem:[#allocation15 + $0x198] sm:$0xff]  ;;  %v8615_v8 = vld [vmem:[#allocation15 + $0x160] sm:$0xff] }
 0x5e1   :  { %v12658_v32 = vld [vmem:[#allocation12 + $0xdb8] sm:$0xf0] }
 0x5e2   :  { %v13934_v59 = vld [vmem:[#allocation12 + $0xe9c] sm:$0xf]  ;;  %v12661_v31 = vor.u32 %v13902_v1, %v12658_v32  ;;  %8505 = vmatpush.bf16.msrb.mxu1 %v12277_v29  ;;  %v8342_v9 = vpop.f32.mrf.mxu0  ;;  %v8327_v58 = vpop.f32.mrf.mxu3  ;;  %v8341_v20 = vadd.f32 %v8340_v36, %v5137_v26  ;;  %v8626_v36 = vld [vmem:[#allocation15 + $0x1b8] sm:$0xff]  ;;  %v8608_v26 = vld [vmem:[#allocation15 + $0x128] sm:$0xff] }
 0x5e3   :  { %v12786_v43 = vld [vmem:[#allocation12 + $0xeb8] sm:$0xf0]  ;;  %v8611_v9 = vld [vmem:[#allocation15 + $0x140] sm:$0xff] }
 0x5e4   :  { %v13798_v33 = vld [vmem:[#allocation12 + $0xa5c] sm:$0xf]  ;;  %v12789_v18 = vor.u32 %v13934_v59, %v12786_v43  ;;  %8514 = vmatpush.bf16.msrb.mxu2 %v12661_v31 }
 0x5e5   :  { %v12242_v42 = vld [vmem:[#allocation12 + $0xa78] sm:$0xf0] }
 0x5e6   :  { %v13894_v19 = vld [vmem:[#allocation12 + $0xd5c] sm:$0xf]  ;;  %v12245_v39 = vor.u32 %v13798_v33, %v12242_v42  ;;  %8531 = vmatpush.bf16.msra.mxu3 %v12789_v18  ;;  %v8303_v63 = vpop.f32.mrf.mxu1 }
 0x5e7   :  { %v12626_v40 = vld [vmem:[#allocation12 + $0xd78] sm:$0xf0]  ;;  %v8612_v63 = vld [vmem:[#allocation15 + $0x148] sm:$0xff] }
 0x5e8   :  { %v13926_v4 = vld [vmem:[#allocation12 + $0xe5c] sm:$0xf]  ;;  %v12629_v21 = vor.u32 %v13894_v19, %v12626_v40  ;;  %8506 = vmatpush.bf16.msrb.mxu1 %v12245_v39 }
 0x5e9   :  { %v12754_v55 = vld [vmem:[#allocation12 + $0xe78] sm:$0xf0] }
 0x5ea   :  { %v13790_v27 = vld [vmem:[#allocation12 + $0xa1c] sm:$0xf]  ;;  %v12757_v30 = vor.u32 %v13926_v4, %v12754_v55  ;;  %8515 = vmatpush.bf16.msrb.mxu2 %v12629_v21  ;;  %v8329_v57 = vpop.f32.mrf.mxu3 }
 0x5eb   :  { %v12210_v12 = vld [vmem:[#allocation12 + $0xa38] sm:$0xf0]  ;;  %v8392_v54 = vpop.f32.mrf.mxu0 }
 0x5ec   :  { %v13886_v7 = vld [vmem:[#allocation12 + $0xd1c] sm:$0xf]  ;;  %v12213_v3 = vor.u32 %v13790_v27, %v12210_v12  ;;  %8532 = vmatpush.bf16.msra.mxu3 %v12757_v30 }
 0x5ed   :  { %v12594_v62 = vld [vmem:[#allocation12 + $0xd38] sm:$0xf0] }
 0x5ee   :  { %v13918_v49 = vld [vmem:[#allocation12 + $0xe1c] sm:$0xf]  ;;  %v12597_v56 = vor.u32 %v13886_v7, %v12594_v62  ;;  %8507 = vmatpush.bf16.msrb.mxu1 %v12213_v3  ;;  %v8632_v3 = vld [vmem:[#allocation15 + $0x1e8] sm:$0xff] }
 0x5ef   :  { %v12722_v0 = vld [vmem:[#allocation12 + $0xe38] sm:$0xf0] }
 0x5f0   :  { %v12725_v22 = vor.u32 %v13918_v49, %v12722_v0  ;;  %v13878_v35 = vld [vmem:[#allocation12 + $0xcdc] sm:$0xf]  ;;  %8516 = vmatpush.bf16.msrb.mxu2 %v12597_v56  ;;  %v8631_v0 = vld [vmem:[#allocation15 + $0x1e0] sm:$0xff] }
 0x5f1   :  { %v12562_v11 = vld [vmem:[#allocation12 + $0xcf8] sm:$0xf0]  ;;  %8508 = vmatmul.bf16.vlgmr.msrb.gmra.mxu1 %v14954_v15  ;;  %8635 = vmatpush.msrb.mxu0 %v8631_v0  ;;  %v8586_v0 = vld [vmem:[#allocation15 + $0x78] sm:$0xff] }
 0x5f2   :  { %v12565_v46 = vor.u32 %v13878_v35, %v12562_v11  ;;  %8533 = vmatpush.bf16.msra.mxu3 %v12725_v22  ;;  %v13870_v48 = vld [vmem:[#allocation12 + $0xc9c] sm:$0xf]  ;;  %8655 = vmatpush.msra.mxu1 %v8632_v3  ;;  %v8634_v22 = vld [vmem:[#allocation15 + $0x1f8] sm:$0xff]  ;;  %v8627_v35 = vld [vmem:[#allocation15 + $0x1c0] sm:$0xff] }
 0x5f3   :  { %v12530_v5 = vld [vmem:[#allocation12 + $0xcb8] sm:$0xf0]  ;;  %v8394_v29 = vpop.f32.mrf.mxu0  ;;  %v8628_v11 = vld [vmem:[#allocation15 + $0x1c8] sm:$0xff]  ;;  %8636 = vmatpush.msrb.mxu0 %v8627_v35  ;;  %v8579_v3 = vld [vmem:[#allocation15 + $0x40] sm:$0xff] }
 0x5f4   :  { %8517 = vmatpush.bf16.msrb.mxu2 %v12565_v46  ;;  %v12533_v34 = vor.u32 %v13870_v48, %v12530_v5  ;;  %v13862_v10 = vld [vmem:[#allocation12 + $0xc5c] sm:$0xf]  ;;  %v8630_v5 = vld [vmem:[#allocation15 + $0x1d8] sm:$0xff]  ;;  %8656 = vmatpush.msra.mxu1 %v8628_v11  ;;  %v8575_v11 = vld [vmem:[#allocation15 + $0x20] sm:$0xff] }
 0x5f5   :  { %8534 = vmatmul.bf16.vlgmr.msra.gmra.mxu3 %v14958_v60  ;;  %v12498_v6 = vld [vmem:[#allocation12 + $0xc78] sm:$0xf0]  ;;  %v8264_v60 = vpop.f32.mrf.mxu2  ;;  %v8582_v35 = vld [vmem:[#allocation15 + $0x58] sm:$0xff] }
 0x5f6   :  { %v12501_v61 = vor.u32 %v13862_v10, %v12498_v6  ;;  %v13854_v17 = vld [vmem:[#allocation12 + $0xc1c] sm:$0xf]  ;;  %8695 = vmatpush.msrb.mxu3 %v8634_v22  ;;  %v8624_v6 = vld [vmem:[#allocation15 + $0x1a8] sm:$0xff]  ;;  %v8618_v60 = vld [vmem:[#allocation15 + $0x178] sm:$0xff] }
 0x5f7   :  { %v12466_v38 = vld [vmem:[#allocation12 + $0xc38] sm:$0xf0]  ;;  %8657 = vmatpush.msra.mxu1 %v8624_v6 }
 0x5f8   :  { %8518 = vmatpush.bf16.msrb.mxu2 %v12533_v34  ;;  %v12469_v15 = vor.u32 %v13854_v17, %v12466_v38  ;;  %v8353_v1 = vpop.f32.mrf.mxu1  ;;  %v8633_v56 = vld [vmem:[#allocation15 + $0x1f0] sm:$0xff]  ;;  %v8623_v34 = vld [vmem:[#allocation15 + $0x1a0] sm:$0xff]  ;;  %8696 = vmatpush.msrb.mxu3 %v8630_v5  ;;  %v8620_v17 = vld [vmem:[#allocation15 + $0x188] sm:$0xff] }
 0x5f9   :  { %v8354_v59 = vadd.f32 %v8353_v1, %v8341_v20  ;;  %v8629_v48 = vld [vmem:[#allocation15 + $0x1d0] sm:$0xff]  ;;  %8637 = vmatpush.msrb.mxu0 %v8623_v34  ;;  %8658 = vmatpush.msra.mxu1 %v8620_v17  ;;  %v8603_v20 = vld [vmem:[#allocation15 + $0x100] sm:$0xff]  ;;  %v8578_v5 = vld [vmem:[#allocation15 + $0x38] sm:$0xff] }
 0x5fa   :  { %v8625_v16 = vld [vmem:[#allocation15 + $0x1b0] sm:$0xff]  ;;  %8697 = vmatpush.msrb.mxu3 %v8626_v36  ;;  %v8571_v34 = vld [vmem:[#allocation15] sm:$0xff] }
 0x5fb   :  { %v8621_v38 = vld [vmem:[#allocation15 + $0x190] sm:$0xff] }
 0x5fc   :  { %8519 = vmatpush.bf16.msrb.mxu2 %v12501_v61  ;;  %v8619_v61 = vld [vmem:[#allocation15 + $0x180] sm:$0xff]  ;;  %8698 = vmatpush.msrb.mxu3 %v8622_v23  ;;  %v8613_v57 = vld [vmem:[#allocation15 + $0x150] sm:$0xff] }
 0x5fd   :  { %v8314_v2 = vpop.f32.mrf.mxu2  ;;  %8638 = vmatpush.msrb.mxu0 %v8619_v61  ;;  %v8605_v1 = vld [vmem:[#allocation15 + $0x110] sm:$0xff] }
 0x5fe   :  { %v8315_v25 = vadd.f32 %v8314_v2, %v8302_v13  ;;  %v8617_v13 = vld [vmem:[#allocation15 + $0x170] sm:$0xff]  ;;  %v8614_v2 = vld [vmem:[#allocation15 + $0x158] sm:$0xff]  ;;  %8699 = vmatpush.msrb.mxu3 %v8618_v60 }
 0x5ff   :  { %8639 = vmatpush.msrb.mxu0 %v8615_v8  ;;  %v8601_v29 = vld [vmem:[#allocation15 + $0xf0] sm:$0xff] }
 0x600   :  { %8520 = vmatpush.bf16.msrb.mxu2 %v12469_v15  ;;  %v8328_v50 = vadd.f32 %v8327_v58, %v8315_v25  ;;  %v8355_v31 = vpop.f32.mrf.mxu1  ;;  %v8616_v15 = vld [vmem:[#allocation15 + $0x168] sm:$0xff]  ;;  %8700 = vmatpush.msrb.mxu3 %v8614_v2  ;;  %v8581_v22 = vld [vmem:[#allocation15 + $0x50] sm:$0xff] }
 0x601   :  { %8659 = vmatpush.msra.mxu1 %v8616_v15  ;;  %8640 = vmatpush.msrb.mxu0 %v8611_v9  ;;  %v8595_v31 = vld [vmem:[#allocation15 + $0xc0] sm:$0xff]  ;;  %v8573_v6 = vld [vmem:[#allocation15 + $0x10] sm:$0xff] }
 0x602   :  { %vm8544_vm7 = vcmp.ge.f32.partialorder %v8328_v50, 0.0  ;;  %v8553_v47 = vmul.f32 %v15038_v51, %v8328_v50 }
 0x603   :  { %8521 = vmatmul.bf16.vlgmr.msrb.gmra.mxu2 %v14964_v37  ;;  %v8379_v37 = vpop.f32.mrf.mxu3  ;;  %8660 = vmatpush.msra.mxu1 %v8612_v63 }
 0x604   :  { %v8561_v52 = vsel %vm8544_vm7, %v8328_v50, %v8553_v47  ;;  %8675 = vmatpush.msra.mxu2 %v8633_v56  ;;  %v8609_v50 = vld [vmem:[#allocation15 + $0x130] sm:$0xff]  ;;  %v8610_v47 = vld [vmem:[#allocation15 + $0x138] sm:$0xff]  ;;  %v8580_v56 = vld [vmem:[#allocation15 + $0x48] sm:$0xff] }
 0x605   :  { %v8568_v32 = vmax.f32 %v15159_v45, %v8561_v52  ;;  %v8316_v43 = vpop.f32.mrf.mxu2  ;;  %8661 = vmatpush.msra.mxu1 %v8608_v26  ;;  %8701 = vmatpush.msrb.mxu3 %v8610_v47  ;;  %v8604_v52 = vld [vmem:[#allocation15 + $0x108] sm:$0xff]  ;;  %v8770_v47 = vld [vmem:[#allocation21 + $0x58] sm:$0xff] }
 0x606   :  { %8676 = vmatpush.msra.mxu2 %v8629_v48  ;;  %v8600_v43 = vld [vmem:[#allocation15 + $0xe8] sm:$0xff]  ;;  %v8577_v48 = vld [vmem:[#allocation15 + $0x30] sm:$0xff] }
 0x607   :  { %8662 = vmatpush.msra.mxu1 %v8604_v52  ;;  %v8767_v52 = vld [vmem:[#allocation21 + $0x40] sm:$0xff] }
 0x608   :  { %8677 = vmatpush.msra.mxu2 %v8625_v16  ;;  %v8574_v16 = vld [vmem:[#allocation15 + $0x18] sm:$0xff] }
 0x609   :  { %8663 = vmatpush.msra.mxu1 %v8600_v43 }
 0x60a   :  { %8678 = vmatpush.msra.mxu2 %v8621_v38 }
 0x60b   :  { %v8381_v33 = vpop.f32.mrf.mxu3  ;;  %v15172_v19 = vpop.f32.mrf.mxu0 }
 0x60c   :  { %8679 = vmatpush.msra.mxu2 %v8617_v13 }
 0x60e   :  { %8680 = vmatpush.msra.mxu2 %v8613_v57 }
 0x610   :  { %8681 = vmatpush.msra.mxu2 %v8609_v50  ;;  %v8772_v50 = vld [vmem:[#allocation21 + $0x68] sm:$0xff] }
 0x612   :  { %8682 = vmatpush.msra.mxu2 %v8605_v1  ;;  %v8765_v1 = vld [vmem:[#allocation21 + $0x30] sm:$0xff] }
 0x613   :  { %v8446_v39 = vpop.f32.mrf.mxu0 }
 0x614   :  { %8683 = vmatpush.msra.mxu2 %v8601_v29  ;;  %v8587_v39 = vld [vmem:[#allocation15 + $0x80] sm:$0xff]  ;;  %v8716_v29 = vld [vmem:[#allocation16 + $0x8] sm:$0xff] }
 0x615   :  { %v8366_v18 = vpop.f32.mrf.mxu2 }
 0x616   :  { %v8367_v42 = vadd.f32 %v8366_v18, %v8354_v59  ;;  %v8599_v59 = vld [vmem:[#allocation15 + $0xe0] sm:$0xff]  ;;  %v8596_v18 = vld [vmem:[#allocation15 + $0xc8] sm:$0xff] }
 0x617   :  { %8664 = vmatpush.msra.mxu1 %v8596_v18 }
 0x618   :  { %v8380_v40 = vadd.f32 %v8379_v37, %v8367_v42  ;;  %v8602_v37 = vld [vmem:[#allocation15 + $0xf8] sm:$0xff]  ;;  %v8597_v42 = vld [vmem:[#allocation15 + $0xd0] sm:$0xff] }
 0x619   :  { %8684 = vmatpush.msra.mxu2 %v8597_v42  ;;  %v8717_v42 = vld [vmem:[#allocation16 + $0x10] sm:$0xff] }
 0x61a   :  { %v8393_v24 = vadd.f32 %v8392_v54, %v8380_v40  ;;  %v8607_v54 = vld [vmem:[#allocation15 + $0x120] sm:$0xff]  ;;  %v8598_v40 = vld [vmem:[#allocation15 + $0xd8] sm:$0xff] }
 0x61b   :  { %8641 = vmatpush.msrb.mxu0 %v8607_v54 }
 0x61d   :  { %v8368_v53 = vpop.f32.mrf.mxu2  ;;  %8642 = vmatpush.msrb.mxu0 %v8603_v20  ;;  %v8769_v20 = vld [vmem:[#allocation21 + $0x50] sm:$0xff] }
 0x61e   :  { %v8594_v53 = vld [vmem:[#allocation15 + $0xb8] sm:$0xff] }
 0x61f   :  { %8643 = vmatpush.msrb.mxu0 %v8599_v59  ;;  %v8715_v59 = vld [vmem:[#allocation16] sm:$0xff] }
 0x621   :  { %8644 = vmatpush.msrb.mxu0 %v8595_v31  ;;  %v8763_v31 = vld [vmem:[#allocation21 + $0x20] sm:$0xff] }
 0x623   :  { %v8405_v4 = vpop.f32.mrf.mxu1 }
 0x624   :  { %v8406_v55 = vadd.f32 %v8405_v4, %v8393_v24  ;;  %v8591_v24 = vld [vmem:[#allocation15 + $0xa0] sm:$0xff]  ;;  %v8592_v4 = vld [vmem:[#allocation15 + $0xa8] sm:$0xff] }
 0x625   :  { %8645 = vmatpush.msrb.mxu0 %v8591_v24  ;;  %8665 = vmatpush.msra.mxu1 %v8592_v4 }
 0x627   :  { %8646 = vmatpush.msrb.mxu0 %v8587_v39 }
 0x62b   :  { %v8407_v27 = vpop.f32.mrf.mxu1 }
 0x62c   :  { %v8589_v27 = vld [vmem:[#allocation15 + $0x90] sm:$0xff] }
 0x62d   :  { %v8431_v21 = vpop.f32.mrf.mxu3 }
 0x635   :  { %v8433_v30 = vpop.f32.mrf.mxu3 }
 0x636   :  { %v8590_v30 = vld [vmem:[#allocation15 + $0x98] sm:$0xff] }
 0x639   :  { %v15174_v7 = vpop.f32.mrf.mxu0 }
 0x63b   :  { %v8418_v45 = vpop.f32.mrf.mxu2 }
 0x63c   :  { %v8419_v12 = vadd.f32 %v8418_v45, %v8406_v55  ;;  %v8593_v55 = vld [vmem:[#allocation15 + $0xb0] sm:$0xff] }
 0x63d   :  { %8685 = vmatpush.msra.mxu2 %v8593_v55  ;;  %v8718_v55 = vld [vmem:[#allocation16 + $0x18] sm:$0xff] }
 0x63e   :  { %v8432_v62 = vadd.f32 %v8431_v21, %v8419_v12  ;;  %v8588_v21 = vld [vmem:[#allocation15 + $0x88] sm:$0xff]  ;;  %v8583_v12 = vld [vmem:[#allocation15 + $0x60] sm:$0xff] }
 0x63f   :  { %8666 = vmatpush.msra.mxu1 %v8588_v21  ;;  %8686 = vmatpush.msra.mxu2 %v8589_v27 }
 0x640   :  { %vm8545_vm8 = vcmp.ge.f32.partialorder %v8432_v62, 0.0  ;;  %v8554_v49 = vmul.f32 %v15038_v51, %v8432_v62  ;;  %8647 = vmatpush.msrb.mxu0 %v8583_v12  ;;  %v8761_v12 = vld [vmem:[#allocation21 + $0x10] sm:$0xff] }
 0x641   :  { %v8498_v28 = vpop.f32.mrf.mxu0 }
 0x642   :  { %v8562_v44 = vsel %vm8545_vm8, %v8432_v62, %v8554_v49  ;;  %v8584_v62 = vld [vmem:[#allocation15 + $0x68] sm:$0xff]  ;;  %v8585_v49 = vld [vmem:[#allocation15 + $0x70] sm:$0xff]  ;;  %8648 = vmatpush.msrb.mxu0 %v8579_v3  ;;  %v5138_v28 = vperm.slane %v15150_v14, 7 }
 0x643   :  { %v15177_v46 = vpop.f32.mrf.mxu1  ;;  %v15179_v41 = vmax.f32 %v8568_v32, %v8562_v44  ;;  %v8420_v10 = vpop.f32.mrf.mxu2  ;;  %v8606_v32 = vld [vmem:[#allocation15 + $0x118] sm:$0xff]  ;;  %8667 = vmatpush.msra.mxu1 %v8584_v62  ;;  %8687 = vmatpush.msra.mxu2 %v8585_v49  ;;  %v8576_v44 = vld [vmem:[#allocation15 + $0x28] sm:$0xff] }
 0x644   :  { %8702 = vmatpush.msrb.mxu3 %v8606_v32  ;;  %8649 = vmatpush.msrb.mxu0 %v8575_v11  ;;  %v8572_v10 = vld [vmem:[#allocation15 + $0x8] sm:$0xff]  ;;  %v8445_v17 = vadd.f32 %v15172_v19, %v5138_v28 }
 0x645   :  { %8668 = vmatpush.msra.mxu1 %v8580_v56  ;;  %8688 = vmatpush.msra.mxu2 %v8581_v22  ;;  %v8760_v62 = vld [vmem:[#allocation21 + $0x8] sm:$0xff]  ;;  %v8759_v49 = vld [vmem:[#allocation21] sm:$0xff]  ;;  %v8756_v56 = vstv %s8825_s24 }
 0x646   :  { %8703 = vmatpush.msrb.mxu3 %v8602_v37  ;;  %8650 = vmatpush.msrb.mxu0 %v8571_v34  ;;  %v8458_v38 = vadd.f32 %v15177_v46, %v8445_v17  ;;  %v8774_v46 = vld [vmem:[#allocation21 + $0x78] sm:$0xff]  ;;  %v8764_v37 = vld [vmem:[#allocation21 + $0x28] sm:$0xff] }
 0x647   :  { %8669 = vmatpush.msra.mxu1 %v8576_v44  ;;  %8689 = vmatpush.msra.mxu2 %v8577_v48  ;;  %v14001_v44 = vld [vmem:[#allocation22] ss:$0 sm:$0xff] }
 0x648   :  { %8704 = vmatpush.msrb.mxu3 %v8598_v40  ;;  %v8762_v40 = vld [vmem:[#allocation21 + $0x18] sm:$0xff] }
 0x649   :  { %8670 = vmatpush.msra.mxu1 %v8572_v10  ;;  %8690 = vmatpush.msra.mxu2 %v8573_v6 }
 0x64a   :  { %8705 = vmatpush.msrb.mxu3 %v8594_v53 }
 0x64b   :  { %v8459_v25 = vpop.f32.mrf.mxu1  ;;  %8779 = vmatpush.msrb.mxu1 %v8774_v46 }
 0x64c   :  { %8706 = vmatpush.msrb.mxu3 %v8590_v30 }
 0x64d   :  { %v15181_v58 = vpop.f32.mrf.mxu3 }
 0x64e   :  { %8707 = vmatpush.msrb.mxu3 %v8586_v0  ;;  %v14000_v0 = vld [vmem:[#allocation19] ss:$0 sm:$0xff] }
 0x650   :  { %8708 = vmatpush.msrb.mxu3 %v8582_v35 }
 0x652   :  { %8709 = vmatpush.msrb.mxu3 %v8578_v5 }
 0x654   :  { %8710 = vmatpush.msrb.mxu3 %v8574_v16 }
 0x655   :  { %v8485_v33 = vpop.f32.mrf.mxu3 }
 0x660   :  { %v8470_v45 = vpop.f32.mrf.mxu2 }
 0x661   :  { %v8471_v15 = vadd.f32 %v8470_v45, %v8458_v38  ;;  %v8726_v45 = vld [vmem:[#allocation18] sm:$0x3] }
 0x663   :  { %v8484_v13 = vadd.f32 %v15181_v58, %v8471_v15  ;;  %v8773_v58 = vld [vmem:[#allocation21 + $0x70] sm:$0xff] }
 0x664   :  { %8780 = vmatpush.msrb.mxu1 %v8773_v58 }
 0x665   :  { %v8497_v9 = vadd.f32 %v15174_v7, %v8484_v13  ;;  %v8771_v7 = vld [vmem:[#allocation21 + $0x60] sm:$0xff] }
 0x666   :  { %8781 = vmatpush.msrb.mxu1 %v8772_v50 }
 0x668   :  { %v8472_v61 = vpop.f32.mrf.mxu2  ;;  %8782 = vmatpush.msrb.mxu1 %v8771_v7 }
 0x66a   :  { %8783 = vmatpush.msrb.mxu1 %v8770_v47 }
 0x66c   :  { %8784 = vmatpush.msrb.mxu1 %v8769_v20 }
 0x66e   :  { %v8509_v36 = vpop.f32.mrf.mxu1 }
 0x66f   :  { %v8510_v63 = vadd.f32 %v8509_v36, %v8497_v9 }
 0x676   :  { %v8511_v8 = vpop.f32.mrf.mxu1 }
 0x678   :  { %v8535_v23 = vpop.f32.mrf.mxu3 }
 0x680   :  { %v8537_v60 = vpop.f32.mrf.mxu3 }
 0x686   :  { %v8522_v57 = vpop.f32.mrf.mxu2 }
 0x687   :  { %v8523_v2 = vadd.f32 %v8522_v57, %v8510_v63 }
 0x689   :  { %v8536_v25 = vadd.f32 %v8535_v23, %v8523_v2 }
 0x68b   :  { %vm8546_vm9 = vcmp.ge.f32.partialorder %v8536_v25, 0.0  ;;  %v8555_v14 = vmul.f32 %v15038_v51, %v8536_v25  ;;  %v8768_v51 = vld [vmem:[#allocation21 + $0x48] sm:$0xff] }
 0x68c   :  { %8785 = vmatpush.msrb.mxu1 %v8768_v51 }
 0x68d   :  { %v8563_v54 = vsel %vm8546_vm9, %v8536_v25, %v8555_v14 }
 0x68e   :  { %v8570_v19 = vmax.f32 %v15179_v41, %v8563_v54  ;;  %v8524_v26 = vpop.f32.mrf.mxu2  ;;  %v8766_v41 = vld [vmem:[#allocation21 + $0x38] sm:$0xff]  ;;  %8786 = vmatpush.msrb.mxu1 %v8767_v52 }
 0x690   :  { %8651 = vmatmul.f32.vlgmr.msrb.gmra.mxu0 %v8570_v19  ;;  %8671 = vmatmul.f32.vlgmr.msra.gmra.mxu1 %v8570_v19 }
 0x691   :  { %8691 = vmatmul.f32.vlgmr.msra.gmra.mxu2 %v8570_v19  ;;  %8711 = vmatmul.f32.vlgmr.msrb.gmra.mxu3 %v8570_v19 }
 0x692   :  { %8787 = vmatpush.msrb.mxu1 %v8766_v41 }
 0x694   :  { %8788 = vmatpush.msrb.mxu1 %v8765_v1 }
 0x696   :  { %8789 = vmatpush.msrb.mxu1 %v8764_v37 }
 0x698   :  { %8790 = vmatpush.msrb.mxu1 %v8763_v31 }
 0x69a   :  { %8791 = vmatpush.msrb.mxu1 %v8762_v40 }
 0x69c   :  { %8792 = vmatpush.msrb.mxu1 %v8761_v12 }
 0x69e   :  { %8793 = vmatpush.msrb.mxu1 %v8760_v62 }
 0x6a0   :  { %8794 = vmatpush.msrb.mxu1 %v8759_v49 }
 0x70d   :  { %v8652_v32 = vpop.f32.mrf.mxu0  ;;  %v8672_v43 = vpop.f32.mrf.mxu1 }
 0x70e   :  { %v8719_v33 = vmul.f32 %v8715_v59, %v8652_v32  ;;  %v8720_v18 = vmul.f32 %v8716_v29, %v8672_v43 }
 0x710   :  { %v8723_v53 = vadd.f32 %v8720_v18, %v8719_v33 }
 0x714   :  { %v8692_v24 = vpop.f32.mrf.mxu2  ;;  %v8712_v4 = vpop.f32.mrf.mxu3 }
 0x715   :  { %v8721_v39 = vmul.f32 %v8717_v42, %v8692_v24  ;;  %v8722_v27 = vmul.f32 %v8718_v55, %v8712_v4 }
 0x717   :  { %v8724_v21 = vadd.f32 %v8723_v53, %v8721_v39 }
 0x719   :  { %v8725_v30 = vadd.f32 %v8724_v21, %v8722_v27 }
 0x71b   :  { %8750 = vmatpush.msra.mxu0 %v8725_v30 }
 0x71c   :  { %12950 = vmatmul.msk.f32.vlgmr.msra.gmra.mxu0 %vm8731_vm10, %v8726_v45 }
 0x799   :  { %v8752_v3 = vpop.f32.mrf.mxu0 }
 0x79a   :  { %v8753_v22 = vadd.f32 %v14000_v0, %v8752_v3 }
 0x79c   :  { %vm8755_vm11 = vcmp.ge.f32.partialorder %v8753_v22, 0.0  ;;  %v8757_v35 = vmul.f32 %v8756_v56, %v8753_v22 }
 0x79e   :  { %v8758_v11 = vsel %vm8755_vm11, %v8753_v22, %v8757_v35 }
 0x79f   :  { %8795 = vmatmul.f32.vlgmr.msrb.gmra.mxu1 %v8758_v11 }
 0x81c   :  { %v8796_v48 = vpop.f32.mrf.mxu1 }
 0x81d   :  { %v8797_v5 = vadd.f32 %v14001_v44, %v8796_v48 }
 0x81f   :  { %8799 = vst [vmem:[#allocation24] sm:$0x3] %v8797_v5 }
 0x820   :  { %8810 = dma.vmem_to_hbm [thread:$0]  %s8806_s27, 32, %s8808_s9, [#allocation4]  }
 0x821   :  { %14344 = dma.done.wait [#allocation4], 32  }
 0x822   :  { %14345 = vsyncadd [#allocation4], 4294967264 }
 0x823   :  { %8815 = vsyncpa [#allocation3], 1 }
 0x824   :  { %8816 = vsyncpa [#allocation8], 1 }
 0x825   :  { %8817 = vsyncpa [#allocation11], 1 }
 0x826   :  { %8818 = vsyncpa [#allocation14], 1 }
 0x827   :  { %8819 = vsyncpa [#allocation17], 1 }
 0x828   :  { %8820 = vsyncpa [#allocation20], 1 }
 0x829   :  { %8821 = vsyncpa [#allocation23], 1 }
 0x82a   :  { %8822 = vsyncpa [#allocation4], 1 }
 0x82b   :  { %8823 = vsyncpa [#allocation5], 1 }

</bundles_post_ra>
